<compile_context>
chip_gen: v7x
topology: tpu7x:2x2x1
jax: 0.10.0
libtpu: 0.0.40
codegen_flags: <defaults>
</compile_context>

<pallas_src>
import math
import functools

import jax
import jax.numpy as jnp
from jax.experimental import pallas as pl
from jax.experimental.pallas import tpu as pltpu


# -----------------------------------------------------------------------------
# Single fused kernel: GRU encoder + Euler--Maruyama SDE + KL + log-likelihood.
# -----------------------------------------------------------------------------
def _latent_sde_kernel(xs_ref, noise_ref,
                       w_i, w_h, b_i, b_h, w_lin, b_lin,
                       w1z, w1c, b1, w2, b2, w3, b3, wh4, bh4,
                       g1, g1b, g2, g2b,
                       zs_ref, lq_ref, lp_ref,
                       hall_scr, ctx_scr,
                       *, dt, scale, out_size, enc_unroll, sde_unroll):
    T, B, D = xs_ref.shape
    H = w_h.shape[0]
    O = out_size
    f32 = jnp.float32
    sp = jax.nn.softplus

    # ---------------- Phase 1: GRU encoder recurrence -----------------------
    # context = flip(encoder(flip(xs))) == run the GRU from t = T-1 down to 0;
    # only the recurrence lives in the loop, hidden states go to hall_scr.
    wi = w_i[...]; wh = w_h[...]; bi = b_i[...]; bh = b_h[...]

    def enc_step(i, h):
        t = T - 1 - i
        x = xs_ref[t]                                            # (B, D)
        gi = jnp.dot(x, wi, preferred_element_type=f32) + bi     # (B, 3H) [r|z|n]
        gh = jnp.dot(h, wh, preferred_element_type=f32) + bh     # (B, 3H)
        rz = jax.nn.sigmoid(gi[:, :2 * H] + gh[:, :2 * H])       # one wide EUP slab
        r, zg = rz[:, :H], rz[:, H:]
        n = jnp.tanh(gi[:, 2 * H:] + r * gh[:, 2 * H:])
        h_new = (1.0 - zg) * n + zg * h
        row = pl.multiple_of(t * B, 8)                           # B % 8 == 0
        hall_scr[pl.ds(row, B), :] = h_new
        return h_new

    jax.lax.fori_loop(0, T, enc_step, jnp.zeros((B, H), f32), unroll=enc_unroll)

    # Hoisted context projection: one (T*B, H) @ (H, C) MXU matmul (+ bias).
    ctx_scr[...] = (jnp.dot(hall_scr[...], w_lin[...],
                            preferred_element_type=f32) + b_lin[...])

    # ---------------- Phase 2: Euler--Maruyama + pathwise KL ----------------
    z0 = xs_ref[0]
    zs_ref[0] = z0

    w1z_v = w1z[...]; w1c_v = w1c[...]; b1_v = b1[...]
    w2_v = w2[...]; b2_v = b2[...]; w3_v = w3[...]; b3_v = b3[...]
    wh4_v = wh4[...]; bh4_v = bh4[...]
    g1_v = g1[...]; g1b_v = g1b[...]; g2_v = g2[...]; g2b_v = g2b[...]

    def sde_step(k, carry):
        z, lq_acc = carry
        # Context index: min(searchsorted(ts, t_k, right=True), T-1) == k+1
        # under the one-Euler-step-per-interval assumption.
        row = pl.multiple_of((k + 1) * B, 8)
        c = ctx_scr[pl.ds(row, B), :]                                    # (B, C)

        # Fused drift nets: activations carry [f-half | h-half] side by side.
        a1 = sp(jnp.dot(z, w1z_v, preferred_element_type=f32)
                + jnp.dot(c, w1c_v, preferred_element_type=f32) + b1_v)  # (B,2H)
        a2 = sp(jnp.dot(a1, w2_v, preferred_element_type=f32) + b2_v)    # (B,2H)
        a3 = jnp.dot(a2, w3_v, preferred_element_type=f32) + b3_v        # (B,H+D)
        h3 = sp(a3[:, :H])
        f = a3[:, H:]                                                    # prior drift
        hdrift = jnp.dot(h3, wh4_v, preferred_element_type=f32) + bh4_v  # (B, D)

        # Diagonal diffusion: D independent Linear(1,H)-softplus-Linear(H,1)-
        # softplus nets folded into block matrices (D*H = full lane row).
        hid = sp(jnp.dot(z, g1_v, preferred_element_type=f32) + g1b_v)   # (B, D*H)
        g = sp(jnp.dot(hid, g2_v, preferred_element_type=f32) + g2b_v)   # (B, D)

        # softplus output > 0 -> a plain max is a sign-safe _stable_division.
        g_safe = jnp.maximum(g, 1e-7)
        u = (f - hdrift) / g_safe            # exact divide: feeds the KL term
        lq_acc = lq_acc + u * u              # dense (B, D) accumulation, no RMW

        z_new = z + f * dt + g * noise_ref[k]
        zs_ref[k + 1] = z_new
        return z_new, lq_acc

    _, lq_acc = jax.lax.fori_loop(
        0, T - 1, sde_step, (z0, jnp.zeros((B, D), f32)), unroll=sde_unroll)
    lq_ref[...] = (0.5 * dt) * jnp.sum(lq_acc, axis=1, keepdims=True)    # (B, 1)

    # ---------------- Phase 3: Gaussian log-likelihood (one dense pass) -----
    lane = jax.lax.broadcasted_iota(jnp.int32, (B, D), 1)
    out_mask = lane >= (D - O)                                   # last O features
    rscale = 1.0 / scale
    lp_const = -math.log(scale) - 0.5 * math.log(2.0 * math.pi)
    diff = (xs_ref[...] - zs_ref[...]) * rscale                  # (T, B, D)
    sq = jnp.sum(diff * diff, axis=0)                            # (B, D) sum over T
    lp_bd = jnp.where(out_mask, -0.5 * sq + T * lp_const, 0.0)   # (B, D)
    lp_ref[...] = jnp.sum(lp_bd, axis=1, keepdims=True)          # (B, 1)


# -----------------------------------------------------------------------------
# Parameter init (deterministic, PyTorch-style uniform fan-in init), with the
# fused / block-diagonal weight layout used by the kernel.
# -----------------------------------------------------------------------------
def init_params(key, input_size, context_size, hidden_size, output_size):
    D, C, H, O = input_size, context_size, hidden_size, output_size
    keys = iter(jax.random.split(key, 64))

    def unif(shape, bound):
        return jax.random.uniform(next(keys), shape, jnp.float32, -bound, bound)

    # --- GRU (gate order r, z, n as in torch.nn.GRU) + Linear head ----------
    kH = 1.0 / math.sqrt(H)
    enc = dict(
        w_i=unif((D, 3 * H), kH), w_h=unif((H, 3 * H), kH),
        b_i=unif((1, 3 * H), kH), b_h=unif((1, 3 * H), kH),
        w_lin=unif((H, C), kH), b_lin=unif((1, C), kH),
    )

    def lin(n_in, n_out):
        b = 1.0 / math.sqrt(n_in)
        return unif((n_in, n_out), b), unif((1, n_out), b)

    wf1, bf1 = lin(D + C, H)     # f_net layer 1 acts on cat(y, ctx)
    wf2, bf2 = lin(H, H)
    wf3, bf3 = lin(H, D)
    wh1, bh1 = lin(D, H)
    wh2, bh2 = lin(H, H)
    wh3, bh3 = lin(H, H)
    wh4, bh4 = lin(H, D)

    # Fused drift weights: activations carry [f | h] halves side by side.
    w1z = jnp.concatenate([wf1[:D], wh1], axis=1)                        # (D, 2H)
    w1c = jnp.concatenate([wf1[D:], jnp.zeros((C, H), jnp.float32)], 1)  # (C, 2H)
    b1 = jnp.concatenate([bf1, bh1], axis=1)                             # (1, 2H)
    w2 = (jnp.zeros((2 * H, 2 * H), jnp.float32)
          .at[:H, :H].set(wf2).at[H:, H:].set(wh2))                      # block diag
    b2 = jnp.concatenate([bf2, bh2], axis=1)
    # Layer 3 emits [h3-pre (H) | f (D)].
    w3 = (jnp.zeros((2 * H, H + D), jnp.float32)
          .at[H:, :H].set(wh3).at[:D, H:].set(wf3)
          if False else
          jnp.zeros((2 * H, H + D), jnp.float32)
          .at[H:, :H].set(wh3).at[:H, H:].set(wf3))
    b3 = jnp.concatenate([bh3, bf3], axis=1)                             # (1, H+D)

    # --- D independent diffusion nets folded into block matrices ------------
    g1w = unif((D, H), 1.0)                     # Linear(1, H) weights, fan_in=1
    g1b_rows = unif((D, H), 1.0)
    g2w = unif((D, H), 1.0 / math.sqrt(H))      # Linear(H, 1) weights
    g2b = unif((1, D), 1.0 / math.sqrt(H))
    g1 = jnp.zeros((D, D * H), jnp.float32)
    g2 = jnp.zeros((D * H, D), jnp.float32)
    for d in range(D):
        g1 = g1.at[d, d * H:(d + 1) * H].set(g1w[d])
        g2 = g2.at[d * H:(d + 1) * H, d].set(g2w[d])
    g1b = g1b_rows.reshape(1, D * H)

    sde = dict(w1z=w1z, w1c=w1c, b1=b1, w2=w2, b2=b2, w3=w3, b3=b3,
               wh4=wh4, bh4=bh4, g1=g1, g1b=g1b, g2=g2, g2b=g2b)
    return dict(encoder=enc, sde=sde, output_size=O, hidden_size=H,
                context_size=C)


# -----------------------------------------------------------------------------
# Full forward pass (mirrors LatentSDE.forward).
# -----------------------------------------------------------------------------
def latent_sde_forward(params, xs, ts, dt, noise_key, batch_block=None,
                       scale=0.01, vmem_limit_bytes=32 * 1024 * 1024):
    del ts  # one Euler step per ts interval (see module-level assumption)
    T, B, D = xs.shape
    O = params["output_size"]
    H = params["hidden_size"]
    C = params["context_size"]
    enc, sde = params["encoder"], params["sde"]

    if batch_block is None:
        # Default: whole batch in one block, grid=(1,).  v5e/v6e have a single
        # TensorCore so a batch grid split is a serial loop with smaller M.
        # On v7x pass batch_block = B // 2 with >= 128 rows per block.
        batch_block = B
    assert B % batch_block == 0, "batch must be divisible by batch_block"
    assert batch_block % 8 == 0, "batch_block must be a multiple of 8 (f32 sublanes)"
    nb = B // batch_block
    Bb = batch_block

    # Brownian increments for each Euler step (single RNG op + single DMA).
    noise = jnp.sqrt(jnp.asarray(dt, jnp.float32)) * jax.random.normal(
        noise_key, (T - 1, B, D), dtype=jnp.float32)

    enames = ("w_i", "w_h", "b_i", "b_h", "w_lin", "b_lin")
    snames = ("w1z", "w1c", "b1", "w2", "b2", "w3", "b3", "wh4", "bh4",
              "g1", "g1b", "g2", "g2b")
    plist = [enc[k] for k in enames] + [sde[k] for k in snames]

    def full_spec(a):
        nd = a.ndim
        return pl.BlockSpec(a.shape, lambda b, _nd=nd: (0,) * _nd)

    # Bounded unroll: full unroll only for short sequences; at realistic T a
    # partial unroll keeps LLO scheduling visibility without vreg blowup.
    enc_unroll = True if T <= 16 else 8
    sde_unroll = True if T <= 16 else 8

    kernel = functools.partial(_latent_sde_kernel, dt=float(dt),
                               scale=float(scale), out_size=O,
                               enc_unroll=enc_unroll, sde_unroll=sde_unroll)

    zs_full, lq_b, lp_b = pl.pallas_call(
        kernel,
        out_shape=(jax.ShapeDtypeStruct((T, B, D), jnp.float32),
                   jax.ShapeDtypeStruct((B, 1), jnp.float32),
                   jax.ShapeDtypeStruct((B, 1), jnp.float32)),
        grid_spec=pltpu.PrefetchScalarGridSpec(
            num_scalar_prefetch=0,
            grid=(nb,),                                  # parallel batch axis
            in_specs=[pl.BlockSpec((T, Bb, D), lambda b: (0, b, 0)),
                      pl.BlockSpec((T - 1, Bb, D), lambda b: (0, b, 0))]
                     + [full_spec(a) for a in plist],
            out_specs=(pl.BlockSpec((T, Bb, D), lambda b: (0, b, 0)),
                       pl.BlockSpec((Bb, 1), lambda b: (b, 0)),
                       pl.BlockSpec((Bb, 1), lambda b: (b, 0))),
            scratch_shapes=[pltpu.VMEM((T * Bb, H), jnp.float32),   # GRU hiddens
                            pltpu.VMEM((T * Bb, C), jnp.float32)],  # context
        ),
        compiler_params=pltpu.CompilerParams(
            dimension_semantics=("parallel",),
            vmem_limit_bytes=vmem_limit_bytes),
    )(xs, noise, *plist)

    logqp = jnp.mean(lq_b[:, 0])            # sum over time done in-kernel
    log_pxs = jnp.mean(lp_b[:, 0])          # sum over (time, feature) in-kernel
    zs = zs_full[..., -O:]                  # (T, B, O)
    return log_pxs, logqp, zs


if __name__ == "__main__":
    key = jax.random.PRNGKey(0)
    k_par, k_x, k_bm = jax.random.split(key, 3)

    input_size, context_size, hidden_size, output_size = 4, 8, 32, 3
    T, B = 8, 32                 # B a multiple of 8 (full f32 sublanes).
    # NOTE: for real MXU utilization use B (or batch_block) >= 128 rows per
    # block (>= 256 on v6e/v7x); kept small here for a quick smoke test.
    dt = 0.1
    ts = jnp.arange(T, dtype=jnp.float32) * dt

    params = init_params(k_par, input_size, context_size, hidden_size,
                         output_size)
    xs = jax.random.normal(k_x, (T, B, input_size), dtype=jnp.float32)

    # Default batch_block=B -> grid=(1,): correct choice for single-TC
    # v5e/v6e; on v7x call with batch_block=B//2 once B is large enough.
    log_pxs, logqp, zs = latent_sde_forward(params, xs, ts, dt, k_bm)
    jax.block_until_ready((log_pxs, logqp, zs))

    assert zs.shape == (T, B, output_size)
    assert log_pxs.shape == () and logqp.shape == ()
    assert bool(jnp.all(jnp.isfinite(zs)))
    assert bool(jnp.isfinite(log_pxs)) and bool(jnp.isfinite(logqp))
    print("KERNEL_OK")
</pallas_src>

<mosaic_0001>
module attributes {stable_mosaic.version = 11 : i64} {
  func.func @_latent_sde_kernel(%arg0: i32, %arg1: memref<8x32x4xf32, #tpu.memory_space<vmem>>, %arg2: memref<7x32x4xf32, #tpu.memory_space<vmem>>, %arg3: memref<4x96xf32, #tpu.memory_space<vmem>>, %arg4: memref<32x96xf32, #tpu.memory_space<vmem>>, %arg5: memref<1x96xf32, #tpu.memory_space<vmem>>, %arg6: memref<1x96xf32, #tpu.memory_space<vmem>>, %arg7: memref<32x8xf32, #tpu.memory_space<vmem>>, %arg8: memref<1x8xf32, #tpu.memory_space<vmem>>, %arg9: memref<4x64xf32, #tpu.memory_space<vmem>>, %arg10: memref<8x64xf32, #tpu.memory_space<vmem>>, %arg11: memref<1x64xf32, #tpu.memory_space<vmem>>, %arg12: memref<64x64xf32, #tpu.memory_space<vmem>>, %arg13: memref<1x64xf32, #tpu.memory_space<vmem>>, %arg14: memref<64x36xf32, #tpu.memory_space<vmem>>, %arg15: memref<1x36xf32, #tpu.memory_space<vmem>>, %arg16: memref<32x4xf32, #tpu.memory_space<vmem>>, %arg17: memref<1x4xf32, #tpu.memory_space<vmem>>, %arg18: memref<4x128xf32, #tpu.memory_space<vmem>>, %arg19: memref<1x128xf32, #tpu.memory_space<vmem>>, %arg20: memref<128x4xf32, #tpu.memory_space<vmem>>, %arg21: memref<1x4xf32, #tpu.memory_space<vmem>>, %arg22: memref<8x32x4xf32, #tpu.memory_space<vmem>>, %arg23: memref<32x1xf32, #tpu.memory_space<vmem>>, %arg24: memref<32x1xf32, #tpu.memory_space<vmem>>, %arg25: memref<256x32xf32, #tpu.memory_space<vmem>>, %arg26: memref<256x8xf32, #tpu.memory_space<vmem>>) attributes {dimension_semantics = [#tpu.dimension_semantics<parallel>], iteration_bounds = array<i64: 1>, scalar_prefetch = 0 : i64, scratch_operands = 2 : i64, tpu.core_type = #tpu.core_type<tc>, window_params = [{transform_indices = @transform_0, window_bounds = array<i64: 8, 32, 4>}, {transform_indices = @transform_1, window_bounds = array<i64: 7, 32, 4>}, {pipeline_mode = #tpu.pipeline_mode<synchronous>, transform_indices = @transform_2, window_bounds = array<i64: 4, 96>}, {pipeline_mode = #tpu.pipeline_mode<synchronous>, transform_indices = @transform_3, window_bounds = array<i64: 32, 96>}, {pipeline_mode = #tpu.pipeline_mode<synchronous>, transform_indices = @transform_4, window_bounds = array<i64: 1, 96>}, {pipeline_mode = #tpu.pipeline_mode<synchronous>, transform_indices = @transform_5, window_bounds = array<i64: 1, 96>}, {pipeline_mode = #tpu.pipeline_mode<synchronous>, transform_indices = @transform_6, window_bounds = array<i64: 32, 8>}, {pipeline_mode = #tpu.pipeline_mode<synchronous>, transform_indices = @transform_7, window_bounds = array<i64: 1, 8>}, {pipeline_mode = #tpu.pipeline_mode<synchronous>, transform_indices = @transform_8, window_bounds = array<i64: 4, 64>}, {pipeline_mode = #tpu.pipeline_mode<synchronous>, transform_indices = @transform_9, window_bounds = array<i64: 8, 64>}, {pipeline_mode = #tpu.pipeline_mode<synchronous>, transform_indices = @transform_10, window_bounds = array<i64: 1, 64>}, {pipeline_mode = #tpu.pipeline_mode<synchronous>, transform_indices = @transform_11, window_bounds = array<i64: 64, 64>}, {pipeline_mode = #tpu.pipeline_mode<synchronous>, transform_indices = @transform_12, window_bounds = array<i64: 1, 64>}, {pipeline_mode = #tpu.pipeline_mode<synchronous>, transform_indices = @transform_13, window_bounds = array<i64: 64, 36>}, {pipeline_mode = #tpu.pipeline_mode<synchronous>, transform_indices = @transform_14, window_bounds = array<i64: 1, 36>}, {pipeline_mode = #tpu.pipeline_mode<synchronous>, transform_indices = @transform_15, window_bounds = array<i64: 32, 4>}, {pipeline_mode = #tpu.pipeline_mode<synchronous>, transform_indices = @transform_16, window_bounds = array<i64: 1, 4>}, {pipeline_mode = #tpu.pipeline_mode<synchronous>, transform_indices = @transform_17, window_bounds = array<i64: 4, 128>}, {pipeline_mode = #tpu.pipeline_mode<synchronous>, transform_indices = @transform_18, window_bounds = array<i64: 1, 128>}, {pipeline_mode = #tpu.pipeline_mode<synchronous>, transform_indices = @transform_19, window_bounds = array<i64: 128, 4>}, {pipeline_mode = #tpu.pipeline_mode<synchronous>, transform_indices = @transform_20, window_bounds = array<i64: 1, 4>}, {transform_indices = @transform_21, window_bounds = array<i64: 8, 32, 4>}, {transform_indices = @transform_22, window_bounds = array<i64: 32, 1>}, {transform_indices = @transform_23, window_bounds = array<i64: 32, 1>}]} {
    %c0 = arith.constant 0 : index
    %c0_0 = arith.constant 0 : index
    %0 = vector.load %arg3[%c0, %c0_0] : memref<4x96xf32, #tpu.memory_space<vmem>>, vector<4x96xf32>
    %c0_1 = arith.constant 0 : index
    %c0_2 = arith.constant 0 : index
    %1 = vector.load %arg4[%c0_1, %c0_2] : memref<32x96xf32, #tpu.memory_space<vmem>>, vector<32x96xf32>
    %c0_3 = arith.constant 0 : index
    %c0_4 = arith.constant 0 : index
    %2 = vector.load %arg5[%c0_3, %c0_4] : memref<1x96xf32, #tpu.memory_space<vmem>>, vector<1x96xf32>
    %c0_5 = arith.constant 0 : index
    %c0_6 = arith.constant 0 : index
    %3 = vector.load %arg6[%c0_5, %c0_6] : memref<1x96xf32, #tpu.memory_space<vmem>>, vector<1x96xf32>
    %cst = arith.constant 0.000000e+00 : f32
    %4 = vector.broadcast %cst : f32 to vector<32x32xf32>
    %c0_i32 = arith.constant 0 : i32
    %c7_i32 = arith.constant 7 : i32
    %5 = arith.subi %c7_i32, %c0_i32 : i32
    %6 = arith.index_cast %5 : i32 to index
    %c0_7 = arith.constant 0 : index
    %c0_8 = arith.constant 0 : index
    %7 = vector.load %arg1[%6, %c0_7, %c0_8] : memref<8x32x4xf32, #tpu.memory_space<vmem>>, vector<1x32x4xf32>
    %8 = vector.shape_cast %7 : vector<1x32x4xf32> to vector<32x4xf32>
    %cst_9 = arith.constant dense<0.000000e+00> : vector<32x96xf32>
    %9 = tpu.matmul %8, %0, %cst_9 {dimension_numbers = #tpu.dot_dimension_numbers<[1], [0], [0], [1], [0, 0, 1, 1], [], []>} : vector<32x4xf32>, vector<4x96xf32>, vector<32x96xf32> -> vector<32x96xf32>
    %10 = vector.broadcast %2 : vector<1x96xf32> to vector<32x96xf32>
    %11 = arith.addf %9, %10 : vector<32x96xf32>
    %cst_10 = arith.constant dense<0.000000e+00> : vector<32x96xf32>
    %12 = tpu.matmul %4, %1, %cst_10 {dimension_numbers = #tpu.dot_dimension_numbers<[1], [0], [0], [1], [0, 0, 1, 1], [], []>} : vector<32x32xf32>, vector<32x96xf32>, vector<32x96xf32> -> vector<32x96xf32>
    %13 = vector.broadcast %3 : vector<1x96xf32> to vector<32x96xf32>
    %14 = arith.addf %12, %13 : vector<32x96xf32>
    %15 = vector.extract_strided_slice %11 {offsets = [0, 0], sizes = [32, 64], strides = [1, 1]} : vector<32x96xf32> to vector<32x64xf32>
    %16 = vector.extract_strided_slice %14 {offsets = [0, 0], sizes = [32, 64], strides = [1, 1]} : vector<32x96xf32> to vector<32x64xf32>
    %17 = arith.addf %15, %16 : vector<32x64xf32>
    %18 = arith.negf %17 : vector<32x64xf32>
    %19 = math.exp %18 : vector<32x64xf32>
    %cst_11 = arith.constant 1.000000e+00 : f32
    %20 = vector.broadcast %cst_11 : f32 to vector<32x64xf32>
    %21 = arith.addf %20, %19 : vector<32x64xf32>
    %22 = arith.divf %20, %21 : vector<32x64xf32>
    %23 = vector.extract_strided_slice %22 {offsets = [0, 0], sizes = [32, 32], strides = [1, 1]} : vector<32x64xf32> to vector<32x32xf32>
    %24 = vector.extract_strided_slice %22 {offsets = [0, 32], sizes = [32, 32], strides = [1, 1]} : vector<32x64xf32> to vector<32x32xf32>
    %25 = vector.extract_strided_slice %11 {offsets = [0, 64], sizes = [32, 32], strides = [1, 1]} : vector<32x96xf32> to vector<32x32xf32>
    %26 = vector.extract_strided_slice %14 {offsets = [0, 64], sizes = [32, 32], strides = [1, 1]} : vector<32x96xf32> to vector<32x32xf32>
    %27 = arith.mulf %23, %26 : vector<32x32xf32>
    %28 = arith.addf %25, %27 : vector<32x32xf32>
    %29 = math.tanh %28 : vector<32x32xf32>
    %cst_12 = arith.constant 1.000000e+00 : f32
    %30 = vector.broadcast %cst_12 : f32 to vector<32x32xf32>
    %31 = arith.subf %30, %24 : vector<32x32xf32>
    %32 = arith.mulf %31, %29 : vector<32x32xf32>
    %33 = arith.mulf %24, %4 : vector<32x32xf32>
    %34 = arith.addf %32, %33 : vector<32x32xf32>
    %c32_i32 = arith.constant 32 : i32
    %35 = arith.muli %5, %c32_i32 : i32
    %36 = tpu.assume_multiple %35, 8 : i32
    %37 = arith.index_cast %36 : i32 to index
    %c0_13 = arith.constant 0 : index
    %38 = vector.load %arg25[%37, %c0_13] : memref<256x32xf32, #tpu.memory_space<vmem>>, vector<32x32xf32>
    tpu.vector_store %arg25[%37, %c0_13], %34 {strides = array<i32>} : memref<256x32xf32, #tpu.memory_space<vmem>>, vector<32x32xf32>,
    %c1_i32 = arith.constant 1 : i32
    %c7_i32_14 = arith.constant 7 : i32
    %39 = arith.subi %c7_i32_14, %c1_i32 : i32
    %40 = arith.index_cast %39 : i32 to index
    %c0_15 = arith.constant 0 : index
    %c0_16 = arith.constant 0 : index
    %41 = vector.load %arg1[%40, %c0_15, %c0_16] : memref<8x32x4xf32, #tpu.memory_space<vmem>>, vector<1x32x4xf32>
    %42 = vector.shape_cast %41 : vector<1x32x4xf32> to vector<32x4xf32>
    %cst_17 = arith.constant dense<0.000000e+00> : vector<32x96xf32>
    %43 = tpu.matmul %42, %0, %cst_17 {dimension_numbers = #tpu.dot_dimension_numbers<[1], [0], [0], [1], [0, 0, 1, 1], [], []>} : vector<32x4xf32>, vector<4x96xf32>, vector<32x96xf32> -> vector<32x96xf32>
    %44 = vector.broadcast %2 : vector<1x96xf32> to vector<32x96xf32>
    %45 = arith.addf %43, %44 : vector<32x96xf32>
    %cst_18 = arith.constant dense<0.000000e+00> : vector<32x96xf32>
    %46 = tpu.matmul %34, %1, %cst_18 {dimension_numbers = #tpu.dot_dimension_numbers<[1], [0], [0], [1], [0, 0, 1, 1], [], []>} : vector<32x32xf32>, vector<32x96xf32>, vector<32x96xf32> -> vector<32x96xf32>
    %47 = vector.broadcast %3 : vector<1x96xf32> to vector<32x96xf32>
    %48 = arith.addf %46, %47 : vector<32x96xf32>
    %49 = vector.extract_strided_slice %45 {offsets = [0, 0], sizes = [32, 64], strides = [1, 1]} : vector<32x96xf32> to vector<32x64xf32>
    %50 = vector.extract_strided_slice %48 {offsets = [0, 0], sizes = [32, 64], strides = [1, 1]} : vector<32x96xf32> to vector<32x64xf32>
    %51 = arith.addf %49, %50 : vector<32x64xf32>
    %52 = arith.negf %51 : vector<32x64xf32>
    %53 = math.exp %52 : vector<32x64xf32>
    %cst_19 = arith.constant 1.000000e+00 : f32
    %54 = vector.broadcast %cst_19 : f32 to vector<32x64xf32>
    %55 = arith.addf %54, %53 : vector<32x64xf32>
    %56 = arith.divf %54, %55 : vector<32x64xf32>
    %57 = vector.extract_strided_slice %56 {offsets = [0, 0], sizes = [32, 32], strides = [1, 1]} : vector<32x64xf32> to vector<32x32xf32>
    %58 = vector.extract_strided_slice %56 {offsets = [0, 32], sizes = [32, 32], strides = [1, 1]} : vector<32x64xf32> to vector<32x32xf32>
    %59 = vector.extract_strided_slice %45 {offsets = [0, 64], sizes = [32, 32], strides = [1, 1]} : vector<32x96xf32> to vector<32x32xf32>
    %60 = vector.extract_strided_slice %48 {offsets = [0, 64], sizes = [32, 32], strides = [1, 1]} : vector<32x96xf32> to vector<32x32xf32>
    %61 = arith.mulf %57, %60 : vector<32x32xf32>
    %62 = arith.addf %59, %61 : vector<32x32xf32>
    %63 = math.tanh %62 : vector<32x32xf32>
    %cst_20 = arith.constant 1.000000e+00 : f32
    %64 = vector.broadcast %cst_20 : f32 to vector<32x32xf32>
    %65 = arith.subf %64, %58 : vector<32x32xf32>
    %66 = arith.mulf %65, %63 : vector<32x32xf32>
    %67 = arith.mulf %58, %34 : vector<32x32xf32>
    %68 = arith.addf %66, %67 : vector<32x32xf32>
    %c32_i32_21 = arith.constant 32 : i32
    %69 = arith.muli %39, %c32_i32_21 : i32
    %70 = tpu.assume_multiple %69, 8 : i32
    %71 = arith.index_cast %70 : i32 to index
    %c0_22 = arith.constant 0 : index
    %72 = vector.load %arg25[%71, %c0_22] : memref<256x32xf32, #tpu.memory_space<vmem>>, vector<32x32xf32>
    tpu.vector_store %arg25[%71, %c0_22], %68 {strides = array<i32>} : memref<256x32xf32, #tpu.memory_space<vmem>>, vector<32x32xf32>,
    %c2_i32 = arith.constant 2 : i32
    %c7_i32_23 = arith.constant 7 : i32
    %73 = arith.subi %c7_i32_23, %c2_i32 : i32
    %74 = arith.index_cast %73 : i32 to index
    %c0_24 = arith.constant 0 : index
    %c0_25 = arith.constant 0 : index
    %75 = vector.load %arg1[%74, %c0_24, %c0_25] : memref<8x32x4xf32, #tpu.memory_space<vmem>>, vector<1x32x4xf32>
    %76 = vector.shape_cast %75 : vector<1x32x4xf32> to vector<32x4xf32>
    %cst_26 = arith.constant dense<0.000000e+00> : vector<32x96xf32>
    %77 = tpu.matmul %76, %0, %cst_26 {dimension_numbers = #tpu.dot_dimension_numbers<[1], [0], [0], [1], [0, 0, 1, 1], [], []>} : vector<32x4xf32>, vector<4x96xf32>, vector<32x96xf32> -> vector<32x96xf32>
    %78 = vector.broadcast %2 : vector<1x96xf32> to vector<32x96xf32>
    %79 = arith.addf %77, %78 : vector<32x96xf32>
    %cst_27 = arith.constant dense<0.000000e+00> : vector<32x96xf32>
    %80 = tpu.matmul %68, %1, %cst_27 {dimension_numbers = #tpu.dot_dimension_numbers<[1], [0], [0], [1], [0, 0, 1, 1], [], []>} : vector<32x32xf32>, vector<32x96xf32>, vector<32x96xf32> -> vector<32x96xf32>
    %81 = vector.broadcast %3 : vector<1x96xf32> to vector<32x96xf32>
    %82 = arith.addf %80, %81 : vector<32x96xf32>
    %83 = vector.extract_strided_slice %79 {offsets = [0, 0], sizes = [32, 64], strides = [1, 1]} : vector<32x96xf32> to vector<32x64xf32>
    %84 = vector.extract_strided_slice %82 {offsets = [0, 0], sizes = [32, 64], strides = [1, 1]} : vector<32x96xf32> to vector<32x64xf32>
    %85 = arith.addf %83, %84 : vector<32x64xf32>
    %86 = arith.negf %85 : vector<32x64xf32>
    %87 = math.exp %86 : vector<32x64xf32>
    %cst_28 = arith.constant 1.000000e+00 : f32
    %88 = vector.broadcast %cst_28 : f32 to vector<32x64xf32>
    %89 = arith.addf %88, %87 : vector<32x64xf32>
    %90 = arith.divf %88, %89 : vector<32x64xf32>
    %91 = vector.extract_strided_slice %90 {offsets = [0, 0], sizes = [32, 32], strides = [1, 1]} : vector<32x64xf32> to vector<32x32xf32>
    %92 = vector.extract_strided_slice %90 {offsets = [0, 32], sizes = [32, 32], strides = [1, 1]} : vector<32x64xf32> to vector<32x32xf32>
    %93 = vector.extract_strided_slice %79 {offsets = [0, 64], sizes = [32, 32], strides = [1, 1]} : vector<32x96xf32> to vector<32x32xf32>
    %94 = vector.extract_strided_slice %82 {offsets = [0, 64], sizes = [32, 32], strides = [1, 1]} : vector<32x96xf32> to vector<32x32xf32>
    %95 = arith.mulf %91, %94 : vector<32x32xf32>
    %96 = arith.addf %93, %95 : vector<32x32xf32>
    %97 = math.tanh %96 : vector<32x32xf32>
    %cst_29 = arith.constant 1.000000e+00 : f32
    %98 = vector.broadcast %cst_29 : f32 to vector<32x32xf32>
    %99 = arith.subf %98, %92 : vector<32x32xf32>
    %100 = arith.mulf %99, %97 : vector<32x32xf32>
    %101 = arith.mulf %92, %68 : vector<32x32xf32>
    %102 = arith.addf %100, %101 : vector<32x32xf32>
    %c32_i32_30 = arith.constant 32 : i32
    %103 = arith.muli %73, %c32_i32_30 : i32
    %104 = tpu.assume_multiple %103, 8 : i32
    %105 = arith.index_cast %104 : i32 to index
    %c0_31 = arith.constant 0 : index
    %106 = vector.load %arg25[%105, %c0_31] : memref<256x32xf32, #tpu.memory_space<vmem>>, vector<32x32xf32>
    tpu.vector_store %arg25[%105, %c0_31], %102 {strides = array<i32>} : memref<256x32xf32, #tpu.memory_space<vmem>>, vector<32x32xf32>,
    %c3_i32 = arith.constant 3 : i32
    %c7_i32_32 = arith.constant 7 : i32
    %107 = arith.subi %c7_i32_32, %c3_i32 : i32
    %108 = arith.index_cast %107 : i32 to index
    %c0_33 = arith.constant 0 : index
    %c0_34 = arith.constant 0 : index
    %109 = vector.load %arg1[%108, %c0_33, %c0_34] : memref<8x32x4xf32, #tpu.memory_space<vmem>>, vector<1x32x4xf32>
    %110 = vector.shape_cast %109 : vector<1x32x4xf32> to vector<32x4xf32>
    %cst_35 = arith.constant dense<0.000000e+00> : vector<32x96xf32>
    %111 = tpu.matmul %110, %0, %cst_35 {dimension_numbers = #tpu.dot_dimension_numbers<[1], [0], [0], [1], [0, 0, 1, 1], [], []>} : vector<32x4xf32>, vector<4x96xf32>, vector<32x96xf32> -> vector<32x96xf32>
    %112 = vector.broadcast %2 : vector<1x96xf32> to vector<32x96xf32>
    %113 = arith.addf %111, %112 : vector<32x96xf32>
    %cst_36 = arith.constant dense<0.000000e+00> : vector<32x96xf32>
    %114 = tpu.matmul %102, %1, %cst_36 {dimension_numbers = #tpu.dot_dimension_numbers<[1], [0], [0], [1], [0, 0, 1, 1], [], []>} : vector<32x32xf32>, vector<32x96xf32>, vector<32x96xf32> -> vector<32x96xf32>
    %115 = vector.broadcast %3 : vector<1x96xf32> to vector<32x96xf32>
    %116 = arith.addf %114, %115 : vector<32x96xf32>
    %117 = vector.extract_strided_slice %113 {offsets = [0, 0], sizes = [32, 64], strides = [1, 1]} : vector<32x96xf32> to vector<32x64xf32>
    %118 = vector.extract_strided_slice %116 {offsets = [0, 0], sizes = [32, 64], strides = [1, 1]} : vector<32x96xf32> to vector<32x64xf32>
    %119 = arith.addf %117, %118 : vector<32x64xf32>
    %120 = arith.negf %119 : vector<32x64xf32>
    %121 = math.exp %120 : vector<32x64xf32>
    %cst_37 = arith.constant 1.000000e+00 : f32
    %122 = vector.broadcast %cst_37 : f32 to vector<32x64xf32>
    %123 = arith.addf %122, %121 : vector<32x64xf32>
    %124 = arith.divf %122, %123 : vector<32x64xf32>
    %125 = vector.extract_strided_slice %124 {offsets = [0, 0], sizes = [32, 32], strides = [1, 1]} : vector<32x64xf32> to vector<32x32xf32>
    %126 = vector.extract_strided_slice %124 {offsets = [0, 32], sizes = [32, 32], strides = [1, 1]} : vector<32x64xf32> to vector<32x32xf32>
    %127 = vector.extract_strided_slice %113 {offsets = [0, 64], sizes = [32, 32], strides = [1, 1]} : vector<32x96xf32> to vector<32x32xf32>
    %128 = vector.extract_strided_slice %116 {offsets = [0, 64], sizes = [32, 32], strides = [1, 1]} : vector<32x96xf32> to vector<32x32xf32>
    %129 = arith.mulf %125, %128 : vector<32x32xf32>
    %130 = arith.addf %127, %129 : vector<32x32xf32>
    %131 = math.tanh %130 : vector<32x32xf32>
    %cst_38 = arith.constant 1.000000e+00 : f32
    %132 = vector.broadcast %cst_38 : f32 to vector<32x32xf32>
    %133 = arith.subf %132, %126 : vector<32x32xf32>
    %134 = arith.mulf %133, %131 : vector<32x32xf32>
    %135 = arith.mulf %126, %102 : vector<32x32xf32>
    %136 = arith.addf %134, %135 : vector<32x32xf32>
    %c32_i32_39 = arith.constant 32 : i32
    %137 = arith.muli %107, %c32_i32_39 : i32
    %138 = tpu.assume_multiple %137, 8 : i32
    %139 = arith.index_cast %138 : i32 to index
    %c0_40 = arith.constant 0 : index
    %140 = vector.load %arg25[%139, %c0_40] : memref<256x32xf32, #tpu.memory_space<vmem>>, vector<32x32xf32>
    tpu.vector_store %arg25[%139, %c0_40], %136 {strides = array<i32>} : memref<256x32xf32, #tpu.memory_space<vmem>>, vector<32x32xf32>,
    %c4_i32 = arith.constant 4 : i32
    %c7_i32_41 = arith.constant 7 : i32
    %141 = arith.subi %c7_i32_41, %c4_i32 : i32
    %142 = arith.index_cast %141 : i32 to index
    %c0_42 = arith.constant 0 : index
    %c0_43 = arith.constant 0 : index
    %143 = vector.load %arg1[%142, %c0_42, %c0_43] : memref<8x32x4xf32, #tpu.memory_space<vmem>>, vector<1x32x4xf32>
    %144 = vector.shape_cast %143 : vector<1x32x4xf32> to vector<32x4xf32>
    %cst_44 = arith.constant dense<0.000000e+00> : vector<32x96xf32>
    %145 = tpu.matmul %144, %0, %cst_44 {dimension_numbers = #tpu.dot_dimension_numbers<[1], [0], [0], [1], [0, 0, 1, 1], [], []>} : vector<32x4xf32>, vector<4x96xf32>, vector<32x96xf32> -> vector<32x96xf32>
    %146 = vector.broadcast %2 : vector<1x96xf32> to vector<32x96xf32>
    %147 = arith.addf %145, %146 : vector<32x96xf32>
    %cst_45 = arith.constant dense<0.000000e+00> : vector<32x96xf32>
    %148 = tpu.matmul %136, %1, %cst_45 {dimension_numbers = #tpu.dot_dimension_numbers<[1], [0], [0], [1], [0, 0, 1, 1], [], []>} : vector<32x32xf32>, vector<32x96xf32>, vector<32x96xf32> -> vector<32x96xf32>
    %149 = vector.broadcast %3 : vector<1x96xf32> to vector<32x96xf32>
    %150 = arith.addf %148, %149 : vector<32x96xf32>
    %151 = vector.extract_strided_slice %147 {offsets = [0, 0], sizes = [32, 64], strides = [1, 1]} : vector<32x96xf32> to vector<32x64xf32>
    %152 = vector.extract_strided_slice %150 {offsets = [0, 0], sizes = [32, 64], strides = [1, 1]} : vector<32x96xf32> to vector<32x64xf32>
    %153 = arith.addf %151, %152 : vector<32x64xf32>
    %154 = arith.negf %153 : vector<32x64xf32>
    %155 = math.exp %154 : vector<32x64xf32>
    %cst_46 = arith.constant 1.000000e+00 : f32
    %156 = vector.broadcast %cst_46 : f32 to vector<32x64xf32>
    %157 = arith.addf %156, %155 : vector<32x64xf32>
    %158 = arith.divf %156, %157 : vector<32x64xf32>
    %159 = vector.extract_strided_slice %158 {offsets = [0, 0], sizes = [32, 32], strides = [1, 1]} : vector<32x64xf32> to vector<32x32xf32>
    %160 = vector.extract_strided_slice %158 {offsets = [0, 32], sizes = [32, 32], strides = [1, 1]} : vector<32x64xf32> to vector<32x32xf32>
    %161 = vector.extract_strided_slice %147 {offsets = [0, 64], sizes = [32, 32], strides = [1, 1]} : vector<32x96xf32> to vector<32x32xf32>
    %162 = vector.extract_strided_slice %150 {offsets = [0, 64], sizes = [32, 32], strides = [1, 1]} : vector<32x96xf32> to vector<32x32xf32>
    %163 = arith.mulf %159, %162 : vector<32x32xf32>
    %164 = arith.addf %161, %163 : vector<32x32xf32>
    %165 = math.tanh %164 : vector<32x32xf32>
    %cst_47 = arith.constant 1.000000e+00 : f32
    %166 = vector.broadcast %cst_47 : f32 to vector<32x32xf32>
    %167 = arith.subf %166, %160 : vector<32x32xf32>
    %168 = arith.mulf %167, %165 : vector<32x32xf32>
    %169 = arith.mulf %160, %136 : vector<32x32xf32>
    %170 = arith.addf %168, %169 : vector<32x32xf32>
    %c32_i32_48 = arith.constant 32 : i32
    %171 = arith.muli %141, %c32_i32_48 : i32
    %172 = tpu.assume_multiple %171, 8 : i32
    %173 = arith.index_cast %172 : i32 to index
    %c0_49 = arith.constant 0 : index
    %174 = vector.load %arg25[%173, %c0_49] : memref<256x32xf32, #tpu.memory_space<vmem>>, vector<32x32xf32>
    tpu.vector_store %arg25[%173, %c0_49], %170 {strides = array<i32>} : memref<256x32xf32, #tpu.memory_space<vmem>>, vector<32x32xf32>,
    %c5_i32 = arith.constant 5 : i32
    %c7_i32_50 = arith.constant 7 : i32
    %175 = arith.subi %c7_i32_50, %c5_i32 : i32
    %176 = arith.index_cast %175 : i32 to index
    %c0_51 = arith.constant 0 : index
    %c0_52 = arith.constant 0 : index
    %177 = vector.load %arg1[%176, %c0_51, %c0_52] : memref<8x32x4xf32, #tpu.memory_space<vmem>>, vector<1x32x4xf32>
    %178 = vector.shape_cast %177 : vector<1x32x4xf32> to vector<32x4xf32>
    %cst_53 = arith.constant dense<0.000000e+00> : vector<32x96xf32>
    %179 = tpu.matmul %178, %0, %cst_53 {dimension_numbers = #tpu.dot_dimension_numbers<[1], [0], [0], [1], [0, 0, 1, 1], [], []>} : vector<32x4xf32>, vector<4x96xf32>, vector<32x96xf32> -> vector<32x96xf32>
    %180 = vector.broadcast %2 : vector<1x96xf32> to vector<32x96xf32>
    %181 = arith.addf %179, %180 : vector<32x96xf32>
    %cst_54 = arith.constant dense<0.000000e+00> : vector<32x96xf32>
    %182 = tpu.matmul %170, %1, %cst_54 {dimension_numbers = #tpu.dot_dimension_numbers<[1], [0], [0], [1], [0, 0, 1, 1], [], []>} : vector<32x32xf32>, vector<32x96xf32>, vector<32x96xf32> -> vector<32x96xf32>
    %183 = vector.broadcast %3 : vector<1x96xf32> to vector<32x96xf32>
    %184 = arith.addf %182, %183 : vector<32x96xf32>
    %185 = vector.extract_strided_slice %181 {offsets = [0, 0], sizes = [32, 64], strides = [1, 1]} : vector<32x96xf32> to vector<32x64xf32>
    %186 = vector.extract_strided_slice %184 {offsets = [0, 0], sizes = [32, 64], strides = [1, 1]} : vector<32x96xf32> to vector<32x64xf32>
    %187 = arith.addf %185, %186 : vector<32x64xf32>
    %188 = arith.negf %187 : vector<32x64xf32>
    %189 = math.exp %188 : vector<32x64xf32>
    %cst_55 = arith.constant 1.000000e+00 : f32
    %190 = vector.broadcast %cst_55 : f32 to vector<32x64xf32>
    %191 = arith.addf %190, %189 : vector<32x64xf32>
    %192 = arith.divf %190, %191 : vector<32x64xf32>
    %193 = vector.extract_strided_slice %192 {offsets = [0, 0], sizes = [32, 32], strides = [1, 1]} : vector<32x64xf32> to vector<32x32xf32>
    %194 = vector.extract_strided_slice %192 {offsets = [0, 32], sizes = [32, 32], strides = [1, 1]} : vector<32x64xf32> to vector<32x32xf32>
    %195 = vector.extract_strided_slice %181 {offsets = [0, 64], sizes = [32, 32], strides = [1, 1]} : vector<32x96xf32> to vector<32x32xf32>
    %196 = vector.extract_strided_slice %184 {offsets = [0, 64], sizes = [32, 32], strides = [1, 1]} : vector<32x96xf32> to vector<32x32xf32>
    %197 = arith.mulf %193, %196 : vector<32x32xf32>
    %198 = arith.addf %195, %197 : vector<32x32xf32>
    %199 = math.tanh %198 : vector<32x32xf32>
    %cst_56 = arith.constant 1.000000e+00 : f32
    %200 = vector.broadcast %cst_56 : f32 to vector<32x32xf32>
    %201 = arith.subf %200, %194 : vector<32x32xf32>
    %202 = arith.mulf %201, %199 : vector<32x32xf32>
    %203 = arith.mulf %194, %170 : vector<32x32xf32>
    %204 = arith.addf %202, %203 : vector<32x32xf32>
    %c32_i32_57 = arith.constant 32 : i32
    %205 = arith.muli %175, %c32_i32_57 : i32
    %206 = tpu.assume_multiple %205, 8 : i32
    %207 = arith.index_cast %206 : i32 to index
    %c0_58 = arith.constant 0 : index
    %208 = vector.load %arg25[%207, %c0_58] : memref<256x32xf32, #tpu.memory_space<vmem>>, vector<32x32xf32>
    tpu.vector_store %arg25[%207, %c0_58], %204 {strides = array<i32>} : memref<256x32xf32, #tpu.memory_space<vmem>>, vector<32x32xf32>,
    %c6_i32 = arith.constant 6 : i32
    %c7_i32_59 = arith.constant 7 : i32
    %209 = arith.subi %c7_i32_59, %c6_i32 : i32
    %210 = arith.index_cast %209 : i32 to index
    %c0_60 = arith.constant 0 : index
    %c0_61 = arith.constant 0 : index
    %211 = vector.load %arg1[%210, %c0_60, %c0_61] : memref<8x32x4xf32, #tpu.memory_space<vmem>>, vector<1x32x4xf32>
    %212 = vector.shape_cast %211 : vector<1x32x4xf32> to vector<32x4xf32>
    %cst_62 = arith.constant dense<0.000000e+00> : vector<32x96xf32>
    %213 = tpu.matmul %212, %0, %cst_62 {dimension_numbers = #tpu.dot_dimension_numbers<[1], [0], [0], [1], [0, 0, 1, 1], [], []>} : vector<32x4xf32>, vector<4x96xf32>, vector<32x96xf32> -> vector<32x96xf32>
    %214 = vector.broadcast %2 : vector<1x96xf32> to vector<32x96xf32>
    %215 = arith.addf %213, %214 : vector<32x96xf32>
    %cst_63 = arith.constant dense<0.000000e+00> : vector<32x96xf32>
    %216 = tpu.matmul %204, %1, %cst_63 {dimension_numbers = #tpu.dot_dimension_numbers<[1], [0], [0], [1], [0, 0, 1, 1], [], []>} : vector<32x32xf32>, vector<32x96xf32>, vector<32x96xf32> -> vector<32x96xf32>
    %217 = vector.broadcast %3 : vector<1x96xf32> to vector<32x96xf32>
    %218 = arith.addf %216, %217 : vector<32x96xf32>
    %219 = vector.extract_strided_slice %215 {offsets = [0, 0], sizes = [32, 64], strides = [1, 1]} : vector<32x96xf32> to vector<32x64xf32>
    %220 = vector.extract_strided_slice %218 {offsets = [0, 0], sizes = [32, 64], strides = [1, 1]} : vector<32x96xf32> to vector<32x64xf32>
    %221 = arith.addf %219, %220 : vector<32x64xf32>
    %222 = arith.negf %221 : vector<32x64xf32>
    %223 = math.exp %222 : vector<32x64xf32>
    %cst_64 = arith.constant 1.000000e+00 : f32
    %224 = vector.broadcast %cst_64 : f32 to vector<32x64xf32>
    %225 = arith.addf %224, %223 : vector<32x64xf32>
    %226 = arith.divf %224, %225 : vector<32x64xf32>
    %227 = vector.extract_strided_slice %226 {offsets = [0, 0], sizes = [32, 32], strides = [1, 1]} : vector<32x64xf32> to vector<32x32xf32>
    %228 = vector.extract_strided_slice %226 {offsets = [0, 32], sizes = [32, 32], strides = [1, 1]} : vector<32x64xf32> to vector<32x32xf32>
    %229 = vector.extract_strided_slice %215 {offsets = [0, 64], sizes = [32, 32], strides = [1, 1]} : vector<32x96xf32> to vector<32x32xf32>
    %230 = vector.extract_strided_slice %218 {offsets = [0, 64], sizes = [32, 32], strides = [1, 1]} : vector<32x96xf32> to vector<32x32xf32>
    %231 = arith.mulf %227, %230 : vector<32x32xf32>
    %232 = arith.addf %229, %231 : vector<32x32xf32>
    %233 = math.tanh %232 : vector<32x32xf32>
    %cst_65 = arith.constant 1.000000e+00 : f32
    %234 = vector.broadcast %cst_65 : f32 to vector<32x32xf32>
    %235 = arith.subf %234, %228 : vector<32x32xf32>
    %236 = arith.mulf %235, %233 : vector<32x32xf32>
    %237 = arith.mulf %228, %204 : vector<32x32xf32>
    %238 = arith.addf %236, %237 : vector<32x32xf32>
    %c32_i32_66 = arith.constant 32 : i32
    %239 = arith.muli %209, %c32_i32_66 : i32
    %240 = tpu.assume_multiple %239, 8 : i32
    %241 = arith.index_cast %240 : i32 to index
    %c0_67 = arith.constant 0 : index
    %242 = vector.load %arg25[%241, %c0_67] : memref<256x32xf32, #tpu.memory_space<vmem>>, vector<32x32xf32>
    tpu.vector_store %arg25[%241, %c0_67], %238 {strides = array<i32>} : memref<256x32xf32, #tpu.memory_space<vmem>>, vector<32x32xf32>,
    %c7_i32_68 = arith.constant 7 : i32
    %c7_i32_69 = arith.constant 7 : i32
    %243 = arith.subi %c7_i32_69, %c7_i32_68 : i32
    %244 = arith.index_cast %243 : i32 to index
    %c0_70 = arith.constant 0 : index
    %c0_71 = arith.constant 0 : index
    %245 = vector.load %arg1[%244, %c0_70, %c0_71] : memref<8x32x4xf32, #tpu.memory_space<vmem>>, vector<1x32x4xf32>
    %246 = vector.shape_cast %245 : vector<1x32x4xf32> to vector<32x4xf32>
    %cst_72 = arith.constant dense<0.000000e+00> : vector<32x96xf32>
    %247 = tpu.matmul %246, %0, %cst_72 {dimension_numbers = #tpu.dot_dimension_numbers<[1], [0], [0], [1], [0, 0, 1, 1], [], []>} : vector<32x4xf32>, vector<4x96xf32>, vector<32x96xf32> -> vector<32x96xf32>
    %248 = vector.broadcast %2 : vector<1x96xf32> to vector<32x96xf32>
    %249 = arith.addf %247, %248 : vector<32x96xf32>
    %cst_73 = arith.constant dense<0.000000e+00> : vector<32x96xf32>
    %250 = tpu.matmul %238, %1, %cst_73 {dimension_numbers = #tpu.dot_dimension_numbers<[1], [0], [0], [1], [0, 0, 1, 1], [], []>} : vector<32x32xf32>, vector<32x96xf32>, vector<32x96xf32> -> vector<32x96xf32>
    %251 = vector.broadcast %3 : vector<1x96xf32> to vector<32x96xf32>
    %252 = arith.addf %250, %251 : vector<32x96xf32>
    %253 = vector.extract_strided_slice %249 {offsets = [0, 0], sizes = [32, 64], strides = [1, 1]} : vector<32x96xf32> to vector<32x64xf32>
    %254 = vector.extract_strided_slice %252 {offsets = [0, 0], sizes = [32, 64], strides = [1, 1]} : vector<32x96xf32> to vector<32x64xf32>
    %255 = arith.addf %253, %254 : vector<32x64xf32>
    %256 = arith.negf %255 : vector<32x64xf32>
    %257 = math.exp %256 : vector<32x64xf32>
    %cst_74 = arith.constant 1.000000e+00 : f32
    %258 = vector.broadcast %cst_74 : f32 to vector<32x64xf32>
    %259 = arith.addf %258, %257 : vector<32x64xf32>
    %260 = arith.divf %258, %259 : vector<32x64xf32>
    %261 = vector.extract_strided_slice %260 {offsets = [0, 0], sizes = [32, 32], strides = [1, 1]} : vector<32x64xf32> to vector<32x32xf32>
    %262 = vector.extract_strided_slice %260 {offsets = [0, 32], sizes = [32, 32], strides = [1, 1]} : vector<32x64xf32> to vector<32x32xf32>
    %263 = vector.extract_strided_slice %249 {offsets = [0, 64], sizes = [32, 32], strides = [1, 1]} : vector<32x96xf32> to vector<32x32xf32>
    %264 = vector.extract_strided_slice %252 {offsets = [0, 64], sizes = [32, 32], strides = [1, 1]} : vector<32x96xf32> to vector<32x32xf32>
    %265 = arith.mulf %261, %264 : vector<32x32xf32>
    %266 = arith.addf %263, %265 : vector<32x32xf32>
    %267 = math.tanh %266 : vector<32x32xf32>
    %cst_75 = arith.constant 1.000000e+00 : f32
    %268 = vector.broadcast %cst_75 : f32 to vector<32x32xf32>
    %269 = arith.subf %268, %262 : vector<32x32xf32>
    %270 = arith.mulf %269, %267 : vector<32x32xf32>
    %271 = arith.mulf %262, %238 : vector<32x32xf32>
    %272 = arith.addf %270, %271 : vector<32x32xf32>
    %c32_i32_76 = arith.constant 32 : i32
    %273 = arith.muli %243, %c32_i32_76 : i32
    %274 = tpu.assume_multiple %273, 8 : i32
    %275 = arith.index_cast %274 : i32 to index
    %c0_77 = arith.constant 0 : index
    %276 = vector.load %arg25[%275, %c0_77] : memref<256x32xf32, #tpu.memory_space<vmem>>, vector<32x32xf32>
    tpu.vector_store %arg25[%275, %c0_77], %272 {strides = array<i32>} : memref<256x32xf32, #tpu.memory_space<vmem>>, vector<32x32xf32>,
    %c8_i32 = arith.constant 8 : i32
    %c0_78 = arith.constant 0 : index
    %c0_79 = arith.constant 0 : index
    %277 = vector.load %arg25[%c0_78, %c0_79] : memref<256x32xf32, #tpu.memory_space<vmem>>, vector<256x32xf32>
    %c0_80 = arith.constant 0 : index
    %c0_81 = arith.constant 0 : index
    %278 = vector.load %arg7[%c0_80, %c0_81] : memref<32x8xf32, #tpu.memory_space<vmem>>, vector<32x8xf32>
    %cst_82 = arith.constant dense<0.000000e+00> : vector<256x8xf32>
    %279 = tpu.matmul %277, %278, %cst_82 {dimension_numbers = #tpu.dot_dimension_numbers<[1], [0], [0], [1], [0, 0, 1, 1], [], []>} : vector<256x32xf32>, vector<32x8xf32>, vector<256x8xf32> -> vector<256x8xf32>
    %c0_83 = arith.constant 0 : index
    %c0_84 = arith.constant 0 : index
    %280 = vector.load %arg8[%c0_83, %c0_84] : memref<1x8xf32, #tpu.memory_space<vmem>>, vector<1x8xf32>
    %281 = vector.broadcast %280 : vector<1x8xf32> to vector<256x8xf32>
    %282 = arith.addf %279, %281 : vector<256x8xf32>
    %c0_85 = arith.constant 0 : index
    %c0_86 = arith.constant 0 : index
    %283 = vector.load %arg26[%c0_85, %c0_86] : memref<256x8xf32, #tpu.memory_space<vmem>>, vector<256x8xf32>
    tpu.vector_store %arg26[%c0_85, %c0_86], %282 {strides = array<i32>} : memref<256x8xf32, #tpu.memory_space<vmem>>, vector<256x8xf32>,
    %c0_87 = arith.constant 0 : index
    %c0_88 = arith.constant 0 : index
    %c0_89 = arith.constant 0 : index
    %284 = vector.load %arg1[%c0_87, %c0_88, %c0_89] : memref<8x32x4xf32, #tpu.memory_space<vmem>>, vector<1x32x4xf32>
    %285 = vector.shape_cast %284 : vector<1x32x4xf32> to vector<32x4xf32>
    %c0_90 = arith.constant 0 : index
    %c0_91 = arith.constant 0 : index
    %c0_92 = arith.constant 0 : index
    %286 = vector.load %arg22[%c0_90, %c0_91, %c0_92] : memref<8x32x4xf32, #tpu.memory_space<vmem>>, vector<1x32x4xf32>
    %287 = vector.shape_cast %286 : vector<1x32x4xf32> to vector<32x4xf32>
    %288 = vector.shape_cast %285 : vector<32x4xf32> to vector<1x32x4xf32>
    tpu.vector_store %arg22[%c0_90, %c0_91, %c0_92], %288 {strides = array<i32>} : memref<8x32x4xf32, #tpu.memory_space<vmem>>, vector<1x32x4xf32>,
    %c0_93 = arith.constant 0 : index
    %c0_94 = arith.constant 0 : index
    %289 = vector.load %arg9[%c0_93, %c0_94] : memref<4x64xf32, #tpu.memory_space<vmem>>, vector<4x64xf32>
    %c0_95 = arith.constant 0 : index
    %c0_96 = arith.constant 0 : index
    %290 = vector.load %arg10[%c0_95, %c0_96] : memref<8x64xf32, #tpu.memory_space<vmem>>, vector<8x64xf32>
    %c0_97 = arith.constant 0 : index
    %c0_98 = arith.constant 0 : index
    %291 = vector.load %arg11[%c0_97, %c0_98] : memref<1x64xf32, #tpu.memory_space<vmem>>, vector<1x64xf32>
    %c0_99 = arith.constant 0 : index
    %c0_100 = arith.constant 0 : index
    %292 = vector.load %arg12[%c0_99, %c0_100] : memref<64x64xf32, #tpu.memory_space<vmem>>, vector<64x64xf32>
    %c0_101 = arith.constant 0 : index
    %c0_102 = arith.constant 0 : index
    %293 = vector.load %arg13[%c0_101, %c0_102] : memref<1x64xf32, #tpu.memory_space<vmem>>, vector<1x64xf32>
    %c0_103 = arith.constant 0 : index
    %c0_104 = arith.constant 0 : index
    %294 = vector.load %arg14[%c0_103, %c0_104] : memref<64x36xf32, #tpu.memory_space<vmem>>, vector<64x36xf32>
    %c0_105 = arith.constant 0 : index
    %c0_106 = arith.constant 0 : index
    %295 = vector.load %arg15[%c0_105, %c0_106] : memref<1x36xf32, #tpu.memory_space<vmem>>, vector<1x36xf32>
    %c0_107 = arith.constant 0 : index
    %c0_108 = arith.constant 0 : index
    %296 = vector.load %arg16[%c0_107, %c0_108] : memref<32x4xf32, #tpu.memory_space<vmem>>, vector<32x4xf32>
    %c0_109 = arith.constant 0 : index
    %c0_110 = arith.constant 0 : index
    %297 = vector.load %arg17[%c0_109, %c0_110] : memref<1x4xf32, #tpu.memory_space<vmem>>, vector<1x4xf32>
    %c0_111 = arith.constant 0 : index
    %c0_112 = arith.constant 0 : index
    %298 = vector.load %arg18[%c0_111, %c0_112] : memref<4x128xf32, #tpu.memory_space<vmem>>, vector<4x128xf32>
    %c0_113 = arith.constant 0 : index
    %c0_114 = arith.constant 0 : index
    %299 = vector.load %arg19[%c0_113, %c0_114] : memref<1x128xf32, #tpu.memory_space<vmem>>, vector<1x128xf32>
    %c0_115 = arith.constant 0 : index
    %c0_116 = arith.constant 0 : index
    %300 = vector.load %arg20[%c0_115, %c0_116] : memref<128x4xf32, #tpu.memory_space<vmem>>, vector<128x4xf32>
    %c0_117 = arith.constant 0 : index
    %c0_118 = arith.constant 0 : index
    %301 = vector.load %arg21[%c0_117, %c0_118] : memref<1x4xf32, #tpu.memory_space<vmem>>, vector<1x4xf32>
    %cst_119 = arith.constant 0.000000e+00 : f32
    %302 = vector.broadcast %cst_119 : f32 to vector<32x4xf32>
    %c0_i32_120 = arith.constant 0 : i32
    %c1_i32_121 = arith.constant 1 : i32
    %303 = arith.addi %c0_i32_120, %c1_i32_121 : i32
    %c32_i32_122 = arith.constant 32 : i32
    %304 = arith.muli %303, %c32_i32_122 : i32
    %305 = tpu.assume_multiple %304, 8 : i32
    %306 = arith.index_cast %305 : i32 to index
    %c0_123 = arith.constant 0 : index
    %307 = vector.load %arg26[%306, %c0_123] : memref<256x8xf32, #tpu.memory_space<vmem>>, vector<32x8xf32>
    %cst_124 = arith.constant dense<0.000000e+00> : vector<32x64xf32>
    %308 = tpu.matmul %285, %289, %cst_124 {dimension_numbers = #tpu.dot_dimension_numbers<[1], [0], [0], [1], [0, 0, 1, 1], [], []>} : vector<32x4xf32>, vector<4x64xf32>, vector<32x64xf32> -> vector<32x64xf32>
    %cst_125 = arith.constant dense<0.000000e+00> : vector<32x64xf32>
    %309 = tpu.matmul %307, %290, %cst_125 {dimension_numbers = #tpu.dot_dimension_numbers<[1], [0], [0], [1], [0, 0, 1, 1], [], []>} : vector<32x8xf32>, vector<8x64xf32>, vector<32x64xf32> -> vector<32x64xf32>
    %310 = arith.addf %308, %309 : vector<32x64xf32>
    %311 = vector.broadcast %291 : vector<1x64xf32> to vector<32x64xf32>
    %312 = arith.addf %310, %311 : vector<32x64xf32>
    %cst_126 = arith.constant 0.000000e+00 : f32
    %313 = vector.broadcast %cst_126 : f32 to vector<32x64xf32>
    %314 = arith.maximumf %312, %313 : vector<32x64xf32>
    %315 = vector.broadcast %cst_126 : f32 to vector<32x64xf32>
    %316 = arith.subf %312, %315 : vector<32x64xf32>
    %317 = arith.cmpf one, %316, %316 : vector<32x64xf32>
    %318 = vector.broadcast %cst_126 : f32 to vector<32x64xf32>
    %319 = arith.addf %312, %318 : vector<32x64xf32>
    %320 = math.absf %316 : vector<32x64xf32>
    %cst_127 = arith.constant 0.000000e+00 : f32
    %321 = vector.broadcast %cst_127 : f32 to vector<32x64xf32>
    %322 = arith.subf %321, %320 : vector<32x64xf32>
    %323 = math.exp %322 : vector<32x64xf32>
    %324 = math.log1p %323 : vector<32x64xf32>
    %325 = arith.addf %314, %324 : vector<32x64xf32>
    %326 = arith.select %317, %319, %325 : vector<32x64xi1>, vector<32x64xf32>
    %cst_128 = arith.constant dense<0.000000e+00> : vector<32x64xf32>
    %327 = tpu.matmul %326, %292, %cst_128 {dimension_numbers = #tpu.dot_dimension_numbers<[1], [0], [0], [1], [0, 0, 1, 1], [], []>} : vector<32x64xf32>, vector<64x64xf32>, vector<32x64xf32> -> vector<32x64xf32>
    %328 = vector.broadcast %293 : vector<1x64xf32> to vector<32x64xf32>
    %329 = arith.addf %327, %328 : vector<32x64xf32>
    %cst_129 = arith.constant 0.000000e+00 : f32
    %330 = vector.broadcast %cst_129 : f32 to vector<32x64xf32>
    %331 = arith.maximumf %329, %330 : vector<32x64xf32>
    %332 = vector.broadcast %cst_129 : f32 to vector<32x64xf32>
    %333 = arith.subf %329, %332 : vector<32x64xf32>
    %334 = arith.cmpf one, %333, %333 : vector<32x64xf32>
    %335 = vector.broadcast %cst_129 : f32 to vector<32x64xf32>
    %336 = arith.addf %329, %335 : vector<32x64xf32>
    %337 = math.absf %333 : vector<32x64xf32>
    %cst_130 = arith.constant 0.000000e+00 : f32
    %338 = vector.broadcast %cst_130 : f32 to vector<32x64xf32>
    %339 = arith.subf %338, %337 : vector<32x64xf32>
    %340 = math.exp %339 : vector<32x64xf32>
    %341 = math.log1p %340 : vector<32x64xf32>
    %342 = arith.addf %331, %341 : vector<32x64xf32>
    %343 = arith.select %334, %336, %342 : vector<32x64xi1>, vector<32x64xf32>
    %cst_131 = arith.constant dense<0.000000e+00> : vector<32x36xf32>
    %344 = tpu.matmul %343, %294, %cst_131 {dimension_numbers = #tpu.dot_dimension_numbers<[1], [0], [0], [1], [0, 0, 1, 1], [], []>} : vector<32x64xf32>, vector<64x36xf32>, vector<32x36xf32> -> vector<32x36xf32>
    %345 = vector.broadcast %295 : vector<1x36xf32> to vector<32x36xf32>
    %346 = arith.addf %344, %345 : vector<32x36xf32>
    %347 = vector.extract_strided_slice %346 {offsets = [0, 0], sizes = [32, 32], strides = [1, 1]} : vector<32x36xf32> to vector<32x32xf32>
    %cst_132 = arith.constant 0.000000e+00 : f32
    %348 = vector.broadcast %cst_132 : f32 to vector<32x32xf32>
    %349 = arith.maximumf %347, %348 : vector<32x32xf32>
    %350 = vector.broadcast %cst_132 : f32 to vector<32x32xf32>
    %351 = arith.subf %347, %350 : vector<32x32xf32>
    %352 = arith.cmpf one, %351, %351 : vector<32x32xf32>
    %353 = vector.broadcast %cst_132 : f32 to vector<32x32xf32>
    %354 = arith.addf %347, %353 : vector<32x32xf32>
    %355 = math.absf %351 : vector<32x32xf32>
    %cst_133 = arith.constant 0.000000e+00 : f32
    %356 = vector.broadcast %cst_133 : f32 to vector<32x32xf32>
    %357 = arith.subf %356, %355 : vector<32x32xf32>
    %358 = math.exp %357 : vector<32x32xf32>
    %359 = math.log1p %358 : vector<32x32xf32>
    %360 = arith.addf %349, %359 : vector<32x32xf32>
    %361 = arith.select %352, %354, %360 : vector<32x32xi1>, vector<32x32xf32>
    %362 = vector.extract_strided_slice %346 {offsets = [0, 32], sizes = [32, 4], strides = [1, 1]} : vector<32x36xf32> to vector<32x4xf32>
    %cst_134 = arith.constant dense<0.000000e+00> : vector<32x4xf32>
    %363 = tpu.matmul %361, %296, %cst_134 {dimension_numbers = #tpu.dot_dimension_numbers<[1], [0], [0], [1], [0, 0, 1, 1], [], []>} : vector<32x32xf32>, vector<32x4xf32>, vector<32x4xf32> -> vector<32x4xf32>
    %364 = vector.broadcast %297 : vector<1x4xf32> to vector<32x4xf32>
    %365 = arith.addf %363, %364 : vector<32x4xf32>
    %cst_135 = arith.constant dense<0.000000e+00> : vector<32x128xf32>
    %366 = tpu.matmul %285, %298, %cst_135 {dimension_numbers = #tpu.dot_dimension_numbers<[1], [0], [0], [1], [0, 0, 1, 1], [], []>} : vector<32x4xf32>, vector<4x128xf32>, vector<32x128xf32> -> vector<32x128xf32>
    %367 = vector.broadcast %299 : vector<1x128xf32> to vector<32x128xf32>
    %368 = arith.addf %366, %367 : vector<32x128xf32>
    %cst_136 = arith.constant 0.000000e+00 : f32
    %369 = vector.broadcast %cst_136 : f32 to vector<32x128xf32>
    %370 = arith.maximumf %368, %369 : vector<32x128xf32>
    %371 = vector.broadcast %cst_136 : f32 to vector<32x128xf32>
    %372 = arith.subf %368, %371 : vector<32x128xf32>
    %373 = arith.cmpf one, %372, %372 : vector<32x128xf32>
    %374 = vector.broadcast %cst_136 : f32 to vector<32x128xf32>
    %375 = arith.addf %368, %374 : vector<32x128xf32>
    %376 = math.absf %372 : vector<32x128xf32>
    %cst_137 = arith.constant 0.000000e+00 : f32
    %377 = vector.broadcast %cst_137 : f32 to vector<32x128xf32>
    %378 = arith.subf %377, %376 : vector<32x128xf32>
    %379 = math.exp %378 : vector<32x128xf32>
    %380 = math.log1p %379 : vector<32x128xf32>
    %381 = arith.addf %370, %380 : vector<32x128xf32>
    %382 = arith.select %373, %375, %381 : vector<32x128xi1>, vector<32x128xf32>
    %cst_138 = arith.constant dense<0.000000e+00> : vector<32x4xf32>
    %383 = tpu.matmul %382, %300, %cst_138 {dimension_numbers = #tpu.dot_dimension_numbers<[1], [0], [0], [1], [0, 0, 1, 1], [], []>} : vector<32x128xf32>, vector<128x4xf32>, vector<32x4xf32> -> vector<32x4xf32>
    %384 = vector.broadcast %301 : vector<1x4xf32> to vector<32x4xf32>
    %385 = arith.addf %383, %384 : vector<32x4xf32>
    %cst_139 = arith.constant 0.000000e+00 : f32
    %386 = vector.broadcast %cst_139 : f32 to vector<32x4xf32>
    %387 = arith.maximumf %385, %386 : vector<32x4xf32>
    %388 = vector.broadcast %cst_139 : f32 to vector<32x4xf32>
    %389 = arith.subf %385, %388 : vector<32x4xf32>
    %390 = arith.cmpf one, %389, %389 : vector<32x4xf32>
    %391 = vector.broadcast %cst_139 : f32 to vector<32x4xf32>
    %392 = arith.addf %385, %391 : vector<32x4xf32>
    %393 = math.absf %389 : vector<32x4xf32>
    %cst_140 = arith.constant 0.000000e+00 : f32
    %394 = vector.broadcast %cst_140 : f32 to vector<32x4xf32>
    %395 = arith.subf %394, %393 : vector<32x4xf32>
    %396 = math.exp %395 : vector<32x4xf32>
    %397 = math.log1p %396 : vector<32x4xf32>
    %398 = arith.addf %387, %397 : vector<32x4xf32>
    %399 = arith.select %390, %392, %398 : vector<32x4xi1>, vector<32x4xf32>
    %cst_141 = arith.constant 1.000000e-07 : f32
    %400 = vector.broadcast %cst_141 : f32 to vector<32x4xf32>
    %401 = arith.maximumf %399, %400 : vector<32x4xf32>
    %402 = arith.subf %362, %365 : vector<32x4xf32>
    %403 = arith.divf %402, %401 : vector<32x4xf32>
    %404 = arith.mulf %403, %403 : vector<32x4xf32>
    %405 = arith.addf %302, %404 : vector<32x4xf32>
    %cst_142 = arith.constant 1.000000e-01 : f32
    %406 = vector.broadcast %cst_142 : f32 to vector<32x4xf32>
    %407 = arith.mulf %362, %406 : vector<32x4xf32>
    %408 = arith.addf %285, %407 : vector<32x4xf32>
    %409 = arith.index_cast %c0_i32_120 : i32 to index
    %c0_143 = arith.constant 0 : index
    %c0_144 = arith.constant 0 : index
    %410 = vector.load %arg2[%409, %c0_143, %c0_144] : memref<7x32x4xf32, #tpu.memory_space<vmem>>, vector<1x32x4xf32>
    %411 = vector.shape_cast %410 : vector<1x32x4xf32> to vector<32x4xf32>
    %412 = arith.mulf %399, %411 : vector<32x4xf32>
    %413 = arith.addf %408, %412 : vector<32x4xf32>
    %c1_i32_145 = arith.constant 1 : i32
    %414 = arith.addi %c0_i32_120, %c1_i32_145 : i32
    %415 = arith.index_cast %414 : i32 to index
    %c0_146 = arith.constant 0 : index
    %c0_147 = arith.constant 0 : index
    %416 = vector.load %arg22[%415, %c0_146, %c0_147] : memref<8x32x4xf32, #tpu.memory_space<vmem>>, vector<1x32x4xf32>
    %417 = vector.shape_cast %416 : vector<1x32x4xf32> to vector<32x4xf32>
    %418 = vector.shape_cast %413 : vector<32x4xf32> to vector<1x32x4xf32>
    tpu.vector_store %arg22[%415, %c0_146, %c0_147], %418 {strides = array<i32>} : memref<8x32x4xf32, #tpu.memory_space<vmem>>, vector<1x32x4xf32>,
    %c1_i32_148 = arith.constant 1 : i32
    %c1_i32_149 = arith.constant 1 : i32
    %419 = arith.addi %c1_i32_148, %c1_i32_149 : i32
    %c32_i32_150 = arith.constant 32 : i32
    %420 = arith.muli %419, %c32_i32_150 : i32
    %421 = tpu.assume_multiple %420, 8 : i32
    %422 = arith.index_cast %421 : i32 to index
    %c0_151 = arith.constant 0 : index
    %423 = vector.load %arg26[%422, %c0_151] : memref<256x8xf32, #tpu.memory_space<vmem>>, vector<32x8xf32>
    %cst_152 = arith.constant dense<0.000000e+00> : vector<32x64xf32>
    %424 = tpu.matmul %413, %289, %cst_152 {dimension_numbers = #tpu.dot_dimension_numbers<[1], [0], [0], [1], [0, 0, 1, 1], [], []>} : vector<32x4xf32>, vector<4x64xf32>, vector<32x64xf32> -> vector<32x64xf32>
    %cst_153 = arith.constant dense<0.000000e+00> : vector<32x64xf32>
    %425 = tpu.matmul %423, %290, %cst_153 {dimension_numbers = #tpu.dot_dimension_numbers<[1], [0], [0], [1], [0, 0, 1, 1], [], []>} : vector<32x8xf32>, vector<8x64xf32>, vector<32x64xf32> -> vector<32x64xf32>
    %426 = arith.addf %424, %425 : vector<32x64xf32>
    %427 = vector.broadcast %291 : vector<1x64xf32> to vector<32x64xf32>
    %428 = arith.addf %426, %427 : vector<32x64xf32>
    %cst_154 = arith.constant 0.000000e+00 : f32
    %429 = vector.broadcast %cst_154 : f32 to vector<32x64xf32>
    %430 = arith.maximumf %428, %429 : vector<32x64xf32>
    %431 = vector.broadcast %cst_154 : f32 to vector<32x64xf32>
    %432 = arith.subf %428, %431 : vector<32x64xf32>
    %433 = arith.cmpf one, %432, %432 : vector<32x64xf32>
    %434 = vector.broadcast %cst_154 : f32 to vector<32x64xf32>
    %435 = arith.addf %428, %434 : vector<32x64xf32>
    %436 = math.absf %432 : vector<32x64xf32>
    %cst_155 = arith.constant 0.000000e+00 : f32
    %437 = vector.broadcast %cst_155 : f32 to vector<32x64xf32>
    %438 = arith.subf %437, %436 : vector<32x64xf32>
    %439 = math.exp %438 : vector<32x64xf32>
    %440 = math.log1p %439 : vector<32x64xf32>
    %441 = arith.addf %430, %440 : vector<32x64xf32>
    %442 = arith.select %433, %435, %441 : vector<32x64xi1>, vector<32x64xf32>
    %cst_156 = arith.constant dense<0.000000e+00> : vector<32x64xf32>
    %443 = tpu.matmul %442, %292, %cst_156 {dimension_numbers = #tpu.dot_dimension_numbers<[1], [0], [0], [1], [0, 0, 1, 1], [], []>} : vector<32x64xf32>, vector<64x64xf32>, vector<32x64xf32> -> vector<32x64xf32>
    %444 = vector.broadcast %293 : vector<1x64xf32> to vector<32x64xf32>
    %445 = arith.addf %443, %444 : vector<32x64xf32>
    %cst_157 = arith.constant 0.000000e+00 : f32
    %446 = vector.broadcast %cst_157 : f32 to vector<32x64xf32>
    %447 = arith.maximumf %445, %446 : vector<32x64xf32>
    %448 = vector.broadcast %cst_157 : f32 to vector<32x64xf32>
    %449 = arith.subf %445, %448 : vector<32x64xf32>
    %450 = arith.cmpf one, %449, %449 : vector<32x64xf32>
    %451 = vector.broadcast %cst_157 : f32 to vector<32x64xf32>
    %452 = arith.addf %445, %451 : vector<32x64xf32>
    %453 = math.absf %449 : vector<32x64xf32>
    %cst_158 = arith.constant 0.000000e+00 : f32
    %454 = vector.broadcast %cst_158 : f32 to vector<32x64xf32>
    %455 = arith.subf %454, %453 : vector<32x64xf32>
    %456 = math.exp %455 : vector<32x64xf32>
    %457 = math.log1p %456 : vector<32x64xf32>
    %458 = arith.addf %447, %457 : vector<32x64xf32>
    %459 = arith.select %450, %452, %458 : vector<32x64xi1>, vector<32x64xf32>
    %cst_159 = arith.constant dense<0.000000e+00> : vector<32x36xf32>
    %460 = tpu.matmul %459, %294, %cst_159 {dimension_numbers = #tpu.dot_dimension_numbers<[1], [0], [0], [1], [0, 0, 1, 1], [], []>} : vector<32x64xf32>, vector<64x36xf32>, vector<32x36xf32> -> vector<32x36xf32>
    %461 = vector.broadcast %295 : vector<1x36xf32> to vector<32x36xf32>
    %462 = arith.addf %460, %461 : vector<32x36xf32>
    %463 = vector.extract_strided_slice %462 {offsets = [0, 0], sizes = [32, 32], strides = [1, 1]} : vector<32x36xf32> to vector<32x32xf32>
    %cst_160 = arith.constant 0.000000e+00 : f32
    %464 = vector.broadcast %cst_160 : f32 to vector<32x32xf32>
    %465 = arith.maximumf %463, %464 : vector<32x32xf32>
    %466 = vector.broadcast %cst_160 : f32 to vector<32x32xf32>
    %467 = arith.subf %463, %466 : vector<32x32xf32>
    %468 = arith.cmpf one, %467, %467 : vector<32x32xf32>
    %469 = vector.broadcast %cst_160 : f32 to vector<32x32xf32>
    %470 = arith.addf %463, %469 : vector<32x32xf32>
    %471 = math.absf %467 : vector<32x32xf32>
    %cst_161 = arith.constant 0.000000e+00 : f32
    %472 = vector.broadcast %cst_161 : f32 to vector<32x32xf32>
    %473 = arith.subf %472, %471 : vector<32x32xf32>
    %474 = math.exp %473 : vector<32x32xf32>
    %475 = math.log1p %474 : vector<32x32xf32>
    %476 = arith.addf %465, %475 : vector<32x32xf32>
    %477 = arith.select %468, %470, %476 : vector<32x32xi1>, vector<32x32xf32>
    %478 = vector.extract_strided_slice %462 {offsets = [0, 32], sizes = [32, 4], strides = [1, 1]} : vector<32x36xf32> to vector<32x4xf32>
    %cst_162 = arith.constant dense<0.000000e+00> : vector<32x4xf32>
    %479 = tpu.matmul %477, %296, %cst_162 {dimension_numbers = #tpu.dot_dimension_numbers<[1], [0], [0], [1], [0, 0, 1, 1], [], []>} : vector<32x32xf32>, vector<32x4xf32>, vector<32x4xf32> -> vector<32x4xf32>
    %480 = vector.broadcast %297 : vector<1x4xf32> to vector<32x4xf32>
    %481 = arith.addf %479, %480 : vector<32x4xf32>
    %cst_163 = arith.constant dense<0.000000e+00> : vector<32x128xf32>
    %482 = tpu.matmul %413, %298, %cst_163 {dimension_numbers = #tpu.dot_dimension_numbers<[1], [0], [0], [1], [0, 0, 1, 1], [], []>} : vector<32x4xf32>, vector<4x128xf32>, vector<32x128xf32> -> vector<32x128xf32>
    %483 = vector.broadcast %299 : vector<1x128xf32> to vector<32x128xf32>
    %484 = arith.addf %482, %483 : vector<32x128xf32>
    %cst_164 = arith.constant 0.000000e+00 : f32
    %485 = vector.broadcast %cst_164 : f32 to vector<32x128xf32>
    %486 = arith.maximumf %484, %485 : vector<32x128xf32>
    %487 = vector.broadcast %cst_164 : f32 to vector<32x128xf32>
    %488 = arith.subf %484, %487 : vector<32x128xf32>
    %489 = arith.cmpf one, %488, %488 : vector<32x128xf32>
    %490 = vector.broadcast %cst_164 : f32 to vector<32x128xf32>
    %491 = arith.addf %484, %490 : vector<32x128xf32>
    %492 = math.absf %488 : vector<32x128xf32>
    %cst_165 = arith.constant 0.000000e+00 : f32
    %493 = vector.broadcast %cst_165 : f32 to vector<32x128xf32>
    %494 = arith.subf %493, %492 : vector<32x128xf32>
    %495 = math.exp %494 : vector<32x128xf32>
    %496 = math.log1p %495 : vector<32x128xf32>
    %497 = arith.addf %486, %496 : vector<32x128xf32>
    %498 = arith.select %489, %491, %497 : vector<32x128xi1>, vector<32x128xf32>
    %cst_166 = arith.constant dense<0.000000e+00> : vector<32x4xf32>
    %499 = tpu.matmul %498, %300, %cst_166 {dimension_numbers = #tpu.dot_dimension_numbers<[1], [0], [0], [1], [0, 0, 1, 1], [], []>} : vector<32x128xf32>, vector<128x4xf32>, vector<32x4xf32> -> vector<32x4xf32>
    %500 = vector.broadcast %301 : vector<1x4xf32> to vector<32x4xf32>
    %501 = arith.addf %499, %500 : vector<32x4xf32>
    %cst_167 = arith.constant 0.000000e+00 : f32
    %502 = vector.broadcast %cst_167 : f32 to vector<32x4xf32>
    %503 = arith.maximumf %501, %502 : vector<32x4xf32>
    %504 = vector.broadcast %cst_167 : f32 to vector<32x4xf32>
    %505 = arith.subf %501, %504 : vector<32x4xf32>
    %506 = arith.cmpf one, %505, %505 : vector<32x4xf32>
    %507 = vector.broadcast %cst_167 : f32 to vector<32x4xf32>
    %508 = arith.addf %501, %507 : vector<32x4xf32>
    %509 = math.absf %505 : vector<32x4xf32>
    %cst_168 = arith.constant 0.000000e+00 : f32
    %510 = vector.broadcast %cst_168 : f32 to vector<32x4xf32>
    %511 = arith.subf %510, %509 : vector<32x4xf32>
    %512 = math.exp %511 : vector<32x4xf32>
    %513 = math.log1p %512 : vector<32x4xf32>
    %514 = arith.addf %503, %513 : vector<32x4xf32>
    %515 = arith.select %506, %508, %514 : vector<32x4xi1>, vector<32x4xf32>
    %cst_169 = arith.constant 1.000000e-07 : f32
    %516 = vector.broadcast %cst_169 : f32 to vector<32x4xf32>
    %517 = arith.maximumf %515, %516 : vector<32x4xf32>
    %518 = arith.subf %478, %481 : vector<32x4xf32>
    %519 = arith.divf %518, %517 : vector<32x4xf32>
    %520 = arith.mulf %519, %519 : vector<32x4xf32>
    %521 = arith.addf %405, %520 : vector<32x4xf32>
    %cst_170 = arith.constant 1.000000e-01 : f32
    %522 = vector.broadcast %cst_170 : f32 to vector<32x4xf32>
    %523 = arith.mulf %478, %522 : vector<32x4xf32>
    %524 = arith.addf %413, %523 : vector<32x4xf32>
    %525 = arith.index_cast %c1_i32_148 : i32 to index
    %c0_171 = arith.constant 0 : index
    %c0_172 = arith.constant 0 : index
    %526 = vector.load %arg2[%525, %c0_171, %c0_172] : memref<7x32x4xf32, #tpu.memory_space<vmem>>, vector<1x32x4xf32>
    %527 = vector.shape_cast %526 : vector<1x32x4xf32> to vector<32x4xf32>
    %528 = arith.mulf %515, %527 : vector<32x4xf32>
    %529 = arith.addf %524, %528 : vector<32x4xf32>
    %c1_i32_173 = arith.constant 1 : i32
    %530 = arith.addi %c1_i32_148, %c1_i32_173 : i32
    %531 = arith.index_cast %530 : i32 to index
    %c0_174 = arith.constant 0 : index
    %c0_175 = arith.constant 0 : index
    %532 = vector.load %arg22[%531, %c0_174, %c0_175] : memref<8x32x4xf32, #tpu.memory_space<vmem>>, vector<1x32x4xf32>
    %533 = vector.shape_cast %532 : vector<1x32x4xf32> to vector<32x4xf32>
    %534 = vector.shape_cast %529 : vector<32x4xf32> to vector<1x32x4xf32>
    tpu.vector_store %arg22[%531, %c0_174, %c0_175], %534 {strides = array<i32>} : memref<8x32x4xf32, #tpu.memory_space<vmem>>, vector<1x32x4xf32>,
    %c2_i32_176 = arith.constant 2 : i32
    %c1_i32_177 = arith.constant 1 : i32
    %535 = arith.addi %c2_i32_176, %c1_i32_177 : i32
    %c32_i32_178 = arith.constant 32 : i32
    %536 = arith.muli %535, %c32_i32_178 : i32
    %537 = tpu.assume_multiple %536, 8 : i32
    %538 = arith.index_cast %537 : i32 to index
    %c0_179 = arith.constant 0 : index
    %539 = vector.load %arg26[%538, %c0_179] : memref<256x8xf32, #tpu.memory_space<vmem>>, vector<32x8xf32>
    %cst_180 = arith.constant dense<0.000000e+00> : vector<32x64xf32>
    %540 = tpu.matmul %529, %289, %cst_180 {dimension_numbers = #tpu.dot_dimension_numbers<[1], [0], [0], [1], [0, 0, 1, 1], [], []>} : vector<32x4xf32>, vector<4x64xf32>, vector<32x64xf32> -> vector<32x64xf32>
    %cst_181 = arith.constant dense<0.000000e+00> : vector<32x64xf32>
    %541 = tpu.matmul %539, %290, %cst_181 {dimension_numbers = #tpu.dot_dimension_numbers<[1], [0], [0], [1], [0, 0, 1, 1], [], []>} : vector<32x8xf32>, vector<8x64xf32>, vector<32x64xf32> -> vector<32x64xf32>
    %542 = arith.addf %540, %541 : vector<32x64xf32>
    %543 = vector.broadcast %291 : vector<1x64xf32> to vector<32x64xf32>
    %544 = arith.addf %542, %543 : vector<32x64xf32>
    %cst_182 = arith.constant 0.000000e+00 : f32
    %545 = vector.broadcast %cst_182 : f32 to vector<32x64xf32>
    %546 = arith.maximumf %544, %545 : vector<32x64xf32>
    %547 = vector.broadcast %cst_182 : f32 to vector<32x64xf32>
    %548 = arith.subf %544, %547 : vector<32x64xf32>
    %549 = arith.cmpf one, %548, %548 : vector<32x64xf32>
    %550 = vector.broadcast %cst_182 : f32 to vector<32x64xf32>
    %551 = arith.addf %544, %550 : vector<32x64xf32>
    %552 = math.absf %548 : vector<32x64xf32>
    %cst_183 = arith.constant 0.000000e+00 : f32
    %553 = vector.broadcast %cst_183 : f32 to vector<32x64xf32>
    %554 = arith.subf %553, %552 : vector<32x64xf32>
    %555 = math.exp %554 : vector<32x64xf32>
    %556 = math.log1p %555 : vector<32x64xf32>
    %557 = arith.addf %546, %556 : vector<32x64xf32>
    %558 = arith.select %549, %551, %557 : vector<32x64xi1>, vector<32x64xf32>
    %cst_184 = arith.constant dense<0.000000e+00> : vector<32x64xf32>
    %559 = tpu.matmul %558, %292, %cst_184 {dimension_numbers = #tpu.dot_dimension_numbers<[1], [0], [0], [1], [0, 0, 1, 1], [], []>} : vector<32x64xf32>, vector<64x64xf32>, vector<32x64xf32> -> vector<32x64xf32>
    %560 = vector.broadcast %293 : vector<1x64xf32> to vector<32x64xf32>
    %561 = arith.addf %559, %560 : vector<32x64xf32>
    %cst_185 = arith.constant 0.000000e+00 : f32
    %562 = vector.broadcast %cst_185 : f32 to vector<32x64xf32>
    %563 = arith.maximumf %561, %562 : vector<32x64xf32>
    %564 = vector.broadcast %cst_185 : f32 to vector<32x64xf32>
    %565 = arith.subf %561, %564 : vector<32x64xf32>
    %566 = arith.cmpf one, %565, %565 : vector<32x64xf32>
    %567 = vector.broadcast %cst_185 : f32 to vector<32x64xf32>
    %568 = arith.addf %561, %567 : vector<32x64xf32>
    %569 = math.absf %565 : vector<32x64xf32>
    %cst_186 = arith.constant 0.000000e+00 : f32
    %570 = vector.broadcast %cst_186 : f32 to vector<32x64xf32>
    %571 = arith.subf %570, %569 : vector<32x64xf32>
    %572 = math.exp %571 : vector<32x64xf32>
    %573 = math.log1p %572 : vector<32x64xf32>
    %574 = arith.addf %563, %573 : vector<32x64xf32>
    %575 = arith.select %566, %568, %574 : vector<32x64xi1>, vector<32x64xf32>
    %cst_187 = arith.constant dense<0.000000e+00> : vector<32x36xf32>
    %576 = tpu.matmul %575, %294, %cst_187 {dimension_numbers = #tpu.dot_dimension_numbers<[1], [0], [0], [1], [0, 0, 1, 1], [], []>} : vector<32x64xf32>, vector<64x36xf32>, vector<32x36xf32> -> vector<32x36xf32>
    %577 = vector.broadcast %295 : vector<1x36xf32> to vector<32x36xf32>
    %578 = arith.addf %576, %577 : vector<32x36xf32>
    %579 = vector.extract_strided_slice %578 {offsets = [0, 0], sizes = [32, 32], strides = [1, 1]} : vector<32x36xf32> to vector<32x32xf32>
    %cst_188 = arith.constant 0.000000e+00 : f32
    %580 = vector.broadcast %cst_188 : f32 to vector<32x32xf32>
    %581 = arith.maximumf %579, %580 : vector<32x32xf32>
    %582 = vector.broadcast %cst_188 : f32 to vector<32x32xf32>
    %583 = arith.subf %579, %582 : vector<32x32xf32>
    %584 = arith.cmpf one, %583, %583 : vector<32x32xf32>
    %585 = vector.broadcast %cst_188 : f32 to vector<32x32xf32>
    %586 = arith.addf %579, %585 : vector<32x32xf32>
    %587 = math.absf %583 : vector<32x32xf32>
    %cst_189 = arith.constant 0.000000e+00 : f32
    %588 = vector.broadcast %cst_189 : f32 to vector<32x32xf32>
    %589 = arith.subf %588, %587 : vector<32x32xf32>
    %590 = math.exp %589 : vector<32x32xf32>
    %591 = math.log1p %590 : vector<32x32xf32>
    %592 = arith.addf %581, %591 : vector<32x32xf32>
    %593 = arith.select %584, %586, %592 : vector<32x32xi1>, vector<32x32xf32>
    %594 = vector.extract_strided_slice %578 {offsets = [0, 32], sizes = [32, 4], strides = [1, 1]} : vector<32x36xf32> to vector<32x4xf32>
    %cst_190 = arith.constant dense<0.000000e+00> : vector<32x4xf32>
    %595 = tpu.matmul %593, %296, %cst_190 {dimension_numbers = #tpu.dot_dimension_numbers<[1], [0], [0], [1], [0, 0, 1, 1], [], []>} : vector<32x32xf32>, vector<32x4xf32>, vector<32x4xf32> -> vector<32x4xf32>
    %596 = vector.broadcast %297 : vector<1x4xf32> to vector<32x4xf32>
    %597 = arith.addf %595, %596 : vector<32x4xf32>
    %cst_191 = arith.constant dense<0.000000e+00> : vector<32x128xf32>
    %598 = tpu.matmul %529, %298, %cst_191 {dimension_numbers = #tpu.dot_dimension_numbers<[1], [0], [0], [1], [0, 0, 1, 1], [], []>} : vector<32x4xf32>, vector<4x128xf32>, vector<32x128xf32> -> vector<32x128xf32>
    %599 = vector.broadcast %299 : vector<1x128xf32> to vector<32x128xf32>
    %600 = arith.addf %598, %599 : vector<32x128xf32>
    %cst_192 = arith.constant 0.000000e+00 : f32
    %601 = vector.broadcast %cst_192 : f32 to vector<32x128xf32>
    %602 = arith.maximumf %600, %601 : vector<32x128xf32>
    %603 = vector.broadcast %cst_192 : f32 to vector<32x128xf32>
    %604 = arith.subf %600, %603 : vector<32x128xf32>
    %605 = arith.cmpf one, %604, %604 : vector<32x128xf32>
    %606 = vector.broadcast %cst_192 : f32 to vector<32x128xf32>
    %607 = arith.addf %600, %606 : vector<32x128xf32>
    %608 = math.absf %604 : vector<32x128xf32>
    %cst_193 = arith.constant 0.000000e+00 : f32
    %609 = vector.broadcast %cst_193 : f32 to vector<32x128xf32>
    %610 = arith.subf %609, %608 : vector<32x128xf32>
    %611 = math.exp %610 : vector<32x128xf32>
    %612 = math.log1p %611 : vector<32x128xf32>
    %613 = arith.addf %602, %612 : vector<32x128xf32>
    %614 = arith.select %605, %607, %613 : vector<32x128xi1>, vector<32x128xf32>
    %cst_194 = arith.constant dense<0.000000e+00> : vector<32x4xf32>
    %615 = tpu.matmul %614, %300, %cst_194 {dimension_numbers = #tpu.dot_dimension_numbers<[1], [0], [0], [1], [0, 0, 1, 1], [], []>} : vector<32x128xf32>, vector<128x4xf32>, vector<32x4xf32> -> vector<32x4xf32>
    %616 = vector.broadcast %301 : vector<1x4xf32> to vector<32x4xf32>
    %617 = arith.addf %615, %616 : vector<32x4xf32>
    %cst_195 = arith.constant 0.000000e+00 : f32
    %618 = vector.broadcast %cst_195 : f32 to vector<32x4xf32>
    %619 = arith.maximumf %617, %618 : vector<32x4xf32>
    %620 = vector.broadcast %cst_195 : f32 to vector<32x4xf32>
    %621 = arith.subf %617, %620 : vector<32x4xf32>
    %622 = arith.cmpf one, %621, %621 : vector<32x4xf32>
    %623 = vector.broadcast %cst_195 : f32 to vector<32x4xf32>
    %624 = arith.addf %617, %623 : vector<32x4xf32>
    %625 = math.absf %621 : vector<32x4xf32>
    %cst_196 = arith.constant 0.000000e+00 : f32
    %626 = vector.broadcast %cst_196 : f32 to vector<32x4xf32>
    %627 = arith.subf %626, %625 : vector<32x4xf32>
    %628 = math.exp %627 : vector<32x4xf32>
    %629 = math.log1p %628 : vector<32x4xf32>
    %630 = arith.addf %619, %629 : vector<32x4xf32>
    %631 = arith.select %622, %624, %630 : vector<32x4xi1>, vector<32x4xf32>
    %cst_197 = arith.constant 1.000000e-07 : f32
    %632 = vector.broadcast %cst_197 : f32 to vector<32x4xf32>
    %633 = arith.maximumf %631, %632 : vector<32x4xf32>
    %634 = arith.subf %594, %597 : vector<32x4xf32>
    %635 = arith.divf %634, %633 : vector<32x4xf32>
    %636 = arith.mulf %635, %635 : vector<32x4xf32>
    %637 = arith.addf %521, %636 : vector<32x4xf32>
    %cst_198 = arith.constant 1.000000e-01 : f32
    %638 = vector.broadcast %cst_198 : f32 to vector<32x4xf32>
    %639 = arith.mulf %594, %638 : vector<32x4xf32>
    %640 = arith.addf %529, %639 : vector<32x4xf32>
    %641 = arith.index_cast %c2_i32_176 : i32 to index
    %c0_199 = arith.constant 0 : index
    %c0_200 = arith.constant 0 : index
    %642 = vector.load %arg2[%641, %c0_199, %c0_200] : memref<7x32x4xf32, #tpu.memory_space<vmem>>, vector<1x32x4xf32>
    %643 = vector.shape_cast %642 : vector<1x32x4xf32> to vector<32x4xf32>
    %644 = arith.mulf %631, %643 : vector<32x4xf32>
    %645 = arith.addf %640, %644 : vector<32x4xf32>
    %c1_i32_201 = arith.constant 1 : i32
    %646 = arith.addi %c2_i32_176, %c1_i32_201 : i32
    %647 = arith.index_cast %646 : i32 to index
    %c0_202 = arith.constant 0 : index
    %c0_203 = arith.constant 0 : index
    %648 = vector.load %arg22[%647, %c0_202, %c0_203] : memref<8x32x4xf32, #tpu.memory_space<vmem>>, vector<1x32x4xf32>
    %649 = vector.shape_cast %648 : vector<1x32x4xf32> to vector<32x4xf32>
    %650 = vector.shape_cast %645 : vector<32x4xf32> to vector<1x32x4xf32>
    tpu.vector_store %arg22[%647, %c0_202, %c0_203], %650 {strides = array<i32>} : memref<8x32x4xf32, #tpu.memory_space<vmem>>, vector<1x32x4xf32>,
    %c3_i32_204 = arith.constant 3 : i32
    %c1_i32_205 = arith.constant 1 : i32
    %651 = arith.addi %c3_i32_204, %c1_i32_205 : i32
    %c32_i32_206 = arith.constant 32 : i32
    %652 = arith.muli %651, %c32_i32_206 : i32
    %653 = tpu.assume_multiple %652, 8 : i32
    %654 = arith.index_cast %653 : i32 to index
    %c0_207 = arith.constant 0 : index
    %655 = vector.load %arg26[%654, %c0_207] : memref<256x8xf32, #tpu.memory_space<vmem>>, vector<32x8xf32>
    %cst_208 = arith.constant dense<0.000000e+00> : vector<32x64xf32>
    %656 = tpu.matmul %645, %289, %cst_208 {dimension_numbers = #tpu.dot_dimension_numbers<[1], [0], [0], [1], [0, 0, 1, 1], [], []>} : vector<32x4xf32>, vector<4x64xf32>, vector<32x64xf32> -> vector<32x64xf32>
    %cst_209 = arith.constant dense<0.000000e+00> : vector<32x64xf32>
    %657 = tpu.matmul %655, %290, %cst_209 {dimension_numbers = #tpu.dot_dimension_numbers<[1], [0], [0], [1], [0, 0, 1, 1], [], []>} : vector<32x8xf32>, vector<8x64xf32>, vector<32x64xf32> -> vector<32x64xf32>
    %658 = arith.addf %656, %657 : vector<32x64xf32>
    %659 = vector.broadcast %291 : vector<1x64xf32> to vector<32x64xf32>
    %660 = arith.addf %658, %659 : vector<32x64xf32>
    %cst_210 = arith.constant 0.000000e+00 : f32
    %661 = vector.broadcast %cst_210 : f32 to vector<32x64xf32>
    %662 = arith.maximumf %660, %661 : vector<32x64xf32>
    %663 = vector.broadcast %cst_210 : f32 to vector<32x64xf32>
    %664 = arith.subf %660, %663 : vector<32x64xf32>
    %665 = arith.cmpf one, %664, %664 : vector<32x64xf32>
    %666 = vector.broadcast %cst_210 : f32 to vector<32x64xf32>
    %667 = arith.addf %660, %666 : vector<32x64xf32>
    %668 = math.absf %664 : vector<32x64xf32>
    %cst_211 = arith.constant 0.000000e+00 : f32
    %669 = vector.broadcast %cst_211 : f32 to vector<32x64xf32>
    %670 = arith.subf %669, %668 : vector<32x64xf32>
    %671 = math.exp %670 : vector<32x64xf32>
    %672 = math.log1p %671 : vector<32x64xf32>
    %673 = arith.addf %662, %672 : vector<32x64xf32>
    %674 = arith.select %665, %667, %673 : vector<32x64xi1>, vector<32x64xf32>
    %cst_212 = arith.constant dense<0.000000e+00> : vector<32x64xf32>
    %675 = tpu.matmul %674, %292, %cst_212 {dimension_numbers = #tpu.dot_dimension_numbers<[1], [0], [0], [1], [0, 0, 1, 1], [], []>} : vector<32x64xf32>, vector<64x64xf32>, vector<32x64xf32> -> vector<32x64xf32>
    %676 = vector.broadcast %293 : vector<1x64xf32> to vector<32x64xf32>
    %677 = arith.addf %675, %676 : vector<32x64xf32>
    %cst_213 = arith.constant 0.000000e+00 : f32
    %678 = vector.broadcast %cst_213 : f32 to vector<32x64xf32>
    %679 = arith.maximumf %677, %678 : vector<32x64xf32>
    %680 = vector.broadcast %cst_213 : f32 to vector<32x64xf32>
    %681 = arith.subf %677, %680 : vector<32x64xf32>
    %682 = arith.cmpf one, %681, %681 : vector<32x64xf32>
    %683 = vector.broadcast %cst_213 : f32 to vector<32x64xf32>
    %684 = arith.addf %677, %683 : vector<32x64xf32>
    %685 = math.absf %681 : vector<32x64xf32>
    %cst_214 = arith.constant 0.000000e+00 : f32
    %686 = vector.broadcast %cst_214 : f32 to vector<32x64xf32>
    %687 = arith.subf %686, %685 : vector<32x64xf32>
    %688 = math.exp %687 : vector<32x64xf32>
    %689 = math.log1p %688 : vector<32x64xf32>
    %690 = arith.addf %679, %689 : vector<32x64xf32>
    %691 = arith.select %682, %684, %690 : vector<32x64xi1>, vector<32x64xf32>
    %cst_215 = arith.constant dense<0.000000e+00> : vector<32x36xf32>
    %692 = tpu.matmul %691, %294, %cst_215 {dimension_numbers = #tpu.dot_dimension_numbers<[1], [0], [0], [1], [0, 0, 1, 1], [], []>} : vector<32x64xf32>, vector<64x36xf32>, vector<32x36xf32> -> vector<32x36xf32>
    %693 = vector.broadcast %295 : vector<1x36xf32> to vector<32x36xf32>
    %694 = arith.addf %692, %693 : vector<32x36xf32>
    %695 = vector.extract_strided_slice %694 {offsets = [0, 0], sizes = [32, 32], strides = [1, 1]} : vector<32x36xf32> to vector<32x32xf32>
    %cst_216 = arith.constant 0.000000e+00 : f32
    %696 = vector.broadcast %cst_216 : f32 to vector<32x32xf32>
    %697 = arith.maximumf %695, %696 : vector<32x32xf32>
    %698 = vector.broadcast %cst_216 : f32 to vector<32x32xf32>
    %699 = arith.subf %695, %698 : vector<32x32xf32>
    %700 = arith.cmpf one, %699, %699 : vector<32x32xf32>
    %701 = vector.broadcast %cst_216 : f32 to vector<32x32xf32>
    %702 = arith.addf %695, %701 : vector<32x32xf32>
    %703 = math.absf %699 : vector<32x32xf32>
    %cst_217 = arith.constant 0.000000e+00 : f32
    %704 = vector.broadcast %cst_217 : f32 to vector<32x32xf32>
    %705 = arith.subf %704, %703 : vector<32x32xf32>
    %706 = math.exp %705 : vector<32x32xf32>
    %707 = math.log1p %706 : vector<32x32xf32>
    %708 = arith.addf %697, %707 : vector<32x32xf32>
    %709 = arith.select %700, %702, %708 : vector<32x32xi1>, vector<32x32xf32>
    %710 = vector.extract_strided_slice %694 {offsets = [0, 32], sizes = [32, 4], strides = [1, 1]} : vector<32x36xf32> to vector<32x4xf32>
    %cst_218 = arith.constant dense<0.000000e+00> : vector<32x4xf32>
    %711 = tpu.matmul %709, %296, %cst_218 {dimension_numbers = #tpu.dot_dimension_numbers<[1], [0], [0], [1], [0, 0, 1, 1], [], []>} : vector<32x32xf32>, vector<32x4xf32>, vector<32x4xf32> -> vector<32x4xf32>
    %712 = vector.broadcast %297 : vector<1x4xf32> to vector<32x4xf32>
    %713 = arith.addf %711, %712 : vector<32x4xf32>
    %cst_219 = arith.constant dense<0.000000e+00> : vector<32x128xf32>
    %714 = tpu.matmul %645, %298, %cst_219 {dimension_numbers = #tpu.dot_dimension_numbers<[1], [0], [0], [1], [0, 0, 1, 1], [], []>} : vector<32x4xf32>, vector<4x128xf32>, vector<32x128xf32> -> vector<32x128xf32>
    %715 = vector.broadcast %299 : vector<1x128xf32> to vector<32x128xf32>
    %716 = arith.addf %714, %715 : vector<32x128xf32>
    %cst_220 = arith.constant 0.000000e+00 : f32
    %717 = vector.broadcast %cst_220 : f32 to vector<32x128xf32>
    %718 = arith.maximumf %716, %717 : vector<32x128xf32>
    %719 = vector.broadcast %cst_220 : f32 to vector<32x128xf32>
    %720 = arith.subf %716, %719 : vector<32x128xf32>
    %721 = arith.cmpf one, %720, %720 : vector<32x128xf32>
    %722 = vector.broadcast %cst_220 : f32 to vector<32x128xf32>
    %723 = arith.addf %716, %722 : vector<32x128xf32>
    %724 = math.absf %720 : vector<32x128xf32>
    %cst_221 = arith.constant 0.000000e+00 : f32
    %725 = vector.broadcast %cst_221 : f32 to vector<32x128xf32>
    %726 = arith.subf %725, %724 : vector<32x128xf32>
    %727 = math.exp %726 : vector<32x128xf32>
    %728 = math.log1p %727 : vector<32x128xf32>
    %729 = arith.addf %718, %728 : vector<32x128xf32>
    %730 = arith.select %721, %723, %729 : vector<32x128xi1>, vector<32x128xf32>
    %cst_222 = arith.constant dense<0.000000e+00> : vector<32x4xf32>
    %731 = tpu.matmul %730, %300, %cst_222 {dimension_numbers = #tpu.dot_dimension_numbers<[1], [0], [0], [1], [0, 0, 1, 1], [], []>} : vector<32x128xf32>, vector<128x4xf32>, vector<32x4xf32> -> vector<32x4xf32>
    %732 = vector.broadcast %301 : vector<1x4xf32> to vector<32x4xf32>
    %733 = arith.addf %731, %732 : vector<32x4xf32>
    %cst_223 = arith.constant 0.000000e+00 : f32
    %734 = vector.broadcast %cst_223 : f32 to vector<32x4xf32>
    %735 = arith.maximumf %733, %734 : vector<32x4xf32>
    %736 = vector.broadcast %cst_223 : f32 to vector<32x4xf32>
    %737 = arith.subf %733, %736 : vector<32x4xf32>
    %738 = arith.cmpf one, %737, %737 : vector<32x4xf32>
    %739 = vector.broadcast %cst_223 : f32 to vector<32x4xf32>
    %740 = arith.addf %733, %739 : vector<32x4xf32>
    %741 = math.absf %737 : vector<32x4xf32>
    %cst_224 = arith.constant 0.000000e+00 : f32
    %742 = vector.broadcast %cst_224 : f32 to vector<32x4xf32>
    %743 = arith.subf %742, %741 : vector<32x4xf32>
    %744 = math.exp %743 : vector<32x4xf32>
    %745 = math.log1p %744 : vector<32x4xf32>
    %746 = arith.addf %735, %745 : vector<32x4xf32>
    %747 = arith.select %738, %740, %746 : vector<32x4xi1>, vector<32x4xf32>
    %cst_225 = arith.constant 1.000000e-07 : f32
    %748 = vector.broadcast %cst_225 : f32 to vector<32x4xf32>
    %749 = arith.maximumf %747, %748 : vector<32x4xf32>
    %750 = arith.subf %710, %713 : vector<32x4xf32>
    %751 = arith.divf %750, %749 : vector<32x4xf32>
    %752 = arith.mulf %751, %751 : vector<32x4xf32>
    %753 = arith.addf %637, %752 : vector<32x4xf32>
    %cst_226 = arith.constant 1.000000e-01 : f32
    %754 = vector.broadcast %cst_226 : f32 to vector<32x4xf32>
    %755 = arith.mulf %710, %754 : vector<32x4xf32>
    %756 = arith.addf %645, %755 : vector<32x4xf32>
    %757 = arith.index_cast %c3_i32_204 : i32 to index
    %c0_227 = arith.constant 0 : index
    %c0_228 = arith.constant 0 : index
    %758 = vector.load %arg2[%757, %c0_227, %c0_228] : memref<7x32x4xf32, #tpu.memory_space<vmem>>, vector<1x32x4xf32>
    %759 = vector.shape_cast %758 : vector<1x32x4xf32> to vector<32x4xf32>
    %760 = arith.mulf %747, %759 : vector<32x4xf32>
    %761 = arith.addf %756, %760 : vector<32x4xf32>
    %c1_i32_229 = arith.constant 1 : i32
    %762 = arith.addi %c3_i32_204, %c1_i32_229 : i32
    %763 = arith.index_cast %762 : i32 to index
    %c0_230 = arith.constant 0 : index
    %c0_231 = arith.constant 0 : index
    %764 = vector.load %arg22[%763, %c0_230, %c0_231] : memref<8x32x4xf32, #tpu.memory_space<vmem>>, vector<1x32x4xf32>
    %765 = vector.shape_cast %764 : vector<1x32x4xf32> to vector<32x4xf32>
    %766 = vector.shape_cast %761 : vector<32x4xf32> to vector<1x32x4xf32>
    tpu.vector_store %arg22[%763, %c0_230, %c0_231], %766 {strides = array<i32>} : memref<8x32x4xf32, #tpu.memory_space<vmem>>, vector<1x32x4xf32>,
    %c4_i32_232 = arith.constant 4 : i32
    %c1_i32_233 = arith.constant 1 : i32
    %767 = arith.addi %c4_i32_232, %c1_i32_233 : i32
    %c32_i32_234 = arith.constant 32 : i32
    %768 = arith.muli %767, %c32_i32_234 : i32
    %769 = tpu.assume_multiple %768, 8 : i32
    %770 = arith.index_cast %769 : i32 to index
    %c0_235 = arith.constant 0 : index
    %771 = vector.load %arg26[%770, %c0_235] : memref<256x8xf32, #tpu.memory_space<vmem>>, vector<32x8xf32>
    %cst_236 = arith.constant dense<0.000000e+00> : vector<32x64xf32>
    %772 = tpu.matmul %761, %289, %cst_236 {dimension_numbers = #tpu.dot_dimension_numbers<[1], [0], [0], [1], [0, 0, 1, 1], [], []>} : vector<32x4xf32>, vector<4x64xf32>, vector<32x64xf32> -> vector<32x64xf32>
    %cst_237 = arith.constant dense<0.000000e+00> : vector<32x64xf32>
    %773 = tpu.matmul %771, %290, %cst_237 {dimension_numbers = #tpu.dot_dimension_numbers<[1], [0], [0], [1], [0, 0, 1, 1], [], []>} : vector<32x8xf32>, vector<8x64xf32>, vector<32x64xf32> -> vector<32x64xf32>
    %774 = arith.addf %772, %773 : vector<32x64xf32>
    %775 = vector.broadcast %291 : vector<1x64xf32> to vector<32x64xf32>
    %776 = arith.addf %774, %775 : vector<32x64xf32>
    %cst_238 = arith.constant 0.000000e+00 : f32
    %777 = vector.broadcast %cst_238 : f32 to vector<32x64xf32>
    %778 = arith.maximumf %776, %777 : vector<32x64xf32>
    %779 = vector.broadcast %cst_238 : f32 to vector<32x64xf32>
    %780 = arith.subf %776, %779 : vector<32x64xf32>
    %781 = arith.cmpf one, %780, %780 : vector<32x64xf32>
    %782 = vector.broadcast %cst_238 : f32 to vector<32x64xf32>
    %783 = arith.addf %776, %782 : vector<32x64xf32>
    %784 = math.absf %780 : vector<32x64xf32>
    %cst_239 = arith.constant 0.000000e+00 : f32
    %785 = vector.broadcast %cst_239 : f32 to vector<32x64xf32>
    %786 = arith.subf %785, %784 : vector<32x64xf32>
    %787 = math.exp %786 : vector<32x64xf32>
    %788 = math.log1p %787 : vector<32x64xf32>
    %789 = arith.addf %778, %788 : vector<32x64xf32>
    %790 = arith.select %781, %783, %789 : vector<32x64xi1>, vector<32x64xf32>
    %cst_240 = arith.constant dense<0.000000e+00> : vector<32x64xf32>
    %791 = tpu.matmul %790, %292, %cst_240 {dimension_numbers = #tpu.dot_dimension_numbers<[1], [0], [0], [1], [0, 0, 1, 1], [], []>} : vector<32x64xf32>, vector<64x64xf32>, vector<32x64xf32> -> vector<32x64xf32>
    %792 = vector.broadcast %293 : vector<1x64xf32> to vector<32x64xf32>
    %793 = arith.addf %791, %792 : vector<32x64xf32>
    %cst_241 = arith.constant 0.000000e+00 : f32
    %794 = vector.broadcast %cst_241 : f32 to vector<32x64xf32>
    %795 = arith.maximumf %793, %794 : vector<32x64xf32>
    %796 = vector.broadcast %cst_241 : f32 to vector<32x64xf32>
    %797 = arith.subf %793, %796 : vector<32x64xf32>
    %798 = arith.cmpf one, %797, %797 : vector<32x64xf32>
    %799 = vector.broadcast %cst_241 : f32 to vector<32x64xf32>
    %800 = arith.addf %793, %799 : vector<32x64xf32>
    %801 = math.absf %797 : vector<32x64xf32>
    %cst_242 = arith.constant 0.000000e+00 : f32
    %802 = vector.broadcast %cst_242 : f32 to vector<32x64xf32>
    %803 = arith.subf %802, %801 : vector<32x64xf32>
    %804 = math.exp %803 : vector<32x64xf32>
    %805 = math.log1p %804 : vector<32x64xf32>
    %806 = arith.addf %795, %805 : vector<32x64xf32>
    %807 = arith.select %798, %800, %806 : vector<32x64xi1>, vector<32x64xf32>
    %cst_243 = arith.constant dense<0.000000e+00> : vector<32x36xf32>
    %808 = tpu.matmul %807, %294, %cst_243 {dimension_numbers = #tpu.dot_dimension_numbers<[1], [0], [0], [1], [0, 0, 1, 1], [], []>} : vector<32x64xf32>, vector<64x36xf32>, vector<32x36xf32> -> vector<32x36xf32>
    %809 = vector.broadcast %295 : vector<1x36xf32> to vector<32x36xf32>
    %810 = arith.addf %808, %809 : vector<32x36xf32>
    %811 = vector.extract_strided_slice %810 {offsets = [0, 0], sizes = [32, 32], strides = [1, 1]} : vector<32x36xf32> to vector<32x32xf32>
    %cst_244 = arith.constant 0.000000e+00 : f32
    %812 = vector.broadcast %cst_244 : f32 to vector<32x32xf32>
    %813 = arith.maximumf %811, %812 : vector<32x32xf32>
    %814 = vector.broadcast %cst_244 : f32 to vector<32x32xf32>
    %815 = arith.subf %811, %814 : vector<32x32xf32>
    %816 = arith.cmpf one, %815, %815 : vector<32x32xf32>
    %817 = vector.broadcast %cst_244 : f32 to vector<32x32xf32>
    %818 = arith.addf %811, %817 : vector<32x32xf32>
    %819 = math.absf %815 : vector<32x32xf32>
    %cst_245 = arith.constant 0.000000e+00 : f32
    %820 = vector.broadcast %cst_245 : f32 to vector<32x32xf32>
    %821 = arith.subf %820, %819 : vector<32x32xf32>
    %822 = math.exp %821 : vector<32x32xf32>
    %823 = math.log1p %822 : vector<32x32xf32>
    %824 = arith.addf %813, %823 : vector<32x32xf32>
    %825 = arith.select %816, %818, %824 : vector<32x32xi1>, vector<32x32xf32>
    %826 = vector.extract_strided_slice %810 {offsets = [0, 32], sizes = [32, 4], strides = [1, 1]} : vector<32x36xf32> to vector<32x4xf32>
    %cst_246 = arith.constant dense<0.000000e+00> : vector<32x4xf32>
    %827 = tpu.matmul %825, %296, %cst_246 {dimension_numbers = #tpu.dot_dimension_numbers<[1], [0], [0], [1], [0, 0, 1, 1], [], []>} : vector<32x32xf32>, vector<32x4xf32>, vector<32x4xf32> -> vector<32x4xf32>
    %828 = vector.broadcast %297 : vector<1x4xf32> to vector<32x4xf32>
    %829 = arith.addf %827, %828 : vector<32x4xf32>
    %cst_247 = arith.constant dense<0.000000e+00> : vector<32x128xf32>
    %830 = tpu.matmul %761, %298, %cst_247 {dimension_numbers = #tpu.dot_dimension_numbers<[1], [0], [0], [1], [0, 0, 1, 1], [], []>} : vector<32x4xf32>, vector<4x128xf32>, vector<32x128xf32> -> vector<32x128xf32>
    %831 = vector.broadcast %299 : vector<1x128xf32> to vector<32x128xf32>
    %832 = arith.addf %830, %831 : vector<32x128xf32>
    %cst_248 = arith.constant 0.000000e+00 : f32
    %833 = vector.broadcast %cst_248 : f32 to vector<32x128xf32>
    %834 = arith.maximumf %832, %833 : vector<32x128xf32>
    %835 = vector.broadcast %cst_248 : f32 to vector<32x128xf32>
    %836 = arith.subf %832, %835 : vector<32x128xf32>
    %837 = arith.cmpf one, %836, %836 : vector<32x128xf32>
    %838 = vector.broadcast %cst_248 : f32 to vector<32x128xf32>
    %839 = arith.addf %832, %838 : vector<32x128xf32>
    %840 = math.absf %836 : vector<32x128xf32>
    %cst_249 = arith.constant 0.000000e+00 : f32
    %841 = vector.broadcast %cst_249 : f32 to vector<32x128xf32>
    %842 = arith.subf %841, %840 : vector<32x128xf32>
    %843 = math.exp %842 : vector<32x128xf32>
    %844 = math.log1p %843 : vector<32x128xf32>
    %845 = arith.addf %834, %844 : vector<32x128xf32>
    %846 = arith.select %837, %839, %845 : vector<32x128xi1>, vector<32x128xf32>
    %cst_250 = arith.constant dense<0.000000e+00> : vector<32x4xf32>
    %847 = tpu.matmul %846, %300, %cst_250 {dimension_numbers = #tpu.dot_dimension_numbers<[1], [0], [0], [1], [0, 0, 1, 1], [], []>} : vector<32x128xf32>, vector<128x4xf32>, vector<32x4xf32> -> vector<32x4xf32>
    %848 = vector.broadcast %301 : vector<1x4xf32> to vector<32x4xf32>
    %849 = arith.addf %847, %848 : vector<32x4xf32>
    %cst_251 = arith.constant 0.000000e+00 : f32
    %850 = vector.broadcast %cst_251 : f32 to vector<32x4xf32>
    %851 = arith.maximumf %849, %850 : vector<32x4xf32>
    %852 = vector.broadcast %cst_251 : f32 to vector<32x4xf32>
    %853 = arith.subf %849, %852 : vector<32x4xf32>
    %854 = arith.cmpf one, %853, %853 : vector<32x4xf32>
    %855 = vector.broadcast %cst_251 : f32 to vector<32x4xf32>
    %856 = arith.addf %849, %855 : vector<32x4xf32>
    %857 = math.absf %853 : vector<32x4xf32>
    %cst_252 = arith.constant 0.000000e+00 : f32
    %858 = vector.broadcast %cst_252 : f32 to vector<32x4xf32>
    %859 = arith.subf %858, %857 : vector<32x4xf32>
    %860 = math.exp %859 : vector<32x4xf32>
    %861 = math.log1p %860 : vector<32x4xf32>
    %862 = arith.addf %851, %861 : vector<32x4xf32>
    %863 = arith.select %854, %856, %862 : vector<32x4xi1>, vector<32x4xf32>
    %cst_253 = arith.constant 1.000000e-07 : f32
    %864 = vector.broadcast %cst_253 : f32 to vector<32x4xf32>
    %865 = arith.maximumf %863, %864 : vector<32x4xf32>
    %866 = arith.subf %826, %829 : vector<32x4xf32>
    %867 = arith.divf %866, %865 : vector<32x4xf32>
    %868 = arith.mulf %867, %867 : vector<32x4xf32>
    %869 = arith.addf %753, %868 : vector<32x4xf32>
    %cst_254 = arith.constant 1.000000e-01 : f32
    %870 = vector.broadcast %cst_254 : f32 to vector<32x4xf32>
    %871 = arith.mulf %826, %870 : vector<32x4xf32>
    %872 = arith.addf %761, %871 : vector<32x4xf32>
    %873 = arith.index_cast %c4_i32_232 : i32 to index
    %c0_255 = arith.constant 0 : index
    %c0_256 = arith.constant 0 : index
    %874 = vector.load %arg2[%873, %c0_255, %c0_256] : memref<7x32x4xf32, #tpu.memory_space<vmem>>, vector<1x32x4xf32>
    %875 = vector.shape_cast %874 : vector<1x32x4xf32> to vector<32x4xf32>
    %876 = arith.mulf %863, %875 : vector<32x4xf32>
    %877 = arith.addf %872, %876 : vector<32x4xf32>
    %c1_i32_257 = arith.constant 1 : i32
    %878 = arith.addi %c4_i32_232, %c1_i32_257 : i32
    %879 = arith.index_cast %878 : i32 to index
    %c0_258 = arith.constant 0 : index
    %c0_259 = arith.constant 0 : index
    %880 = vector.load %arg22[%879, %c0_258, %c0_259] : memref<8x32x4xf32, #tpu.memory_space<vmem>>, vector<1x32x4xf32>
    %881 = vector.shape_cast %880 : vector<1x32x4xf32> to vector<32x4xf32>
    %882 = vector.shape_cast %877 : vector<32x4xf32> to vector<1x32x4xf32>
    tpu.vector_store %arg22[%879, %c0_258, %c0_259], %882 {strides = array<i32>} : memref<8x32x4xf32, #tpu.memory_space<vmem>>, vector<1x32x4xf32>,
    %c5_i32_260 = arith.constant 5 : i32
    %c1_i32_261 = arith.constant 1 : i32
    %883 = arith.addi %c5_i32_260, %c1_i32_261 : i32
    %c32_i32_262 = arith.constant 32 : i32
    %884 = arith.muli %883, %c32_i32_262 : i32
    %885 = tpu.assume_multiple %884, 8 : i32
    %886 = arith.index_cast %885 : i32 to index
    %c0_263 = arith.constant 0 : index
    %887 = vector.load %arg26[%886, %c0_263] : memref<256x8xf32, #tpu.memory_space<vmem>>, vector<32x8xf32>
    %cst_264 = arith.constant dense<0.000000e+00> : vector<32x64xf32>
    %888 = tpu.matmul %877, %289, %cst_264 {dimension_numbers = #tpu.dot_dimension_numbers<[1], [0], [0], [1], [0, 0, 1, 1], [], []>} : vector<32x4xf32>, vector<4x64xf32>, vector<32x64xf32> -> vector<32x64xf32>
    %cst_265 = arith.constant dense<0.000000e+00> : vector<32x64xf32>
    %889 = tpu.matmul %887, %290, %cst_265 {dimension_numbers = #tpu.dot_dimension_numbers<[1], [0], [0], [1], [0, 0, 1, 1], [], []>} : vector<32x8xf32>, vector<8x64xf32>, vector<32x64xf32> -> vector<32x64xf32>
    %890 = arith.addf %888, %889 : vector<32x64xf32>
    %891 = vector.broadcast %291 : vector<1x64xf32> to vector<32x64xf32>
    %892 = arith.addf %890, %891 : vector<32x64xf32>
    %cst_266 = arith.constant 0.000000e+00 : f32
    %893 = vector.broadcast %cst_266 : f32 to vector<32x64xf32>
    %894 = arith.maximumf %892, %893 : vector<32x64xf32>
    %895 = vector.broadcast %cst_266 : f32 to vector<32x64xf32>
    %896 = arith.subf %892, %895 : vector<32x64xf32>
    %897 = arith.cmpf one, %896, %896 : vector<32x64xf32>
    %898 = vector.broadcast %cst_266 : f32 to vector<32x64xf32>
    %899 = arith.addf %892, %898 : vector<32x64xf32>
    %900 = math.absf %896 : vector<32x64xf32>
    %cst_267 = arith.constant 0.000000e+00 : f32
    %901 = vector.broadcast %cst_267 : f32 to vector<32x64xf32>
    %902 = arith.subf %901, %900 : vector<32x64xf32>
    %903 = math.exp %902 : vector<32x64xf32>
    %904 = math.log1p %903 : vector<32x64xf32>
    %905 = arith.addf %894, %904 : vector<32x64xf32>
    %906 = arith.select %897, %899, %905 : vector<32x64xi1>, vector<32x64xf32>
    %cst_268 = arith.constant dense<0.000000e+00> : vector<32x64xf32>
    %907 = tpu.matmul %906, %292, %cst_268 {dimension_numbers = #tpu.dot_dimension_numbers<[1], [0], [0], [1], [0, 0, 1, 1], [], []>} : vector<32x64xf32>, vector<64x64xf32>, vector<32x64xf32> -> vector<32x64xf32>
    %908 = vector.broadcast %293 : vector<1x64xf32> to vector<32x64xf32>
    %909 = arith.addf %907, %908 : vector<32x64xf32>
    %cst_269 = arith.constant 0.000000e+00 : f32
    %910 = vector.broadcast %cst_269 : f32 to vector<32x64xf32>
    %911 = arith.maximumf %909, %910 : vector<32x64xf32>
    %912 = vector.broadcast %cst_269 : f32 to vector<32x64xf32>
    %913 = arith.subf %909, %912 : vector<32x64xf32>
    %914 = arith.cmpf one, %913, %913 : vector<32x64xf32>
    %915 = vector.broadcast %cst_269 : f32 to vector<32x64xf32>
    %916 = arith.addf %909, %915 : vector<32x64xf32>
    %917 = math.absf %913 : vector<32x64xf32>
    %cst_270 = arith.constant 0.000000e+00 : f32
    %918 = vector.broadcast %cst_270 : f32 to vector<32x64xf32>
    %919 = arith.subf %918, %917 : vector<32x64xf32>
    %920 = math.exp %919 : vector<32x64xf32>
    %921 = math.log1p %920 : vector<32x64xf32>
    %922 = arith.addf %911, %921 : vector<32x64xf32>
    %923 = arith.select %914, %916, %922 : vector<32x64xi1>, vector<32x64xf32>
    %cst_271 = arith.constant dense<0.000000e+00> : vector<32x36xf32>
    %924 = tpu.matmul %923, %294, %cst_271 {dimension_numbers = #tpu.dot_dimension_numbers<[1], [0], [0], [1], [0, 0, 1, 1], [], []>} : vector<32x64xf32>, vector<64x36xf32>, vector<32x36xf32> -> vector<32x36xf32>
    %925 = vector.broadcast %295 : vector<1x36xf32> to vector<32x36xf32>
    %926 = arith.addf %924, %925 : vector<32x36xf32>
    %927 = vector.extract_strided_slice %926 {offsets = [0, 0], sizes = [32, 32], strides = [1, 1]} : vector<32x36xf32> to vector<32x32xf32>
    %cst_272 = arith.constant 0.000000e+00 : f32
    %928 = vector.broadcast %cst_272 : f32 to vector<32x32xf32>
    %929 = arith.maximumf %927, %928 : vector<32x32xf32>
    %930 = vector.broadcast %cst_272 : f32 to vector<32x32xf32>
    %931 = arith.subf %927, %930 : vector<32x32xf32>
    %932 = arith.cmpf one, %931, %931 : vector<32x32xf32>
    %933 = vector.broadcast %cst_272 : f32 to vector<32x32xf32>
    %934 = arith.addf %927, %933 : vector<32x32xf32>
    %935 = math.absf %931 : vector<32x32xf32>
    %cst_273 = arith.constant 0.000000e+00 : f32
    %936 = vector.broadcast %cst_273 : f32 to vector<32x32xf32>
    %937 = arith.subf %936, %935 : vector<32x32xf32>
    %938 = math.exp %937 : vector<32x32xf32>
    %939 = math.log1p %938 : vector<32x32xf32>
    %940 = arith.addf %929, %939 : vector<32x32xf32>
    %941 = arith.select %932, %934, %940 : vector<32x32xi1>, vector<32x32xf32>
    %942 = vector.extract_strided_slice %926 {offsets = [0, 32], sizes = [32, 4], strides = [1, 1]} : vector<32x36xf32> to vector<32x4xf32>
    %cst_274 = arith.constant dense<0.000000e+00> : vector<32x4xf32>
    %943 = tpu.matmul %941, %296, %cst_274 {dimension_numbers = #tpu.dot_dimension_numbers<[1], [0], [0], [1], [0, 0, 1, 1], [], []>} : vector<32x32xf32>, vector<32x4xf32>, vector<32x4xf32> -> vector<32x4xf32>
    %944 = vector.broadcast %297 : vector<1x4xf32> to vector<32x4xf32>
    %945 = arith.addf %943, %944 : vector<32x4xf32>
    %cst_275 = arith.constant dense<0.000000e+00> : vector<32x128xf32>
    %946 = tpu.matmul %877, %298, %cst_275 {dimension_numbers = #tpu.dot_dimension_numbers<[1], [0], [0], [1], [0, 0, 1, 1], [], []>} : vector<32x4xf32>, vector<4x128xf32>, vector<32x128xf32> -> vector<32x128xf32>
    %947 = vector.broadcast %299 : vector<1x128xf32> to vector<32x128xf32>
    %948 = arith.addf %946, %947 : vector<32x128xf32>
    %cst_276 = arith.constant 0.000000e+00 : f32
    %949 = vector.broadcast %cst_276 : f32 to vector<32x128xf32>
    %950 = arith.maximumf %948, %949 : vector<32x128xf32>
    %951 = vector.broadcast %cst_276 : f32 to vector<32x128xf32>
    %952 = arith.subf %948, %951 : vector<32x128xf32>
    %953 = arith.cmpf one, %952, %952 : vector<32x128xf32>
    %954 = vector.broadcast %cst_276 : f32 to vector<32x128xf32>
    %955 = arith.addf %948, %954 : vector<32x128xf32>
    %956 = math.absf %952 : vector<32x128xf32>
    %cst_277 = arith.constant 0.000000e+00 : f32
    %957 = vector.broadcast %cst_277 : f32 to vector<32x128xf32>
    %958 = arith.subf %957, %956 : vector<32x128xf32>
    %959 = math.exp %958 : vector<32x128xf32>
    %960 = math.log1p %959 : vector<32x128xf32>
    %961 = arith.addf %950, %960 : vector<32x128xf32>
    %962 = arith.select %953, %955, %961 : vector<32x128xi1>, vector<32x128xf32>
    %cst_278 = arith.constant dense<0.000000e+00> : vector<32x4xf32>
    %963 = tpu.matmul %962, %300, %cst_278 {dimension_numbers = #tpu.dot_dimension_numbers<[1], [0], [0], [1], [0, 0, 1, 1], [], []>} : vector<32x128xf32>, vector<128x4xf32>, vector<32x4xf32> -> vector<32x4xf32>
    %964 = vector.broadcast %301 : vector<1x4xf32> to vector<32x4xf32>
    %965 = arith.addf %963, %964 : vector<32x4xf32>
    %cst_279 = arith.constant 0.000000e+00 : f32
    %966 = vector.broadcast %cst_279 : f32 to vector<32x4xf32>
    %967 = arith.maximumf %965, %966 : vector<32x4xf32>
    %968 = vector.broadcast %cst_279 : f32 to vector<32x4xf32>
    %969 = arith.subf %965, %968 : vector<32x4xf32>
    %970 = arith.cmpf one, %969, %969 : vector<32x4xf32>
    %971 = vector.broadcast %cst_279 : f32 to vector<32x4xf32>
    %972 = arith.addf %965, %971 : vector<32x4xf32>
    %973 = math.absf %969 : vector<32x4xf32>
    %cst_280 = arith.constant 0.000000e+00 : f32
    %974 = vector.broadcast %cst_280 : f32 to vector<32x4xf32>
    %975 = arith.subf %974, %973 : vector<32x4xf32>
    %976 = math.exp %975 : vector<32x4xf32>
    %977 = math.log1p %976 : vector<32x4xf32>
    %978 = arith.addf %967, %977 : vector<32x4xf32>
    %979 = arith.select %970, %972, %978 : vector<32x4xi1>, vector<32x4xf32>
    %cst_281 = arith.constant 1.000000e-07 : f32
    %980 = vector.broadcast %cst_281 : f32 to vector<32x4xf32>
    %981 = arith.maximumf %979, %980 : vector<32x4xf32>
    %982 = arith.subf %942, %945 : vector<32x4xf32>
    %983 = arith.divf %982, %981 : vector<32x4xf32>
    %984 = arith.mulf %983, %983 : vector<32x4xf32>
    %985 = arith.addf %869, %984 : vector<32x4xf32>
    %cst_282 = arith.constant 1.000000e-01 : f32
    %986 = vector.broadcast %cst_282 : f32 to vector<32x4xf32>
    %987 = arith.mulf %942, %986 : vector<32x4xf32>
    %988 = arith.addf %877, %987 : vector<32x4xf32>
    %989 = arith.index_cast %c5_i32_260 : i32 to index
    %c0_283 = arith.constant 0 : index
    %c0_284 = arith.constant 0 : index
    %990 = vector.load %arg2[%989, %c0_283, %c0_284] : memref<7x32x4xf32, #tpu.memory_space<vmem>>, vector<1x32x4xf32>
    %991 = vector.shape_cast %990 : vector<1x32x4xf32> to vector<32x4xf32>
    %992 = arith.mulf %979, %991 : vector<32x4xf32>
    %993 = arith.addf %988, %992 : vector<32x4xf32>
    %c1_i32_285 = arith.constant 1 : i32
    %994 = arith.addi %c5_i32_260, %c1_i32_285 : i32
    %995 = arith.index_cast %994 : i32 to index
    %c0_286 = arith.constant 0 : index
    %c0_287 = arith.constant 0 : index
    %996 = vector.load %arg22[%995, %c0_286, %c0_287] : memref<8x32x4xf32, #tpu.memory_space<vmem>>, vector<1x32x4xf32>
    %997 = vector.shape_cast %996 : vector<1x32x4xf32> to vector<32x4xf32>
    %998 = vector.shape_cast %993 : vector<32x4xf32> to vector<1x32x4xf32>
    tpu.vector_store %arg22[%995, %c0_286, %c0_287], %998 {strides = array<i32>} : memref<8x32x4xf32, #tpu.memory_space<vmem>>, vector<1x32x4xf32>,
    %c6_i32_288 = arith.constant 6 : i32
    %c1_i32_289 = arith.constant 1 : i32
    %999 = arith.addi %c6_i32_288, %c1_i32_289 : i32
    %c32_i32_290 = arith.constant 32 : i32
    %1000 = arith.muli %999, %c32_i32_290 : i32
    %1001 = tpu.assume_multiple %1000, 8 : i32
    %1002 = arith.index_cast %1001 : i32 to index
    %c0_291 = arith.constant 0 : index
    %1003 = vector.load %arg26[%1002, %c0_291] : memref<256x8xf32, #tpu.memory_space<vmem>>, vector<32x8xf32>
    %cst_292 = arith.constant dense<0.000000e+00> : vector<32x64xf32>
    %1004 = tpu.matmul %993, %289, %cst_292 {dimension_numbers = #tpu.dot_dimension_numbers<[1], [0], [0], [1], [0, 0, 1, 1], [], []>} : vector<32x4xf32>, vector<4x64xf32>, vector<32x64xf32> -> vector<32x64xf32>
    %cst_293 = arith.constant dense<0.000000e+00> : vector<32x64xf32>
    %1005 = tpu.matmul %1003, %290, %cst_293 {dimension_numbers = #tpu.dot_dimension_numbers<[1], [0], [0], [1], [0, 0, 1, 1], [], []>} : vector<32x8xf32>, vector<8x64xf32>, vector<32x64xf32> -> vector<32x64xf32>
    %1006 = arith.addf %1004, %1005 : vector<32x64xf32>
    %1007 = vector.broadcast %291 : vector<1x64xf32> to vector<32x64xf32>
    %1008 = arith.addf %1006, %1007 : vector<32x64xf32>
    %cst_294 = arith.constant 0.000000e+00 : f32
    %1009 = vector.broadcast %cst_294 : f32 to vector<32x64xf32>
    %1010 = arith.maximumf %1008, %1009 : vector<32x64xf32>
    %1011 = vector.broadcast %cst_294 : f32 to vector<32x64xf32>
    %1012 = arith.subf %1008, %1011 : vector<32x64xf32>
    %1013 = arith.cmpf one, %1012, %1012 : vector<32x64xf32>
    %1014 = vector.broadcast %cst_294 : f32 to vector<32x64xf32>
    %1015 = arith.addf %1008, %1014 : vector<32x64xf32>
    %1016 = math.absf %1012 : vector<32x64xf32>
    %cst_295 = arith.constant 0.000000e+00 : f32
    %1017 = vector.broadcast %cst_295 : f32 to vector<32x64xf32>
    %1018 = arith.subf %1017, %1016 : vector<32x64xf32>
    %1019 = math.exp %1018 : vector<32x64xf32>
    %1020 = math.log1p %1019 : vector<32x64xf32>
    %1021 = arith.addf %1010, %1020 : vector<32x64xf32>
    %1022 = arith.select %1013, %1015, %1021 : vector<32x64xi1>, vector<32x64xf32>
    %cst_296 = arith.constant dense<0.000000e+00> : vector<32x64xf32>
    %1023 = tpu.matmul %1022, %292, %cst_296 {dimension_numbers = #tpu.dot_dimension_numbers<[1], [0], [0], [1], [0, 0, 1, 1], [], []>} : vector<32x64xf32>, vector<64x64xf32>, vector<32x64xf32> -> vector<32x64xf32>
    %1024 = vector.broadcast %293 : vector<1x64xf32> to vector<32x64xf32>
    %1025 = arith.addf %1023, %1024 : vector<32x64xf32>
    %cst_297 = arith.constant 0.000000e+00 : f32
    %1026 = vector.broadcast %cst_297 : f32 to vector<32x64xf32>
    %1027 = arith.maximumf %1025, %1026 : vector<32x64xf32>
    %1028 = vector.broadcast %cst_297 : f32 to vector<32x64xf32>
    %1029 = arith.subf %1025, %1028 : vector<32x64xf32>
    %1030 = arith.cmpf one, %1029, %1029 : vector<32x64xf32>
    %1031 = vector.broadcast %cst_297 : f32 to vector<32x64xf32>
    %1032 = arith.addf %1025, %1031 : vector<32x64xf32>
    %1033 = math.absf %1029 : vector<32x64xf32>
    %cst_298 = arith.constant 0.000000e+00 : f32
    %1034 = vector.broadcast %cst_298 : f32 to vector<32x64xf32>
    %1035 = arith.subf %1034, %1033 : vector<32x64xf32>
    %1036 = math.exp %1035 : vector<32x64xf32>
    %1037 = math.log1p %1036 : vector<32x64xf32>
    %1038 = arith.addf %1027, %1037 : vector<32x64xf32>
    %1039 = arith.select %1030, %1032, %1038 : vector<32x64xi1>, vector<32x64xf32>
    %cst_299 = arith.constant dense<0.000000e+00> : vector<32x36xf32>
    %1040 = tpu.matmul %1039, %294, %cst_299 {dimension_numbers = #tpu.dot_dimension_numbers<[1], [0], [0], [1], [0, 0, 1, 1], [], []>} : vector<32x64xf32>, vector<64x36xf32>, vector<32x36xf32> -> vector<32x36xf32>
    %1041 = vector.broadcast %295 : vector<1x36xf32> to vector<32x36xf32>
    %1042 = arith.addf %1040, %1041 : vector<32x36xf32>
    %1043 = vector.extract_strided_slice %1042 {offsets = [0, 0], sizes = [32, 32], strides = [1, 1]} : vector<32x36xf32> to vector<32x32xf32>
    %cst_300 = arith.constant 0.000000e+00 : f32
    %1044 = vector.broadcast %cst_300 : f32 to vector<32x32xf32>
    %1045 = arith.maximumf %1043, %1044 : vector<32x32xf32>
    %1046 = vector.broadcast %cst_300 : f32 to vector<32x32xf32>
    %1047 = arith.subf %1043, %1046 : vector<32x32xf32>
    %1048 = arith.cmpf one, %1047, %1047 : vector<32x32xf32>
    %1049 = vector.broadcast %cst_300 : f32 to vector<32x32xf32>
    %1050 = arith.addf %1043, %1049 : vector<32x32xf32>
    %1051 = math.absf %1047 : vector<32x32xf32>
    %cst_301 = arith.constant 0.000000e+00 : f32
    %1052 = vector.broadcast %cst_301 : f32 to vector<32x32xf32>
    %1053 = arith.subf %1052, %1051 : vector<32x32xf32>
    %1054 = math.exp %1053 : vector<32x32xf32>
    %1055 = math.log1p %1054 : vector<32x32xf32>
    %1056 = arith.addf %1045, %1055 : vector<32x32xf32>
    %1057 = arith.select %1048, %1050, %1056 : vector<32x32xi1>, vector<32x32xf32>
    %1058 = vector.extract_strided_slice %1042 {offsets = [0, 32], sizes = [32, 4], strides = [1, 1]} : vector<32x36xf32> to vector<32x4xf32>
    %cst_302 = arith.constant dense<0.000000e+00> : vector<32x4xf32>
    %1059 = tpu.matmul %1057, %296, %cst_302 {dimension_numbers = #tpu.dot_dimension_numbers<[1], [0], [0], [1], [0, 0, 1, 1], [], []>} : vector<32x32xf32>, vector<32x4xf32>, vector<32x4xf32> -> vector<32x4xf32>
    %1060 = vector.broadcast %297 : vector<1x4xf32> to vector<32x4xf32>
    %1061 = arith.addf %1059, %1060 : vector<32x4xf32>
    %cst_303 = arith.constant dense<0.000000e+00> : vector<32x128xf32>
    %1062 = tpu.matmul %993, %298, %cst_303 {dimension_numbers = #tpu.dot_dimension_numbers<[1], [0], [0], [1], [0, 0, 1, 1], [], []>} : vector<32x4xf32>, vector<4x128xf32>, vector<32x128xf32> -> vector<32x128xf32>
    %1063 = vector.broadcast %299 : vector<1x128xf32> to vector<32x128xf32>
    %1064 = arith.addf %1062, %1063 : vector<32x128xf32>
    %cst_304 = arith.constant 0.000000e+00 : f32
    %1065 = vector.broadcast %cst_304 : f32 to vector<32x128xf32>
    %1066 = arith.maximumf %1064, %1065 : vector<32x128xf32>
    %1067 = vector.broadcast %cst_304 : f32 to vector<32x128xf32>
    %1068 = arith.subf %1064, %1067 : vector<32x128xf32>
    %1069 = arith.cmpf one, %1068, %1068 : vector<32x128xf32>
    %1070 = vector.broadcast %cst_304 : f32 to vector<32x128xf32>
    %1071 = arith.addf %1064, %1070 : vector<32x128xf32>
    %1072 = math.absf %1068 : vector<32x128xf32>
    %cst_305 = arith.constant 0.000000e+00 : f32
    %1073 = vector.broadcast %cst_305 : f32 to vector<32x128xf32>
    %1074 = arith.subf %1073, %1072 : vector<32x128xf32>
    %1075 = math.exp %1074 : vector<32x128xf32>
    %1076 = math.log1p %1075 : vector<32x128xf32>
    %1077 = arith.addf %1066, %1076 : vector<32x128xf32>
    %1078 = arith.select %1069, %1071, %1077 : vector<32x128xi1>, vector<32x128xf32>
    %cst_306 = arith.constant dense<0.000000e+00> : vector<32x4xf32>
    %1079 = tpu.matmul %1078, %300, %cst_306 {dimension_numbers = #tpu.dot_dimension_numbers<[1], [0], [0], [1], [0, 0, 1, 1], [], []>} : vector<32x128xf32>, vector<128x4xf32>, vector<32x4xf32> -> vector<32x4xf32>
    %1080 = vector.broadcast %301 : vector<1x4xf32> to vector<32x4xf32>
    %1081 = arith.addf %1079, %1080 : vector<32x4xf32>
    %cst_307 = arith.constant 0.000000e+00 : f32
    %1082 = vector.broadcast %cst_307 : f32 to vector<32x4xf32>
    %1083 = arith.maximumf %1081, %1082 : vector<32x4xf32>
    %1084 = vector.broadcast %cst_307 : f32 to vector<32x4xf32>
    %1085 = arith.subf %1081, %1084 : vector<32x4xf32>
    %1086 = arith.cmpf one, %1085, %1085 : vector<32x4xf32>
    %1087 = vector.broadcast %cst_307 : f32 to vector<32x4xf32>
    %1088 = arith.addf %1081, %1087 : vector<32x4xf32>
    %1089 = math.absf %1085 : vector<32x4xf32>
    %cst_308 = arith.constant 0.000000e+00 : f32
    %1090 = vector.broadcast %cst_308 : f32 to vector<32x4xf32>
    %1091 = arith.subf %1090, %1089 : vector<32x4xf32>
    %1092 = math.exp %1091 : vector<32x4xf32>
    %1093 = math.log1p %1092 : vector<32x4xf32>
    %1094 = arith.addf %1083, %1093 : vector<32x4xf32>
    %1095 = arith.select %1086, %1088, %1094 : vector<32x4xi1>, vector<32x4xf32>
    %cst_309 = arith.constant 1.000000e-07 : f32
    %1096 = vector.broadcast %cst_309 : f32 to vector<32x4xf32>
    %1097 = arith.maximumf %1095, %1096 : vector<32x4xf32>
    %1098 = arith.subf %1058, %1061 : vector<32x4xf32>
    %1099 = arith.divf %1098, %1097 : vector<32x4xf32>
    %1100 = arith.mulf %1099, %1099 : vector<32x4xf32>
    %1101 = arith.addf %985, %1100 : vector<32x4xf32>
    %cst_310 = arith.constant 1.000000e-01 : f32
    %1102 = vector.broadcast %cst_310 : f32 to vector<32x4xf32>
    %1103 = arith.mulf %1058, %1102 : vector<32x4xf32>
    %1104 = arith.addf %993, %1103 : vector<32x4xf32>
    %1105 = arith.index_cast %c6_i32_288 : i32 to index
    %c0_311 = arith.constant 0 : index
    %c0_312 = arith.constant 0 : index
    %1106 = vector.load %arg2[%1105, %c0_311, %c0_312] : memref<7x32x4xf32, #tpu.memory_space<vmem>>, vector<1x32x4xf32>
    %1107 = vector.shape_cast %1106 : vector<1x32x4xf32> to vector<32x4xf32>
    %1108 = arith.mulf %1095, %1107 : vector<32x4xf32>
    %1109 = arith.addf %1104, %1108 : vector<32x4xf32>
    %c1_i32_313 = arith.constant 1 : i32
    %1110 = arith.addi %c6_i32_288, %c1_i32_313 : i32
    %1111 = arith.index_cast %1110 : i32 to index
    %c0_314 = arith.constant 0 : index
    %c0_315 = arith.constant 0 : index
    %1112 = vector.load %arg22[%1111, %c0_314, %c0_315] : memref<8x32x4xf32, #tpu.memory_space<vmem>>, vector<1x32x4xf32>
    %1113 = vector.shape_cast %1112 : vector<1x32x4xf32> to vector<32x4xf32>
    %1114 = vector.shape_cast %1109 : vector<32x4xf32> to vector<1x32x4xf32>
    tpu.vector_store %arg22[%1111, %c0_314, %c0_315], %1114 {strides = array<i32>} : memref<8x32x4xf32, #tpu.memory_space<vmem>>, vector<1x32x4xf32>,
    %c7_i32_316 = arith.constant 7 : i32
    %cst_317 = arith.constant dense<0.000000e+00> : vector<32xf32>
    %1115 = vector.multi_reduction <add>, %1101, %cst_317 [1] : vector<32x4xf32> to vector<32xf32>
    %1116 = vector.shape_cast %1115 : vector<32xf32> to vector<32x1xf32>
    %cst_318 = arith.constant 5.000000e-02 : f32
    %1117 = vector.broadcast %cst_318 : f32 to vector<32x1xf32>
    %1118 = arith.mulf %1117, %1116 : vector<32x1xf32>
    %c0_319 = arith.constant 0 : index
    %c0_320 = arith.constant 0 : index
    %1119 = vector.load %arg23[%c0_319, %c0_320] : memref<32x1xf32, #tpu.memory_space<vmem>>, vector<32x1xf32>
    tpu.vector_store %arg23[%c0_319, %c0_320], %1118 {strides = array<i32>} : memref<32x1xf32, #tpu.memory_space<vmem>>, vector<32x1xf32>,
    %1120 = tpu.iota {dimensions = array<i32: 1>} : vector<32x4xi32>
    %c1_i32_321 = arith.constant 1 : i32
    %1121 = vector.broadcast %c1_i32_321 : i32 to vector<32x4xi32>
    %1122 = arith.cmpi sge, %1120, %1121 : vector<32x4xi32>
    %c0_322 = arith.constant 0 : index
    %c0_323 = arith.constant 0 : index
    %c0_324 = arith.constant 0 : index
    %1123 = vector.load %arg1[%c0_322, %c0_323, %c0_324] : memref<8x32x4xf32, #tpu.memory_space<vmem>>, vector<8x32x4xf32>
    %c0_325 = arith.constant 0 : index
    %c0_326 = arith.constant 0 : index
    %c0_327 = arith.constant 0 : index
    %1124 = vector.load %arg22[%c0_325, %c0_326, %c0_327] : memref<8x32x4xf32, #tpu.memory_space<vmem>>, vector<8x32x4xf32>
    %1125 = arith.subf %1123, %1124 : vector<8x32x4xf32>
    %cst_328 = arith.constant 1.000000e+02 : f32
    %1126 = vector.broadcast %cst_328 : f32 to vector<8x32x4xf32>
    %1127 = arith.mulf %1125, %1126 : vector<8x32x4xf32>
    %1128 = arith.mulf %1127, %1127 : vector<8x32x4xf32>
    %cst_329 = arith.constant dense<0.000000e+00> : vector<32x4xf32>
    %1129 = vector.multi_reduction <add>, %1128, %cst_329 [0] : vector<8x32x4xf32> to vector<32x4xf32>
    %cst_330 = arith.constant -5.000000e-01 : f32
    %1130 = vector.broadcast %cst_330 : f32 to vector<32x4xf32>
    %1131 = arith.mulf %1130, %1129 : vector<32x4xf32>
    %cst_331 = arith.constant 29.4898529 : f32
    %1132 = vector.broadcast %cst_331 : f32 to vector<32x4xf32>
    %1133 = arith.addf %1131, %1132 : vector<32x4xf32>
    %cst_332 = arith.constant 0.000000e+00 : f32
    %1134 = vector.broadcast %cst_332 : f32 to vector<32x4xf32>
    %1135 = arith.select %1122, %1133, %1134 : vector<32x4xi1>, vector<32x4xf32>
    %cst_333 = arith.constant dense<0.000000e+00> : vector<32xf32>
    %1136 = vector.multi_reduction <add>, %1135, %cst_333 [1] : vector<32x4xf32> to vector<32xf32>
    %1137 = vector.shape_cast %1136 : vector<32xf32> to vector<32x1xf32>
    %c0_334 = arith.constant 0 : index
    %c0_335 = arith.constant 0 : index
    %1138 = vector.load %arg24[%c0_334, %c0_335] : memref<32x1xf32, #tpu.memory_space<vmem>>, vector<32x1xf32>
    tpu.vector_store %arg24[%c0_334, %c0_335], %1137 {strides = array<i32>} : memref<32x1xf32, #tpu.memory_space<vmem>>, vector<32x1xf32>,
    return
  }
  func.func @transform_0(%arg0: i32) -> (i32, i32, i32) {
    %c0_i32 = arith.constant 0 : i32
    %c0_i32_0 = arith.constant 0 : i32
    %c0_i32_1 = arith.constant 0 : i32
    return %c0_i32, %arg0, %c0_i32_0 : i32, i32, i32
  }
  func.func @transform_1(%arg0: i32) -> (i32, i32, i32) {
    %c0_i32 = arith.constant 0 : i32
    %c0_i32_0 = arith.constant 0 : i32
    %c0_i32_1 = arith.constant 0 : i32
    return %c0_i32, %arg0, %c0_i32_0 : i32, i32, i32
  }
  func.func @transform_2(%arg0: i32) -> (i32, i32) {
    %c0_i32 = arith.constant 0 : i32
    %c0_i32_0 = arith.constant 0 : i32
    %c0_i32_1 = arith.constant 0 : i32
    return %c0_i32, %c0_i32_0 : i32, i32
  }
  func.func @transform_3(%arg0: i32) -> (i32, i32) {
    %c0_i32 = arith.constant 0 : i32
    %c0_i32_0 = arith.constant 0 : i32
    %c0_i32_1 = arith.constant 0 : i32
    return %c0_i32, %c0_i32_0 : i32, i32
  }
  func.func @transform_4(%arg0: i32) -> (i32, i32) {
    %c0_i32 = arith.constant 0 : i32
    %c0_i32_0 = arith.constant 0 : i32
    %c0_i32_1 = arith.constant 0 : i32
    return %c0_i32, %c0_i32_0 : i32, i32
  }
  func.func @transform_5(%arg0: i32) -> (i32, i32) {
    %c0_i32 = arith.constant 0 : i32
    %c0_i32_0 = arith.constant 0 : i32
    %c0_i32_1 = arith.constant 0 : i32
    return %c0_i32, %c0_i32_0 : i32, i32
  }
  func.func @transform_6(%arg0: i32) -> (i32, i32) {
    %c0_i32 = arith.constant 0 : i32
    %c0_i32_0 = arith.constant 0 : i32
    %c0_i32_1 = arith.constant 0 : i32
    return %c0_i32, %c0_i32_0 : i32, i32
  }
  func.func @transform_7(%arg0: i32) -> (i32, i32) {
    %c0_i32 = arith.constant 0 : i32
    %c0_i32_0 = arith.constant 0 : i32
    %c0_i32_1 = arith.constant 0 : i32
    return %c0_i32, %c0_i32_0 : i32, i32
  }
  func.func @transform_8(%arg0: i32) -> (i32, i32) {
    %c0_i32 = arith.constant 0 : i32
    %c0_i32_0 = arith.constant 0 : i32
    %c0_i32_1 = arith.constant 0 : i32
    return %c0_i32, %c0_i32_0 : i32, i32
  }
  func.func @transform_9(%arg0: i32) -> (i32, i32) {
    %c0_i32 = arith.constant 0 : i32
    %c0_i32_0 = arith.constant 0 : i32
    %c0_i32_1 = arith.constant 0 : i32
    return %c0_i32, %c0_i32_0 : i32, i32
  }
  func.func @transform_10(%arg0: i32) -> (i32, i32) {
    %c0_i32 = arith.constant 0 : i32
    %c0_i32_0 = arith.constant 0 : i32
    %c0_i32_1 = arith.constant 0 : i32
    return %c0_i32, %c0_i32_0 : i32, i32
  }
  func.func @transform_11(%arg0: i32) -> (i32, i32) {
    %c0_i32 = arith.constant 0 : i32
    %c0_i32_0 = arith.constant 0 : i32
    %c0_i32_1 = arith.constant 0 : i32
    return %c0_i32, %c0_i32_0 : i32, i32
  }
  func.func @transform_12(%arg0: i32) -> (i32, i32) {
    %c0_i32 = arith.constant 0 : i32
    %c0_i32_0 = arith.constant 0 : i32
    %c0_i32_1 = arith.constant 0 : i32
    return %c0_i32, %c0_i32_0 : i32, i32
  }
  func.func @transform_13(%arg0: i32) -> (i32, i32) {
    %c0_i32 = arith.constant 0 : i32
    %c0_i32_0 = arith.constant 0 : i32
    %c0_i32_1 = arith.constant 0 : i32
    return %c0_i32, %c0_i32_0 : i32, i32
  }
  func.func @transform_14(%arg0: i32) -> (i32, i32) {
    %c0_i32 = arith.constant 0 : i32
    %c0_i32_0 = arith.constant 0 : i32
    %c0_i32_1 = arith.constant 0 : i32
    return %c0_i32, %c0_i32_0 : i32, i32
  }
  func.func @transform_15(%arg0: i32) -> (i32, i32) {
    %c0_i32 = arith.constant 0 : i32
    %c0_i32_0 = arith.constant 0 : i32
    %c0_i32_1 = arith.constant 0 : i32
    return %c0_i32, %c0_i32_0 : i32, i32
  }
  func.func @transform_16(%arg0: i32) -> (i32, i32) {
    %c0_i32 = arith.constant 0 : i32
    %c0_i32_0 = arith.constant 0 : i32
    %c0_i32_1 = arith.constant 0 : i32
    return %c0_i32, %c0_i32_0 : i32, i32
  }
  func.func @transform_17(%arg0: i32) -> (i32, i32) {
    %c0_i32 = arith.constant 0 : i32
    %c0_i32_0 = arith.constant 0 : i32
    %c0_i32_1 = arith.constant 0 : i32
    return %c0_i32, %c0_i32_0 : i32, i32
  }
  func.func @transform_18(%arg0: i32) -> (i32, i32) {
    %c0_i32 = arith.constant 0 : i32
    %c0_i32_0 = arith.constant 0 : i32
    %c0_i32_1 = arith.constant 0 : i32
    return %c0_i32, %c0_i32_0 : i32, i32
  }
  func.func @transform_19(%arg0: i32) -> (i32, i32) {
    %c0_i32 = arith.constant 0 : i32
    %c0_i32_0 = arith.constant 0 : i32
    %c0_i32_1 = arith.constant 0 : i32
    return %c0_i32, %c0_i32_0 : i32, i32
  }
  func.func @transform_20(%arg0: i32) -> (i32, i32) {
    %c0_i32 = arith.constant 0 : i32
    %c0_i32_0 = arith.constant 0 : i32
    %c0_i32_1 = arith.constant 0 : i32
    return %c0_i32, %c0_i32_0 : i32, i32
  }
  func.func @transform_21(%arg0: i32) -> (i32, i32, i32) {
    %c0_i32 = arith.constant 0 : i32
    %c0_i32_0 = arith.constant 0 : i32
    %c0_i32_1 = arith.constant 0 : i32
    return %c0_i32, %arg0, %c0_i32_0 : i32, i32, i32
  }
  func.func @transform_22(%arg0: i32) -> (i32, i32) {
    %c0_i32 = arith.constant 0 : i32
    %c0_i32_0 = arith.constant 0 : i32
    return %arg0, %c0_i32 : i32, i32
  }
  func.func @transform_23(%arg0: i32) -> (i32, i32) {
    %c0_i32 = arith.constant 0 : i32
    %c0_i32_0 = arith.constant 0 : i32
    return %arg0, %c0_i32 : i32, i32
  }
}

</mosaic_0001>

<bundles_post_ra>
// kernel: tpu_custom_call.1
= control target key start
LH: loop header
LB: loop body
LE: loop exit
PB: predicated region body
PF: predicated region fallthrough
CT: control target
= control target key end

     0   :  { %vm102_vm0 = vcmask 1043456   ;;  %vm89_vm1 = vcmask 31744   ;;  %v14845_v3 = vmov 0.0   ;;  %s14846_s27 = smov 64   ;;  %vm197_vm2 = vcmask 261120   ;;  %s18647_s3 = inlined_call_operand.vmem [shape: f32[32,96], index: 3, kind: input, shape index: {}]   ;;  %s18648_s2 = inlined_call_operand.vmem [shape: f32[4,96], index: 2, kind: input, shape index: {}]   ;;  %s18649_s0 = inlined_call_operand.vmem [shape: f32[8,32,4], index: 0, kind: input, shape index: {}]   ;;  %s18650_s5 = inlined_call_operand.vmem [shape: f32[1,96], index: 5, kind: input, shape index: {}]   ;;  %s18651_s4 = inlined_call_operand.vmem [shape: f32[1,96], index: 4, kind: input, shape index: {}]   ;;  %s18652_s6 = inlined_call_operand.vmem [shape: f32[32,8], index: 6, kind: input, shape index: {}]   ;;  %s18653_s9 = inlined_call_operand.vmem [shape: f32[8,64], index: 9, kind: input, shape index: {}]   ;;  %s18654_s8 = inlined_call_operand.vmem [shape: f32[4,64], index: 8, kind: input, shape index: {}]   ;;  %s18655_s21 = inlined_call_operand.vmem [shape: f32[8,32,4], index: 21, kind: output, shape index: {0}]   ;;  %s18656_s7 = inlined_call_operand.vmem [shape: f32[1,8], index: 7, kind: input, shape index: {}]   ;;  %s18657_s11 = inlined_call_operand.vmem [shape: f32[64,64], index: 11, kind: input, shape index: {}]   ;;  %s18658_s10 = inlined_call_operand.vmem [shape: f32[1,64], index: 10, kind: input, shape index: {}]   ;;  %s18659_s13 = inlined_call_operand.vmem [shape: f32[64,36], index: 13, kind: input, shape index: {}]   ;;  %s18660_s12 = inlined_call_operand.vmem [shape: f32[1,64], index: 12, kind: input, shape index: {}]   ;;  %s18661_s15 = inlined_call_operand.vmem [shape: f32[32,4], index: 15, kind: input, shape index: {}]   ;;  %s18662_s17 = inlined_call_operand.vmem [shape: f32[4,128], index: 17, kind: input, shape index: {}]   ;;  %s18663_s14 = inlined_call_operand.vmem [shape: f32[1,36], index: 14, kind: input, shape index: {}]   ;;  %s18664_s19 = inlined_call_operand.vmem [shape: f32[128,4], index: 19, kind: input, shape index: {}]   ;;  %s18665_s18 = inlined_call_operand.vmem [shape: f32[1,128], index: 18, kind: input, shape index: {}]   ;;  %s18666_s20 = inlined_call_operand.vmem [shape: f32[1,4], index: 20, kind: input, shape index: {}]   ;;  %s18667_s1 = inlined_call_operand.vmem [shape: f32[7,32,4], index: 1, kind: input, shape index: {}]   ;;  %s18668_s16 = inlined_call_operand.vmem [shape: f32[1,4], index: 16, kind: input, shape index: {}]   ;;  %s18669_s23 = inlined_call_operand.vmem [shape: f32[32,1], index: 23, kind: output, shape index: {2}]   ;;  %s18670_s22 = inlined_call_operand.vmem [shape: f32[32,1], index: 22, kind: output, shape index: {1}]  }
   0x1   :  { %18713 = sst [smem:[#allocation54_spill]] %s18647_s3  ;;  %12323 = vmatprep.mubr.f32.mxu1 %v14845_v3  ;;  %vm3013_vm3 = vcmask 64512   ;;  %vm3389_vm7 = vcmask 523264  }
   0x2   :  { %18714 = sst [smem:[#allocation55_spill]] %s18648_s2  ;;  %s18721_s24 = sld [smem:[#allocation54_spill]] }
   0x3   :  { %18715 = sst [smem:[#allocation56_spill]] %s18649_s0  ;;  %s18722_s28 = sld [smem:[#allocation55_spill]] }
   0x4   :  { %18716 = sst [smem:[#allocation57_spill]] %s18650_s5  ;;  %s18723_s3 = sld [smem:[#allocation56_spill]] }
   0x5   :  { %18717 = sst [smem:[#allocation58_spill]] %s18651_s4  ;;  %s14847_s4 = smov 96  }
   0x6   :  { %18718 = sst [smem:[#allocation59_spill]] %s18652_s6  ;;  %s18725_s5 = sld [smem:[#allocation58_spill]] }
   0x7   :  { %18719 = sst [smem:[#allocation60_spill]] %s18653_s9  ;;  %s18724_s9 = sld [smem:[#allocation57_spill]] }
   0x8   :  { %18720 = sst [smem:[#allocation61_spill]] %s18654_s8  ;;  %v72_v0 = vld [vmem:[%s18721_s24] sm:$0xff]  ;;  %v73_v1 = vld [vmem:[%s18721_s24 + $0x8] sm:$0xff]  ;;  %v74_v2 = vld [vmem:[%s18721_s24 + $0x10] sm:$0xff]  ;;  %s14848_s2 = smov 32  }
   0x9   :  { %v14978_v4 = vpack.c.bf16 %v73_v1, %v72_v0  ;;  %v75_v5 = vld [vmem:[%s18721_s24 + $0x18] sm:$0xff]  ;;  %v14986_v6 = vld [vmem:[%s18722_s28] sm:$0xf]  ;;  %s18726_s24 = sld [smem:[#allocation59_spill]]  ;;  %s18728_s30 = sld [smem:[#allocation61_spill]] }
   0xa   :  { %v11295_v7 = vld [vmem:[%s18723_s3 + $0xe0] sm:$0xff]  ;;  %v14991_v8 = vpack.c.bf16 %v75_v5, %v74_v2  ;;  %12307 = vmatprep.subr.msk.mxu0 %vm102_vm0, %v14986_v6  ;;  %v11296_v9 = vld [vmem:[%s18723_s3 + $0xe8] sm:$0xff]  ;;  %v11297_v10 = vld [vmem:[%s18723_s3 + $0xf0] sm:$0xff] }
   0xb   :  { %12309 = vmatprep.mubr.msk.f32.mxu0 %vm89_vm1, %v11295_v7  ;;  %13380 = vmatprep.subr.bf16.mxu1 %v14978_v4  ;;  %v11298_v11 = vld [vmem:[%s18723_s3 + $0xf8] sm:$0xff] }
   0xc   :  { %12308 = vmatpush3.msk.msra.mxu0 %vm102_vm0, %v14986_v6  ;;  %13382 = vmatpush3.bf16.msra.mxu1 %v14978_v4  ;;  %v15041_v25 = vld [vmem:[%s18725_s5] ss:$0 sm:$0xff] }
   0xd   :  { %12310 = vmatmul.mubr.msk.f32.vlgmr.msra.gmra.mrb[0].mxu0 %vm89_vm1, %v11296_v9  ;;  %13384 = vmatprep.subr.bf16.mxu1 %v14991_v8  ;;  %v15028_v16 = vld [vmem:[%s18724_s9] ss:$0 sm:$0xff] }
   0xe   :  { %12312 = vmatprep.mubr.msk.f32.mxu0 %vm89_vm1, %v11297_v10  ;;  %12329 = vmatprep.subr.msk.mxu0 %vm102_vm0, %v14986_v6  ;;  %v11310_v9 = vld [vmem:[%s18723_s3 + $0xc0] sm:$0xff]  ;;  %v11311_v10 = vld [vmem:[%s18723_s3 + $0xc8] sm:$0xff] }
   0xf   :  { %12330 = vmatpush3.msk.msra.mxu0 %vm102_vm0, %v14986_v6 }
  0x10   :  { %13386 = vmatpush3.bf16.msra.mxu1 %v14991_v8  ;;  %12351 = vmatprep.subr.msk.mxu0 %vm102_vm0, %v14986_v6 }
  0x11   :  { %12313 = vmatmul.mubr.msk.f32.gmra.mrb[2].mxu0 %vm89_vm1, %v11298_v11  ;;  %13388 = vmatprep.subr.bf16.mxu1 %v14978_v4  ;;  %v11312_v11 = vld [vmem:[%s18723_s3 + $0xd0] sm:$0xff] }
  0x12   :  { %12331 = vmatprep.mubr.msk.f32.mxu0 %vm89_vm1, %v11310_v9 }
  0x13   :  { %12324 = vmatmul.mubr.f32.vlgmr.msra.gmra.mrb[0].mxu1 %v14845_v3 }
  0x14   :  { %12326 = vmatprep.mubr.f32.mxu1 %v14845_v3  ;;  %13390 = vmatpush3.bf16.msra.mxu1 %v14978_v4 }
  0x15   :  { %13392 = vmatprep.subr.bf16.mxu1 %v14991_v8  ;;  %12332 = vmatmul.mubr.msk.f32.vlgmr.msra.gmra.mrb[4].mxu0 %vm89_vm1, %v11311_v10 }
  0x16   :  { %12334 = vmatprep.mubr.msk.f32.mxu0 %vm89_vm1, %v11312_v11  ;;  %12352 = vmatpush3.msk.msra.mxu0 %vm102_vm0, %v14986_v6 }
  0x17   :  { %12327 = vmatmul.mubr.f32.gmra.mrb[2].mxu1 %v14845_v3  ;;  %12373 = vmatprep.subr.msk.mxu0 %vm102_vm0, %v14986_v6 }
  0x18   :  { %13394 = vmatpush3.bf16.msra.mxu1 %v14991_v8 }
  0x19   :  { %13396 = vmatprep.subr.bf16.mxu1 %v14978_v4 }
  0xe0   :  { %v12311_v12 = vpop.f32.mrb[0].mxu0 }
  0xe1   :  { %v172_v13 = vpop.f32.mrb[1].mxu0  ;;  %v178_v27 = vadd.f32 %v12311_v12, %v15041_v25 }
  0xe2   :  { %v173_v26 = vadd.f32 %v15041_v25, %v172_v13 }
  0xe4   :  { %v12314_v14 = vpop.f32.mrb[2].mxu0 }
  0xe5   :  { %v182_v15 = vpop.f32.mrb[3].mxu0  ;;  %v188_v32 = vadd.f32 %v12314_v14, %v15041_v25  ;;  %v11313_v14 = vld [vmem:[%s18723_s3 + $0xd8] sm:$0xff] }
  0xe6   :  { %v12325_v17 = vpop.f32.mrb[0].mxu1  ;;  %v183_v29 = vadd.f32 %v15041_v25, %v182_v15  ;;  %12335 = vmatmul.mubr.msk.f32.gmra.mrb[6].mxu0 %vm89_vm1, %v11313_v14 }
  0xe7   :  { %v267_v18 = vpop.f32.mrb[1].mxu1  ;;  %v273_v22 = vadd.f32 %v12325_v17, %v15028_v16 }
  0xe8   :  { %v268_v19 = vadd.f32 %v15028_v16, %v267_v18 }
  0xe9   :  { %v287_v30 = vadd.f32 %v273_v22, %v178_v27 }
  0xea   :  { %v12328_v20 = vpop.f32.mrb[2].mxu1  ;;  %318 = vrot.lane.b32.xlu0 %v268_v19, %s14846_s27  ;;  %v286_v28 = vadd.f32 %v268_v19, %v173_v26 }
  0xeb   :  { %v277_v21 = vpop.f32.mrb[3].mxu1  ;;  %v283_v24 = vadd.f32 %v12328_v20, %v15028_v16  ;;  %v11307_v34 = vmul.f32 -1.442695, %v287_v30 }
  0xec   :  { %v278_v23 = vadd.f32 %v15028_v16, %v277_v21  ;;  %v11306_v31 = vmul.f32 -1.442695, %v286_v28 }
  0xed   :  { %v289_v35 = vadd.f32 %v283_v24, %v188_v32 }
  0xee   :  { %322 = vrot.lane.b32.xlu1 %v278_v23, %s14846_s27  ;;  %320 = vrot.lane.b32.xlu0 %v273_v22, %s14846_s27  ;;  %v288_v33 = vadd.f32 %v278_v23, %v183_v29  ;;  %13987 = vpow2.f32 %v11306_v31 }
  0xef   :  { %13989 = vpow2.f32 %v11307_v34  ;;  %v11309_v37 = vmul.f32 -1.442695, %v289_v35 }
  0xf0   :  { %v11308_v36 = vmul.f32 -1.442695, %v288_v33 }
  0xf2   :  { %324 = vrot.lane.b32.xlu1 %v283_v24, %s14846_s27  ;;  %13991 = vpow2.f32 %v11308_v36 }
  0xf3   :  { %13993 = vpow2.f32 %v11309_v37 }
  0xf8   :  { %v13988_v38 = vpop.eup %13987 }
  0xf9   :  { %v13990_v39 = vpop.eup %13989  ;;  %v302_v40 = vadd.f32 1.0, %v13988_v38 }
  0xfa   :  { %v303_v42 = vadd.f32 1.0, %v13990_v39  ;;  %v12333_v39 = vpop.f32.mrb[4].mxu0 }
  0xfb   :  { %13995 = vrcp.f32 %v302_v40  ;;  %v494_v40 = vpop.f32.mrb[5].mxu0 }
  0xfc   :  { %v13992_v41 = vpop.eup %13991  ;;  %13997 = vrcp.f32 %v303_v42 }
  0xfd   :  { %v304_v43 = vadd.f32 1.0, %v13992_v41  ;;  %v13994_v44 = vpop.eup %13993 }
  0xfe   :  { %v305_v45 = vadd.f32 1.0, %v13994_v44 }
  0xff   :  { %13999 = vrcp.f32 %v304_v43 }
 0x100   :  { %14001 = vrcp.f32 %v305_v45 }
 0x105   :  { %v13996_v46 = vpop.eup %13995 }
 0x106   :  { %v13998_v49 = vpop.eup %13997  ;;  %v358_v12 = vsub.f32 1.0, %v13996_v46  ;;  %v382_v15 = vmul.f32 0.0, %v13996_v46 }
 0x107   :  { %v359_v19 = vsub.f32 1.0, %v13998_v49  ;;  %v383_v22 = vmul.f32 0.0, %v13998_v49 }
 0x109   :  { %v14000_v50 = vpop.eup %13999 }
 0x10a   :  { %v14002_v55 = vpop.eup %14001  ;;  %v360_v21 = vsub.f32 1.0, %v14000_v50 }
 0x15c   :  { %v319_v47 = vpop.permute.xlu0 %318 }
 0x15d   :  { %v330_v48 = vmul.f32 %v13996_v46, %v319_v47 }
 0x15f   :  { %338 = vrot.lane.b32.xlu0 %v330_v48, %s14846_s27 }
 0x160   :  { %v323_v51 = vpop.permute.xlu1 %322  ;;  %v321_v52 = vpop.permute.xlu0 %320 }
 0x161   :  { %v332_v53 = vmul.f32 %v14000_v50, %v323_v51  ;;  %v331_v54 = vmul.f32 %v13998_v49, %v321_v52  ;;  %v500_v51 = vadd.f32 %v12333_v39, %v15041_v25  ;;  %v495_v52 = vadd.f32 %v15041_v25, %v494_v40  ;;  %v11327_v40 = vld [vmem:[%s18723_s3 + $0xa0] sm:$0xff] }
 0x162   :  { %12353 = vmatprep.mubr.msk.f32.mxu0 %vm89_vm1, %v11327_v40 }
 0x163   :  { %340 = vrot.lane.b32.xlu1 %v331_v54, %s14846_s27  ;;  %342 = vrot.lane.b32.xlu0 %v332_v53, %s14846_s27 }
 0x164   :  { %v325_v56 = vpop.permute.xlu1 %324 }
 0x165   :  { %v333_v57 = vmul.f32 %v14002_v55, %v325_v56 }
 0x167   :  { %344 = vrot.lane.b32.xlu1 %v333_v57, %s14846_s27 }
 0x1b9   :  { %v12336_v41 = vpop.f32.mrb[6].mxu0 }
 0x1ba   :  { %v504_v42 = vpop.f32.mrb[7].mxu0  ;;  %v510_v54 = vadd.f32 %v12336_v41, %v15041_v25  ;;  %v11328_v41 = vld [vmem:[%s18723_s3 + $0xa8] sm:$0xff] }
 0x1bb   :  { %v505_v56 = vadd.f32 %v15041_v25, %v504_v42  ;;  %12354 = vmatmul.mubr.msk.f32.vlgmr.msra.gmra.mrb[8].mxu0 %vm89_vm1, %v11328_v41  ;;  %v11329_v42 = vld [vmem:[%s18723_s3 + $0xb0] sm:$0xff] }
 0x1bc   :  { %12374 = vmatpush3.msk.msra.mxu0 %vm102_vm0, %v14986_v6  ;;  %12356 = vmatprep.mubr.msk.f32.mxu0 %vm89_vm1, %v11329_v42 }
 0x1bd   :  { %12395 = vmatprep.subr.msk.mxu0 %vm102_vm0, %v14986_v6 }
 0x1d1   :  { %v339_v58 = vpop.permute.xlu0 %338 }
 0x1d2   :  { %v350_v59 = vadd.f32 %v339_v58, %v173_v26  ;;  %v384_v26 = vmul.f32 0.0, %v14000_v50 }
 0x1d4   :  { %14003 = vtanh.f32 %v350_v59 }
 0x1d5   :  { %v341_v60 = vpop.permute.xlu1 %340  ;;  %v343_v61 = vpop.permute.xlu0 %342 }
 0x1d6   :  { %v351_v62 = vadd.f32 %v341_v60, %v178_v27  ;;  %v352_v63 = vadd.f32 %v343_v61, %v183_v29  ;;  %v361_v29 = vsub.f32 1.0, %v14002_v55 }
 0x1d8   :  { %14005 = vtanh.f32 %v351_v62 }
 0x1d9   :  { %14007 = vtanh.f32 %v352_v63  ;;  %v345_v0 = vpop.permute.xlu1 %344 }
 0x1da   :  { %v353_v1 = vadd.f32 %v345_v0, %v188_v32  ;;  %v385_v32 = vmul.f32 0.0, %v14002_v55 }
 0x1dc   :  { %14009 = vtanh.f32 %v353_v1 }
 0x1de   :  { %v14004_v2 = vpop.eup %14003 }
 0x1df   :  { %366 = vrot.lane.b32.xlu0 %v14004_v2, %s14847_s4 }
 0x1e2   :  { %v14006_v3 = vpop.eup %14005 }
 0x1e3   :  { %v14008_v5 = vpop.eup %14007  ;;  %368 = vrot.lane.b32.xlu1 %v14006_v3, %s14847_s4 }
 0x1e4   :  { %370 = vrot.lane.b32.xlu0 %v14008_v5, %s14847_s4 }
 0x1e6   :  { %v14010_v7 = vpop.eup %14009 }
 0x1e7   :  { %372 = vrot.lane.b32.xlu1 %v14010_v7, %s14847_s4 }
 0x251   :  { %v367_v13 = vpop.permute.xlu0 %366 }
 0x252   :  { %v378_v17 = vmul.f32 %v367_v13, %v358_v12 }
 0x254   :  { %v15075_v18 = vadd.f32 %v382_v15, %v378_v17 }
 0x255   :  { %v369_v20 = vpop.permute.xlu1 %368 }
 0x256   :  { %v379_v23 = vmul.f32 %v369_v20, %v359_v19  ;;  %v371_v24 = vpop.permute.xlu0 %370  ;;  %394 = vrot.lane.b32.xlu0 %v15075_v18, %s14847_s4 }
 0x257   :  { %v380_v27 = vmul.f32 %v371_v24, %v360_v21 }
 0x258   :  { %v15079_v28 = vadd.f32 %v383_v22, %v379_v23 }
 0x259   :  { %v15081_v30 = vadd.f32 %v384_v26, %v380_v27  ;;  %v373_v31 = vpop.permute.xlu1 %372 }
 0x25a   :  { %v381_v33 = vmul.f32 %v373_v31, %v361_v29  ;;  %396 = vrot.lane.b32.xlu1 %v15079_v28, %s14847_s4 }
 0x25b   :  { %398 = vrot.lane.b32.xlu0 %v15081_v30, %s14847_s4 }
 0x25c   :  { %v15087_v34 = vadd.f32 %v385_v32, %v381_v33 }
 0x25e   :  { %400 = vrot.lane.b32.xlu1 %v15087_v34, %s14847_s4 }
 0x2c8   :  { %v395_v35 = vpop.permute.xlu0 %394 }
 0x2c9   :  { %407 = vst.msk [vmem:[#allocation2 + $0xe0] sm:$0xff] %vm197_vm2, %v395_v35  ;;  %12345 = vmatprep.mubr.msk.f32.mxu1 %vm197_vm2, %v395_v35 }
 0x2cc   :  { %v397_v36 = vpop.permute.xlu1 %396 }
 0x2cd   :  { %408 = vst.msk [vmem:[#allocation2 + $0xe8] sm:$0xff] %vm197_vm2, %v397_v36  ;;  %v399_v37 = vpop.permute.xlu0 %398  ;;  %12346 = vmatmul.mubr.msk.f32.vlgmr.msra.gmra.mrb[4].mxu1 %vm197_vm2, %v397_v36 }
 0x2ce   :  { %409 = vst.msk [vmem:[#allocation2 + $0xf0] sm:$0xff] %vm197_vm2, %v399_v37  ;;  %12348 = vmatprep.mubr.msk.f32.mxu1 %vm197_vm2, %v399_v37  ;;  %13398 = vmatpush3.bf16.msra.mxu1 %v14978_v4 }
 0x2cf   :  { %13400 = vmatprep.subr.bf16.mxu1 %v14991_v8 }
 0x2d0   :  { %v401_v38 = vpop.permute.xlu1 %400 }
 0x2d1   :  { %410 = vst.msk [vmem:[#allocation2 + $0xf8] sm:$0xff] %vm197_vm2, %v401_v38  ;;  %12349 = vmatmul.mubr.msk.f32.gmra.mrb[6].mxu1 %vm197_vm2, %v401_v38 }
 0x2d2   :  { %13402 = vmatpush3.bf16.msra.mxu1 %v14991_v8 }
 0x2d3   :  { %13404 = vmatprep.subr.bf16.mxu1 %v14978_v4 }
 0x3a0   :  { %v12347_v43 = vpop.f32.mrb[4].mxu1 }
 0x3a1   :  { %v593_v44 = vadd.f32 %v12347_v43, %v15028_v16  ;;  %v587_v45 = vpop.f32.mrb[5].mxu1  ;;  %v11330_v43 = vld [vmem:[%s18723_s3 + $0xb8] sm:$0xff] }
 0x3a2   :  { %v588_v46 = vadd.f32 %v15028_v16, %v587_v45  ;;  %12357 = vmatmul.mubr.msk.f32.gmra.mrb[10].mxu0 %vm89_vm1, %v11330_v43 }
 0x3a3   :  { %640 = vrot.lane.b32.xlu1 %v593_v44, %s14846_s27  ;;  %v607_v53 = vadd.f32 %v593_v44, %v500_v51 }
 0x3a4   :  { %638 = vrot.lane.b32.xlu0 %v588_v46, %s14846_s27  ;;  %v12350_v47 = vpop.f32.mrb[6].mxu1  ;;  %v606_v55 = vadd.f32 %v588_v46, %v495_v52 }
 0x3a5   :  { %v603_v48 = vadd.f32 %v12350_v47, %v15028_v16  ;;  %v597_v49 = vpop.f32.mrb[7].mxu1  ;;  %v11324_v57 = vmul.f32 -1.442695, %v607_v53 }
 0x3a6   :  { %v598_v50 = vadd.f32 %v15028_v16, %v597_v49  ;;  %v11323_v59 = vmul.f32 -1.442695, %v606_v55 }
 0x3a7   :  { %644 = vrot.lane.b32.xlu1 %v603_v48, %s14846_s27  ;;  %v609_v58 = vadd.f32 %v603_v48, %v510_v54  ;;  %14011 = vpow2.f32 %v11324_v57 }
 0x3a8   :  { %642 = vrot.lane.b32.xlu0 %v598_v50, %s14846_s27  ;;  %v608_v60 = vadd.f32 %v598_v50, %v505_v56  ;;  %14013 = vpow2.f32 %v11323_v59 }
 0x3a9   :  { %v11326_v61 = vmul.f32 -1.442695, %v609_v58 }
 0x3aa   :  { %v11325_v62 = vmul.f32 -1.442695, %v608_v60 }
 0x3ab   :  { %14015 = vpow2.f32 %v11326_v61 }
 0x3ac   :  { %14017 = vpow2.f32 %v11325_v62 }
 0x3b1   :  { %v14012_v63 = vpop.eup %14011 }
 0x3b2   :  { %v14014_v0 = vpop.eup %14013  ;;  %v623_v1 = vadd.f32 1.0, %v14012_v63 }
 0x3b3   :  { %v622_v3 = vadd.f32 1.0, %v14014_v0  ;;  %v12355_v0 = vpop.f32.mrb[8].mxu0 }
 0x3b4   :  { %14019 = vrcp.f32 %v623_v1  ;;  %v814_v1 = vpop.f32.mrb[9].mxu0 }
 0x3b5   :  { %v14016_v2 = vpop.eup %14015  ;;  %14021 = vrcp.f32 %v622_v3 }
 0x3b6   :  { %v14018_v5 = vpop.eup %14017  ;;  %v625_v7 = vadd.f32 1.0, %v14016_v2 }
 0x3b7   :  { %v624_v9 = vadd.f32 1.0, %v14018_v5 }
 0x3b8   :  { %14023 = vrcp.f32 %v625_v7 }
 0x3b9   :  { %14025 = vrcp.f32 %v624_v9 }
 0x3be   :  { %v14020_v10 = vpop.eup %14019 }
 0x3bf   :  { %v14022_v12 = vpop.eup %14021  ;;  %v679_v44 = vsub.f32 1.0, %v14020_v10  ;;  %v703_v47 = vmul.f32 %v14020_v10, %v15079_v28 }
 0x3c0   :  { %v678_v46 = vsub.f32 1.0, %v14022_v12  ;;  %v702_v50 = vmul.f32 %v14022_v12, %v15075_v18 }
 0x3c2   :  { %v14024_v17 = vpop.eup %14023 }
 0x3c3   :  { %v14026_v20 = vpop.eup %14025  ;;  %v681_v53 = vsub.f32 1.0, %v14024_v17  ;;  %v705_v57 = vmul.f32 %v14024_v17, %v15087_v34 }
 0x3c4   :  { %v704_v28 = vmul.f32 %v14026_v20, %v15081_v30 }
 0x415   :  { %v641_v11 = vpop.permute.xlu1 %640 }
 0x416   :  { %v651_v13 = vmul.f32 %v14020_v10, %v641_v11  ;;  %v639_v14 = vpop.permute.xlu0 %638 }
 0x417   :  { %v650_v15 = vmul.f32 %v14022_v12, %v639_v14 }
 0x418   :  { %660 = vrot.lane.b32.xlu1 %v651_v13, %s14846_s27 }
 0x419   :  { %v645_v19 = vpop.permute.xlu1 %644  ;;  %658 = vrot.lane.b32.xlu0 %v650_v15, %s14846_s27  ;;  %v820_v15 = vadd.f32 %v12355_v0, %v15041_v25 }
 0x41a   :  { %v653_v21 = vmul.f32 %v14024_v17, %v645_v19  ;;  %v643_v22 = vpop.permute.xlu0 %642  ;;  %v815_v17 = vadd.f32 %v15041_v25, %v814_v1  ;;  %v11344_v1 = vld [vmem:[%s18723_s3 + $0x80] sm:$0xff] }
 0x41b   :  { %v652_v23 = vmul.f32 %v14026_v20, %v643_v22  ;;  %12375 = vmatprep.mubr.msk.f32.mxu0 %vm89_vm1, %v11344_v1 }
 0x41c   :  { %664 = vrot.lane.b32.xlu1 %v653_v21, %s14846_s27 }
 0x41d   :  { %662 = vrot.lane.b32.xlu0 %v652_v23, %s14846_s27 }
 0x475   :  { %v12358_v2 = vpop.f32.mrb[10].mxu0 }
 0x476   :  { %v824_v3 = vpop.f32.mrb[11].mxu0 }
 0x477   :  { %v825_v22 = vadd.f32 %v15041_v25, %v824_v3  ;;  %v11346_v3 = vld [vmem:[%s18723_s3 + $0x90] sm:$0xff] }
 0x48a   :  { %v661_v24 = vpop.permute.xlu1 %660 }
 0x48b   :  { %v671_v26 = vadd.f32 %v661_v24, %v500_v51  ;;  %v659_v27 = vpop.permute.xlu0 %658 }
 0x48c   :  { %v670_v29 = vadd.f32 %v659_v27, %v495_v52 }
 0x48d   :  { %14027 = vtanh.f32 %v671_v26 }
 0x48e   :  { %14029 = vtanh.f32 %v670_v29  ;;  %v665_v31 = vpop.permute.xlu1 %664 }
 0x48f   :  { %v673_v32 = vadd.f32 %v665_v31, %v510_v54  ;;  %v663_v33 = vpop.permute.xlu0 %662 }
 0x490   :  { %v672_v35 = vadd.f32 %v663_v33, %v505_v56  ;;  %v680_v56 = vsub.f32 1.0, %v14026_v20  ;;  %v830_v20 = vadd.f32 %v12358_v2, %v15041_v25  ;;  %v11345_v2 = vld [vmem:[%s18723_s3 + $0x88] sm:$0xff] }
 0x491   :  { %14031 = vtanh.f32 %v673_v32  ;;  %12376 = vmatmul.mubr.msk.f32.vlgmr.msra.gmra.mrb[12].mxu0 %vm89_vm1, %v11345_v2 }
 0x492   :  { %14033 = vtanh.f32 %v672_v35  ;;  %12396 = vmatpush3.msk.msra.mxu0 %vm102_vm0, %v14986_v6  ;;  %12378 = vmatprep.mubr.msk.f32.mxu0 %vm89_vm1, %v11346_v3 }
 0x493   :  { %12417 = vmatprep.subr.msk.mxu0 %vm102_vm0, %v14986_v6 }
 0x497   :  { %v14028_v36 = vpop.eup %14027 }
 0x498   :  { %v14030_v37 = vpop.eup %14029  ;;  %688 = vrot.lane.b32.xlu1 %v14028_v36, %s14847_s4 }
 0x499   :  { %686 = vrot.lane.b32.xlu0 %v14030_v37, %s14847_s4 }
 0x49b   :  { %v14032_v38 = vpop.eup %14031 }
 0x49c   :  { %v14034_v39 = vpop.eup %14033  ;;  %692 = vrot.lane.b32.xlu1 %v14032_v38, %s14847_s4 }
 0x49d   :  { %690 = vrot.lane.b32.xlu0 %v14034_v39, %s14847_s4 }
 0x50a   :  { %v689_v45 = vpop.permute.xlu1 %688 }
 0x50b   :  { %v699_v48 = vmul.f32 %v689_v45, %v679_v44  ;;  %v687_v49 = vpop.permute.xlu0 %686 }
 0x50c   :  { %v698_v51 = vmul.f32 %v687_v49, %v678_v46 }
 0x50d   :  { %v15145_v52 = vadd.f32 %v703_v47, %v699_v48 }
 0x50e   :  { %v15147_v54 = vadd.f32 %v702_v50, %v698_v51  ;;  %v693_v55 = vpop.permute.xlu1 %692 }
 0x50f   :  { %v701_v58 = vmul.f32 %v693_v55, %v681_v53  ;;  %716 = vrot.lane.b32.xlu1 %v15145_v52, %s14847_s4  ;;  %v691_v59 = vpop.permute.xlu0 %690 }
 0x510   :  { %v700_v60 = vmul.f32 %v691_v59, %v680_v56  ;;  %714 = vrot.lane.b32.xlu0 %v15147_v54, %s14847_s4 }
 0x511   :  { %v15155_v18 = vadd.f32 %v705_v57, %v701_v58 }
 0x512   :  { %v15157_v61 = vadd.f32 %v704_v28, %v700_v60 }
 0x513   :  { %720 = vrot.lane.b32.xlu1 %v15155_v18, %s14847_s4 }
 0x514   :  { %718 = vrot.lane.b32.xlu0 %v15157_v61, %s14847_s4 }
 0x581   :  { %v717_v34 = vpop.permute.xlu1 %716 }
 0x582   :  { %728 = vst.msk [vmem:[#allocation2 + $0xc8] sm:$0xff] %vm197_vm2, %v717_v34  ;;  %v715_v62 = vpop.permute.xlu0 %714 }
 0x583   :  { %727 = vst.msk [vmem:[#allocation2 + $0xc0] sm:$0xff] %vm197_vm2, %v715_v62  ;;  %12367 = vmatprep.mubr.msk.f32.mxu1 %vm197_vm2, %v715_v62 }
 0x584   :  { %12368 = vmatmul.mubr.msk.f32.vlgmr.msra.gmra.mrb[8].mxu1 %vm197_vm2, %v717_v34 }
 0x585   :  { %v721_v30 = vpop.permute.xlu1 %720  ;;  %13406 = vmatpush3.bf16.msra.mxu1 %v14978_v4 }
 0x586   :  { %730 = vst.msk [vmem:[#allocation2 + $0xd8] sm:$0xff] %vm197_vm2, %v721_v30  ;;  %v719_v63 = vpop.permute.xlu0 %718  ;;  %13408 = vmatprep.subr.bf16.mxu1 %v14991_v8 }
 0x587   :  { %729 = vst.msk [vmem:[#allocation2 + $0xd0] sm:$0xff] %vm197_vm2, %v719_v63  ;;  %12370 = vmatprep.mubr.msk.f32.mxu1 %vm197_vm2, %v719_v63 }
 0x588   :  { %12371 = vmatmul.mubr.msk.f32.gmra.mrb[10].mxu1 %vm197_vm2, %v721_v30 }
 0x589   :  { %13410 = vmatpush3.bf16.msra.mxu1 %v14991_v8 }
 0x58a   :  { %13412 = vmatprep.subr.bf16.mxu1 %v14978_v4 }
 0x657   :  { %v12369_v5 = vpop.f32.mrb[8].mxu1 }
 0x658   :  { %v913_v7 = vadd.f32 %v12369_v5, %v15028_v16  ;;  %v907_v9 = vpop.f32.mrb[9].mxu1  ;;  %v11347_v5 = vld [vmem:[%s18723_s3 + $0x98] sm:$0xff] }
 0x659   :  { %v908_v10 = vadd.f32 %v15028_v16, %v907_v9  ;;  %12379 = vmatmul.mubr.msk.f32.gmra.mrb[14].mxu0 %vm89_vm1, %v11347_v5 }
 0x65a   :  { %960 = vrot.lane.b32.xlu1 %v913_v7, %s14846_s27  ;;  %v927_v19 = vadd.f32 %v913_v7, %v820_v15 }
 0x65b   :  { %958 = vrot.lane.b32.xlu0 %v908_v10, %s14846_s27  ;;  %v12372_v11 = vpop.f32.mrb[10].mxu1  ;;  %v926_v21 = vadd.f32 %v908_v10, %v815_v17 }
 0x65c   :  { %v923_v12 = vadd.f32 %v12372_v11, %v15028_v16  ;;  %v917_v13 = vpop.f32.mrb[11].mxu1  ;;  %v11341_v23 = vmul.f32 -1.442695, %v927_v19 }
 0x65d   :  { %v918_v14 = vadd.f32 %v15028_v16, %v917_v13  ;;  %v11340_v26 = vmul.f32 -1.442695, %v926_v21 }
 0x65e   :  { %964 = vrot.lane.b32.xlu1 %v923_v12, %s14846_s27  ;;  %v929_v24 = vadd.f32 %v923_v12, %v830_v20  ;;  %14035 = vpow2.f32 %v11341_v23 }
 0x65f   :  { %962 = vrot.lane.b32.xlu0 %v918_v14, %s14846_s27  ;;  %v928_v27 = vadd.f32 %v918_v14, %v825_v22  ;;  %14037 = vpow2.f32 %v11340_v26 }
 0x660   :  { %v11343_v29 = vmul.f32 -1.442695, %v929_v24 }
 0x661   :  { %v11342_v31 = vmul.f32 -1.442695, %v928_v27 }
 0x662   :  { %14039 = vpow2.f32 %v11343_v29 }
 0x663   :  { %14041 = vpow2.f32 %v11342_v31 }
 0x668   :  { %v14036_v32 = vpop.eup %14035 }
 0x669   :  { %v14038_v33 = vpop.eup %14037  ;;  %v943_v35 = vadd.f32 1.0, %v14036_v32 }
 0x66a   :  { %v942_v37 = vadd.f32 1.0, %v14038_v33  ;;  %v12377_v33 = vpop.f32.mrb[12].mxu0 }
 0x66b   :  { %14043 = vrcp.f32 %v943_v35  ;;  %v1134_v35 = vpop.f32.mrb[13].mxu0 }
 0x66c   :  { %v14040_v36 = vpop.eup %14039  ;;  %14045 = vrcp.f32 %v942_v37 }
 0x66d   :  { %v14042_v38 = vpop.eup %14041  ;;  %v945_v39 = vadd.f32 1.0, %v14040_v36 }
 0x66e   :  { %v944_v40 = vadd.f32 1.0, %v14042_v38 }
 0x66f   :  { %14047 = vrcp.f32 %v945_v39 }
 0x670   :  { %14049 = vrcp.f32 %v944_v40 }
 0x675   :  { %v14044_v41 = vpop.eup %14043 }
 0x676   :  { %v14046_v43 = vpop.eup %14045  ;;  %v999_v7 = vsub.f32 1.0, %v14044_v41  ;;  %v1023_v11 = vmul.f32 %v14044_v41, %v15145_v52 }
 0x677   :  { %v998_v10 = vsub.f32 1.0, %v14046_v43  ;;  %v1022_v14 = vmul.f32 %v14046_v43, %v15147_v54 }
 0x679   :  { %v14048_v47 = vpop.eup %14047 }
 0x67a   :  { %v14050_v49 = vpop.eup %14049  ;;  %v1001_v19 = vsub.f32 1.0, %v14048_v47  ;;  %v1025_v23 = vmul.f32 %v14048_v47, %v15155_v18 }
 0x67b   :  { %v1024_v52 = vmul.f32 %v14050_v49, %v15157_v61 }
 0x6cc   :  { %v961_v42 = vpop.permute.xlu1 %960 }
 0x6cd   :  { %v971_v44 = vmul.f32 %v14044_v41, %v961_v42  ;;  %v959_v45 = vpop.permute.xlu0 %958 }
 0x6ce   :  { %v970_v46 = vmul.f32 %v14046_v43, %v959_v45 }
 0x6cf   :  { %980 = vrot.lane.b32.xlu1 %v971_v44, %s14846_s27 }
 0x6d0   :  { %v965_v48 = vpop.permute.xlu1 %964  ;;  %978 = vrot.lane.b32.xlu0 %v970_v46, %s14846_s27  ;;  %v1140_v46 = vadd.f32 %v12377_v33, %v15041_v25  ;;  %v11362_v33 = vld [vmem:[%s18723_s3 + $0x68] sm:$0xff] }
 0x6d1   :  { %v973_v50 = vmul.f32 %v14048_v47, %v965_v48  ;;  %v963_v51 = vpop.permute.xlu0 %962  ;;  %v1135_v47 = vadd.f32 %v15041_v25, %v1134_v35  ;;  %v11363_v35 = vld [vmem:[%s18723_s3 + $0x70] sm:$0xff] }
 0x6d2   :  { %v972_v53 = vmul.f32 %v14050_v49, %v963_v51 }
 0x6d3   :  { %984 = vrot.lane.b32.xlu1 %v973_v50, %s14846_s27 }
 0x6d4   :  { %982 = vrot.lane.b32.xlu0 %v972_v53, %s14846_s27 }
 0x72c   :  { %v12380_v36 = vpop.f32.mrb[14].mxu0 }
 0x72d   :  { %v1144_v37 = vpop.f32.mrb[15].mxu0 }
 0x72e   :  { %v1145_v51 = vadd.f32 %v15041_v25, %v1144_v37 }
 0x741   :  { %v981_v55 = vpop.permute.xlu1 %980 }
 0x742   :  { %v991_v56 = vadd.f32 %v981_v55, %v820_v15  ;;  %v979_v57 = vpop.permute.xlu0 %978 }
 0x743   :  { %v990_v58 = vadd.f32 %v979_v57, %v815_v17 }
 0x744   :  { %14051 = vtanh.f32 %v991_v56 }
 0x745   :  { %14053 = vtanh.f32 %v990_v58  ;;  %v985_v59 = vpop.permute.xlu1 %984 }
 0x746   :  { %v993_v28 = vadd.f32 %v985_v59, %v830_v20  ;;  %v983_v60 = vpop.permute.xlu0 %982 }
 0x747   :  { %v992_v34 = vadd.f32 %v983_v60, %v825_v22  ;;  %v1000_v22 = vsub.f32 1.0, %v14050_v49  ;;  %v1150_v49 = vadd.f32 %v12380_v36, %v15041_v25  ;;  %v11364_v36 = vld [vmem:[%s18723_s3 + $0x78] sm:$0xff] }
 0x748   :  { %14055 = vtanh.f32 %v993_v28 }
 0x749   :  { %14057 = vtanh.f32 %v992_v34 }
 0x74e   :  { %v14052_v62 = vpop.eup %14051 }
 0x74f   :  { %v14054_v30 = vpop.eup %14053  ;;  %1008 = vrot.lane.b32.xlu1 %v14052_v62, %s14847_s4 }
 0x750   :  { %1006 = vrot.lane.b32.xlu0 %v14054_v30, %s14847_s4 }
 0x752   :  { %v14056_v63 = vpop.eup %14055 }
 0x753   :  { %v14058_v0 = vpop.eup %14057  ;;  %1012 = vrot.lane.b32.xlu1 %v14056_v63, %s14847_s4 }
 0x754   :  { %1010 = vrot.lane.b32.xlu0 %v14058_v0, %s14847_s4 }
 0x7c1   :  { %v1009_v9 = vpop.permute.xlu1 %1008 }
 0x7c2   :  { %v1019_v12 = vmul.f32 %v1009_v9, %v999_v7  ;;  %v1007_v13 = vpop.permute.xlu0 %1006 }
 0x7c3   :  { %v1018_v15 = vmul.f32 %v1007_v13, %v998_v10 }
 0x7c4   :  { %v15217_v17 = vadd.f32 %v1023_v11, %v1019_v12 }
 0x7c5   :  { %v15219_v20 = vadd.f32 %v1022_v14, %v1018_v15  ;;  %v1013_v21 = vpop.permute.xlu1 %1012 }
 0x7c6   :  { %v1021_v24 = vmul.f32 %v1013_v21, %v1001_v19  ;;  %1036 = vrot.lane.b32.xlu1 %v15217_v17, %s14847_s4  ;;  %v1011_v26 = vpop.permute.xlu0 %1010 }
 0x7c7   :  { %v1020_v27 = vmul.f32 %v1011_v26, %v1000_v22  ;;  %1034 = vrot.lane.b32.xlu0 %v15219_v20, %s14847_s4 }
 0x7c8   :  { %v15227_v54 = vadd.f32 %v1025_v23, %v1021_v24 }
 0x7c9   :  { %v15229_v29 = vadd.f32 %v1024_v52, %v1020_v27 }
 0x7ca   :  { %1040 = vrot.lane.b32.xlu1 %v15227_v54, %s14847_s4 }
 0x7cb   :  { %1038 = vrot.lane.b32.xlu0 %v15229_v29, %s14847_s4 }
 0x838   :  { %v1037_v18 = vpop.permute.xlu1 %1036 }
 0x839   :  { %1048 = vst.msk [vmem:[#allocation2 + $0xa8] sm:$0xff] %vm197_vm2, %v1037_v18  ;;  %v1035_v31 = vpop.permute.xlu0 %1034 }
 0x83a   :  { %1047 = vst.msk [vmem:[#allocation2 + $0xa0] sm:$0xff] %vm197_vm2, %v1035_v31  ;;  %12389 = vmatprep.mubr.msk.f32.mxu1 %vm197_vm2, %v1035_v31 }
 0x83b   :  { %12390 = vmatmul.mubr.msk.f32.vlgmr.msra.gmra.mrb[12].mxu1 %vm197_vm2, %v1037_v18 }
 0x83c   :  { %v1041_v61 = vpop.permute.xlu1 %1040  ;;  %13414 = vmatpush3.bf16.msra.mxu1 %v14978_v4 }
 0x83d   :  { %1050 = vst.msk [vmem:[#allocation2 + $0xb8] sm:$0xff] %vm197_vm2, %v1041_v61  ;;  %v1039_v32 = vpop.permute.xlu0 %1038  ;;  %13416 = vmatprep.subr.bf16.mxu1 %v14991_v8 }
 0x83e   :  { %1049 = vst.msk [vmem:[#allocation2 + $0xb0] sm:$0xff] %vm197_vm2, %v1039_v32  ;;  %12392 = vmatprep.mubr.msk.f32.mxu1 %vm197_vm2, %v1039_v32  ;;  %v11361_v32 = vld [vmem:[%s18723_s3 + $0x60] sm:$0xff] }
 0x83f   :  { %12393 = vmatmul.mubr.msk.f32.gmra.mrb[14].mxu1 %vm197_vm2, %v1041_v61  ;;  %12397 = vmatprep.mubr.msk.f32.mxu0 %vm89_vm1, %v11361_v32 }
 0x840   :  { %13418 = vmatpush3.bf16.msra.mxu1 %v14991_v8  ;;  %12398 = vmatmul.mubr.msk.f32.vlgmr.msra.gmra.mrb[16].mxu0 %vm89_vm1, %v11362_v33 }
 0x841   :  { %13420 = vmatprep.subr.bf16.mxu1 %v14978_v4  ;;  %12418 = vmatpush3.msk.msra.mxu0 %vm102_vm0, %v14986_v6 }
 0x842   :  { %12439 = vmatprep.subr.msk.mxu0 %vm102_vm0, %v14986_v6  ;;  %12400 = vmatprep.mubr.msk.f32.mxu0 %vm89_vm1, %v11363_v35 }
 0x844   :  { %12401 = vmatmul.mubr.msk.f32.gmra.mrb[18].mxu0 %vm89_vm1, %v11364_v36 }
 0x90e   :  { %v12391_v38 = vpop.f32.mrb[12].mxu1 }
 0x90f   :  { %v1233_v39 = vadd.f32 %v12391_v38, %v15028_v16  ;;  %v1227_v40 = vpop.f32.mrb[13].mxu1 }
 0x910   :  { %v1228_v41 = vadd.f32 %v15028_v16, %v1227_v40 }
 0x911   :  { %1280 = vrot.lane.b32.xlu1 %v1233_v39, %s14846_s27  ;;  %v1247_v48 = vadd.f32 %v1233_v39, %v1140_v46 }
 0x912   :  { %1278 = vrot.lane.b32.xlu0 %v1228_v41, %s14846_s27  ;;  %v12394_v42 = vpop.f32.mrb[14].mxu1  ;;  %v1246_v50 = vadd.f32 %v1228_v41, %v1135_v47 }
 0x913   :  { %v1243_v43 = vadd.f32 %v12394_v42, %v15028_v16  ;;  %v1237_v44 = vpop.f32.mrb[15].mxu1  ;;  %v11358_v53 = vmul.f32 -1.442695, %v1247_v48 }
 0x914   :  { %v1238_v45 = vadd.f32 %v15028_v16, %v1237_v44  ;;  %v11357_v56 = vmul.f32 -1.442695, %v1246_v50 }
 0x915   :  { %1284 = vrot.lane.b32.xlu1 %v1243_v43, %s14846_s27  ;;  %v1249_v55 = vadd.f32 %v1243_v43, %v1150_v49  ;;  %14059 = vpow2.f32 %v11358_v53 }
 0x916   :  { %1282 = vrot.lane.b32.xlu0 %v1238_v45, %s14846_s27  ;;  %v1248_v57 = vadd.f32 %v1238_v45, %v1145_v51  ;;  %14061 = vpow2.f32 %v11357_v56 }
 0x917   :  { %v11360_v16 = vmul.f32 -1.442695, %v1249_v55 }
 0x918   :  { %v11359_v58 = vmul.f32 -1.442695, %v1248_v57 }
 0x919   :  { %14063 = vpow2.f32 %v11360_v16  ;;  %v12399_v16 = vpop.f32.mrb[16].mxu0 }
 0x91a   :  { %14065 = vpow2.f32 %v11359_v58  ;;  %v1454_v58 = vpop.f32.mrb[17].mxu0 }
 0x91f   :  { %v14060_v59 = vpop.eup %14059 }
 0x920   :  { %v14062_v28 = vpop.eup %14061  ;;  %v1263_v60 = vadd.f32 1.0, %v14060_v59  ;;  %v12402_v59 = vpop.f32.mrb[18].mxu0 }
 0x921   :  { %v1262_v62 = vadd.f32 1.0, %v14062_v28  ;;  %v1464_v28 = vpop.f32.mrb[19].mxu0 }
 0x922   :  { %14067 = vrcp.f32 %v1263_v60 }
 0x923   :  { %v14064_v34 = vpop.eup %14063  ;;  %14069 = vrcp.f32 %v1262_v62 }
 0x924   :  { %v14066_v30 = vpop.eup %14065  ;;  %v1265_v63 = vadd.f32 1.0, %v14064_v34  ;;  %v15322_v34 = vld [vmem:[%s18724_s9] ss:$0 sm:$0xff] }
 0x925   :  { %v1264_v25 = vadd.f32 1.0, %v14066_v30 }
 0x926   :  { %14071 = vrcp.f32 %v1265_v63 }
 0x927   :  { %14073 = vrcp.f32 %v1264_v25 }
 0x92c   :  { %v14068_v0 = vpop.eup %14067 }
 0x92d   :  { %v14070_v2 = vpop.eup %14069  ;;  %v1319_v37 = vsub.f32 1.0, %v14068_v0  ;;  %v1343_v40 = vmul.f32 %v14068_v0, %v15217_v17 }
 0x92e   :  { %v1318_v39 = vsub.f32 1.0, %v14070_v2  ;;  %v1342_v43 = vmul.f32 %v14070_v2, %v15219_v20 }
 0x930   :  { %v14072_v9 = vpop.eup %14071 }
 0x931   :  { %v14074_v11 = vpop.eup %14073 }
 0x932   :  { %v1320_v48 = vsub.f32 1.0, %v14074_v11  ;;  %v1344_v17 = vmul.f32 %v14074_v11, %v15229_v29 }
 0x983   :  { %v1281_v1 = vpop.permute.xlu1 %1280 }
 0x984   :  { %v1291_v3 = vmul.f32 %v14068_v0, %v1281_v1  ;;  %v1279_v5 = vpop.permute.xlu0 %1278 }
 0x985   :  { %v1290_v7 = vmul.f32 %v14070_v2, %v1279_v5 }
 0x986   :  { %1300 = vrot.lane.b32.xlu1 %v1291_v3, %s14846_s27  ;;  %v15335_v3 = vld [vmem:[%s18725_s5] ss:$0 sm:$0xff]  ;;  %s18727_s5 = sld [smem:[#allocation60_spill]] }
 0x987   :  { %v1285_v10 = vpop.permute.xlu1 %1284  ;;  %1298 = vrot.lane.b32.xlu0 %v1290_v7, %s14846_s27  ;;  %v1460_v5 = vadd.f32 %v15335_v3, %v12399_v16  ;;  %v1455_v7 = vadd.f32 %v15335_v3, %v1454_v58  ;;  %v11378_v16 = vld [vmem:[%s18723_s3 + $0x40] sm:$0xff]  ;;  %v11379_v58 = vld [vmem:[%s18723_s3 + $0x48] sm:$0xff] }
 0x988   :  { %v1293_v12 = vmul.f32 %v14072_v9, %v1285_v10  ;;  %v1283_v13 = vpop.permute.xlu0 %1282  ;;  %v1470_v10 = vadd.f32 %v15335_v3, %v12402_v59  ;;  %12419 = vmatprep.mubr.msk.f32.mxu0 %vm89_vm1, %v11378_v16  ;;  %v15360_v59 = vld [vmem:[%s18722_s28] sm:$0xf] }
 0x989   :  { %v1292_v14 = vmul.f32 %v14074_v11, %v1283_v13  ;;  %12420 = vmatmul.mubr.msk.f32.vlgmr.msra.gmra.mrb[20].mxu0 %vm89_vm1, %v11379_v58 }
 0x98a   :  { %1304 = vrot.lane.b32.xlu1 %v1293_v12, %s14846_s27  ;;  %v1465_v12 = vadd.f32 %v15335_v3, %v1464_v28  ;;  %12440 = vmatpush3.msk.msra.mxu0 %vm102_vm0, %v15360_v59  ;;  %v11380_v28 = vld [vmem:[%s18723_s3 + $0x50] sm:$0xff] }
 0x98b   :  { %1302 = vrot.lane.b32.xlu0 %v1292_v14, %s14846_s27  ;;  %12461 = vmatprep.subr.msk.mxu0 %vm102_vm0, %v15360_v59 }
 0x98c   :  { %12422 = vmatprep.mubr.msk.f32.mxu0 %vm89_vm1, %v11380_v28 }
 0x9f8   :  { %v1301_v15 = vpop.permute.xlu1 %1300 }
 0x9f9   :  { %v1311_v19 = vadd.f32 %v1301_v15, %v1140_v46  ;;  %v1299_v21 = vpop.permute.xlu0 %1298  ;;  %v1321_v46 = vsub.f32 1.0, %v14072_v9 }
 0x9fa   :  { %v1310_v22 = vadd.f32 %v1299_v21, %v1135_v47 }
 0x9fb   :  { %14075 = vtanh.f32 %v1311_v19 }
 0x9fc   :  { %14077 = vtanh.f32 %v1310_v22  ;;  %v1305_v23 = vpop.permute.xlu1 %1304 }
 0x9fd   :  { %v1313_v24 = vadd.f32 %v1305_v23, %v1150_v49  ;;  %v1303_v26 = vpop.permute.xlu0 %1302  ;;  %v1345_v49 = vmul.f32 %v14072_v9, %v15227_v54 }
 0x9fe   :  { %v1312_v52 = vadd.f32 %v1303_v26, %v1145_v51 }
 0x9ff   :  { %14079 = vtanh.f32 %v1313_v24 }
 0xa00   :  { %14081 = vtanh.f32 %v1312_v52 }
 0xa05   :  { %v14076_v27 = vpop.eup %14075 }
 0xa06   :  { %v14078_v18 = vpop.eup %14077  ;;  %1328 = vrot.lane.b32.xlu1 %v14076_v27, %s14847_s4 }
 0xa07   :  { %1326 = vrot.lane.b32.xlu0 %v14078_v18, %s14847_s4 }
 0xa09   :  { %v14080_v31 = vpop.eup %14079 }
 0xa0a   :  { %v14082_v61 = vpop.eup %14081  ;;  %1332 = vrot.lane.b32.xlu1 %v14080_v31, %s14847_s4 }
 0xa0b   :  { %1330 = vrot.lane.b32.xlu0 %v14082_v61, %s14847_s4 }
 0xa78   :  { %v1329_v38 = vpop.permute.xlu1 %1328 }
 0xa79   :  { %v1339_v41 = vmul.f32 %v1329_v38, %v1319_v37  ;;  %v1327_v42 = vpop.permute.xlu0 %1326 }
 0xa7a   :  { %v1338_v44 = vmul.f32 %v1327_v42, %v1318_v39 }
 0xa7b   :  { %v15289_v45 = vadd.f32 %v1343_v40, %v1339_v41 }
 0xa7c   :  { %v15291_v47 = vadd.f32 %v1342_v43, %v1338_v44  ;;  %v1333_v6 = vpop.permute.xlu1 %1332 }
 0xa7d   :  { %v1341_v50 = vmul.f32 %v1333_v6, %v1321_v46  ;;  %1356 = vrot.lane.b32.xlu1 %v15289_v45, %s14847_s4  ;;  %v1331_v51 = vpop.permute.xlu0 %1330 }
 0xa7e   :  { %v1340_v53 = vmul.f32 %v1331_v51, %v1320_v48  ;;  %1354 = vrot.lane.b32.xlu0 %v15291_v47, %s14847_s4 }
 0xa7f   :  { %v15299_v20 = vadd.f32 %v1345_v49, %v1341_v50 }
 0xa80   :  { %v15301_v55 = vadd.f32 %v1344_v17, %v1340_v53 }
 0xa81   :  { %1360 = vrot.lane.b32.xlu1 %v15299_v20, %s14847_s4 }
 0xa82   :  { %1358 = vrot.lane.b32.xlu0 %v15301_v55, %s14847_s4 }
 0xaef   :  { %v1357_v54 = vpop.permute.xlu1 %1356 }
 0xaf0   :  { %1368 = vst.msk [vmem:[#allocation2 + $0x88] sm:$0xff] %vm197_vm2, %v1357_v54  ;;  %v1355_v56 = vpop.permute.xlu0 %1354 }
 0xaf1   :  { %1367 = vst.msk [vmem:[#allocation2 + $0x80] sm:$0xff] %vm197_vm2, %v1355_v56  ;;  %12411 = vmatprep.mubr.msk.f32.mxu1 %vm197_vm2, %v1355_v56 }
 0xaf2   :  { %12412 = vmatmul.mubr.msk.f32.vlgmr.msra.gmra.mrb[16].mxu1 %vm197_vm2, %v1357_v54 }
 0xaf3   :  { %v1361_v29 = vpop.permute.xlu1 %1360  ;;  %13422 = vmatpush3.bf16.msra.mxu1 %v14978_v4 }
 0xaf4   :  { %1370 = vst.msk [vmem:[#allocation2 + $0x98] sm:$0xff] %vm197_vm2, %v1361_v29  ;;  %v1359_v57 = vpop.permute.xlu0 %1358  ;;  %13424 = vmatprep.subr.bf16.mxu1 %v14991_v8 }
 0xaf5   :  { %1369 = vst.msk [vmem:[#allocation2 + $0x90] sm:$0xff] %vm197_vm2, %v1359_v57  ;;  %12414 = vmatprep.mubr.msk.f32.mxu1 %vm197_vm2, %v1359_v57 }
 0xaf6   :  { %12415 = vmatmul.mubr.msk.f32.gmra.mrb[18].mxu1 %vm197_vm2, %v1361_v29 }
 0xaf7   :  { %13426 = vmatpush3.bf16.msra.mxu1 %v14991_v8 }
 0xaf8   :  { %13428 = vmatprep.subr.bf16.mxu1 %v14978_v4 }
 0xbc5   :  { %v12413_v60 = vpop.f32.mrb[16].mxu1 }
 0xbc6   :  { %v1553_v62 = vadd.f32 %v15322_v34, %v12413_v60  ;;  %v1547_v30 = vpop.f32.mrb[17].mxu1  ;;  %v11381_v60 = vld [vmem:[%s18723_s3 + $0x58] sm:$0xff] }
 0xbc7   :  { %v1548_v63 = vadd.f32 %v15322_v34, %v1547_v30  ;;  %12423 = vmatmul.mubr.msk.f32.gmra.mrb[22].mxu0 %vm89_vm1, %v11381_v60 }
 0xbc8   :  { %1600 = vrot.lane.b32.xlu1 %v1553_v62, %s14846_s27  ;;  %v1567_v9 = vadd.f32 %v1553_v62, %v1460_v5 }
 0xbc9   :  { %1598 = vrot.lane.b32.xlu0 %v1548_v63, %s14846_s27  ;;  %v12416_v25 = vpop.f32.mrb[18].mxu1  ;;  %v1566_v11 = vadd.f32 %v1548_v63, %v1455_v7 }
 0xbca   :  { %v1563_v0 = vadd.f32 %v15322_v34, %v12416_v25  ;;  %v1557_v1 = vpop.f32.mrb[19].mxu1  ;;  %v11375_v13 = vmul.f32 -1.442695, %v1567_v9 }
 0xbcb   :  { %v1558_v2 = vadd.f32 %v15322_v34, %v1557_v1  ;;  %v11374_v15 = vmul.f32 -1.442695, %v1566_v11 }
 0xbcc   :  { %1604 = vrot.lane.b32.xlu1 %v1563_v0, %s14846_s27  ;;  %v1569_v14 = vadd.f32 %v1563_v0, %v1470_v10  ;;  %14083 = vpow2.f32 %v11375_v13 }
 0xbcd   :  { %1602 = vrot.lane.b32.xlu0 %v1558_v2, %s14846_s27  ;;  %v1568_v19 = vadd.f32 %v1558_v2, %v1465_v12  ;;  %14085 = vpow2.f32 %v11374_v15 }
 0xbce   :  { %v11377_v21 = vmul.f32 -1.442695, %v1569_v14 }
 0xbcf   :  { %v11376_v22 = vmul.f32 -1.442695, %v1568_v19 }
 0xbd0   :  { %14087 = vpow2.f32 %v11377_v21 }
 0xbd1   :  { %14089 = vpow2.f32 %v11376_v22 }
 0xbd6   :  { %v14084_v23 = vpop.eup %14083 }
 0xbd7   :  { %v14086_v24 = vpop.eup %14085  ;;  %v1583_v26 = vadd.f32 1.0, %v14084_v23 }
 0xbd8   :  { %v1582_v27 = vadd.f32 1.0, %v14086_v24  ;;  %v12421_v24 = vpop.f32.mrb[20].mxu0 }
 0xbd9   :  { %14091 = vrcp.f32 %v1583_v26  ;;  %v1774_v26 = vpop.f32.mrb[21].mxu0 }
 0xbda   :  { %v14088_v52 = vpop.eup %14087  ;;  %14093 = vrcp.f32 %v1582_v27 }
 0xbdb   :  { %v14090_v18 = vpop.eup %14089  ;;  %v1585_v31 = vadd.f32 1.0, %v14088_v52 }
 0xbdc   :  { %v1584_v61 = vadd.f32 1.0, %v14090_v18 }
 0xbdd   :  { %14095 = vrcp.f32 %v1585_v31 }
 0xbde   :  { %14097 = vrcp.f32 %v1584_v61 }
 0xbe3   :  { %v14092_v32 = vpop.eup %14091 }
 0xbe4   :  { %v14094_v35 = vpop.eup %14093  ;;  %v1639_v62 = vsub.f32 1.0, %v14092_v32  ;;  %v1663_v25 = vmul.f32 %v14092_v32, %v15289_v45 }
 0xbe5   :  { %v1638_v63 = vsub.f32 1.0, %v14094_v35  ;;  %v1662_v2 = vmul.f32 %v14094_v35, %v15291_v47 }
 0xbe7   :  { %v14096_v39 = vpop.eup %14095 }
 0xbe8   :  { %v14098_v41 = vpop.eup %14097  ;;  %v1641_v9 = vsub.f32 1.0, %v14096_v39  ;;  %v1665_v13 = vmul.f32 %v14096_v39, %v15299_v20 }
 0xbe9   :  { %v1664_v45 = vmul.f32 %v14098_v41, %v15301_v55 }
 0xc3a   :  { %v1601_v33 = vpop.permute.xlu1 %1600 }
 0xc3b   :  { %v1611_v36 = vmul.f32 %v14092_v32, %v1601_v33  ;;  %v1599_v37 = vpop.permute.xlu0 %1598 }
 0xc3c   :  { %v1610_v38 = vmul.f32 %v14094_v35, %v1599_v37 }
 0xc3d   :  { %1620 = vrot.lane.b32.xlu1 %v1611_v36, %s14846_s27 }
 0xc3e   :  { %v1605_v40 = vpop.permute.xlu1 %1604  ;;  %1618 = vrot.lane.b32.xlu0 %v1610_v38, %s14846_s27  ;;  %v1780_v38 = vadd.f32 %v15335_v3, %v12421_v24 }
 0xc3f   :  { %v1613_v42 = vmul.f32 %v14096_v39, %v1605_v40  ;;  %v1603_v43 = vpop.permute.xlu0 %1602  ;;  %v1775_v39 = vadd.f32 %v15335_v3, %v1774_v26  ;;  %v11395_v26 = vld [vmem:[%s18723_s3 + $0x20] sm:$0xff] }
 0xc40   :  { %v1612_v44 = vmul.f32 %v14098_v41, %v1603_v43  ;;  %12441 = vmatprep.mubr.msk.f32.mxu0 %vm89_vm1, %v11395_v26 }
 0xc41   :  { %1624 = vrot.lane.b32.xlu1 %v1613_v42, %s14846_s27 }
 0xc42   :  { %1622 = vrot.lane.b32.xlu0 %v1612_v44, %s14846_s27 }
 0xc9a   :  { %v12424_v52 = vpop.f32.mrb[22].mxu0 }
 0xc9b   :  { %v1784_v27 = vpop.f32.mrb[23].mxu0 }
 0xc9c   :  { %v1785_v43 = vadd.f32 %v15335_v3, %v1784_v27  ;;  %v11397_v27 = vld [vmem:[%s18723_s3 + $0x30] sm:$0xff] }
 0xcaf   :  { %v1621_v46 = vpop.permute.xlu1 %1620 }
 0xcb0   :  { %v1631_v6 = vadd.f32 %v1621_v46, %v1460_v5  ;;  %v1619_v48 = vpop.permute.xlu0 %1618 }
 0xcb1   :  { %v1630_v49 = vadd.f32 %v1619_v48, %v1455_v7 }
 0xcb2   :  { %14099 = vtanh.f32 %v1631_v6 }
 0xcb3   :  { %14101 = vtanh.f32 %v1630_v49  ;;  %v1625_v50 = vpop.permute.xlu1 %1624 }
 0xcb4   :  { %v1633_v51 = vadd.f32 %v1625_v50, %v1470_v10  ;;  %v1623_v17 = vpop.permute.xlu0 %1622 }
 0xcb5   :  { %v1632_v53 = vadd.f32 %v1623_v17, %v1465_v12  ;;  %v1640_v12 = vsub.f32 1.0, %v14098_v41  ;;  %v1790_v41 = vadd.f32 %v15335_v3, %v12424_v52  ;;  %v11396_v52 = vld [vmem:[%s18723_s3 + $0x28] sm:$0xff] }
 0xcb6   :  { %14103 = vtanh.f32 %v1633_v51  ;;  %12442 = vmatmul.mubr.msk.f32.vlgmr.msra.gmra.mrb[24].mxu0 %vm89_vm1, %v11396_v52 }
 0xcb7   :  { %14105 = vtanh.f32 %v1632_v53  ;;  %12462 = vmatpush3.msk.msra.mxu0 %vm102_vm0, %v15360_v59  ;;  %12444 = vmatprep.mubr.msk.f32.mxu0 %vm89_vm1, %v11397_v27 }
 0xcbc   :  { %v14100_v54 = vpop.eup %14099 }
 0xcbd   :  { %v14102_v56 = vpop.eup %14101  ;;  %1648 = vrot.lane.b32.xlu1 %v14100_v54, %s14847_s4 }
 0xcbe   :  { %1646 = vrot.lane.b32.xlu0 %v14102_v56, %s14847_s4 }
 0xcc0   :  { %v14104_v29 = vpop.eup %14103 }
 0xcc1   :  { %v14106_v57 = vpop.eup %14105  ;;  %1652 = vrot.lane.b32.xlu1 %v14104_v29, %s14847_s4 }
 0xcc2   :  { %1650 = vrot.lane.b32.xlu0 %v14106_v57, %s14847_s4 }
 0xd2f   :  { %v1649_v30 = vpop.permute.xlu1 %1648 }
 0xd30   :  { %v1659_v0 = vmul.f32 %v1649_v30, %v1639_v62  ;;  %v1647_v1 = vpop.permute.xlu0 %1646 }
 0xd31   :  { %v1658_v5 = vmul.f32 %v1647_v1, %v1638_v63 }
 0xd32   :  { %v15376_v7 = vadd.f32 %v1663_v25, %v1659_v0 }
 0xd33   :  { %v15378_v10 = vadd.f32 %v1662_v2, %v1658_v5  ;;  %v1653_v11 = vpop.permute.xlu1 %1652 }
 0xd34   :  { %v1661_v14 = vmul.f32 %v1653_v11, %v1641_v9  ;;  %1676 = vrot.lane.b32.xlu1 %v15376_v7, %s14847_s4  ;;  %v1651_v15 = vpop.permute.xlu0 %1650 }
 0xd35   :  { %v1660_v19 = vmul.f32 %v1651_v15, %v1640_v12  ;;  %1674 = vrot.lane.b32.xlu0 %v15378_v10, %s14847_s4 }
 0xd36   :  { %v15386_v47 = vadd.f32 %v1665_v13, %v1661_v14 }
 0xd37   :  { %v15388_v21 = vadd.f32 %v1664_v45, %v1660_v19 }
 0xd38   :  { %1680 = vrot.lane.b32.xlu1 %v15386_v47, %s14847_s4 }
 0xd39   :  { %1678 = vrot.lane.b32.xlu0 %v15388_v21, %s14847_s4 }
 0xda6   :  { %v1677_v20 = vpop.permute.xlu1 %1676 }
 0xda7   :  { %1688 = vst.msk [vmem:[#allocation2 + $0x68] sm:$0xff] %vm197_vm2, %v1677_v20  ;;  %v1675_v22 = vpop.permute.xlu0 %1674 }
 0xda8   :  { %1687 = vst.msk [vmem:[#allocation2 + $0x60] sm:$0xff] %vm197_vm2, %v1675_v22  ;;  %12433 = vmatprep.mubr.msk.f32.mxu1 %vm197_vm2, %v1675_v22 }
 0xda9   :  { %12434 = vmatmul.mubr.msk.f32.vlgmr.msra.gmra.mrb[20].mxu1 %vm197_vm2, %v1677_v20 }
 0xdaa   :  { %v1681_v55 = vpop.permute.xlu1 %1680  ;;  %13430 = vmatpush3.bf16.msra.mxu1 %v14978_v4 }
 0xdab   :  { %1690 = vst.msk [vmem:[#allocation2 + $0x78] sm:$0xff] %vm197_vm2, %v1681_v55  ;;  %v1679_v23 = vpop.permute.xlu0 %1678  ;;  %13432 = vmatprep.subr.bf16.mxu1 %v14991_v8 }
 0xdac   :  { %1689 = vst.msk [vmem:[#allocation2 + $0x70] sm:$0xff] %vm197_vm2, %v1679_v23  ;;  %12436 = vmatprep.mubr.msk.f32.mxu1 %vm197_vm2, %v1679_v23 }
 0xdad   :  { %12437 = vmatmul.mubr.msk.f32.gmra.mrb[22].mxu1 %vm197_vm2, %v1681_v55 }
 0xdae   :  { %13434 = vmatpush3.bf16.msra.mxu1 %v14991_v8 }
 0xdaf   :  { %13436 = vmatprep.subr.bf16.mxu1 %v14978_v4 }
 0xe7c   :  { %v12435_v18 = vpop.f32.mrb[20].mxu1 }
 0xe7d   :  { %v1873_v31 = vadd.f32 %v15322_v34, %v12435_v18  ;;  %v1867_v61 = vpop.f32.mrb[21].mxu1  ;;  %v11398_v18 = vld [vmem:[%s18723_s3 + $0x38] sm:$0xff] }
 0xe7e   :  { %v1868_v32 = vadd.f32 %v15322_v34, %v1867_v61  ;;  %12445 = vmatmul.mubr.msk.f32.gmra.mrb[26].mxu0 %vm89_vm1, %v11398_v18 }
 0xe7f   :  { %1920 = vrot.lane.b32.xlu1 %v1873_v31, %s14846_s27  ;;  %v1887_v40 = vadd.f32 %v1873_v31, %v1780_v38 }
 0xe80   :  { %1918 = vrot.lane.b32.xlu0 %v1868_v32, %s14846_s27  ;;  %v12438_v33 = vpop.f32.mrb[22].mxu1  ;;  %v1886_v42 = vadd.f32 %v1868_v32, %v1775_v39 }
 0xe81   :  { %v1883_v35 = vadd.f32 %v15322_v34, %v12438_v33  ;;  %v1877_v36 = vpop.f32.mrb[23].mxu1  ;;  %v11392_v44 = vmul.f32 -1.442695, %v1887_v40 }
 0xe82   :  { %v1878_v37 = vadd.f32 %v15322_v34, %v1877_v36  ;;  %v11391_v6 = vmul.f32 -1.442695, %v1886_v42 }
 0xe83   :  { %1924 = vrot.lane.b32.xlu1 %v1883_v35, %s14846_s27  ;;  %v1889_v46 = vadd.f32 %v1883_v35, %v1790_v41  ;;  %14107 = vpow2.f32 %v11392_v44 }
 0xe84   :  { %1922 = vrot.lane.b32.xlu0 %v1878_v37, %s14846_s27  ;;  %v1888_v48 = vadd.f32 %v1878_v37, %v1785_v43  ;;  %14109 = vpow2.f32 %v11391_v6 }
 0xe85   :  { %v11394_v49 = vmul.f32 -1.442695, %v1889_v46 }
 0xe86   :  { %v11393_v50 = vmul.f32 -1.442695, %v1888_v48 }
 0xe87   :  { %14111 = vpow2.f32 %v11394_v49 }
 0xe88   :  { %14113 = vpow2.f32 %v11393_v50 }
 0xe8d   :  { %v14108_v51 = vpop.eup %14107 }
 0xe8e   :  { %v14110_v17 = vpop.eup %14109  ;;  %v1903_v53 = vadd.f32 1.0, %v14108_v51  ;;  %v12443_v51 = vpop.f32.mrb[24].mxu0 }
 0xe8f   :  { %v1902_v56 = vadd.f32 1.0, %v14110_v17  ;;  %v2094_v17 = vpop.f32.mrb[25].mxu0 }
 0xe90   :  { %14115 = vrcp.f32 %v1903_v53 }
 0xe91   :  { %v14112_v54 = vpop.eup %14111  ;;  %14117 = vrcp.f32 %v1902_v56 }
 0xe92   :  { %v14114_v29 = vpop.eup %14113  ;;  %v1905_v57 = vadd.f32 1.0, %v14112_v54 }
 0xe93   :  { %v1904_v16 = vadd.f32 1.0, %v14114_v29 }
 0xe94   :  { %14119 = vrcp.f32 %v1905_v57 }
 0xe95   :  { %14121 = vrcp.f32 %v1904_v16 }
 0xe9a   :  { %v14116_v58 = vpop.eup %14115 }
 0xe9b   :  { %v14118_v60 = vpop.eup %14117  ;;  %v1959_v31 = vsub.f32 1.0, %v14116_v58  ;;  %v1983_v33 = vmul.f32 %v14116_v58, %v15376_v7 }
 0xe9c   :  { %v1958_v32 = vsub.f32 1.0, %v14118_v60  ;;  %v1982_v59 = vmul.f32 %v14118_v60, %v15378_v10 }
 0xe9e   :  { %v14120_v25 = vpop.eup %14119 }
 0xe9f   :  { %v14122_v1 = vpop.eup %14121 }
 0xea0   :  { %v1960_v42 = vsub.f32 1.0, %v14122_v1  ;;  %v1984_v7 = vmul.f32 %v14122_v1, %v15388_v21 }
 0xef1   :  { %v1921_v28 = vpop.permute.xlu1 %1920 }
 0xef2   :  { %v1931_v62 = vmul.f32 %v14116_v58, %v1921_v28  ;;  %v1919_v30 = vpop.permute.xlu0 %1918 }
 0xef3   :  { %v1930_v63 = vmul.f32 %v14118_v60, %v1919_v30  ;;  %v2100_v60 = vadd.f32 %v15335_v3, %v12443_v51  ;;  %v15512_v51 = vld [vmem:[%s18723_s3 + $0x10] sm:$0xff] }
 0xef4   :  { %1940 = vrot.lane.b32.xlu1 %v1931_v62, %s14846_s27  ;;  %v2095_v62 = vadd.f32 %v15335_v3, %v2094_v17  ;;  %v15517_v17 = vld [vmem:[%s18723_s3 + $0x18] sm:$0xff]  ;;  %3052 = vst.msk [vmem:[%s18655_s21 + $0x10] sm:$0xff] %vm89_vm1, %v15512_v51 }
 0xef5   :  { %v1925_v0 = vpop.permute.xlu1 %1924  ;;  %1938 = vrot.lane.b32.xlu0 %v1930_v63, %s14846_s27  ;;  %3053 = vst.msk [vmem:[%s18655_s21 + $0x18] sm:$0xff] %vm89_vm1, %v15517_v17 }
 0xef6   :  { %v1933_v2 = vmul.f32 %v14120_v25, %v1925_v0  ;;  %v1923_v5 = vpop.permute.xlu0 %1922 }
 0xef7   :  { %v1932_v9 = vmul.f32 %v14122_v1, %v1923_v5 }
 0xef8   :  { %1944 = vrot.lane.b32.xlu1 %v1933_v2, %s14846_s27 }
 0xef9   :  { %1942 = vrot.lane.b32.xlu0 %v1932_v9, %s14846_s27 }
 0xf51   :  { %v12446_v53 = vpop.f32.mrb[26].mxu0 }
 0xf52   :  { %v2104_v54 = vpop.f32.mrb[27].mxu0  ;;  %v2110_v63 = vadd.f32 %v15335_v3, %v12446_v53 }
 0xf53   :  { %v2105_v0 = vadd.f32 %v15335_v3, %v2104_v54 }
 0xf66   :  { %v1941_v11 = vpop.permute.xlu1 %1940 }
 0xf67   :  { %v1951_v12 = vadd.f32 %v1941_v11, %v1780_v38  ;;  %v1939_v13 = vpop.permute.xlu0 %1938 }
 0xf68   :  { %v1950_v14 = vadd.f32 %v1939_v13, %v1775_v39  ;;  %v1961_v39 = vsub.f32 1.0, %v14120_v25 }
 0xf69   :  { %14123 = vtanh.f32 %v1951_v12 }
 0xf6a   :  { %14125 = vtanh.f32 %v1950_v14  ;;  %v1945_v15 = vpop.permute.xlu1 %1944 }
 0xf6b   :  { %v1953_v45 = vadd.f32 %v1945_v15, %v1790_v41  ;;  %v1943_v19 = vpop.permute.xlu0 %1942 }
 0xf6c   :  { %v1952_v20 = vadd.f32 %v1943_v19, %v1785_v43  ;;  %v1985_v43 = vmul.f32 %v14120_v25, %v15386_v47 }
 0xf6d   :  { %14127 = vtanh.f32 %v1953_v45 }
 0xf6e   :  { %14129 = vtanh.f32 %v1952_v20 }
 0xf73   :  { %v14124_v22 = vpop.eup %14123 }
 0xf74   :  { %v14126_v55 = vpop.eup %14125  ;;  %1968 = vrot.lane.b32.xlu1 %v14124_v22, %s14847_s4 }
 0xf75   :  { %1966 = vrot.lane.b32.xlu0 %v14126_v55, %s14847_s4 }
 0xf77   :  { %v14128_v23 = vpop.eup %14127 }
 0xf78   :  { %v14130_v24 = vpop.eup %14129  ;;  %1972 = vrot.lane.b32.xlu1 %v14128_v23, %s14847_s4 }
 0xf79   :  { %1970 = vrot.lane.b32.xlu0 %v14130_v24, %s14847_s4 }
 0xfe6   :  { %v1969_v61 = vpop.permute.xlu1 %1968 }
 0xfe7   :  { %v1979_v35 = vmul.f32 %v1969_v61, %v1959_v31  ;;  %v1967_v36 = vpop.permute.xlu0 %1966 }
 0xfe8   :  { %v1978_v37 = vmul.f32 %v1967_v36, %v1958_v32 }
 0xfe9   :  { %v15446_v38 = vadd.f32 %v1983_v33, %v1979_v35 }
 0xfea   :  { %v15448_v40 = vadd.f32 %v1982_v59, %v1978_v37  ;;  %v1973_v41 = vpop.permute.xlu1 %1972 }
 0xfeb   :  { %v1981_v44 = vmul.f32 %v1973_v41, %v1961_v39  ;;  %1996 = vrot.lane.b32.xlu1 %v15446_v38, %s14847_s4  ;;  %v1971_v46 = vpop.permute.xlu0 %1970 }
 0xfec   :  { %v1980_v6 = vmul.f32 %v1971_v46, %v1960_v42  ;;  %1994 = vrot.lane.b32.xlu0 %v15448_v40, %s14847_s4 }
 0xfed   :  { %v15456_v10 = vadd.f32 %v1985_v43, %v1981_v44 }
 0xfee   :  { %v15458_v48 = vadd.f32 %v1984_v7, %v1980_v6 }
 0xfef   :  { %2000 = vrot.lane.b32.xlu1 %v15456_v10, %s14847_s4 }
 0xff0   :  { %1998 = vrot.lane.b32.xlu0 %v15458_v48, %s14847_s4 }
0x105d   :  { %v1997_v47 = vpop.permute.xlu1 %1996 }
0x105e   :  { %2008 = vst.msk [vmem:[#allocation2 + $0x48] sm:$0xff] %vm197_vm2, %v1997_v47  ;;  %v1995_v49 = vpop.permute.xlu0 %1994 }
0x105f   :  { %2007 = vst.msk [vmem:[#allocation2 + $0x40] sm:$0xff] %vm197_vm2, %v1995_v49  ;;  %12455 = vmatprep.mubr.msk.f32.mxu1 %vm197_vm2, %v1995_v49 }
0x1060   :  { %12456 = vmatmul.mubr.msk.f32.vlgmr.msra.gmra.mrb[24].mxu1 %vm197_vm2, %v1997_v47 }
0x1061   :  { %v2001_v21 = vpop.permute.xlu1 %2000  ;;  %13438 = vmatpush3.bf16.msra.mxu1 %v14978_v4 }
0x1062   :  { %2010 = vst.msk [vmem:[#allocation2 + $0x58] sm:$0xff] %vm197_vm2, %v2001_v21  ;;  %v1999_v50 = vpop.permute.xlu0 %1998  ;;  %13440 = vmatprep.subr.bf16.mxu1 %v14991_v8 }
0x1063   :  { %2009 = vst.msk [vmem:[#allocation2 + $0x50] sm:$0xff] %vm197_vm2, %v1999_v50  ;;  %12458 = vmatprep.mubr.msk.f32.mxu1 %vm197_vm2, %v1999_v50  ;;  %v15503_v50 = vld [vmem:[%s18723_s3 + $0x8] sm:$0xff] }
0x1064   :  { %12459 = vmatmul.mubr.msk.f32.gmra.mrb[26].mxu1 %vm197_vm2, %v2001_v21  ;;  %v15498_v21 = vld [vmem:[%s18723_s3] sm:$0xff]  ;;  %3051 = vst.msk [vmem:[%s18655_s21 + $0x8] sm:$0xff] %vm89_vm1, %v15503_v50 }
0x1065   :  { %13442 = vmatpush3.bf16.msra.mxu1 %v14991_v8  ;;  %12463 = vmatprep.mubr.msk.f32.mxu0 %vm89_vm1, %v15498_v21  ;;  %3050 = vst.msk [vmem:[%s18655_s21] sm:$0xff] %vm89_vm1, %v15498_v21 }
0x1066   :  { %12464 = vmatmul.mubr.msk.f32.vlgmr.msra.gmra.mrb[28].mxu0 %vm89_vm1, %v15503_v50 }
0x1067   :  { %12466 = vmatprep.mubr.msk.f32.mxu0 %vm89_vm1, %v15512_v51 }
0x106a   :  { %12467 = vmatmul.mubr.msk.f32.gmra.mrb[30].mxu0 %vm89_vm1, %v15517_v17 }
0x1133   :  { %v12457_v56 = vpop.f32.mrb[24].mxu1 }
0x1134   :  { %v2193_v4 = vadd.f32 %v15322_v34, %v12457_v56  ;;  %v2187_v29 = vpop.f32.mrb[25].mxu1 }
0x1135   :  { %v2188_v57 = vadd.f32 %v15322_v34, %v2187_v29 }
0x1136   :  { %2240 = vrot.lane.b32.xlu1 %v2193_v4, %s14846_s27  ;;  %v2207_v30 = vadd.f32 %v2193_v4, %v2100_v60 }
0x1137   :  { %2238 = vrot.lane.b32.xlu0 %v2188_v57, %s14846_s27  ;;  %v12460_v16 = vpop.f32.mrb[26].mxu1  ;;  %v2206_v25 = vadd.f32 %v2188_v57, %v2095_v62 }
0x1138   :  { %v2203_v58 = vadd.f32 %v15322_v34, %v12460_v16  ;;  %v2197_v28 = vpop.f32.mrb[27].mxu1  ;;  %v11409_v1 = vmul.f32 -1.442695, %v2207_v30 }
0x1139   :  { %v2198_v8 = vadd.f32 %v15322_v34, %v2197_v28  ;;  %v11408_v5 = vmul.f32 -1.442695, %v2206_v25 }
0x113a   :  { %2244 = vrot.lane.b32.xlu1 %v2203_v58, %s14846_s27  ;;  %v2209_v2 = vadd.f32 %v2203_v58, %v2110_v63  ;;  %14131 = vpow2.f32 %v11409_v1 }
0x113b   :  { %2242 = vrot.lane.b32.xlu0 %v2198_v8, %s14846_s27  ;;  %v2208_v9 = vadd.f32 %v2198_v8, %v2105_v0  ;;  %14133 = vpow2.f32 %v11408_v5 }
0x113c   :  { %v11411_v11 = vmul.f32 -1.442695, %v2209_v2 }
0x113d   :  { %v11410_v12 = vmul.f32 -1.442695, %v2208_v9 }
0x113e   :  { %14135 = vpow2.f32 %v11411_v11  ;;  %v12465_v11 = vpop.f32.mrb[28].mxu0 }
0x113f   :  { %14137 = vpow2.f32 %v11410_v12  ;;  %v2413_v12 = vpop.f32.mrb[29].mxu0 }
0x1144   :  { %v14132_v13 = vpop.eup %14131 }
0x1145   :  { %v14134_v14 = vpop.eup %14133  ;;  %v2223_v15 = vadd.f32 1.0, %v14132_v13  ;;  %v12468_v13 = vpop.f32.mrb[30].mxu0 }
0x1146   :  { %v2222_v19 = vadd.f32 1.0, %v14134_v14  ;;  %v2423_v14 = vpop.f32.mrb[31].mxu0 }
0x1147   :  { %14139 = vrcp.f32 %v2223_v15 }
0x1148   :  { %v14136_v45 = vpop.eup %14135  ;;  %14141 = vrcp.f32 %v2222_v19 }
0x1149   :  { %v14138_v20 = vpop.eup %14137  ;;  %v2225_v22 = vadd.f32 1.0, %v14136_v45 }
0x114a   :  { %v2224_v55 = vadd.f32 1.0, %v14138_v20 }
0x114b   :  { %14143 = vrcp.f32 %v2225_v22 }
0x114c   :  { %14145 = vrcp.f32 %v2224_v55 }
0x1151   :  { %v14140_v23 = vpop.eup %14139 }
0x1152   :  { %v14142_v26 = vpop.eup %14141  ;;  %v2279_v53 = vsub.f32 1.0, %v14140_v23  ;;  %v2303_v4 = vmul.f32 %v14140_v23, %v15446_v38 }
0x1153   :  { %v2278_v56 = vsub.f32 1.0, %v14142_v26  ;;  %v2302_v16 = vmul.f32 %v14142_v26, %v15448_v40 }
0x1155   :  { %v14144_v31 = vpop.eup %14143 }
0x1156   :  { %v14146_v32 = vpop.eup %14145  ;;  %v2281_v8 = vsub.f32 1.0, %v14144_v31 }
0x1157   :  { %v2280_v30 = vsub.f32 1.0, %v14146_v32  ;;  %v2304_v38 = vmul.f32 %v14146_v32, %v15458_v48 }
0x11a8   :  { %v2241_v24 = vpop.permute.xlu1 %2240 }
0x11a9   :  { %v2251_v52 = vmul.f32 %v14140_v23, %v2241_v24  ;;  %v2239_v27 = vpop.permute.xlu0 %2238 }
0x11aa   :  { %v2250_v18 = vmul.f32 %v14142_v26, %v2239_v27  ;;  %v2419_v26 = vadd.f32 %v15335_v3, %v12465_v11  ;;  %v2681_v11 = vld [vmem:[%s18726_s24] sm:$0xff] }
0x11ab   :  { %2260 = vrot.lane.b32.xlu1 %v2251_v52, %s14846_s27  ;;  %v2414_v52 = vadd.f32 %v15335_v3, %v2413_v12  ;;  %v2682_v12 = vld [vmem:[%s18726_s24 + $0x8] sm:$0xff] }
0x11ac   :  { %v2245_v61 = vpop.permute.xlu1 %2244  ;;  %2258 = vrot.lane.b32.xlu0 %v2250_v18, %s14846_s27  ;;  %v2429_v18 = vadd.f32 %v15335_v3, %v12468_v13  ;;  %v13443_v13 = vpack.c.bf16 %v2682_v12, %v2681_v11  ;;  %v2679_v11 = vld [vmem:[#allocation2 + $0xf0] sm:$0xff]  ;;  %v2680_v12 = vld [vmem:[#allocation2 + $0xf8] sm:$0xff] }
0x11ad   :  { %v2253_v33 = vmul.f32 %v14144_v31, %v2245_v61  ;;  %v2243_v35 = vpop.permute.xlu0 %2242  ;;  %v2424_v61 = vadd.f32 %v15335_v3, %v2423_v14  ;;  %v2683_v14 = vld [vmem:[%s18726_s24 + $0x10] sm:$0xff] }
0x11ae   :  { %v2252_v36 = vmul.f32 %v14146_v32, %v2243_v35  ;;  %13444 = vmatprep.subr.bf16.mxu0 %v13443_v13 }
0x11af   :  { %2264 = vrot.lane.b32.xlu1 %v2253_v33, %s14846_s27  ;;  %13446 = vmatpush3.bf16.msra.mxu0 %v13443_v13  ;;  %v15630_v13 = vld [vmem:[%s18727_s5] sm:$0xff] }
0x11b0   :  { %2262 = vrot.lane.b32.xlu0 %v2252_v36, %s14846_s27  ;;  %12539 = vmatprep.subr.mxu1 %v15630_v13 }
0x121d   :  { %v2261_v59 = vpop.permute.xlu1 %2260 }
0x121e   :  { %v2271_v37 = vadd.f32 %v2261_v59, %v2100_v60  ;;  %v2259_v39 = vpop.permute.xlu0 %2258 }
0x121f   :  { %v2270_v41 = vadd.f32 %v2259_v39, %v2095_v62 }
0x1220   :  { %14147 = vtanh.f32 %v2271_v37 }
0x1221   :  { %14149 = vtanh.f32 %v2270_v41  ;;  %v2265_v42 = vpop.permute.xlu1 %2264 }
0x1222   :  { %v2273_v43 = vadd.f32 %v2265_v42, %v2110_v63  ;;  %v2263_v44 = vpop.permute.xlu0 %2262  ;;  %v2305_v63 = vmul.f32 %v14144_v31, %v15456_v10 }
0x1223   :  { %v2272_v46 = vadd.f32 %v2263_v44, %v2105_v0 }
0x1224   :  { %14151 = vtanh.f32 %v2273_v43 }
0x1225   :  { %14153 = vtanh.f32 %v2272_v46 }
0x122a   :  { %v14148_v7 = vpop.eup %14147 }
0x122b   :  { %v14150_v6 = vpop.eup %14149  ;;  %2288 = vrot.lane.b32.xlu1 %v14148_v7, %s14847_s4 }
0x122c   :  { %2286 = vrot.lane.b32.xlu0 %v14150_v6, %s14847_s4 }
0x122e   :  { %v14152_v47 = vpop.eup %14151 }
0x122f   :  { %v14154_v49 = vpop.eup %14153  ;;  %2292 = vrot.lane.b32.xlu1 %v14152_v47, %s14847_s4 }
0x1230   :  { %2290 = vrot.lane.b32.xlu0 %v14154_v49, %s14847_s4 }
0x129d   :  { %v2289_v54 = vpop.permute.xlu1 %2288 }
0x129e   :  { %v2299_v29 = vmul.f32 %v2289_v54, %v2279_v53  ;;  %v2287_v57 = vpop.permute.xlu0 %2286 }
0x129f   :  { %v2298_v58 = vmul.f32 %v2287_v57, %v2278_v56 }
0x12a0   :  { %v15525_v28 = vadd.f32 %v2303_v4, %v2299_v29 }
0x12a1   :  { %v15527_v60 = vadd.f32 %v2302_v16, %v2298_v58  ;;  %v2293_v62 = vpop.permute.xlu1 %2292 }
0x12a2   :  { %v2301_v25 = vmul.f32 %v2293_v62, %v2281_v8  ;;  %2316 = vrot.lane.b32.xlu1 %v15525_v28, %s14847_s4  ;;  %v2291_v0 = vpop.permute.xlu0 %2290 }
0x12a3   :  { %v2300_v1 = vmul.f32 %v2291_v0, %v2280_v30  ;;  %2314 = vrot.lane.b32.xlu0 %v15527_v60, %s14847_s4 }
0x12a4   :  { %v15535_v40 = vadd.f32 %v2305_v63, %v2301_v25 }
0x12a5   :  { %v15537_v2 = vadd.f32 %v2304_v38, %v2300_v1 }
0x12a6   :  { %2320 = vrot.lane.b32.xlu1 %v15535_v40, %s14847_s4 }
0x12a7   :  { %2318 = vrot.lane.b32.xlu0 %v15537_v2, %s14847_s4 }
0x1314   :  { %v2317_v10 = vpop.permute.xlu1 %2316 }
0x1315   :  { %2328 = vst.msk [vmem:[#allocation2 + $0x28] sm:$0xff] %vm197_vm2, %v2317_v10  ;;  %v2315_v5 = vpop.permute.xlu0 %2314 }
0x1316   :  { %2327 = vst.msk [vmem:[#allocation2 + $0x20] sm:$0xff] %vm197_vm2, %v2315_v5  ;;  %12477 = vmatprep.mubr.msk.f32.mxu1 %vm197_vm2, %v2315_v5 }
0x1317   :  { %12478 = vmatmul.mubr.msk.f32.vlgmr.msra.gmra.mrb[28].mxu1 %vm197_vm2, %v2317_v10 }
0x1318   :  { %v2321_v48 = vpop.permute.xlu1 %2320  ;;  %12540 = vmatpush3.msra.mxu1 %v15630_v13 }
0x1319   :  { %2330 = vst.msk [vmem:[#allocation2 + $0x38] sm:$0xff] %vm197_vm2, %v2321_v48  ;;  %v2319_v9 = vpop.permute.xlu0 %2318 }
0x131a   :  { %2329 = vst.msk [vmem:[#allocation2 + $0x30] sm:$0xff] %vm197_vm2, %v2319_v9  ;;  %12480 = vmatprep.mubr.msk.f32.mxu1 %vm197_vm2, %v2319_v9 }
0x131b   :  { %12481 = vmatmul.mubr.msk.f32.gmra.mrb[30].mxu1 %vm197_vm2, %v2321_v48 }
0x13ea   :  { %v12479_v15 = vpop.f32.mrb[28].mxu1 }
0x13eb   :  { %v2512_v45 = vadd.f32 %v15322_v34, %v12479_v15  ;;  %v2506_v19 = vpop.f32.mrb[29].mxu1  ;;  %v2684_v15 = vld [vmem:[%s18726_s24 + $0x18] sm:$0xff] }
0x13ec   :  { %v2507_v20 = vadd.f32 %v15322_v34, %v2506_v19 }
0x13ed   :  { %2559 = vrot.lane.b32.xlu1 %v2512_v45, %s14846_s27  ;;  %v2526_v27 = vadd.f32 %v2512_v45, %v2419_v26  ;;  %v13447_v45 = vpack.c.bf16 %v2684_v15, %v2683_v14  ;;  %v15637_v14 = vld [vmem:[%s18728_s30] sm:$0xf] }
0x13ee   :  { %2557 = vrot.lane.b32.xlu0 %v2507_v20, %s14846_s27  ;;  %v12482_v22 = vpop.f32.mrb[30].mxu1  ;;  %v2525_v31 = vadd.f32 %v2507_v20, %v2414_v52  ;;  %12547 = vmatprep.subr.msk.mxu1 %vm102_vm0, %v15637_v14  ;;  %v15664_v15 = vld [vmem:[%s18656_s7] ss:$0 sm:$0xff] }
0x13ef   :  { %v2522_v55 = vadd.f32 %v15322_v34, %v12482_v22  ;;  %v2516_v23 = vpop.f32.mrb[31].mxu1  ;;  %v11422_v32 = vmul.f32 -1.442695, %v2526_v27  ;;  %13448 = vmatprep.subr.bf16.mxu0 %v13447_v45 }
0x13f0   :  { %v2517_v24 = vadd.f32 %v15322_v34, %v2516_v23  ;;  %v11421_v35 = vmul.f32 -1.442695, %v2525_v31  ;;  %13450 = vmatpush3.bf16.msra.mxu0 %v13447_v45 }
0x13f1   :  { %2563 = vrot.lane.b32.xlu1 %v2522_v55, %s14846_s27  ;;  %v2528_v33 = vadd.f32 %v2522_v55, %v2429_v18  ;;  %14155 = vpow2.f32 %v11422_v32 }
0x13f2   :  { %2561 = vrot.lane.b32.xlu0 %v2517_v24, %s14846_s27  ;;  %v2527_v36 = vadd.f32 %v2517_v24, %v2424_v61  ;;  %14157 = vpow2.f32 %v11421_v35 }
0x13f3   :  { %v11424_v34 = vmul.f32 -1.442695, %v2528_v33 }
0x13f4   :  { %v11423_v59 = vmul.f32 -1.442695, %v2527_v36 }
0x13f5   :  { %14159 = vpow2.f32 %v11424_v34 }
0x13f6   :  { %14161 = vpow2.f32 %v11423_v59 }
0x13fb   :  { %v14156_v37 = vpop.eup %14155 }
0x13fc   :  { %v14158_v39 = vpop.eup %14157  ;;  %v2542_v41 = vadd.f32 1.0, %v14156_v37 }
0x13fd   :  { %v2541_v43 = vadd.f32 1.0, %v14158_v39 }
0x13fe   :  { %14163 = vrcp.f32 %v2542_v41 }
0x13ff   :  { %v14160_v42 = vpop.eup %14159  ;;  %14165 = vrcp.f32 %v2541_v43 }
0x1400   :  { %v14162_v44 = vpop.eup %14161  ;;  %v2544_v46 = vadd.f32 1.0, %v14160_v42 }
0x1401   :  { %v2543_v3 = vadd.f32 1.0, %v14162_v44 }
0x1402   :  { %14167 = vrcp.f32 %v2544_v46  ;;  %v2653_v46 = vld [vmem:[#allocation2 + $0x20] sm:$0xff] }
0x1403   :  { %14169 = vrcp.f32 %v2543_v3  ;;  %v2654_v3 = vld [vmem:[#allocation2 + $0x28] sm:$0xff] }
0x1408   :  { %v14164_v7 = vpop.eup %14163 }
0x1409   :  { %v14166_v47 = vpop.eup %14165  ;;  %v2598_v19 = vsub.f32 1.0, %v14164_v7  ;;  %v2622_v55 = vmul.f32 %v14164_v7, %v15525_v28 }
0x140a   :  { %v2597_v22 = vsub.f32 1.0, %v14166_v47 }
0x140c   :  { %v14168_v56 = vpop.eup %14167 }
0x140d   :  { %v14170_v29 = vpop.eup %14169  ;;  %v2624_v33 = vmul.f32 %v14168_v56, %v15535_v40 }
0x140e   :  { %v2599_v32 = vsub.f32 1.0, %v14170_v29  ;;  %v2623_v34 = vmul.f32 %v14170_v29, %v15537_v2 }
0x145f   :  { %v2560_v6 = vpop.permute.xlu1 %2559 }
0x1460   :  { %v2570_v49 = vmul.f32 %v14164_v7, %v2560_v6  ;;  %v2558_v53 = vpop.permute.xlu0 %2557  ;;  %v2655_v7 = vld [vmem:[#allocation2 + $0x30] sm:$0xff]  ;;  %v2656_v6 = vld [vmem:[#allocation2 + $0x38] sm:$0xff] }
0x1461   :  { %v2569_v54 = vmul.f32 %v14166_v47, %v2558_v53  ;;  %v2659_v53 = vld [vmem:[#allocation2 + $0x50] sm:$0xff] }
0x1462   :  { %2579 = vrot.lane.b32.xlu1 %v2570_v49, %s14846_s27  ;;  %v2658_v49 = vld [vmem:[#allocation2 + $0x48] sm:$0xff] }
0x1463   :  { %v2564_v4 = vpop.permute.xlu1 %2563  ;;  %2577 = vrot.lane.b32.xlu0 %v2569_v54, %s14846_s27  ;;  %v2660_v54 = vld [vmem:[#allocation2 + $0x58] sm:$0xff] }
0x1464   :  { %v2572_v57 = vmul.f32 %v14168_v56, %v2564_v4  ;;  %v2562_v16 = vpop.permute.xlu0 %2561  ;;  %v2662_v4 = vld [vmem:[#allocation2 + $0x68] sm:$0xff] }
0x1465   :  { %v2571_v58 = vmul.f32 %v14170_v29, %v2562_v16  ;;  %v2663_v29 = vld [vmem:[#allocation2 + $0x70] sm:$0xff]  ;;  %v2665_v16 = vld [vmem:[#allocation2 + $0x80] sm:$0xff] }
0x1466   :  { %2583 = vrot.lane.b32.xlu1 %v2572_v57, %s14846_s27  ;;  %v2664_v57 = vld [vmem:[#allocation2 + $0x78] sm:$0xff] }
0x1467   :  { %2581 = vrot.lane.b32.xlu0 %v2571_v58, %s14846_s27  ;;  %v2666_v58 = vld [vmem:[#allocation2 + $0x88] sm:$0xff] }
0x14d4   :  { %v2580_v8 = vpop.permute.xlu1 %2579 }
0x14d5   :  { %v2590_v62 = vadd.f32 %v2580_v8, %v2419_v26  ;;  %v2578_v30 = vpop.permute.xlu0 %2577  ;;  %v2621_v26 = vmul.f32 %v14166_v47, %v15527_v60  ;;  %v2657_v47 = vld [vmem:[#allocation2 + $0x40] sm:$0xff]  ;;  %v2667_v8 = vld [vmem:[#allocation2 + $0x90] sm:$0xff] }
0x14d6   :  { %v2589_v63 = vadd.f32 %v2578_v30, %v2414_v52  ;;  %v2669_v30 = vld [vmem:[#allocation2 + $0xa0] sm:$0xff] }
0x14d7   :  { %14171 = vtanh.f32 %v2590_v62  ;;  %v2668_v62 = vld [vmem:[#allocation2 + $0x98] sm:$0xff] }
0x14d8   :  { %14173 = vtanh.f32 %v2589_v63  ;;  %v2584_v25 = vpop.permute.xlu1 %2583  ;;  %v2670_v63 = vld [vmem:[#allocation2 + $0xa8] sm:$0xff] }
0x14d9   :  { %v2592_v0 = vadd.f32 %v2584_v25, %v2429_v18  ;;  %v2582_v38 = vpop.permute.xlu0 %2581  ;;  %v2600_v18 = vsub.f32 1.0, %v14168_v56  ;;  %v2661_v56 = vld [vmem:[#allocation2 + $0x60] sm:$0xff]  ;;  %v2671_v25 = vld [vmem:[#allocation2 + $0xb0] sm:$0xff] }
0x14da   :  { %v2591_v1 = vadd.f32 %v2582_v38, %v2424_v61  ;;  %v2673_v38 = vld [vmem:[#allocation2 + $0xc0] sm:$0xff] }
0x14db   :  { %14175 = vtanh.f32 %v2592_v0  ;;  %v2672_v0 = vld [vmem:[#allocation2 + $0xb8] sm:$0xff] }
0x14dc   :  { %14177 = vtanh.f32 %v2591_v1  ;;  %v2674_v1 = vld [vmem:[#allocation2 + $0xc8] sm:$0xff] }
0x14e1   :  { %v14172_v10 = vpop.eup %14171 }
0x14e2   :  { %v14174_v5 = vpop.eup %14173  ;;  %2607 = vrot.lane.b32.xlu1 %v14172_v10, %s14847_s4  ;;  %v2675_v10 = vld [vmem:[#allocation2 + $0xd0] sm:$0xff] }
0x14e3   :  { %2605 = vrot.lane.b32.xlu0 %v14174_v5, %s14847_s4  ;;  %v2676_v5 = vld [vmem:[#allocation2 + $0xd8] sm:$0xff] }
0x14e5   :  { %v14176_v48 = vpop.eup %14175 }
0x14e6   :  { %v14178_v9 = vpop.eup %14177  ;;  %2611 = vrot.lane.b32.xlu1 %v14176_v48, %s14847_s4  ;;  %v2677_v48 = vld [vmem:[#allocation2 + $0xe0] sm:$0xff] }
0x14e7   :  { %2609 = vrot.lane.b32.xlu0 %v14178_v9, %s14847_s4  ;;  %v2678_v9 = vld [vmem:[#allocation2 + $0xe8] sm:$0xff] }
0x1554   :  { %v2608_v20 = vpop.permute.xlu1 %2607 }
0x1555   :  { %v2618_v23 = vmul.f32 %v2608_v20, %v2598_v19  ;;  %v2606_v24 = vpop.permute.xlu0 %2605 }
0x1556   :  { %v2617_v52 = vmul.f32 %v2606_v24, %v2597_v22 }
0x1557   :  { %v2626_v27 = vadd.f32 %v2622_v55, %v2618_v23 }
0x1558   :  { %v2625_v31 = vadd.f32 %v2621_v26, %v2617_v52  ;;  %v2612_v61 = vpop.permute.xlu1 %2611 }
0x1559   :  { %v2620_v35 = vmul.f32 %v2612_v61, %v2600_v18  ;;  %2635 = vrot.lane.b32.xlu1 %v2626_v27, %s14847_s4  ;;  %v2610_v36 = vpop.permute.xlu0 %2609 }
0x155a   :  { %v2619_v59 = vmul.f32 %v2610_v36, %v2599_v32  ;;  %2633 = vrot.lane.b32.xlu0 %v2625_v31, %s14847_s4 }
0x155b   :  { %v2628_v28 = vadd.f32 %v2624_v33, %v2620_v35 }
0x155c   :  { %v2627_v37 = vadd.f32 %v2623_v34, %v2619_v59 }
0x155d   :  { %2639 = vrot.lane.b32.xlu1 %v2628_v28, %s14847_s4 }
0x155e   :  { %2637 = vrot.lane.b32.xlu0 %v2627_v37, %s14847_s4 }
0x15cb   :  { %v2636_v60 = vpop.permute.xlu1 %2635 }
0x15cc   :  { %2646 = vst.msk [vmem:[#allocation2 + $0x8] sm:$0xff] %vm197_vm2, %v2636_v60  ;;  %v2634_v39 = vpop.permute.xlu0 %2633 }
0x15cd   :  { %2645 = vst.msk [vmem:[#allocation2] sm:$0xff] %vm197_vm2, %v2634_v39 }
0x15cf   :  { %v2640_v40 = vpop.permute.xlu1 %2639 }
0x15d0   :  { %2648 = vst.msk [vmem:[#allocation2 + $0x18] sm:$0xff] %vm197_vm2, %v2640_v40  ;;  %v2638_v41 = vpop.permute.xlu0 %2637 }
0x15d1   :  { %2647 = vst.msk [vmem:[#allocation2 + $0x10] sm:$0xff] %vm197_vm2, %v2638_v41 }
0x15d3   :  { %v2650_v42 = vld [vmem:[#allocation2 + $0x8] sm:$0xff] }
0x15d4   :  { %v2649_v2 = vld [vmem:[#allocation2] sm:$0xff] }
0x15d5   :  { %12491 = vmatprep.mubr.msk.f32.mxu0 %vm197_vm2, %v2649_v2 }
0x15d6   :  { %12492 = vmatmul.mubr.msk.f32.vlgmr.msra.gmra.mrb[32].mxu0 %vm197_vm2, %v2650_v42 }
0x15d7   :  { %v2652_v44 = vld [vmem:[#allocation2 + $0x18] sm:$0xff] }
0x15d8   :  { %v2651_v43 = vld [vmem:[#allocation2 + $0x10] sm:$0xff] }
0x15d9   :  { %12494 = vmatprep.mubr.msk.f32.mxu0 %vm197_vm2, %v2651_v43 }
0x15da   :  { %12495 = vmatmul.mubr.msk.f32.gmra.mrb[34].mxu0 %vm197_vm2, %v2652_v44 }
0x15db   :  { %12497 = vmatprep.mubr.msk.f32.mxu0 %vm197_vm2, %v2653_v46 }
0x15de   :  { %12498 = vmatmul.mubr.msk.f32.gmra.mrb[36].mxu0 %vm197_vm2, %v2654_v3 }
0x15df   :  { %12500 = vmatprep.mubr.msk.f32.mxu0 %vm197_vm2, %v2655_v7 }
0x15e2   :  { %12501 = vmatmul.mubr.msk.f32.gmra.mrb[38].mxu0 %vm197_vm2, %v2656_v6 }
0x15e3   :  { %12503 = vmatprep.mubr.msk.f32.mxu0 %vm197_vm2, %v2657_v47 }
0x15e6   :  { %12504 = vmatmul.mubr.msk.f32.gmra.mrb[40].mxu0 %vm197_vm2, %v2658_v49 }
0x15e7   :  { %12506 = vmatprep.mubr.msk.f32.mxu0 %vm197_vm2, %v2659_v53 }
0x15ea   :  { %12507 = vmatmul.mubr.msk.f32.gmra.mrb[42].mxu0 %vm197_vm2, %v2660_v54 }
0x15eb   :  { %12509 = vmatprep.mubr.msk.f32.mxu0 %vm197_vm2, %v2661_v56 }
0x15ee   :  { %12510 = vmatmul.mubr.msk.f32.gmra.mrb[44].mxu0 %vm197_vm2, %v2662_v4 }
0x15ef   :  { %12512 = vmatprep.mubr.msk.f32.mxu0 %vm197_vm2, %v2663_v29 }
0x15f2   :  { %12513 = vmatmul.mubr.msk.f32.gmra.mrb[46].mxu0 %vm197_vm2, %v2664_v57 }
0x15f3   :  { %12515 = vmatprep.mubr.msk.f32.mxu0 %vm197_vm2, %v2665_v16 }
0x15f6   :  { %12516 = vmatmul.mubr.msk.f32.gmra.mrb[48].mxu0 %vm197_vm2, %v2666_v58 }
0x15f7   :  { %12518 = vmatprep.mubr.msk.f32.mxu0 %vm197_vm2, %v2667_v8 }
0x15fa   :  { %12519 = vmatmul.mubr.msk.f32.gmra.mrb[50].mxu0 %vm197_vm2, %v2668_v62 }
0x15fb   :  { %12521 = vmatprep.mubr.msk.f32.mxu0 %vm197_vm2, %v2669_v30 }
0x15fe   :  { %12522 = vmatmul.mubr.msk.f32.gmra.mrb[52].mxu0 %vm197_vm2, %v2670_v63 }
0x15ff   :  { %12524 = vmatprep.mubr.msk.f32.mxu0 %vm197_vm2, %v2671_v25 }
0x1602   :  { %12525 = vmatmul.mubr.msk.f32.gmra.mrb[54].mxu0 %vm197_vm2, %v2672_v0 }
0x1603   :  { %12527 = vmatprep.mubr.msk.f32.mxu0 %vm197_vm2, %v2673_v38 }
0x1606   :  { %12528 = vmatmul.mubr.msk.f32.gmra.mrb[56].mxu0 %vm197_vm2, %v2674_v1 }
0x1607   :  { %12530 = vmatprep.mubr.msk.f32.mxu0 %vm197_vm2, %v2675_v10 }
0x160a   :  { %12531 = vmatmul.mubr.msk.f32.gmra.mrb[58].mxu0 %vm197_vm2, %v2676_v5 }
0x160b   :  { %12533 = vmatprep.mubr.msk.f32.mxu0 %vm197_vm2, %v2677_v48 }
0x160e   :  { %12534 = vmatmul.mubr.msk.f32.gmra.mrb[60].mxu0 %vm197_vm2, %v2678_v9 }
0x160f   :  { %12536 = vmatprep.mubr.msk.f32.mxu0 %vm197_vm2, %v2679_v11 }
0x1612   :  { %12537 = vmatmul.mubr.msk.f32.gmra.mrb[62].mxu0 %vm197_vm2, %v2680_v12 }
0x16a9   :  { %v12493_v45 = vpop.f32.mrb[32].mxu0 }
0x16aa   :  { %v2854_v19 = vpop.f32.mrb[33].mxu0 }
0x16ad   :  { %v12496_v20 = vpop.f32.mrb[34].mxu0 }
0x16ae   :  { %v2864_v22 = vpop.f32.mrb[35].mxu0 }
0x16b1   :  { %v12499_v55 = vpop.f32.mrb[36].mxu0 }
0x16b2   :  { %v2880_v23 = vadd.f32 %v12499_v55, %v15664_v15  ;;  %v2874_v24 = vpop.f32.mrb[37].mxu0 }
0x16b3   :  { %v2875_v26 = vadd.f32 %v15664_v15, %v2874_v24 }
0x16b4   :  { %3019 = vst.msk [vmem:[#allocation3 + $0x28] sm:$0xff] %vm3013_vm3, %v2880_v23 }
0x16b5   :  { %3018 = vst.msk [vmem:[#allocation3 + $0x20] sm:$0xff] %vm3013_vm3, %v2875_v26  ;;  %v12502_v52 = vpop.f32.mrb[38].mxu0  ;;  %v3057_v26 = vld [vmem:[%s18657_s11] sm:$0xff] }
0x16b6   :  { %v2890_v27 = vadd.f32 %v12502_v52, %v15664_v15  ;;  %v2884_v18 = vpop.f32.mrb[39].mxu0  ;;  %v3058_v52 = vld [vmem:[%s18657_s11 + $0x8] sm:$0xff] }
0x16b7   :  { %v2885_v31 = vadd.f32 %v15664_v15, %v2884_v18  ;;  %v3060_v18 = vld [vmem:[%s18657_s11 + $0x18] sm:$0xff] }
0x16b8   :  { %3021 = vst.msk [vmem:[#allocation3 + $0x38] sm:$0xff] %vm3013_vm3, %v2890_v27  ;;  %v15742_v27 = vpack.c.bf16 %v3058_v52, %v3057_v26 }
0x16b9   :  { %3020 = vst.msk [vmem:[#allocation3 + $0x30] sm:$0xff] %vm3013_vm3, %v2885_v31  ;;  %v12505_v61 = vpop.f32.mrb[40].mxu0 }
0x16ba   :  { %v2900_v32 = vadd.f32 %v12505_v61, %v15664_v15  ;;  %v2894_v33 = vpop.f32.mrb[41].mxu0  ;;  %v3061_v61 = vld [vmem:[%s18657_s11 + $0x20] sm:$0xff] }
0x16bb   :  { %v2895_v35 = vadd.f32 %v15664_v15, %v2894_v33  ;;  %v3101_v59 = vld [vmem:[#allocation3 + $0x28] sm:$0xff] }
0x16bc   :  { %3023 = vst.msk [vmem:[#allocation3 + $0x48] sm:$0xff] %vm3013_vm3, %v2900_v32  ;;  %v3100_v36 = vld [vmem:[#allocation3 + $0x20] sm:$0xff]  ;;  %v3062_v32 = vld [vmem:[%s18657_s11 + $0x28] sm:$0xff] }
0x16bd   :  { %3022 = vst.msk [vmem:[#allocation3 + $0x40] sm:$0xff] %vm3013_vm3, %v2895_v35  ;;  %v12508_v34 = vpop.f32.mrb[42].mxu0  ;;  %12541 = vmatprep.mubr.msk.f32.mxu1 %vm3013_vm3, %v3100_v36  ;;  %v15762_v33 = vpack.c.bf16 %v3062_v32, %v3061_v61  ;;  %v3063_v35 = vld [vmem:[%s18657_s11 + $0x30] sm:$0xff]  ;;  %v3064_v36 = vld [vmem:[%s18657_s11 + $0x38] sm:$0xff] }
0x16be   :  { %v2910_v28 = vadd.f32 %v12508_v34, %v15664_v15  ;;  %v2904_v37 = vpop.f32.mrb[43].mxu0  ;;  %12542 = vmatmul.mubr.msk.f32.vlgmr.msra.gmra.mrb[32].mxu1 %vm3013_vm3, %v3101_v59  ;;  %v15772_v34 = vpack.c.bf16 %v3064_v36, %v3063_v35  ;;  %v11467_v59 = vld [vmem:[%s18658_s10] ss:$0 sm:$0xff] }
0x16bf   :  { %v2905_v60 = vadd.f32 %v15664_v15, %v2904_v37  ;;  %12548 = vmatpush3.msk.msra.mxu1 %vm102_vm0, %v15637_v14  ;;  %v3103_v41 = vld [vmem:[#allocation3 + $0x38] sm:$0xff]  ;;  %18730 = vst [vmem:[#allocation5_spill] sm:$0xff] %v15762_v33 }
0x16c0   :  { %3025 = vst.msk [vmem:[#allocation3 + $0x58] sm:$0xff] %vm3013_vm3, %v2910_v28  ;;  %v3102_v39 = vld [vmem:[#allocation3 + $0x30] sm:$0xff]  ;;  %13452 = vmatprep.subr.bf16.mxu1 %v15742_v27  ;;  %18731 = vst [vmem:[#allocation6_spill] sm:$0xff] %v15772_v34 }
0x16c1   :  { %3024 = vst.msk [vmem:[#allocation3 + $0x50] sm:$0xff] %vm3013_vm3, %v2905_v60  ;;  %v12511_v40 = vpop.f32.mrb[44].mxu0  ;;  %12544 = vmatprep.mubr.msk.f32.mxu1 %vm3013_vm3, %v3102_v39 }
0x16c2   :  { %v2920_v2 = vadd.f32 %v12511_v40, %v15664_v15  ;;  %v2914_v42 = vpop.f32.mrb[45].mxu0  ;;  %12545 = vmatmul.mubr.msk.f32.gmra.mrb[34].mxu1 %vm3013_vm3, %v3103_v41 }
0x16c3   :  { %v2915_v43 = vadd.f32 %v15664_v15, %v2914_v42  ;;  %12549 = vmatprep.mubr.msk.f32.mxu1 %vm89_vm1, %v15498_v21 }
0x16c4   :  { %3027 = vst.msk [vmem:[#allocation3 + $0x68] sm:$0xff] %vm3013_vm3, %v2920_v2 }
0x16c5   :  { %3026 = vst.msk [vmem:[#allocation3 + $0x60] sm:$0xff] %vm3013_vm3, %v2915_v43  ;;  %v12514_v44 = vpop.f32.mrb[46].mxu0 }
0x16c6   :  { %v2930_v46 = vadd.f32 %v12514_v44, %v15664_v15  ;;  %v2924_v3 = vpop.f32.mrb[47].mxu0  ;;  %12550 = vmatmul.mubr.msk.f32.vlgmr.msra.gmra.mrb[32].mxu1 %vm89_vm1, %v15503_v50 }
0x16c7   :  { %v2925_v7 = vadd.f32 %v15664_v15, %v2924_v3  ;;  %12552 = vmatprep.mubr.msk.f32.mxu1 %vm89_vm1, %v15512_v51  ;;  %13454 = vmatpush3.bf16.msra.mxu1 %v15742_v27 }
0x16c8   :  { %3029 = vst.msk [vmem:[#allocation3 + $0x78] sm:$0xff] %vm3013_vm3, %v2930_v46 }
0x16c9   :  { %3028 = vst.msk [vmem:[#allocation3 + $0x70] sm:$0xff] %vm3013_vm3, %v2925_v7  ;;  %v12517_v6 = vpop.f32.mrb[48].mxu0 }
0x16ca   :  { %v2940_v47 = vadd.f32 %v12517_v6, %v15664_v15  ;;  %v2934_v49 = vpop.f32.mrb[49].mxu0  ;;  %12553 = vmatmul.mubr.msk.f32.gmra.mrb[34].mxu1 %vm89_vm1, %v15517_v17 }
0x16cb   :  { %v2935_v53 = vadd.f32 %v15664_v15, %v2934_v49 }
0x16cc   :  { %3031 = vst.msk [vmem:[#allocation3 + $0x88] sm:$0xff] %vm3013_vm3, %v2940_v47 }
0x16cd   :  { %3030 = vst.msk [vmem:[#allocation3 + $0x80] sm:$0xff] %vm3013_vm3, %v2935_v53  ;;  %v12520_v54 = vpop.f32.mrb[50].mxu0 }
0x16ce   :  { %v2950_v56 = vadd.f32 %v12520_v54, %v15664_v15  ;;  %v2944_v4 = vpop.f32.mrb[51].mxu0 }
0x16cf   :  { %v2945_v29 = vadd.f32 %v15664_v15, %v2944_v4 }
0x16d0   :  { %3033 = vst.msk [vmem:[#allocation3 + $0x98] sm:$0xff] %vm3013_vm3, %v2950_v56 }
0x16d1   :  { %3032 = vst.msk [vmem:[#allocation3 + $0x90] sm:$0xff] %vm3013_vm3, %v2945_v29  ;;  %v12523_v57 = vpop.f32.mrb[52].mxu0 }
0x16d2   :  { %v2960_v16 = vadd.f32 %v12523_v57, %v15664_v15  ;;  %v2954_v58 = vpop.f32.mrb[53].mxu0 }
0x16d3   :  { %v2955_v8 = vadd.f32 %v15664_v15, %v2954_v58 }
0x16d4   :  { %3035 = vst.msk [vmem:[#allocation3 + $0xa8] sm:$0xff] %vm3013_vm3, %v2960_v16 }
0x16d5   :  { %3034 = vst.msk [vmem:[#allocation3 + $0xa0] sm:$0xff] %vm3013_vm3, %v2955_v8  ;;  %v12526_v62 = vpop.f32.mrb[54].mxu0 }
0x16d6   :  { %v2970_v30 = vadd.f32 %v12526_v62, %v15664_v15  ;;  %v2964_v63 = vpop.f32.mrb[55].mxu0 }
0x16d7   :  { %v2965_v25 = vadd.f32 %v15664_v15, %v2964_v63 }
0x16d8   :  { %3037 = vst.msk [vmem:[#allocation3 + $0xb8] sm:$0xff] %vm3013_vm3, %v2970_v30 }
0x16d9   :  { %3036 = vst.msk [vmem:[#allocation3 + $0xb0] sm:$0xff] %vm3013_vm3, %v2965_v25  ;;  %v12529_v0 = vpop.f32.mrb[56].mxu0 }
0x16da   :  { %v2980_v38 = vadd.f32 %v12529_v0, %v15664_v15  ;;  %v2974_v1 = vpop.f32.mrb[57].mxu0 }
0x16db   :  { %v2975_v10 = vadd.f32 %v15664_v15, %v2974_v1 }
0x16dc   :  { %3039 = vst.msk [vmem:[#allocation3 + $0xc8] sm:$0xff] %vm3013_vm3, %v2980_v38 }
0x16dd   :  { %3038 = vst.msk [vmem:[#allocation3 + $0xc0] sm:$0xff] %vm3013_vm3, %v2975_v10  ;;  %v12532_v5 = vpop.f32.mrb[58].mxu0 }
0x16de   :  { %v2990_v48 = vadd.f32 %v12532_v5, %v15664_v15  ;;  %v2984_v9 = vpop.f32.mrb[59].mxu0 }
0x16df   :  { %v2985_v11 = vadd.f32 %v15664_v15, %v2984_v9 }
0x16e0   :  { %3041 = vst.msk [vmem:[#allocation3 + $0xd8] sm:$0xff] %vm3013_vm3, %v2990_v48 }
0x16e1   :  { %3040 = vst.msk [vmem:[#allocation3 + $0xd0] sm:$0xff] %vm3013_vm3, %v2985_v11  ;;  %v12535_v12 = vpop.f32.mrb[60].mxu0 }
0x16e2   :  { %v3000_v45 = vadd.f32 %v12535_v12, %v15664_v15  ;;  %v2994_v19 = vpop.f32.mrb[61].mxu0 }
0x16e3   :  { %v2995_v20 = vadd.f32 %v15664_v15, %v2994_v19 }
0x16e4   :  { %3043 = vst.msk [vmem:[#allocation3 + $0xe8] sm:$0xff] %vm3013_vm3, %v3000_v45 }
0x16e5   :  { %3042 = vst.msk [vmem:[#allocation3 + $0xe0] sm:$0xff] %vm3013_vm3, %v2995_v20  ;;  %v12538_v22 = vpop.f32.mrb[62].mxu0 }
0x16e6   :  { %v3010_v55 = vadd.f32 %v12538_v22, %v15664_v15  ;;  %v3004_v23 = vpop.f32.mrb[63].mxu0 }
0x16e7   :  { %v3005_v24 = vadd.f32 %v15664_v15, %v3004_v23  ;;  %v3059_v15 = vld [vmem:[%s18657_s11 + $0x10] sm:$0xff] }
0x16e8   :  { %3045 = vst.msk [vmem:[#allocation3 + $0xf8] sm:$0xff] %vm3013_vm3, %v3010_v55  ;;  %v15752_v31 = vpack.c.bf16 %v3060_v18, %v3059_v15 }
0x16e9   :  { %3044 = vst.msk [vmem:[#allocation3 + $0xf0] sm:$0xff] %vm3013_vm3, %v3005_v24 }
0x16ea   :  { %18729 = vst [vmem:[#allocation4_spill] sm:$0xff] %v15752_v31  ;;  %13456 = vmatprep.subr.bf16.mxu1 %v15752_v31 }
0x16eb   :  { %13458 = vmatpush3.bf16.msra.mxu1 %v15752_v31 }
0x16ec   :  { %13460 = vmatprep.subr.bf16.mxu1 %v15762_v33 }
0x16ef   :  { %13462 = vmatpush3.bf16.msra.mxu1 %v15762_v33 }
0x16f0   :  { %13464 = vmatprep.subr.bf16.mxu1 %v15772_v34 }
0x16f3   :  { %13466 = vmatpush3.bf16.msra.mxu1 %v15772_v34 }
0x1799   :  { %v12551_v28 = vpop.f32.mrb[32].mxu1 }
0x179a   :  { %v15779_v37 = vadd.f32 %v12551_v28, %v11467_v59  ;;  %v3282_v60 = vpop.f32.mrb[33].mxu1 }
0x179b   :  { %v15781_v39 = vadd.f32 %v11467_v59, %v3282_v60 }
0x179c   :  { %v3324_v40 = vand.u32 2147483647, %v15779_v37  ;;  %v3312_v12 = vmax.f32 %v15779_v37, 0.0  ;;  %vm3316_vm6 = vcmp.ne.f32.partialorder %v15779_v37, %v15779_v37 }
0x179d   :  { %v3323_v41 = vand.u32 2147483647, %v15781_v39  ;;  %v12554_v2 = vpop.f32.mrb[34].mxu1  ;;  %v3311_v15 = vmax.f32 %v15781_v39, 0.0  ;;  %vm3315_vm8 = vcmp.ne.f32.partialorder %v15781_v39, %v15781_v39 }
0x179e   :  { %v3328_v42 = vsub.f32 0.0, %v3324_v40  ;;  %v15785_v43 = vadd.f32 %v12554_v2, %v11467_v59  ;;  %v3292_v44 = vpop.f32.mrb[35].mxu1 }
0x179f   :  { %v3327_v46 = vsub.f32 0.0, %v3323_v41  ;;  %v15787_v3 = vadd.f32 %v11467_v59, %v3292_v44 }
0x17a0   :  { %v3333_v7 = vmul.f32 1.442695, %v3328_v42  ;;  %v3326_v6 = vand.u32 2147483647, %v15785_v43  ;;  %v3314_v40 = vmax.f32 %v15785_v43, 0.0  ;;  %vm3318_vm12 = vcmp.ne.f32.partialorder %v15785_v43, %v15785_v43 }
0x17a1   :  { %v3331_v47 = vmul.f32 1.442695, %v3327_v46  ;;  %v3325_v49 = vand.u32 2147483647, %v15787_v3  ;;  %v3313_v42 = vmax.f32 %v15787_v3, 0.0  ;;  %vm3317_vm11 = vcmp.ne.f32.partialorder %v15787_v3, %v15787_v3 }
0x17a2   :  { %14179 = vpow2.f32 %v3333_v7  ;;  %v3330_v53 = vsub.f32 0.0, %v3326_v6 }
0x17a3   :  { %14181 = vpow2.f32 %v3331_v47  ;;  %v3329_v54 = vsub.f32 0.0, %v3325_v49 }
0x17a4   :  { %v3337_v56 = vmul.f32 1.442695, %v3330_v53 }
0x17a5   :  { %v3335_v4 = vmul.f32 1.442695, %v3329_v54  ;;  %v3067_v54 = vld [vmem:[%s18659_s13 + $0x8] sm:$0xff] }
0x17a6   :  { %14183 = vpow2.f32 %v3337_v56 }
0x17a7   :  { %14185 = vpow2.f32 %v3335_v4 }
0x17ac   :  { %v14180_v29 = vpop.eup %14179 }
0x17ad   :  { %v14182_v57 = vpop.eup %14181  ;;  %v3348_v16 = vadd.f32 1.0, %v14180_v29  ;;  %v3351_v63 = vmul.f32 -0.5, %v14180_v29  ;;  %v3354_v1 = vand.u32 2147483647, %v14180_v29 }
0x17ae   :  { %v3339_v58 = vadd.f32 1.0, %v14182_v57  ;;  %v3342_v0 = vmul.f32 -0.5, %v14182_v57  ;;  %v3345_v9 = vand.u32 2147483647, %v14182_v57 }
0x17af   :  { %14187 = vlog2.f32 %v3348_v16  ;;  %v3352_v38 = vadd.f32 1.0, %v3351_v63  ;;  %vm3355_vm4 = vcmp.lt.f32.partialorder %v3354_v1, 0.0004427343 }
0x17b0   :  { %v14184_v8 = vpop.eup %14183  ;;  %14189 = vlog2.f32 %v3339_v58  ;;  %v3343_v5 = vadd.f32 1.0, %v3342_v0  ;;  %vm3346_vm5 = vcmp.lt.f32.partialorder %v3345_v9, 0.0004427343  ;;  %v3072_v58 = vld [vmem:[%s18659_s13 + $0x30] sm:$0xff] }
0x17b1   :  { %v14186_v62 = vpop.eup %14185  ;;  %v3366_v30 = vadd.f32 1.0, %v14184_v8  ;;  %v3369_v10 = vmul.f32 -0.5, %v14184_v8  ;;  %v3353_v20 = vmul.f32 %v14180_v29, %v3352_v38  ;;  %v3372_v26 = vand.u32 2147483647, %v14184_v8  ;;  %v3070_v29 = vld [vmem:[%s18659_s13 + $0x20] sm:$0xff] }
0x17b2   :  { %v3357_v25 = vadd.f32 1.0, %v14186_v62  ;;  %v3360_v48 = vmul.f32 -0.5, %v14186_v62  ;;  %v3344_v23 = vmul.f32 %v14182_v57, %v3343_v5  ;;  %v3363_v18 = vand.u32 2147483647, %v14186_v62  ;;  %v3071_v57 = vld [vmem:[%s18659_s13 + $0x28] sm:$0xff] }
0x17b3   :  { %14191 = vlog2.f32 %v3366_v30  ;;  %v3370_v22 = vadd.f32 1.0, %v3369_v10  ;;  %vm3373_vm9 = vcmp.lt.f32.partialorder %v3372_v26, 0.0004427343  ;;  %v15840_v16 = vpack.c.bf16 %v3071_v57, %v3070_v29  ;;  %v11468_v30 = vld [vmem:[%s18660_s12] ss:$0 sm:$0xff] }
0x17b4   :  { %14193 = vlog2.f32 %v3357_v25  ;;  %v3361_v24 = vadd.f32 1.0, %v3360_v48  ;;  %vm3364_vm10 = vcmp.lt.f32.partialorder %v3363_v18, 0.0004427343 }
0x17b5   :  { %v3371_v60 = vmul.f32 %v14184_v8, %v3370_v22  ;;  %v3073_v8 = vld [vmem:[%s18659_s13 + $0x38] sm:$0xff] }
0x17b6   :  { %v3362_v2 = vmul.f32 %v14186_v62, %v3361_v24  ;;  %v15850_v62 = vpack.c.bf16 %v3073_v8, %v3072_v58 }
0x17b8   :  { %18732 = vst [vmem:[#allocation7_spill] sm:$0xff] %v15850_v62 }
0x17b9   :  { %v14188_v11 = vpop.eup %14187 }
0x17ba   :  { %v14190_v45 = vpop.eup %14189  ;;  %v3350_v19 = vmul.f32 0.6931472, %v14188_v11 }
0x17bb   :  { %v3341_v55 = vmul.f32 0.6931472, %v14190_v45 }
0x17bc   :  { %v3356_v52 = vsel %vm3355_vm4, %v3353_v20, %v3350_v19 }
0x17bd   :  { %v14192_v61 = vpop.eup %14191  ;;  %v3376_v32 = vadd.f32 %v3356_v52, %v3312_v12  ;;  %v3347_v35 = vsel %vm3346_vm5, %v3344_v23, %v3341_v55 }
0x17be   :  { %v14194_v36 = vpop.eup %14193  ;;  %v3375_v59 = vadd.f32 %v3347_v35, %v3311_v15  ;;  %v3368_v28 = vmul.f32 0.6931472, %v14192_v61 }
0x17bf   :  { %v3359_v41 = vmul.f32 0.6931472, %v14194_v36  ;;  %v3380_v7 = vsel %vm3316_vm6, %v15779_v37, %v3376_v32  ;;  %v3066_v37 = vld [vmem:[%s18659_s13] sm:$0xff] }
0x17c0   :  { %v3379_v44 = vsel %vm3315_vm8, %v15781_v39, %v3375_v59  ;;  %v3374_v46 = vsel %vm3373_vm9, %v3371_v60, %v3368_v28  ;;  %v15820_v56 = vpack.c.bf16 %v3067_v54, %v3066_v37 }
0x17c1   :  { %12571 = vmatprep.mubr.msk.f32.mxu1 %vm3389_vm7, %v3379_v44  ;;  %v3365_v6 = vsel %vm3364_vm10, %v3362_v2, %v3359_v41  ;;  %v3378_v47 = vadd.f32 %v3374_v46, %v3314_v40 }
0x17c2   :  { %12572 = vmatmul.mubr.msk.f32.vlgmr.msra.gmra.mrb[36].mxu1 %vm3389_vm7, %v3380_v7  ;;  %v3377_v49 = vadd.f32 %v3365_v6, %v3313_v42  ;;  %13468 = vmatprep.subr.bf16.mxu1 %v15820_v56 }
0x17c3   :  { %v3382_v39 = vsel %vm3318_vm12, %v15785_v43, %v3378_v47  ;;  %13470 = vmatpush3.bf16.msra.mxu1 %v15820_v56  ;;  %v3068_v43 = vld [vmem:[%s18659_s13 + $0x10] sm:$0xff] }
0x17c4   :  { %v3381_v53 = vsel %vm3317_vm11, %v15787_v3, %v3377_v49  ;;  %v3069_v3 = vld [vmem:[%s18659_s13 + $0x18] sm:$0xff] }
0x17c5   :  { %12574 = vmatprep.mubr.msk.f32.mxu1 %vm3389_vm7, %v3381_v53  ;;  %v15830_v4 = vpack.c.bf16 %v3069_v3, %v3068_v43 }
0x17c6   :  { %12575 = vmatmul.mubr.msk.f32.gmra.mrb[38].mxu1 %vm3389_vm7, %v3382_v39 }
0x17c7   :  { %13472 = vmatprep.subr.bf16.mxu1 %v15830_v4 }
0x17c8   :  { %13474 = vmatpush3.bf16.msra.mxu1 %v15830_v4 }
0x17c9   :  { %13476 = vmatprep.subr.bf16.mxu1 %v15840_v16 }
0x17cc   :  { %13478 = vmatpush3.bf16.msra.mxu1 %v15840_v16 }
0x17cd   :  { %13480 = vmatprep.subr.bf16.mxu1 %v15850_v62 }
0x17d0   :  { %13482 = vmatpush3.bf16.msra.mxu1 %v15850_v62 }
0x1895   :  { %v12573_v63 = vpop.f32.mrb[36].mxu1 }
0x1896   :  { %v15857_v25 = vadd.f32 %v12573_v63, %v11468_v30  ;;  %v3468_v0 = vpop.f32.mrb[37].mxu1 }
0x1897   :  { %v15859_v38 = vadd.f32 %v11468_v30, %v3468_v0 }
0x1898   :  { %v3500_v1 = vand.u32 2147483647, %v15857_v25  ;;  %v3488_v47 = vmax.f32 %v15857_v25, 0.0  ;;  %vm3492_vm15 = vcmp.ne.f32.partialorder %v15857_v25, %v15857_v25 }
0x1899   :  { %v3499_v10 = vand.u32 2147483647, %v15859_v38  ;;  %v12576_v5 = vpop.f32.mrb[38].mxu1  ;;  %v3487_v58 = vmax.f32 %v15859_v38, 0.0  ;;  %vm3491_vm4 = vcmp.ne.f32.partialorder %v15859_v38, %v15859_v38 }
0x189a   :  { %v3504_v48 = vsub.f32 0.0, %v3500_v1  ;;  %v15863_v9 = vadd.f32 %v12576_v5, %v11468_v30  ;;  %v3478_v11 = vpop.f32.mrb[39].mxu1 }
0x189b   :  { %v3503_v12 = vsub.f32 0.0, %v3499_v10  ;;  %v15865_v45 = vadd.f32 %v11468_v30, %v3478_v11 }
0x189c   :  { %v3509_v19 = vmul.f32 1.442695, %v3504_v48  ;;  %v3502_v20 = vand.u32 2147483647, %v15863_v9  ;;  %v3490_v11 = vmax.f32 %v15863_v9, 0.0  ;;  %vm3494_vm9 = vcmp.ne.f32.partialorder %v15863_v9, %v15863_v9 }
0x189d   :  { %v3507_v22 = vmul.f32 1.442695, %v3503_v12  ;;  %v3501_v55 = vand.u32 2147483647, %v15865_v45  ;;  %vm3493_vm8 = vcmp.ne.f32.partialorder %v15865_v45, %v15865_v45 }
0x189e   :  { %14195 = vpow2.f32 %v3509_v19  ;;  %v3506_v23 = vsub.f32 0.0, %v3502_v20  ;;  %v3489_v20 = vmax.f32 %v15865_v45, 0.0 }
0x189f   :  { %14197 = vpow2.f32 %v3507_v22  ;;  %v3505_v24 = vsub.f32 0.0, %v3501_v55 }
0x18a0   :  { %v3513_v26 = vmul.f32 1.442695, %v3506_v23 }
0x18a1   :  { %v3511_v52 = vmul.f32 1.442695, %v3505_v24 }
0x18a2   :  { %14199 = vpow2.f32 %v3513_v26 }
0x18a3   :  { %14201 = vpow2.f32 %v3511_v52 }
0x18a8   :  { %v14196_v15 = vpop.eup %14195 }
0x18a9   :  { %v14198_v18 = vpop.eup %14197  ;;  %v3524_v61 = vadd.f32 1.0, %v14196_v15  ;;  %v3527_v28 = vmul.f32 -0.5, %v14196_v15  ;;  %v3530_v2 = vand.u32 2147483647, %v14196_v15 }
0x18aa   :  { %v3515_v32 = vadd.f32 1.0, %v14198_v18  ;;  %v3518_v40 = vmul.f32 -0.5, %v14198_v18  ;;  %v3521_v7 = vand.u32 2147483647, %v14198_v18 }
0x18ab   :  { %14203 = vlog2.f32 %v3524_v61  ;;  %v3528_v41 = vadd.f32 1.0, %v3527_v28  ;;  %vm3531_vm13 = vcmp.lt.f32.partialorder %v3530_v2, 0.0004427343  ;;  %v3083_v28 = vld [vmem:[%s18664_s19 + $0x8] sm:$0xff] }
0x18ac   :  { %v14200_v35 = vpop.eup %14199  ;;  %14205 = vlog2.f32 %v3515_v32  ;;  %v3519_v44 = vadd.f32 1.0, %v3518_v40  ;;  %vm3522_vm14 = vcmp.lt.f32.partialorder %v3521_v7, 0.0004427343 }
0x18ad   :  { %v14202_v36 = vpop.eup %14201  ;;  %v3542_v59 = vadd.f32 1.0, %v14200_v35  ;;  %v3545_v42 = vmul.f32 -0.5, %v14200_v35  ;;  %v3529_v39 = vmul.f32 %v14196_v15, %v3528_v41  ;;  %v3548_v29 = vand.u32 2147483647, %v14200_v35  ;;  %v3085_v41 = vld [vmem:[%s18664_s19 + $0x18] sm:$0xff] }
0x18ae   :  { %v3533_v60 = vadd.f32 1.0, %v14202_v36  ;;  %v3536_v46 = vmul.f32 -0.5, %v14202_v36  ;;  %v3520_v43 = vmul.f32 %v14198_v18, %v3519_v44  ;;  %v3539_v8 = vand.u32 2147483647, %v14202_v36  ;;  %v3076_v18 = vld [vmem:[%s18661_s15 + $0x8] sm:$0xff] }
0x18af   :  { %14207 = vlog2.f32 %v3542_v59  ;;  %v3546_v37 = vadd.f32 1.0, %v3545_v42  ;;  %vm3549_vm5 = vcmp.lt.f32.partialorder %v3548_v29, 0.0004427343  ;;  %v3082_v59 = vld [vmem:[%s18664_s19] sm:$0xff] }
0x18b0   :  { %14209 = vlog2.f32 %v3533_v60  ;;  %v3537_v3 = vadd.f32 1.0, %v3536_v46  ;;  %vm3540_vm6 = vcmp.lt.f32.partialorder %v3539_v8, 0.0004427343  ;;  %v3084_v60 = vld [vmem:[%s18664_s19 + $0x10] sm:$0xff]  ;;  %v15931_v40 = vpack.c.bf16 %v3083_v28, %v3082_v59 }
0x18b1   :  { %v3547_v48 = vmul.f32 %v14200_v35, %v3546_v37  ;;  %v15915_v35 = vld [vmem:[%s18662_s17] sm:$0xf]  ;;  %v15936_v42 = vpack.c.bf16 %v3085_v41, %v3084_v60 }
0x18b2   :  { %v3538_v19 = vmul.f32 %v14202_v36, %v3537_v3  ;;  %v11473_v36 = vld [vmem:[%s18663_s14] ss:$0 sm:$0xff]  ;;  %13492 = vmatprep.subr.bf16.mxu0 %v15931_v40 }
0x18b3   :  { %13494 = vmatpush3.bf16.msra.mxu0 %v15931_v40 }
0x18b4   :  { %13496 = vmatprep.subr.bf16.mxu0 %v15936_v42 }
0x18b5   :  { %v14204_v6 = vpop.eup %14203 }
0x18b6   :  { %v14206_v49 = vpop.eup %14205  ;;  %v3526_v53 = vmul.f32 0.6931472, %v14204_v6 }
0x18b7   :  { %v3517_v54 = vmul.f32 0.6931472, %v14206_v49  ;;  %13498 = vmatpush3.bf16.msra.mxu0 %v15936_v42 }
0x18b8   :  { %v3532_v57 = vsel %vm3531_vm13, %v3529_v39, %v3526_v53 }
0x18b9   :  { %v14208_v30 = vpop.eup %14207  ;;  %v3552_v63 = vadd.f32 %v3532_v57, %v3488_v47  ;;  %v3523_v0 = vsel %vm3522_vm14, %v3520_v43, %v3517_v54 }
0x18ba   :  { %v14210_v1 = vpop.eup %14209  ;;  %v3551_v10 = vadd.f32 %v3523_v0, %v3487_v58  ;;  %v3544_v5 = vmul.f32 0.6931472, %v14208_v30 }
0x18bb   :  { %v3535_v12 = vmul.f32 0.6931472, %v14210_v1  ;;  %v3556_v23 = vsel %vm3492_vm15, %v15857_v25, %v3552_v63  ;;  %v3075_v25 = vld [vmem:[%s18661_s15] sm:$0xff] }
0x18bc   :  { %v3555_v22 = vsel %vm3491_vm4, %v15859_v38, %v3551_v10  ;;  %v3550_v55 = vsel %vm3549_vm5, %v3547_v48, %v3544_v5  ;;  %v15901_v61 = vpack.c.bf16 %v3076_v18, %v3075_v25 }
0x18bd   :  { %12593 = vmatprep.mubr.msk.f32.mxu1 %vm3389_vm7, %v3555_v22  ;;  %v3541_v24 = vsel %vm3540_vm6, %v3538_v19, %v3535_v12  ;;  %v3554_v26 = vadd.f32 %v3550_v55, %v3490_v11 }
0x18be   :  { %12594 = vmatmul.mubr.msk.f32.vlgmr.msra.gmra.mrb[40].mxu1 %vm3389_vm7, %v3556_v23  ;;  %v3553_v52 = vadd.f32 %v3541_v24, %v3489_v20  ;;  %13484 = vmatprep.subr.bf16.mxu1 %v15901_v61 }
0x18bf   :  { %v3558_v38 = vsel %vm3494_vm9, %v15863_v9, %v3554_v26  ;;  %v3078_v9 = vld [vmem:[%s18661_s15 + $0x18] sm:$0xff]  ;;  %13486 = vmatpush3.bf16.msra.mxu1 %v15901_v61 }
0x18c0   :  { %v3557_v15 = vsel %vm3493_vm8, %v15865_v45, %v3553_v52  ;;  %v3077_v45 = vld [vmem:[%s18661_s15 + $0x10] sm:$0xff] }
0x18c1   :  { %12596 = vmatprep.mubr.msk.f32.mxu1 %vm3389_vm7, %v3557_v15  ;;  %v15906_v32 = vpack.c.bf16 %v3078_v9, %v3077_v45 }
0x18c2   :  { %12597 = vmatmul.mubr.msk.f32.gmra.mrb[42].mxu1 %vm3389_vm7, %v3558_v38 }
0x18c3   :  { %13488 = vmatprep.subr.bf16.mxu1 %v15906_v32 }
0x18c4   :  { %13490 = vmatpush3.bf16.msra.mxu1 %v15906_v32 }
0x18c5   :  { %12613 = vmatprep.subr.msk.mxu1 %vm102_vm0, %v15915_v35 }
0x1991   :  { %v12595_v2 = vpop.f32.mrb[40].mxu1 }
0x1992   :  { %v15938_v44 = vadd.f32 %v12595_v2, %v11473_v36  ;;  %v3643_v46 = vpop.f32.mrb[41].mxu1 }
0x1993   :  { %v15941_v7 = vadd.f32 %v11473_v36, %v3643_v46 }
0x1994   :  { %18733 = vst [vmem:[#allocation8_spill] sm:$0xff] %v15938_v44  ;;  %v3675_v6 = vand.u32 2147483647, %v15938_v44  ;;  %v4223_v47 = vmul.f32 0.1, %v15938_v44  ;;  %v3663_v59 = vmax.f32 %v15938_v44, 0.0  ;;  %vm3667_vm12 = vcmp.ne.f32.partialorder %v15938_v44, %v15938_v44 }
0x1995   :  { %18734 = vst [vmem:[#allocation9_spill] sm:$0xff] %v15941_v7  ;;  %v3674_v49 = vand.u32 2147483647, %v15941_v7  ;;  %v12598_v53 = vpop.f32.mrb[42].mxu1  ;;  %v4222_v39 = vmul.f32 0.1, %v15941_v7  ;;  %vm3666_vm13 = vcmp.ne.f32.partialorder %v15941_v7, %v15941_v7 }
0x1996   :  { %v3679_v37 = vsub.f32 0.0, %v3675_v6  ;;  %v15949_v54 = vadd.f32 %v12598_v53, %v11473_v36  ;;  %4232 = vrot.lane.b32.xlu1 %v4223_v47, %s14847_s4  ;;  %v3653_v43 = vpop.f32.mrb[43].mxu1  ;;  %v3662_v53 = vmax.f32 %v15941_v7, 0.0 }
0x1997   :  { %v3678_v3 = vsub.f32 0.0, %v3674_v49  ;;  %v15952_v29 = vadd.f32 %v11473_v36, %v3653_v43  ;;  %4230 = vrot.lane.b32.xlu0 %v4222_v39, %s14847_s4 }
0x1998   :  { %18735 = vst [vmem:[#allocation10_spill] sm:$0xff] %v15949_v54  ;;  %v3684_v57 = vmul.f32 1.442695, %v3679_v37  ;;  %v3677_v58 = vand.u32 2147483647, %v15949_v54  ;;  %vm3669_vm5 = vcmp.ne.f32.partialorder %v15949_v54, %v15949_v54 }
0x1999   :  { %18736 = vst [vmem:[#allocation11_spill] sm:$0xff] %v15952_v29  ;;  %v4225_v8 = vmul.f32 0.1, %v15949_v54  ;;  %v3682_v30 = vmul.f32 1.442695, %v3678_v3  ;;  %vm3668_vm4 = vcmp.ne.f32.partialorder %v15952_v29, %v15952_v29 }
0x199a   :  { %v3676_v63 = vand.u32 2147483647, %v15952_v29  ;;  %v4224_v0 = vmul.f32 0.1, %v15952_v29  ;;  %14211 = vpow2.f32 %v3684_v57  ;;  %v3681_v1 = vsub.f32 0.0, %v3677_v58 }
0x199b   :  { %4236 = vrot.lane.b32.xlu1 %v4225_v8, %s14847_s4  ;;  %14213 = vpow2.f32 %v3682_v30 }
0x199c   :  { %v3680_v10 = vsub.f32 0.0, %v3676_v63  ;;  %4234 = vrot.lane.b32.xlu0 %v4224_v0, %s14847_s4  ;;  %v3688_v5 = vmul.f32 1.442695, %v3681_v1 }
0x199e   :  { %v3686_v48 = vmul.f32 1.442695, %v3680_v10  ;;  %14215 = vpow2.f32 %v3688_v5  ;;  %v3665_v10 = vmax.f32 %v15949_v54, 0.0 }
0x19a0   :  { %14217 = vpow2.f32 %v3686_v48  ;;  %v3664_v48 = vmax.f32 %v15952_v29, 0.0 }
0x19a4   :  { %v14212_v11 = vpop.eup %14211 }
0x19a5   :  { %v14214_v12 = vpop.eup %14213  ;;  %v3699_v19 = vadd.f32 1.0, %v14212_v11  ;;  %v3702_v24 = vmul.f32 -0.5, %v14212_v11  ;;  %v3705_v38 = vand.u32 2147483647, %v14212_v11 }
0x19a6   :  { %v3690_v20 = vadd.f32 1.0, %v14214_v12  ;;  %v3693_v52 = vmul.f32 -0.5, %v14214_v12  ;;  %v3696_v9 = vand.u32 2147483647, %v14214_v12 }
0x19a7   :  { %14219 = vlog2.f32 %v3699_v19  ;;  %v3703_v15 = vadd.f32 1.0, %v3702_v24  ;;  %vm3706_vm10 = vcmp.lt.f32.partialorder %v3705_v38, 0.0004427343  ;;  %v4265_v24 = vld [vmem:[#allocation3 + $0x48] sm:$0xff] }
0x19a8   :  { %v14216_v22 = vpop.eup %14215  ;;  %14221 = vlog2.f32 %v3690_v20  ;;  %v3694_v18 = vadd.f32 1.0, %v3693_v52  ;;  %vm3697_vm11 = vcmp.lt.f32.partialorder %v3696_v9, 0.0004427343  ;;  %v3086_v52 = vld [vmem:[%s18664_s19 + $0x20] sm:$0xff]  ;;  %v3091_v9 = vld [vmem:[%s18664_s19 + $0x48] sm:$0xff] }
0x19a9   :  { %v3717_v23 = vadd.f32 1.0, %v14216_v22  ;;  %v3720_v25 = vmul.f32 -0.5, %v14216_v22  ;;  %v3704_v41 = vmul.f32 %v14212_v11, %v3703_v15  ;;  %v3723_v49 = vand.u32 2147483647, %v14216_v22  ;;  %v3087_v15 = vld [vmem:[%s18664_s19 + $0x28] sm:$0xff] }
0x19aa   :  { %v14218_v55 = vpop.eup %14217  ;;  %v3695_v6 = vmul.f32 %v14214_v12, %v3694_v18  ;;  %v16012_v38 = vpack.c.bf16 %v3087_v15, %v3086_v52 }
0x19ab   :  { %v3708_v26 = vadd.f32 1.0, %v14218_v55  ;;  %14223 = vlog2.f32 %v3717_v23  ;;  %v3711_v45 = vmul.f32 -0.5, %v14218_v55  ;;  %v3721_v2 = vadd.f32 1.0, %v3720_v25  ;;  %v3089_v25 = vld [vmem:[%s18664_s19 + $0x38] sm:$0xff] }
0x19ac   :  { %v3714_v37 = vand.u32 2147483647, %v14218_v55  ;;  %vm3724_vm14 = vcmp.lt.f32.partialorder %v3723_v49, 0.0004427343  ;;  %13500 = vmatprep.subr.bf16.mxu0 %v16012_v38 }
0x19ad   :  { %14225 = vlog2.f32 %v3708_v26  ;;  %v3712_v47 = vadd.f32 1.0, %v3711_v45  ;;  %v3722_v63 = vmul.f32 %v14216_v22, %v3721_v2  ;;  %v4266_v26 = vld [vmem:[#allocation3 + $0x50] sm:$0xff]  ;;  %13502 = vmatpush3.bf16.msra.mxu0 %v16012_v38  ;;  %v3090_v45 = vld [vmem:[%s18664_s19 + $0x40] sm:$0xff]  ;;  %v3095_v2 = vld [vmem:[%s18664_s19 + $0x68] sm:$0xff] }
0x19ae   :  { %vm3715_vm15 = vcmp.lt.f32.partialorder %v3714_v37, 0.0004427343 }
0x19af   :  { %v3713_v1 = vmul.f32 %v14218_v55, %v3712_v47  ;;  %v3097_v47 = vld [vmem:[%s18664_s19 + $0x78] sm:$0xff] }
0x19b1   :  { %v14220_v36 = vpop.eup %14219 }
0x19b2   :  { %v14222_v28 = vpop.eup %14221  ;;  %v3701_v60 = vmul.f32 0.6931472, %v14220_v36  ;;  %v3092_v36 = vld [vmem:[%s18664_s19 + $0x50] sm:$0xff] }
0x19b3   :  { %v3692_v46 = vmul.f32 0.6931472, %v14222_v28  ;;  %v3093_v28 = vld [vmem:[%s18664_s19 + $0x58] sm:$0xff] }
0x19b4   :  { %v3707_v39 = vsel %vm3706_vm10, %v3704_v41, %v3701_v60  ;;  %v16040_v60 = vpack.c.bf16 %v3093_v28, %v3092_v36  ;;  %v3094_v41 = vld [vmem:[%s18664_s19 + $0x60] sm:$0xff] }
0x19b5   :  { %v14224_v43 = vpop.eup %14223  ;;  %v3698_v3 = vsel %vm3697_vm11, %v3695_v6, %v3692_v46  ;;  %v3727_v57 = vadd.f32 %v3707_v39, %v3663_v59  ;;  %v16035_v59 = vpack.c.bf16 %v3091_v9, %v3090_v45  ;;  %v16051_v46 = vpack.c.bf16 %v3095_v2, %v3094_v41  ;;  %v3096_v6 = vld [vmem:[%s18664_s19 + $0x70] sm:$0xff] }
0x19b6   :  { %v3726_v8 = vadd.f32 %v3698_v3, %v3662_v53  ;;  %v3719_v30 = vmul.f32 0.6931472, %v14224_v43  ;;  %v16061_v49 = vpack.c.bf16 %v3097_v47, %v3096_v6  ;;  %v11483_v3 = vld [vmem:[%s18665_s18] ss:$0 sm:$0xff] }
0x19b7   :  { %v14226_v58 = vpop.eup %14225  ;;  %v3731_v12 = vsel %vm3667_vm12, %v15938_v44, %v3727_v57 }
0x19b8   :  { %v3710_v0 = vmul.f32 0.6931472, %v14226_v58  ;;  %v3730_v5 = vsel %vm3666_vm13, %v15941_v7, %v3726_v8  ;;  %v3725_v11 = vsel %vm3724_vm14, %v3722_v63, %v3719_v30 }
0x19b9   :  { %12607 = vmatprep.mubr.msk.f32.mxu1 %vm197_vm2, %v3730_v5  ;;  %v3729_v20 = vadd.f32 %v3725_v11, %v3665_v10 }
0x19ba   :  { %v3716_v19 = vsel %vm3715_vm15, %v3713_v1, %v3710_v0  ;;  %12608 = vmatmul.mubr.msk.f32.vlgmr.msra.gmra.mrb[44].mxu1 %vm197_vm2, %v3731_v12 }
0x19bb   :  { %v3728_v22 = vadd.f32 %v3716_v19, %v3664_v48  ;;  %12614 = vmatpush3.msk.msra.mxu1 %vm102_vm0, %v15915_v35  ;;  %v3733_v23 = vsel %vm3669_vm5, %v15949_v54, %v3729_v20  ;;  %v4264_v35 = vld [vmem:[#allocation3 + $0x40] sm:$0xff] }
0x19bc   :  { %12659 = vmatprep.subr.mxu1 %v15630_v13 }
0x19bd   :  { %v3732_v55 = vsel %vm3668_vm4, %v15952_v29, %v3728_v22 }
0x19be   :  { %12610 = vmatprep.mubr.msk.f32.mxu1 %vm197_vm2, %v3732_v55 }
0x19bf   :  { %12611 = vmatmul.mubr.msk.f32.gmra.mrb[46].mxu1 %vm197_vm2, %v3733_v23 }
0x19c0   :  { %12615 = vmatprep.mubr.msk.f32.mxu1 %vm89_vm1, %v15498_v21 }
0x19c3   :  { %12616 = vmatmul.mubr.msk.f32.vlgmr.msra.gmra.mrb[48].mxu1 %vm89_vm1, %v15503_v50 }
0x19c4   :  { %12618 = vmatprep.mubr.msk.f32.mxu1 %vm89_vm1, %v15512_v51  ;;  %12660 = vmatpush3.msra.mxu1 %v15630_v13  ;;  %v4267_v13 = vld [vmem:[#allocation3 + $0x58] sm:$0xff] }
0x19c5   :  { %12667 = vmatprep.subr.msk.mxu1 %vm102_vm0, %v15637_v14 }
0x19c7   :  { %12619 = vmatmul.mubr.msk.f32.gmra.mrb[50].mxu1 %vm89_vm1, %v15517_v17 }
0x19c8   :  { %12661 = vmatprep.mubr.msk.f32.mxu1 %vm3013_vm3, %v4264_v35 }
0x19cb   :  { %12662 = vmatmul.mubr.msk.f32.vlgmr.msra.gmra.mrb[52].mxu1 %vm3013_vm3, %v4265_v24 }
0x19cc   :  { %12664 = vmatprep.mubr.msk.f32.mxu1 %vm3013_vm3, %v4266_v26  ;;  %12668 = vmatpush3.msk.msra.mxu1 %vm102_vm0, %v15637_v14  ;;  %v3088_v14 = vld [vmem:[%s18664_s19 + $0x30] sm:$0xff] }
0x19cd   :  { %13564 = vmatprep.subr.bf16.mxu1 %v15931_v40  ;;  %v16022_v18 = vpack.c.bf16 %v3089_v25, %v3088_v14 }
0x19cf   :  { %12665 = vmatmul.mubr.msk.f32.gmra.mrb[54].mxu1 %vm3013_vm3, %v4267_v13  ;;  %13504 = vmatprep.subr.bf16.mxu0 %v16022_v18 }
0x19d0   :  { %13506 = vmatpush3.bf16.msra.mxu0 %v16022_v18 }
0x19d1   :  { %13508 = vmatprep.subr.bf16.mxu0 %v16035_v59 }
0x19d4   :  { %13510 = vmatpush3.bf16.msra.mxu0 %v16035_v59 }
0x19d5   :  { %13512 = vmatprep.subr.bf16.mxu0 %v16040_v60 }
0x19d8   :  { %13514 = vmatpush3.bf16.msra.mxu0 %v16040_v60 }
0x19d9   :  { %13516 = vmatprep.subr.bf16.mxu0 %v16051_v46 }
0x19dc   :  { %13518 = vmatpush3.bf16.msra.mxu0 %v16051_v46 }
0x19dd   :  { %13520 = vmatprep.subr.bf16.mxu0 %v16061_v49 }
0x19e0   :  { %13522 = vmatpush3.bf16.msra.mxu0 %v16061_v49 }
0x19e1   :  { %13524 = vmatprep.subr.bf16.mxu0 %v15742_v27 }
0x1a8d   :  { %v16067_v53 = vpop.f32.mrb[44].mxu1 }
0x1a8e   :  { %18737 = vst [vmem:[#allocation12_spill] sm:$0xff] %v16067_v53  ;;  %v16069_v39 = vpop.f32.mrb[45].mxu1 }
0x1a8f   :  { %18738 = vst [vmem:[#allocation13_spill] sm:$0xff] %v16069_v39 }
0x1a92   :  { %v16071_v37 = vpop.f32.mrb[46].mxu1 }
0x1a93   :  { %18739 = vst [vmem:[#allocation14_spill] sm:$0xff] %v16071_v37  ;;  %v16073_v43 = vpop.f32.mrb[47].mxu1 }
0x1a94   :  { %18740 = vst [vmem:[#allocation15_spill] sm:$0xff] %v16073_v43 }
0x1a96   :  { %v12617_v57 = vpop.f32.mrb[48].mxu1 }
0x1a97   :  { %v16078_v58 = vadd.f32 %v12617_v57, %v11483_v3  ;;  %v3912_v8 = vpop.f32.mrb[49].mxu1 }
0x1a98   :  { %v16080_v30 = vadd.f32 %v11483_v3, %v3912_v8 }
0x1a99   :  { %v3944_v63 = vand.u32 2147483647, %v16078_v58  ;;  %vm3936_vm9 = vcmp.ne.f32.partialorder %v16078_v58, %v16078_v58 }
0x1a9a   :  { %v3943_v0 = vand.u32 2147483647, %v16080_v30  ;;  %v12620_v1 = vpop.f32.mrb[50].mxu1  ;;  %vm3935_vm10 = vcmp.ne.f32.partialorder %v16080_v30, %v16080_v30 }
0x1a9b   :  { %v3948_v10 = vsub.f32 0.0, %v3944_v63  ;;  %v16084_v5 = vadd.f32 %v12620_v1, %v11483_v3  ;;  %v3922_v48 = vpop.f32.mrb[51].mxu1 }
0x1a9c   :  { %v3947_v11 = vsub.f32 0.0, %v3943_v0  ;;  %v16086_v12 = vadd.f32 %v11483_v3, %v3922_v48  ;;  %v3932_v0 = vmax.f32 %v16078_v58, 0.0 }
0x1a9d   :  { %v3953_v19 = vmul.f32 1.442695, %v3948_v10  ;;  %v3946_v20 = vand.u32 2147483647, %v16084_v5  ;;  %vm3938_vm14 = vcmp.ne.f32.partialorder %v16084_v5, %v16084_v5 }
0x1a9e   :  { %v3951_v22 = vmul.f32 1.442695, %v3947_v11  ;;  %v3945_v55 = vand.u32 2147483647, %v16086_v12  ;;  %vm3937_vm13 = vcmp.ne.f32.partialorder %v16086_v12, %v16086_v12 }
0x1a9f   :  { %14227 = vpow2.f32 %v3953_v19  ;;  %v3950_v23 = vsub.f32 0.0, %v3946_v20 }
0x1aa0   :  { %14229 = vpow2.f32 %v3951_v22  ;;  %v3949_v35 = vsub.f32 0.0, %v3945_v55 }
0x1aa1   :  { %v3957_v24 = vmul.f32 1.442695, %v3950_v23  ;;  %v3931_v23 = vmax.f32 %v16080_v30, 0.0 }
0x1aa2   :  { %v3955_v26 = vmul.f32 1.442695, %v3949_v35 }
0x1aa3   :  { %14231 = vpow2.f32 %v3957_v24 }
0x1aa4   :  { %14233 = vpow2.f32 %v3955_v26 }
0x1aa9   :  { %v14228_v13 = vpop.eup %14227 }
0x1aaa   :  { %v14230_v52 = vpop.eup %14229  ;;  %v3968_v15 = vadd.f32 1.0, %v14228_v13  ;;  %v3971_v36 = vmul.f32 -0.5, %v14228_v13  ;;  %v3974_v6 = vand.u32 2147483647, %v14228_v13 }
0x1aab   :  { %v3959_v14 = vadd.f32 1.0, %v14230_v52  ;;  %v3962_v41 = vmul.f32 -0.5, %v14230_v52  ;;  %v3965_v8 = vand.u32 2147483647, %v14230_v52 }
0x1aac   :  { %14235 = vlog2.f32 %v3968_v15  ;;  %v3972_v2 = vadd.f32 1.0, %v3971_v36  ;;  %vm3975_vm6 = vcmp.lt.f32.partialorder %v3974_v6, 0.0004427343 }
0x1aad   :  { %v14232_v25 = vpop.eup %14231  ;;  %14237 = vlog2.f32 %v3959_v14  ;;  %v3963_v3 = vadd.f32 1.0, %v3962_v41  ;;  %vm3966_vm8 = vcmp.lt.f32.partialorder %v3965_v8, 0.0004427343 }
0x1aae   :  { %v14234_v45 = vpop.eup %14233  ;;  %v3986_v9 = vadd.f32 1.0, %v14232_v25  ;;  %v3989_v47 = vmul.f32 -0.5, %v14232_v25  ;;  %v3973_v48 = vmul.f32 %v14228_v13, %v3972_v2  ;;  %v3992_v55 = vand.u32 2147483647, %v14232_v25 }
0x1aaf   :  { %v3977_v28 = vadd.f32 1.0, %v14234_v45  ;;  %v3980_v57 = vmul.f32 -0.5, %v14234_v45  ;;  %v3964_v20 = vmul.f32 %v14230_v52, %v3963_v3  ;;  %v3983_v24 = vand.u32 2147483647, %v14234_v45 }
0x1ab0   :  { %14239 = vlog2.f32 %v3986_v9  ;;  %v3990_v11 = vadd.f32 1.0, %v3989_v47  ;;  %v3934_v2 = vmax.f32 %v16084_v5, 0.0  ;;  %vm3993_vm11 = vcmp.lt.f32.partialorder %v3992_v55, 0.0004427343 }
0x1ab1   :  { %14241 = vlog2.f32 %v3977_v28  ;;  %v3981_v22 = vadd.f32 1.0, %v3980_v57  ;;  %v3933_v47 = vmax.f32 %v16086_v12, 0.0  ;;  %vm3984_vm12 = vcmp.lt.f32.partialorder %v3983_v24, 0.0004427343 }
0x1ab2   :  { %v3991_v52 = vmul.f32 %v14232_v25, %v3990_v11 }
0x1ab3   :  { %v3982_v41 = vmul.f32 %v14234_v45, %v3981_v22 }
0x1ab6   :  { %v14236_v63 = vpop.eup %14235 }
0x1ab7   :  { %v14238_v1 = vpop.eup %14237  ;;  %v3970_v10 = vmul.f32 0.6931472, %v14236_v63 }
0x1ab8   :  { %v3961_v19 = vmul.f32 0.6931472, %v14238_v1 }
0x1ab9   :  { %v3976_v35 = vsel %vm3975_vm6, %v3973_v48, %v3970_v10 }
0x1aba   :  { %v14240_v26 = vpop.eup %14239  ;;  %v3967_v15 = vsel %vm3966_vm8, %v3964_v20, %v3961_v19  ;;  %v3996_v14 = vadd.f32 %v3976_v35, %v3932_v0 }
0x1abb   :  { %v14242_v9 = vpop.eup %14241  ;;  %v3995_v13 = vadd.f32 %v3967_v15, %v3931_v23  ;;  %v3988_v36 = vmul.f32 0.6931472, %v14240_v26 }
0x1abc   :  { %v3979_v28 = vmul.f32 0.6931472, %v14242_v9  ;;  %v4000_v57 = vsel %vm3936_vm9, %v16078_v58, %v3996_v14  ;;  %v11489_v58 = vld [vmem:[%s18666_s20] ss:$0 sm:$0xff] }
0x1abd   :  { %v3999_v6 = vsel %vm3935_vm10, %v16080_v30, %v3995_v13  ;;  %v3994_v3 = vsel %vm3993_vm11, %v3991_v52, %v3988_v36 }
0x1abe   :  { %12653 = vmatprep.mubr.f32.mxu0 %v3999_v6  ;;  %v3985_v8 = vsel %vm3984_vm12, %v3982_v41, %v3979_v28  ;;  %v3998_v63 = vadd.f32 %v3994_v3, %v3934_v2 }
0x1abf   :  { %12654 = vmatmul.mubr.f32.vlgmr.msra.gmra.mrb[64].mxu0 %v4000_v57  ;;  %v3997_v25 = vadd.f32 %v3985_v8, %v3933_v47 }
0x1ac0   :  { %13526 = vmatpush3.bf16.msra.mxu0 %v15742_v27  ;;  %v4002_v45 = vsel %vm3938_vm14, %v16084_v5, %v3998_v63 }
0x1ac1   :  { %v4001_v30 = vsel %vm3937_vm13, %v16086_v12, %v3997_v25  ;;  %13528 = vmatprep.subr.bf16.mxu0 %v15752_v31  ;;  %v4233_v25 = vpop.permute.xlu1 %4232 }
0x1ac2   :  { %12656 = vmatprep.mubr.f32.mxu0 %v4001_v30 }
0x1ac3   :  { %12657 = vmatmul.mubr.f32.gmra.mrb[66].mxu0 %v4002_v45 }
0x1ac4   :  { %13530 = vmatpush3.bf16.msra.mxu0 %v15752_v31 }
0x1ac5   :  { %13532 = vmatprep.subr.bf16.mxu0 %v15762_v33 }
0x1ac8   :  { %13534 = vmatpush3.bf16.msra.mxu0 %v15762_v33 }
0x1ac9   :  { %13536 = vmatprep.subr.bf16.mxu0 %v15772_v34 }
0x1acc   :  { %13538 = vmatpush3.bf16.msra.mxu0 %v15772_v34 }
0x1acd   :  { %13540 = vmatprep.subr.bf16.mxu0 %v15820_v56 }
0x1b92   :  { %v12655_v12 = vpop.f32.mrb[64].mxu0 }
0x1b93   :  { %v16120_v0 = vadd.f32 %v12655_v12, %v11489_v58  ;;  %v4075_v5 = vpop.f32.mrb[65].mxu0 }
0x1b94   :  { %v16122_v1 = vadd.f32 %v11489_v58, %v4075_v5 }
0x1b95   :  { %v4107_v10 = vand.u32 2147483647, %v16120_v0  ;;  %vm4099_vm15 = vcmp.ne.f32.partialorder %v16120_v0, %v16120_v0 }
0x1b96   :  { %v4106_v48 = vand.u32 2147483647, %v16122_v1  ;;  %v12658_v11 = vpop.f32.mrb[66].mxu0  ;;  %vm4098_vm6 = vcmp.ne.f32.partialorder %v16122_v1, %v16122_v1 }
0x1b97   :  { %v4111_v19 = vsub.f32 0.0, %v4107_v10  ;;  %v16126_v20 = vadd.f32 %v12658_v11, %v11489_v58  ;;  %v4085_v22 = vpop.f32.mrb[67].mxu0  ;;  %v4243_v11 = vadd.f32 %v4233_v25, %v15503_v50 }
0x1b98   :  { %v4110_v55 = vsub.f32 0.0, %v4106_v48  ;;  %v16128_v23 = vadd.f32 %v11489_v58, %v4085_v22 }
0x1b99   :  { %v4116_v35 = vmul.f32 1.442695, %v4111_v19  ;;  %v4109_v24 = vand.u32 2147483647, %v16126_v20  ;;  %v4095_v19 = vmax.f32 %v16120_v0, 0.0  ;;  %vm4101_vm10 = vcmp.ne.f32.partialorder %v16126_v20, %v16126_v20 }
0x1b9a   :  { %v4114_v26 = vmul.f32 1.442695, %v4110_v55  ;;  %v4108_v15 = vand.u32 2147483647, %v16128_v23  ;;  %vm4100_vm11 = vcmp.ne.f32.partialorder %v16128_v23, %v16128_v23 }
0x1b9b   :  { %14243 = vpow2.f32 %v4116_v35  ;;  %v4113_v14 = vsub.f32 0.0, %v4109_v24 }
0x1b9c   :  { %14245 = vpow2.f32 %v4114_v26  ;;  %v4112_v9 = vsub.f32 0.0, %v4108_v15 }
0x1b9d   :  { %v4120_v13 = vmul.f32 1.442695, %v4113_v14 }
0x1b9e   :  { %v4118_v36 = vmul.f32 1.442695, %v4112_v9 }
0x1b9f   :  { %14247 = vpow2.f32 %v4120_v13  ;;  %v4231_v13 = vpop.permute.xlu0 %4230 }
0x1ba0   :  { %14249 = vpow2.f32 %v4118_v36 }
0x1ba5   :  { %v14244_v52 = vpop.eup %14243 }
0x1ba6   :  { %v14246_v28 = vpop.eup %14245  ;;  %v4131_v41 = vadd.f32 1.0, %v14244_v52  ;;  %v4134_v57 = vmul.f32 -0.5, %v14244_v52  ;;  %v4137_v45 = vand.u32 2147483647, %v14244_v52 }
0x1ba7   :  { %v4122_v2 = vadd.f32 1.0, %v14246_v28  ;;  %v4125_v63 = vmul.f32 -0.5, %v14246_v28  ;;  %v4128_v10 = vand.u32 2147483647, %v14246_v28 }
0x1ba8   :  { %14251 = vlog2.f32 %v4131_v41  ;;  %v4135_v30 = vadd.f32 1.0, %v4134_v57  ;;  %vm4138_vm4 = vcmp.lt.f32.partialorder %v4137_v45, 0.0004427343  ;;  %v4094_v41 = vmax.f32 %v16122_v1, 0.0  ;;  %v4247_v57 = vld [vmem:[%s18667_s1 + $0x8] sm:$0xff] }
0x1ba9   :  { %v14248_v6 = vpop.eup %14247  ;;  %14253 = vlog2.f32 %v4122_v2  ;;  %v4126_v12 = vadd.f32 1.0, %v4125_v63  ;;  %vm4129_vm5 = vcmp.lt.f32.partialorder %v4128_v10, 0.0004427343  ;;  %v4096_v45 = vmax.f32 %v16128_v23, 0.0 }
0x1baa   :  { %v14250_v47 = vpop.eup %14249  ;;  %v4149_v3 = vadd.f32 1.0, %v14248_v6  ;;  %v4152_v58 = vmul.f32 -0.5, %v14248_v6  ;;  %v4136_v35 = vmul.f32 %v14244_v52, %v4135_v30  ;;  %v4155_v14 = vand.u32 2147483647, %v14248_v6 }
0x1bab   :  { %v4140_v8 = vadd.f32 1.0, %v14250_v47  ;;  %v4143_v5 = vmul.f32 -0.5, %v14250_v47  ;;  %v4127_v15 = vmul.f32 %v14246_v28, %v4126_v12  ;;  %v4146_v50 = vand.u32 2147483647, %v14250_v47 }
0x1bac   :  { %14255 = vlog2.f32 %v4149_v3  ;;  %v4153_v24 = vadd.f32 1.0, %v4152_v58  ;;  %v4097_v28 = vmax.f32 %v16126_v20, 0.0  ;;  %v4246_v58 = vld [vmem:[%s18667_s1] sm:$0xff]  ;;  %vm4156_vm8 = vcmp.lt.f32.partialorder %v4155_v14, 0.0004427343 }
0x1bad   :  { %14257 = vlog2.f32 %v4140_v8  ;;  %v4144_v9 = vadd.f32 1.0, %v4143_v5  ;;  %vm4147_vm9 = vcmp.lt.f32.partialorder %v4146_v50, 0.0004427343  ;;  %v14798_v50 = vld [vmem:[%s18658_s10] ss:$0 sm:$0xff] }
0x1bae   :  { %v4154_v30 = vmul.f32 %v14248_v6, %v4153_v24 }
0x1baf   :  { %v4145_v10 = vmul.f32 %v14250_v47, %v4144_v9 }
0x1bb2   :  { %v14252_v48 = vpop.eup %14251 }
0x1bb3   :  { %v14254_v22 = vpop.eup %14253  ;;  %v4133_v55 = vmul.f32 0.6931472, %v14252_v48 }
0x1bb4   :  { %v4124_v26 = vmul.f32 0.6931472, %v14254_v22  ;;  %v4242_v22 = vadd.f32 %v4231_v13, %v15498_v21  ;;  %v4248_v21 = vld [vmem:[%s18667_s1 + $0x10] sm:$0xff] }
0x1bb5   :  { %v4139_v36 = vsel %vm4138_vm4, %v4136_v35, %v4133_v55  ;;  %v4237_v55 = vpop.permute.xlu1 %4236 }
0x1bb6   :  { %v14256_v2 = vpop.eup %14255  ;;  %v4159_v3 = vadd.f32 %v4139_v36, %v4095_v19  ;;  %v4130_v52 = vsel %vm4129_vm5, %v4127_v15, %v4124_v26  ;;  %v4235_v15 = vpop.permute.xlu0 %4234  ;;  %v4245_v13 = vadd.f32 %v4237_v55, %v15517_v17 }
0x1bb7   :  { %v14258_v8 = vpop.eup %14257  ;;  %v4158_v63 = vadd.f32 %v4130_v52, %v4094_v41  ;;  %v4151_v25 = vmul.f32 0.6931472, %v14256_v2 }
0x1bb8   :  { %v16151_v12 = vsel %vm4099_vm15, %v16120_v0, %v4159_v3  ;;  %v4142_v5 = vmul.f32 0.6931472, %v14258_v8  ;;  %v4249_v0 = vld [vmem:[%s18667_s1 + $0x18] sm:$0xff] }
0x1bb9   :  { %v4251_v48 = vmul.f32 %v4247_v57, %v16151_v12  ;;  %v16155_v19 = vsel %vm4098_vm6, %v16122_v1, %v4158_v63  ;;  %v4157_v6 = vsel %vm4156_vm8, %v4154_v30, %v4151_v25 }
0x1bba   :  { %v4161_v35 = vadd.f32 %v4157_v6, %v4097_v28  ;;  %v4148_v24 = vsel %vm4147_vm9, %v4145_v10, %v4142_v5  ;;  %v4250_v26 = vmul.f32 %v4246_v58, %v16155_v19 }
0x1bbb   :  { %v16162_v47 = vadd.f32 %v4251_v48, %v4243_v11  ;;  %v4160_v1 = vadd.f32 %v4148_v24, %v4096_v45 }
0x1bbc   :  { %v16170_v14 = vsel %vm4101_vm10, %v16126_v20, %v4161_v35  ;;  %v16174_v9 = vadd.f32 %v4250_v26, %v4242_v22  ;;  %v4244_v20 = vadd.f32 %v4235_v15, %v15512_v51 }
0x1bbd   :  { %11491 = vst.msk [vmem:[%s18655_s21 + $0x28] sm:$0xff] %vm89_vm1, %v16162_v47  ;;  %v16183_v11 = vsel %vm4100_vm11, %v16128_v23, %v4160_v1  ;;  %v4253_v36 = vmul.f32 %v4249_v0, %v16170_v14 }
0x1bbe   :  { %11490 = vst.msk [vmem:[%s18655_s21 + $0x20] sm:$0xff] %vm89_vm1, %v16174_v9  ;;  %12669 = vmatprep.mubr.msk.f32.mxu1 %vm89_vm1, %v16174_v9  ;;  %v4252_v17 = vmul.f32 %v4248_v21, %v16183_v11 }
0x1bbf   :  { %12670 = vmatmul.mubr.msk.f32.vlgmr.msra.gmra.mrb[52].mxu1 %vm89_vm1, %v16162_v47  ;;  %v16197_v23 = vadd.f32 %v4253_v36, %v4245_v13 }
0x1bc0   :  { %v16199_v41 = vadd.f32 %v4252_v17, %v4244_v20  ;;  %13566 = vmatpush3.bf16.msra.mxu1 %v15931_v40 }
0x1bc1   :  { %11493 = vst.msk [vmem:[%s18655_s21 + $0x38] sm:$0xff] %vm89_vm1, %v16197_v23  ;;  %13568 = vmatprep.subr.bf16.mxu1 %v15936_v42 }
0x1bc2   :  { %11492 = vst.msk [vmem:[%s18655_s21 + $0x30] sm:$0xff] %vm89_vm1, %v16199_v41  ;;  %12672 = vmatprep.mubr.msk.f32.mxu1 %vm89_vm1, %v16199_v41 }
0x1bc3   :  { %12673 = vmatmul.mubr.msk.f32.gmra.mrb[54].mxu1 %vm89_vm1, %v16197_v23 }
0x1bc4   :  { %13570 = vmatpush3.bf16.msra.mxu1 %v15936_v42 }
0x1bc5   :  { %13572 = vmatprep.subr.bf16.mxu1 %v16012_v38 }
0x1bc8   :  { %13574 = vmatpush3.bf16.msra.mxu1 %v16012_v38 }
0x1bc9   :  { %13576 = vmatprep.subr.bf16.mxu1 %v16022_v18 }
0x1bcc   :  { %13578 = vmatpush3.bf16.msra.mxu1 %v16022_v18 }
0x1bcd   :  { %13580 = vmatprep.subr.bf16.mxu1 %v16035_v59 }
0x1bd0   :  { %13582 = vmatpush3.bf16.msra.mxu1 %v16035_v59 }
0x1bd1   :  { %13584 = vmatprep.subr.bf16.mxu1 %v16040_v60 }
0x1bd4   :  { %13586 = vmatpush3.bf16.msra.mxu1 %v16040_v60 }
0x1bd5   :  { %13588 = vmatprep.subr.bf16.mxu1 %v16051_v46 }
0x1bd8   :  { %13590 = vmatpush3.bf16.msra.mxu1 %v16051_v46 }
0x1bd9   :  { %13592 = vmatprep.subr.bf16.mxu1 %v16061_v49 }
0x1bdc   :  { %13594 = vmatpush3.bf16.msra.mxu1 %v16061_v49 }
0x1bdd   :  { %13612 = vmatprep.subr.bf16.mxu1 %v15820_v56 }
0x1c92   :  { %v12671_v51 = vpop.f32.mrb[52].mxu1 }
0x1c93   :  { %v16234_v2 = vadd.f32 %v14798_v50, %v12671_v51  ;;  %v4443_v3 = vpop.f32.mrb[53].mxu1 }
0x1c94   :  { %v16236_v57 = vadd.f32 %v14798_v50, %v4443_v3 }
0x1c95   :  { %v4479_v52 = vand.u32 2147483647, %v16234_v2  ;;  %vm4471_vm14 = vcmp.ne.f32.partialorder %v16234_v2, %v16234_v2 }
0x1c96   :  { %v4478_v28 = vand.u32 2147483647, %v16236_v57  ;;  %v12674_v8 = vpop.f32.mrb[54].mxu1  ;;  %vm4470_vm15 = vcmp.ne.f32.partialorder %v16236_v57, %v16236_v57 }
0x1c97   :  { %v4483_v63 = vsub.f32 0.0, %v4479_v52  ;;  %v16240_v25 = vadd.f32 %v14798_v50, %v12674_v8  ;;  %v4453_v30 = vpop.f32.mrb[55].mxu1 }
0x1c98   :  { %v4482_v45 = vsub.f32 0.0, %v4478_v28  ;;  %v16242_v58 = vadd.f32 %v14798_v50, %v4453_v30 }
0x1c99   :  { %v4488_v5 = vmul.f32 1.442695, %v4483_v63  ;;  %v4481_v10 = vand.u32 2147483647, %v16240_v25  ;;  %vm4473_vm8 = vcmp.ne.f32.partialorder %v16240_v25, %v16240_v25 }
0x1c9a   :  { %v4486_v48 = vmul.f32 1.442695, %v4482_v45  ;;  %v4480_v6 = vand.u32 2147483647, %v16242_v58  ;;  %v4467_v45 = vmax.f32 %v16234_v2, 0.0  ;;  %vm4472_vm6 = vcmp.ne.f32.partialorder %v16242_v58, %v16242_v58 }
0x1c9b   :  { %14259 = vpow2.f32 %v4488_v5  ;;  %v4485_v22 = vsub.f32 0.0, %v4481_v10 }
0x1c9c   :  { %14261 = vpow2.f32 %v4486_v48  ;;  %v4484_v55 = vsub.f32 0.0, %v4480_v6 }
0x1c9d   :  { %v4492_v35 = vmul.f32 1.442695, %v4485_v22 }
0x1c9e   :  { %v4490_v24 = vmul.f32 1.442695, %v4484_v55 }
0x1c9f   :  { %14263 = vpow2.f32 %v4492_v35 }
0x1ca0   :  { %14265 = vpow2.f32 %v4490_v24 }
0x1ca5   :  { %v14260_v26 = vpop.eup %14259 }
0x1ca6   :  { %v14262_v0 = vpop.eup %14261  ;;  %v4503_v15 = vadd.f32 1.0, %v14260_v26  ;;  %v4506_v20 = vmul.f32 -0.5, %v14260_v26  ;;  %v4509_v3 = vand.u32 2147483647, %v14260_v26 }
0x1ca7   :  { %v4494_v1 = vadd.f32 1.0, %v14262_v0  ;;  %v4497_v51 = vmul.f32 -0.5, %v14262_v0  ;;  %v4500_v63 = vand.u32 2147483647, %v14262_v0 }
0x1ca8   :  { %14267 = vlog2.f32 %v4503_v15  ;;  %v4507_v50 = vadd.f32 1.0, %v4506_v20  ;;  %vm4510_vm12 = vcmp.lt.f32.partialorder %v4509_v3, 0.0004427343  ;;  %v4469_v3 = vmax.f32 %v16240_v25, 0.0 }
0x1ca9   :  { %v14264_v21 = vpop.eup %14263  ;;  %14269 = vlog2.f32 %v4494_v1  ;;  %v4498_v28 = vadd.f32 1.0, %v4497_v51  ;;  %v4466_v1 = vmax.f32 %v16236_v57, 0.0  ;;  %vm4501_vm13 = vcmp.lt.f32.partialorder %v4500_v63, 0.0004427343 }
0x1caa   :  { %v14266_v13 = vpop.eup %14265  ;;  %v4521_v36 = vadd.f32 1.0, %v14264_v21  ;;  %v4524_v52 = vmul.f32 -0.5, %v14264_v21  ;;  %v4508_v48 = vmul.f32 %v14260_v26, %v4507_v50  ;;  %v4527_v24 = vand.u32 2147483647, %v14264_v21 }
0x1cab   :  { %v4512_v17 = vadd.f32 1.0, %v14266_v13  ;;  %v4515_v8 = vmul.f32 -0.5, %v14266_v13  ;;  %v4499_v55 = vmul.f32 %v14262_v0, %v4498_v28 }
0x1cac   :  { %14271 = vlog2.f32 %v4521_v36  ;;  %v4525_v6 = vadd.f32 1.0, %v4524_v52  ;;  %v4518_v36 = vand.u32 2147483647, %v14266_v13  ;;  %vm4528_vm4 = vcmp.lt.f32.partialorder %v4527_v24, 0.0004427343 }
0x1cad   :  { %14273 = vlog2.f32 %v4512_v17  ;;  %v4516_v35 = vadd.f32 1.0, %v4515_v8  ;;  %v4468_v8 = vmax.f32 %v16242_v58, 0.0 }
0x1cae   :  { %v4526_v0 = vmul.f32 %v14264_v21, %v4525_v6  ;;  %vm4519_vm5 = vcmp.lt.f32.partialorder %v4518_v36, 0.0004427343 }
0x1caf   :  { %v4517_v28 = vmul.f32 %v14266_v13, %v4516_v35  ;;  %v14799_v13 = vld [vmem:[%s18660_s12] ss:$0 sm:$0xff] }
0x1cb2   :  { %v14268_v30 = vpop.eup %14267 }
0x1cb3   :  { %v14270_v5 = vpop.eup %14269  ;;  %v4505_v10 = vmul.f32 0.6931472, %v14268_v30 }
0x1cb4   :  { %v4496_v22 = vmul.f32 0.6931472, %v14270_v5 }
0x1cb5   :  { %v4511_v15 = vsel %vm4510_vm12, %v4508_v48, %v4505_v10 }
0x1cb6   :  { %v14272_v20 = vpop.eup %14271  ;;  %v4531_v17 = vadd.f32 %v4511_v15, %v4467_v45  ;;  %v4502_v51 = vsel %vm4501_vm13, %v4499_v55, %v4496_v22 }
0x1cb7   :  { %v14274_v29 = vpop.eup %14273  ;;  %v4530_v26 = vadd.f32 %v4502_v51, %v4466_v1  ;;  %v4523_v50 = vmul.f32 0.6931472, %v14272_v20 }
0x1cb8   :  { %v4514_v52 = vmul.f32 0.6931472, %v14274_v29  ;;  %v4535_v45 = vsel %vm4471_vm14, %v16234_v2, %v4531_v17 }
0x1cb9   :  { %v4534_v63 = vsel %vm4470_vm15, %v16236_v57, %v4530_v26  ;;  %v4529_v30 = vsel %vm4528_vm4, %v4526_v0, %v4523_v50 }
0x1cba   :  { %12691 = vmatprep.mubr.msk.f32.mxu0 %vm3389_vm7, %v4534_v63  ;;  %v4520_v5 = vsel %vm4519_vm5, %v4517_v28, %v4514_v52  ;;  %v4533_v21 = vadd.f32 %v4529_v30, %v4469_v3 }
0x1cbb   :  { %12692 = vmatmul.mubr.msk.f32.vlgmr.msra.gmra.mrb[68].mxu0 %vm3389_vm7, %v4535_v45  ;;  %v4532_v29 = vadd.f32 %v4520_v5, %v4468_v8 }
0x1cbc   :  { %13542 = vmatpush3.bf16.msra.mxu0 %v15820_v56  ;;  %v4537_v2 = vsel %vm4473_vm8, %v16240_v25, %v4533_v21 }
0x1cbd   :  { %v4536_v57 = vsel %vm4472_vm6, %v16242_v58, %v4532_v29  ;;  %13544 = vmatprep.subr.bf16.mxu0 %v15830_v4 }
0x1cbe   :  { %12694 = vmatprep.mubr.msk.f32.mxu0 %vm3389_vm7, %v4536_v57 }
0x1cbf   :  { %12695 = vmatmul.mubr.msk.f32.gmra.mrb[70].mxu0 %vm3389_vm7, %v4537_v2 }
0x1cc0   :  { %13546 = vmatpush3.bf16.msra.mxu0 %v15830_v4 }
0x1cc1   :  { %13548 = vmatprep.subr.bf16.mxu0 %v15840_v16 }
0x1cc4   :  { %13550 = vmatpush3.bf16.msra.mxu0 %v15840_v16 }
0x1cc5   :  { %13552 = vmatprep.subr.bf16.mxu0 %v15850_v62 }
0x1cc8   :  { %13554 = vmatpush3.bf16.msra.mxu0 %v15850_v62 }
0x1cc9   :  { %13556 = vmatprep.subr.bf16.mxu0 %v15901_v61 }
0x1d8e   :  { %v12693_v58 = vpop.f32.mrb[68].mxu0 }
0x1d8f   :  { %v16280_v25 = vadd.f32 %v14799_v13, %v12693_v58  ;;  %v4616_v10 = vpop.f32.mrb[69].mxu0 }
0x1d90   :  { %v16282_v48 = vadd.f32 %v14799_v13, %v4616_v10 }
0x1d91   :  { %v4648_v6 = vand.u32 2147483647, %v16280_v25  ;;  %vm4640_vm11 = vcmp.ne.f32.partialorder %v16280_v25, %v16280_v25 }
0x1d92   :  { %v4647_v22 = vand.u32 2147483647, %v16282_v48  ;;  %v12696_v55 = vpop.f32.mrb[70].mxu0  ;;  %vm4639_vm12 = vcmp.ne.f32.partialorder %v16282_v48, %v16282_v48 }
0x1d93   :  { %v4652_v35 = vsub.f32 0.0, %v4648_v6  ;;  %v16286_v24 = vadd.f32 %v14799_v13, %v12696_v55  ;;  %v4626_v15 = vpop.f32.mrb[71].mxu0 }
0x1d94   :  { %v4651_v1 = vsub.f32 0.0, %v4647_v22  ;;  %v16288_v36 = vadd.f32 %v14799_v13, %v4626_v15  ;;  %v4636_v15 = vmax.f32 %v16280_v25, 0.0 }
0x1d95   :  { %v4657_v20 = vmul.f32 1.442695, %v4652_v35  ;;  %v4650_v17 = vand.u32 2147483647, %v16286_v24  ;;  %vm4642_vm4 = vcmp.ne.f32.partialorder %v16286_v24, %v16286_v24 }
0x1d96   :  { %v4655_v51 = vmul.f32 1.442695, %v4651_v1  ;;  %v4649_v26 = vand.u32 2147483647, %v16288_v36  ;;  %vm4641_vm15 = vcmp.ne.f32.partialorder %v16288_v36, %v16288_v36 }
0x1d97   :  { %14275 = vpow2.f32 %v4657_v20  ;;  %v4654_v50 = vsub.f32 0.0, %v4650_v17 }
0x1d98   :  { %14277 = vpow2.f32 %v4655_v51  ;;  %v4653_v0 = vsub.f32 0.0, %v4649_v26 }
0x1d99   :  { %v4661_v3 = vmul.f32 1.442695, %v4654_v50 }
0x1d9a   :  { %v4659_v52 = vmul.f32 1.442695, %v4653_v0 }
0x1d9b   :  { %14279 = vpow2.f32 %v4661_v3 }
0x1d9c   :  { %14281 = vpow2.f32 %v4659_v52 }
0x1da1   :  { %v14276_v28 = vpop.eup %14275 }
0x1da2   :  { %v14278_v8 = vpop.eup %14277  ;;  %v4672_v63 = vadd.f32 1.0, %v14276_v28  ;;  %v4675_v29 = vmul.f32 -0.5, %v14276_v28  ;;  %v4678_v13 = vand.u32 2147483647, %v14276_v28 }
0x1da3   :  { %v4663_v30 = vadd.f32 1.0, %v14278_v8  ;;  %v4666_v2 = vmul.f32 -0.5, %v14278_v8  ;;  %v4669_v55 = vand.u32 2147483647, %v14278_v8 }
0x1da4   :  { %14283 = vlog2.f32 %v4672_v63  ;;  %v4676_v58 = vadd.f32 1.0, %v4675_v29  ;;  %vm4679_vm9 = vcmp.lt.f32.partialorder %v4678_v13, 0.0004427343  ;;  %v4635_v63 = vmax.f32 %v16282_v48, 0.0 }
0x1da5   :  { %v14280_v45 = vpop.eup %14279  ;;  %14285 = vlog2.f32 %v4663_v30  ;;  %v4667_v6 = vadd.f32 1.0, %v4666_v2  ;;  %vm4670_vm10 = vcmp.lt.f32.partialorder %v4669_v55, 0.0004427343  ;;  %v4638_v13 = vmax.f32 %v16286_v24, 0.0 }
0x1da6   :  { %v14282_v5 = vpop.eup %14281  ;;  %v4690_v21 = vadd.f32 1.0, %v14280_v45  ;;  %v4693_v10 = vmul.f32 -0.5, %v14280_v45  ;;  %v4677_v17 = vmul.f32 %v14276_v28, %v4676_v58  ;;  %v4696_v3 = vand.u32 2147483647, %v14280_v45 }
0x1da7   :  { %v4681_v57 = vadd.f32 1.0, %v14282_v5  ;;  %v4684_v22 = vmul.f32 -0.5, %v14282_v5  ;;  %v4668_v50 = vmul.f32 %v14278_v8, %v4667_v6  ;;  %v4687_v30 = vand.u32 2147483647, %v14282_v5 }
0x1da8   :  { %14287 = vlog2.f32 %v4690_v21  ;;  %v4694_v51 = vadd.f32 1.0, %v4693_v10  ;;  %vm4697_vm13 = vcmp.lt.f32.partialorder %v4696_v3, 0.0004427343 }
0x1da9   :  { %14289 = vlog2.f32 %v4681_v57  ;;  %v4685_v0 = vadd.f32 1.0, %v4684_v22  ;;  %v4637_v22 = vmax.f32 %v16288_v36, 0.0  ;;  %vm4688_vm14 = vcmp.lt.f32.partialorder %v4687_v30, 0.0004427343 }
0x1daa   :  { %v4695_v8 = vmul.f32 %v14280_v45, %v4694_v51 }
0x1dab   :  { %v4686_v6 = vmul.f32 %v14282_v5, %v4685_v0  ;;  %v16321_v5 = vld [vmem:[%s18662_s17] sm:$0xf] }
0x1dae   :  { %v14284_v35 = vpop.eup %14283 }
0x1daf   :  { %v14286_v1 = vpop.eup %14285  ;;  %v4674_v20 = vmul.f32 0.6931472, %v14284_v35 }
0x1db0   :  { %v4665_v26 = vmul.f32 0.6931472, %v14286_v1 }
0x1db1   :  { %v4680_v52 = vsel %vm4679_vm9, %v4677_v17, %v4674_v20  ;;  %v14801_v17 = vld [vmem:[%s18663_s14] ss:$0 sm:$0xff] }
0x1db2   :  { %v14288_v21 = vpop.eup %14287  ;;  %v4700_v29 = vadd.f32 %v4680_v52, %v4636_v15  ;;  %v4671_v57 = vsel %vm4670_vm10, %v4668_v50, %v4665_v26 }
0x1db3   :  { %v14290_v2 = vpop.eup %14289  ;;  %v4699_v28 = vadd.f32 %v4671_v57, %v4635_v63  ;;  %v4692_v58 = vmul.f32 0.6931472, %v14288_v21 }
0x1db4   :  { %v4683_v10 = vmul.f32 0.6931472, %v14290_v2  ;;  %v4704_v15 = vsel %vm4640_vm11, %v16280_v25, %v4700_v29 }
0x1db5   :  { %v4703_v55 = vsel %vm4639_vm12, %v16282_v48, %v4699_v28  ;;  %v4698_v35 = vsel %vm4697_vm13, %v4695_v8, %v4692_v58 }
0x1db6   :  { %12713 = vmatprep.mubr.msk.f32.mxu0 %vm3389_vm7, %v4703_v55  ;;  %v4689_v1 = vsel %vm4688_vm14, %v4686_v6, %v4683_v10  ;;  %v4702_v45 = vadd.f32 %v4698_v35, %v4638_v13 }
0x1db7   :  { %12714 = vmatmul.mubr.msk.f32.vlgmr.msra.gmra.mrb[72].mxu0 %vm3389_vm7, %v4704_v15  ;;  %v4701_v20 = vadd.f32 %v4689_v1, %v4637_v22 }
0x1db8   :  { %13558 = vmatpush3.bf16.msra.mxu0 %v15901_v61  ;;  %v4706_v25 = vsel %vm4642_vm4, %v16286_v24, %v4702_v45 }
0x1db9   :  { %v4705_v48 = vsel %vm4641_vm15, %v16288_v36, %v4701_v20  ;;  %13560 = vmatprep.subr.bf16.mxu0 %v15906_v32 }
0x1dba   :  { %12716 = vmatprep.mubr.msk.f32.mxu0 %vm3389_vm7, %v4705_v48 }
0x1dbb   :  { %12717 = vmatmul.mubr.msk.f32.gmra.mrb[74].mxu0 %vm3389_vm7, %v4706_v25 }
0x1dbc   :  { %13562 = vmatpush3.bf16.msra.mxu0 %v15906_v32 }
0x1dbd   :  { %12733 = vmatprep.subr.msk.mxu0 %vm102_vm0, %v16321_v5 }
0x1e8a   :  { %v12715_v36 = vpop.f32.mrb[72].mxu0 }
0x1e8b   :  { %v16328_v51 = vadd.f32 %v14801_v17, %v12715_v36  ;;  %v4785_v24 = vpop.f32.mrb[73].mxu0 }
0x1e8c   :  { %v16330_v26 = vadd.f32 %v14801_v17, %v4785_v24 }
0x1e8d   :  { %18741 = vst [vmem:[#allocation16_spill] sm:$0xff] %v16328_v51  ;;  %v4817_v50 = vand.u32 2147483647, %v16328_v51  ;;  %v5344_v0 = vmul.f32 0.1, %v16328_v51  ;;  %vm4809_vm8 = vcmp.ne.f32.partialorder %v16328_v51, %v16328_v51 }
0x1e8e   :  { %18742 = vst [vmem:[#allocation17_spill] sm:$0xff] %v16330_v26  ;;  %v4816_v3 = vand.u32 2147483647, %v16330_v26  ;;  %v12718_v52 = vpop.f32.mrb[74].mxu0  ;;  %v5343_v63 = vmul.f32 0.1, %v16330_v26  ;;  %vm4808_vm9 = vcmp.ne.f32.partialorder %v16330_v26, %v16330_v26 }
0x1e8f   :  { %v4821_v30 = vsub.f32 0.0, %v4817_v50  ;;  %v16336_v21 = vadd.f32 %v14801_v17, %v12718_v52  ;;  %5353 = vrot.lane.b32.xlu1 %v5344_v0, %s14847_s4  ;;  %v4795_v29 = vpop.f32.mrb[75].mxu0 }
0x1e90   :  { %v4820_v57 = vsub.f32 0.0, %v4816_v3  ;;  %v16339_v2 = vadd.f32 %v14801_v17, %v4795_v29  ;;  %5351 = vrot.lane.b32.xlu0 %v5343_v63, %s14847_s4 }
0x1e91   :  { %18743 = vst [vmem:[#allocation18_spill] sm:$0xff] %v16336_v21  ;;  %v4826_v28 = vmul.f32 1.442695, %v4821_v30  ;;  %v4819_v58 = vand.u32 2147483647, %v16336_v21  ;;  %vm4811_vm13 = vcmp.ne.f32.partialorder %v16336_v21, %v16336_v21 }
0x1e92   :  { %18744 = vst [vmem:[#allocation19_spill] sm:$0xff] %v16339_v2  ;;  %v5346_v8 = vmul.f32 0.1, %v16336_v21  ;;  %v4824_v13 = vmul.f32 1.442695, %v4820_v57  ;;  %vm4810_vm12 = vcmp.ne.f32.partialorder %v16339_v2, %v16339_v2 }
0x1e93   :  { %v4818_v10 = vand.u32 2147483647, %v16339_v2  ;;  %v5345_v6 = vmul.f32 0.1, %v16339_v2  ;;  %14291 = vpow2.f32 %v4826_v28  ;;  %v4823_v22 = vsub.f32 0.0, %v4819_v58 }
0x1e94   :  { %5357 = vrot.lane.b32.xlu1 %v5346_v8, %s14847_s4  ;;  %14293 = vpow2.f32 %v4824_v13  ;;  %v4805_v58 = vmax.f32 %v16328_v51, 0.0 }
0x1e95   :  { %v4822_v55 = vsub.f32 0.0, %v4818_v10  ;;  %5355 = vrot.lane.b32.xlu0 %v5345_v6, %s14847_s4  ;;  %v4830_v35 = vmul.f32 1.442695, %v4823_v22 }
0x1e97   :  { %v4828_v15 = vmul.f32 1.442695, %v4822_v55  ;;  %14295 = vpow2.f32 %v4830_v35 }
0x1e99   :  { %14297 = vpow2.f32 %v4828_v15 }
0x1e9d   :  { %v14292_v1 = vpop.eup %14291 }
0x1e9e   :  { %v14294_v45 = vpop.eup %14293  ;;  %v4841_v20 = vadd.f32 1.0, %v14292_v1  ;;  %v4844_v24 = vmul.f32 -0.5, %v14292_v1  ;;  %v4847_v52 = vand.u32 2147483647, %v14292_v1 }
0x1e9f   :  { %v4832_v48 = vadd.f32 1.0, %v14294_v45  ;;  %v4835_v0 = vmul.f32 -0.5, %v14294_v45  ;;  %v4838_v57 = vand.u32 2147483647, %v14294_v45 }
0x1ea0   :  { %14299 = vlog2.f32 %v4841_v20  ;;  %v4845_v3 = vadd.f32 1.0, %v4844_v24  ;;  %vm4848_vm5 = vcmp.lt.f32.partialorder %v4847_v52, 0.0004427343  ;;  %v4804_v20 = vmax.f32 %v16330_v26, 0.0 }
0x1ea1   :  { %v14296_v25 = vpop.eup %14295  ;;  %14301 = vlog2.f32 %v4832_v48  ;;  %v4836_v30 = vadd.f32 1.0, %v4835_v0  ;;  %vm4839_vm6 = vcmp.lt.f32.partialorder %v4838_v57, 0.0004427343  ;;  %v4806_v57 = vmax.f32 %v16339_v2, 0.0 }
0x1ea2   :  { %v4859_v17 = vadd.f32 1.0, %v14296_v25  ;;  %v4862_v63 = vmul.f32 -0.5, %v14296_v25  ;;  %v4846_v10 = vmul.f32 %v14292_v1, %v4845_v3  ;;  %v4865_v15 = vand.u32 2147483647, %v14296_v25 }
0x1ea3   :  { %v14298_v36 = vpop.eup %14297  ;;  %v4837_v55 = vmul.f32 %v14294_v45, %v4836_v30  ;;  %v4807_v30 = vmax.f32 %v16336_v21, 0.0 }
0x1ea4   :  { %v4850_v50 = vadd.f32 1.0, %v14298_v36  ;;  %14303 = vlog2.f32 %v4859_v17  ;;  %v4853_v29 = vmul.f32 -0.5, %v14298_v36  ;;  %v4863_v6 = vadd.f32 1.0, %v4862_v63 }
0x1ea5   :  { %v4856_v17 = vand.u32 2147483647, %v14298_v36  ;;  %vm4866_vm10 = vcmp.lt.f32.partialorder %v4865_v15, 0.0004427343  ;;  %v5389_v15 = vld [vmem:[#allocation3 + $0x78] sm:$0xff] }
0x1ea6   :  { %14305 = vlog2.f32 %v4850_v50  ;;  %v4854_v35 = vadd.f32 1.0, %v4853_v29  ;;  %v4864_v45 = vmul.f32 %v14296_v25, %v4863_v6  ;;  %v14803_v6 = vld [vmem:[%s18728_s30] sm:$0xf] }
0x1ea7   :  { %vm4857_vm11 = vcmp.lt.f32.partialorder %v4856_v17, 0.0004427343 }
0x1ea8   :  { %v4855_v63 = vmul.f32 %v14298_v36, %v4854_v35  ;;  %v5388_v35 = vld [vmem:[#allocation3 + $0x70] sm:$0xff] }
0x1eaa   :  { %v14300_v28 = vpop.eup %14299 }
0x1eab   :  { %v14302_v8 = vpop.eup %14301  ;;  %v4843_v13 = vmul.f32 0.6931472, %v14300_v28 }
0x1eac   :  { %v4834_v22 = vmul.f32 0.6931472, %v14302_v8 }
0x1ead   :  { %v4849_v48 = vsel %vm4848_vm5, %v4846_v10, %v4843_v13  ;;  %v14802_v13 = vld [vmem:[%s18727_s5] sm:$0xff] }
0x1eae   :  { %v14304_v24 = vpop.eup %14303  ;;  %v4840_v50 = vsel %vm4839_vm6, %v4837_v55, %v4834_v22  ;;  %v4869_v0 = vadd.f32 %v4849_v48, %v4805_v58  ;;  %v5386_v22 = vld [vmem:[#allocation3 + $0x60] sm:$0xff]  ;;  %v5387_v55 = vld [vmem:[#allocation3 + $0x68] sm:$0xff] }
0x1eaf   :  { %v4868_v1 = vadd.f32 %v4840_v50, %v4804_v20  ;;  %v4861_v3 = vmul.f32 0.6931472, %v14304_v24 }
0x1eb0   :  { %v14306_v54 = vpop.eup %14305  ;;  %v4873_v58 = vsel %vm4809_vm8, %v16328_v51, %v4869_v0  ;;  %v14804_v0 = vld [vmem:[%s18665_s18] ss:$0 sm:$0xff] }
0x1eb1   :  { %v4852_v52 = vmul.f32 0.6931472, %v14306_v54  ;;  %v4872_v29 = vsel %vm4808_vm9, %v16330_v26, %v4868_v1  ;;  %v4867_v28 = vsel %vm4866_vm10, %v4864_v45, %v4861_v3 }
0x1eb2   :  { %12727 = vmatprep.mubr.msk.f32.mxu0 %vm197_vm2, %v4872_v29  ;;  %v4871_v25 = vadd.f32 %v4867_v28, %v4807_v30 }
0x1eb3   :  { %v4858_v8 = vsel %vm4857_vm11, %v4855_v63, %v4852_v52  ;;  %12728 = vmatmul.mubr.msk.f32.vlgmr.msra.gmra.mrb[76].mxu0 %vm197_vm2, %v4873_v58 }
0x1eb4   :  { %v4870_v54 = vadd.f32 %v4858_v8, %v4806_v57  ;;  %12734 = vmatpush3.msk.msra.mxu0 %vm102_vm0, %v16321_v5  ;;  %v4875_v10 = vsel %vm4811_vm13, %v16336_v21, %v4871_v25 }
0x1eb5   :  { %12779 = vmatprep.subr.mxu0 %v14802_v13 }
0x1eb6   :  { %v4874_v36 = vsel %vm4810_vm12, %v16339_v2, %v4870_v54 }
0x1eb7   :  { %12730 = vmatprep.mubr.msk.f32.mxu0 %vm197_vm2, %v4874_v36 }
0x1eb8   :  { %12731 = vmatmul.mubr.msk.f32.gmra.mrb[78].mxu0 %vm197_vm2, %v4875_v10 }
0x1eb9   :  { %12735 = vmatprep.mubr.msk.f32.mxu0 %vm89_vm1, %v16174_v9 }
0x1ebc   :  { %12736 = vmatmul.mubr.msk.f32.vlgmr.msra.gmra.mrb[80].mxu0 %vm89_vm1, %v16162_v47 }
0x1ebd   :  { %12738 = vmatprep.mubr.msk.f32.mxu0 %vm89_vm1, %v16199_v41  ;;  %12780 = vmatpush3.msra.mxu0 %v14802_v13 }
0x1ebe   :  { %12787 = vmatprep.subr.msk.mxu0 %vm102_vm0, %v14803_v6 }
0x1ec0   :  { %12739 = vmatmul.mubr.msk.f32.gmra.mrb[82].mxu0 %vm89_vm1, %v16197_v23 }
0x1ec1   :  { %12781 = vmatprep.mubr.msk.f32.mxu0 %vm3013_vm3, %v5386_v22 }
0x1ec4   :  { %12782 = vmatmul.mubr.msk.f32.vlgmr.msra.gmra.mrb[84].mxu0 %vm3013_vm3, %v5387_v55 }
0x1ec5   :  { %12784 = vmatprep.mubr.msk.f32.mxu0 %vm3013_vm3, %v5388_v35  ;;  %12788 = vmatpush3.msk.msra.mxu0 %vm102_vm0, %v14803_v6 }
0x1ec6   :  { %13596 = vmatprep.subr.bf16.mxu0 %v15742_v27 }
0x1ec8   :  { %12785 = vmatmul.mubr.msk.f32.gmra.mrb[86].mxu0 %vm3013_vm3, %v5389_v15 }
0x1f86   :  { %v16394_v20 = vpop.f32.mrb[76].mxu0 }
0x1f87   :  { %18745 = vst [vmem:[#allocation20_spill] sm:$0xff] %v16394_v20  ;;  %v16396_v48 = vpop.f32.mrb[77].mxu0 }
0x1f88   :  { %18746 = vst [vmem:[#allocation21_spill] sm:$0xff] %v16396_v48 }
0x1f8b   :  { %v16398_v17 = vpop.f32.mrb[78].mxu0 }
0x1f8c   :  { %18747 = vst [vmem:[#allocation22_spill] sm:$0xff] %v16398_v17  ;;  %v16400_v24 = vpop.f32.mrb[79].mxu0 }
0x1f8d   :  { %18748 = vst [vmem:[#allocation23_spill] sm:$0xff] %v16400_v24 }
0x1f8f   :  { %v12737_v50 = vpop.f32.mrb[80].mxu0 }
0x1f90   :  { %v16405_v1 = vadd.f32 %v14804_v0, %v12737_v50  ;;  %v5039_v3 = vpop.f32.mrb[81].mxu0 }
0x1f91   :  { %v16407_v45 = vadd.f32 %v14804_v0, %v5039_v3 }
0x1f92   :  { %v5071_v52 = vand.u32 2147483647, %v16405_v1  ;;  %vm5063_vm4 = vcmp.ne.f32.partialorder %v16405_v1, %v16405_v1 }
0x1f93   :  { %v5070_v63 = vand.u32 2147483647, %v16407_v45  ;;  %v12740_v30 = vpop.f32.mrb[82].mxu0  ;;  %vm5062_vm5 = vcmp.ne.f32.partialorder %v16407_v45, %v16407_v45 }
0x1f94   :  { %v5075_v29 = vsub.f32 0.0, %v5071_v52  ;;  %v16411_v57 = vadd.f32 %v14804_v0, %v12740_v30  ;;  %v5049_v28 = vpop.f32.mrb[83].mxu0 }
0x1f95   :  { %v5074_v58 = vsub.f32 0.0, %v5070_v63  ;;  %v16413_v8 = vadd.f32 %v14804_v0, %v5049_v28 }
0x1f96   :  { %v5080_v25 = vmul.f32 1.442695, %v5075_v29  ;;  %v5073_v54 = vand.u32 2147483647, %v16411_v57  ;;  %vm5065_vm10 = vcmp.ne.f32.partialorder %v16411_v57, %v16411_v57 }
0x1f97   :  { %v5078_v36 = vmul.f32 1.442695, %v5074_v58  ;;  %v5072_v13 = vand.u32 2147483647, %v16413_v8  ;;  %vm5064_vm9 = vcmp.ne.f32.partialorder %v16413_v8, %v16413_v8 }
0x1f98   :  { %14307 = vpow2.f32 %v5080_v25  ;;  %v5077_v10 = vsub.f32 0.0, %v5073_v54 }
0x1f99   :  { %14309 = vpow2.f32 %v5078_v36  ;;  %v5076_v6 = vsub.f32 0.0, %v5072_v13 }
0x1f9a   :  { %v5084_v22 = vmul.f32 1.442695, %v5077_v10 }
0x1f9b   :  { %v5082_v55 = vmul.f32 1.442695, %v5076_v6 }
0x1f9c   :  { %14311 = vpow2.f32 %v5084_v22  ;;  %v5059_v22 = vmax.f32 %v16405_v1, 0.0 }
0x1f9d   :  { %14313 = vpow2.f32 %v5082_v55 }
0x1fa2   :  { %v14308_v35 = vpop.eup %14307 }
0x1fa3   :  { %v14310_v15 = vpop.eup %14309  ;;  %v5095_v50 = vadd.f32 1.0, %v14308_v35  ;;  %v5098_v30 = vmul.f32 -0.5, %v14308_v35  ;;  %v5101_v25 = vand.u32 2147483647, %v14308_v35 }
0x1fa4   :  { %v5086_v3 = vadd.f32 1.0, %v14310_v15  ;;  %v5089_v28 = vmul.f32 -0.5, %v14310_v15  ;;  %v5092_v10 = vand.u32 2147483647, %v14310_v15 }
0x1fa5   :  { %14315 = vlog2.f32 %v5095_v50  ;;  %v5099_v58 = vadd.f32 1.0, %v5098_v30  ;;  %vm5102_vm14 = vcmp.lt.f32.partialorder %v5101_v25, 0.0004427343 }
0x1fa6   :  { %v14312_v0 = vpop.eup %14311  ;;  %14317 = vlog2.f32 %v5086_v3  ;;  %v5090_v36 = vadd.f32 1.0, %v5089_v28  ;;  %vm5093_vm15 = vcmp.lt.f32.partialorder %v5092_v10, 0.0004427343 }
0x1fa7   :  { %v14314_v52 = vpop.eup %14313  ;;  %v5113_v63 = vadd.f32 1.0, %v14312_v0  ;;  %v5116_v54 = vmul.f32 -0.5, %v14312_v0  ;;  %v5100_v2 = vmul.f32 %v14308_v35, %v5099_v58  ;;  %v5119_v7 = vand.u32 2147483647, %v14312_v0 }
0x1fa8   :  { %v5104_v29 = vadd.f32 1.0, %v14314_v52  ;;  %v5107_v13 = vmul.f32 -0.5, %v14314_v52  ;;  %v5091_v26 = vmul.f32 %v14310_v15, %v5090_v36  ;;  %v5061_v36 = vmax.f32 %v16411_v57, 0.0 }
0x1fa9   :  { %14319 = vlog2.f32 %v5113_v63  ;;  %v5117_v3 = vadd.f32 1.0, %v5116_v54  ;;  %v5058_v63 = vmax.f32 %v16407_v45, 0.0  ;;  %vm5120_vm6 = vcmp.lt.f32.partialorder %v5119_v7, 0.0004427343 }
0x1faa   :  { %14321 = vlog2.f32 %v5104_v29  ;;  %v5108_v51 = vadd.f32 1.0, %v5107_v13  ;;  %v5110_v29 = vand.u32 2147483647, %v14314_v52 }
0x1fab   :  { %v5118_v15 = vmul.f32 %v14312_v0, %v5117_v3 }
0x1fac   :  { %v5109_v54 = vmul.f32 %v14314_v52, %v5108_v51  ;;  %vm5111_vm8 = vcmp.lt.f32.partialorder %v5110_v29, 0.0004427343 }
0x1faf   :  { %v14316_v6 = vpop.eup %14315 }
0x1fb0   :  { %v14318_v55 = vpop.eup %14317  ;;  %v5097_v50 = vmul.f32 0.6931472, %v14316_v6 }
0x1fb1   :  { %v5088_v21 = vmul.f32 0.6931472, %v14318_v55 }
0x1fb2   :  { %v5103_v30 = vsel %vm5102_vm14, %v5100_v2, %v5097_v50 }
0x1fb3   :  { %v14320_v28 = vpop.eup %14319  ;;  %v5094_v44 = vsel %vm5093_vm15, %v5091_v26, %v5088_v21  ;;  %v5123_v24 = vadd.f32 %v5103_v30, %v5059_v22  ;;  %v5060_v26 = vmax.f32 %v16413_v8, 0.0 }
0x1fb4   :  { %v14322_v17 = vpop.eup %14321  ;;  %v5122_v35 = vadd.f32 %v5094_v44, %v5058_v63  ;;  %v5115_v58 = vmul.f32 0.6931472, %v14320_v28 }
0x1fb5   :  { %v5106_v25 = vmul.f32 0.6931472, %v14322_v17  ;;  %v5127_v13 = vsel %vm5063_vm4, %v16405_v1, %v5123_v24  ;;  %v14805_v1 = vld [vmem:[%s18666_s20] ss:$0 sm:$0xff] }
0x1fb6   :  { %v5126_v2 = vsel %vm5062_vm5, %v16407_v45, %v5122_v35  ;;  %v5121_v21 = vsel %vm5120_vm6, %v5118_v15, %v5115_v58 }
0x1fb7   :  { %12773 = vmatprep.mubr.f32.mxu1 %v5126_v2  ;;  %v5112_v44 = vsel %vm5111_vm8, %v5109_v54, %v5106_v25  ;;  %v5125_v10 = vadd.f32 %v5121_v21, %v5061_v36 }
0x1fb8   :  { %12774 = vmatmul.mubr.f32.vlgmr.msra.gmra.mrb[56].mxu1 %v5127_v13  ;;  %v5124_v17 = vadd.f32 %v5112_v44, %v5060_v26 }
0x1fb9   :  { %13614 = vmatpush3.bf16.msra.mxu1 %v15820_v56  ;;  %v5129_v51 = vsel %vm5065_vm10, %v16411_v57, %v5125_v10 }
0x1fba   :  { %v5128_v7 = vsel %vm5064_vm9, %v16413_v8, %v5124_v17  ;;  %13616 = vmatprep.subr.bf16.mxu1 %v15830_v4 }
0x1fbb   :  { %12776 = vmatprep.mubr.f32.mxu1 %v5128_v7 }
0x1fbc   :  { %12777 = vmatmul.mubr.f32.gmra.mrb[58].mxu1 %v5129_v51 }
0x1fbd   :  { %13618 = vmatpush3.bf16.msra.mxu1 %v15830_v4 }
0x1fbe   :  { %13620 = vmatprep.subr.bf16.mxu1 %v15840_v16 }
0x1fc1   :  { %13622 = vmatpush3.bf16.msra.mxu1 %v15840_v16 }
0x1fc2   :  { %13624 = vmatprep.subr.bf16.mxu1 %v15850_v62 }
0x1fc5   :  { %13626 = vmatpush3.bf16.msra.mxu1 %v15850_v62 }
0x1fc6   :  { %13636 = vmatprep.subr.bf16.mxu1 %v15931_v40 }
0x208b   :  { %v12775_v24 = vpop.f32.mrb[56].mxu1 }
0x208c   :  { %v16447_v45 = vadd.f32 %v14805_v1, %v12775_v24  ;;  %v5196_v57 = vpop.f32.mrb[57].mxu1  ;;  %v5354_v24 = vpop.permute.xlu1 %5353 }
0x208d   :  { %v16449_v8 = vadd.f32 %v14805_v1, %v5196_v57 }
0x208e   :  { %v5228_v0 = vand.u32 2147483647, %v16447_v45  ;;  %vm5220_vm11 = vcmp.ne.f32.partialorder %v16447_v45, %v16447_v45 }
0x208f   :  { %v5227_v52 = vand.u32 2147483647, %v16449_v8  ;;  %v12778_v6 = vpop.f32.mrb[58].mxu1  ;;  %vm5219_vm14 = vcmp.ne.f32.partialorder %v16449_v8, %v16449_v8 }
0x2090   :  { %v5232_v22 = vsub.f32 0.0, %v5228_v0  ;;  %v16453_v55 = vadd.f32 %v14805_v1, %v12778_v6  ;;  %v5206_v50 = vpop.f32.mrb[59].mxu1 }
0x2091   :  { %v5231_v3 = vsub.f32 0.0, %v5227_v52  ;;  %v16455_v63 = vadd.f32 %v14805_v1, %v5206_v50 }
0x2092   :  { %v5237_v30 = vmul.f32 1.442695, %v5232_v22  ;;  %v5230_v29 = vand.u32 2147483647, %v16453_v55  ;;  %vm5222_vm5 = vcmp.ne.f32.partialorder %v16453_v55, %v16453_v55 }
0x2093   :  { %v5235_v28 = vmul.f32 1.442695, %v5231_v3  ;;  %v5229_v35 = vand.u32 2147483647, %v16455_v63  ;;  %v5364_v3 = vadd.f32 %v5354_v24, %v16162_v47  ;;  %v11521_v24 = vld [vmem:[%s18667_s1 + $0x28] sm:$0xff]  ;;  %vm5221_vm6 = vcmp.ne.f32.partialorder %v16455_v63, %v16455_v63 }
0x2094   :  { %14323 = vpow2.f32 %v5237_v30  ;;  %v5234_v58 = vsub.f32 0.0, %v5230_v29  ;;  %v5216_v30 = vmax.f32 %v16447_v45, 0.0 }
0x2095   :  { %14325 = vpow2.f32 %v5235_v28  ;;  %v5233_v15 = vsub.f32 0.0, %v5229_v35 }
0x2096   :  { %v5241_v25 = vmul.f32 1.442695, %v5234_v58 }
0x2097   :  { %v5239_v54 = vmul.f32 1.442695, %v5233_v15 }
0x2098   :  { %14327 = vpow2.f32 %v5241_v25 }
0x2099   :  { %14329 = vpow2.f32 %v5239_v54 }
0x209e   :  { %v14324_v36 = vpop.eup %14323 }
0x209f   :  { %v14326_v2 = vpop.eup %14325  ;;  %v5252_v26 = vadd.f32 1.0, %v14324_v36  ;;  %v5255_v17 = vmul.f32 -0.5, %v14324_v36  ;;  %v5258_v57 = vand.u32 2147483647, %v14324_v36 }
0x20a0   :  { %v5243_v21 = vadd.f32 1.0, %v14326_v2  ;;  %v5246_v51 = vmul.f32 -0.5, %v14326_v2  ;;  %v5249_v22 = vand.u32 2147483647, %v14326_v2 }
0x20a1   :  { %14331 = vlog2.f32 %v5252_v26  ;;  %v5256_v1 = vadd.f32 1.0, %v5255_v17  ;;  %vm5259_vm12 = vcmp.lt.f32.partialorder %v5258_v57, 0.0004427343  ;;  %v5215_v17 = vmax.f32 %v16449_v8, 0.0 }
0x20a2   :  { %v14328_v13 = vpop.eup %14327  ;;  %14333 = vlog2.f32 %v5243_v21  ;;  %v5247_v52 = vadd.f32 1.0, %v5246_v51  ;;  %v5352_v21 = vpop.permute.xlu0 %5351  ;;  %vm5250_vm13 = vcmp.lt.f32.partialorder %v5249_v22, 0.0004427343  ;;  %v11520_v22 = vld [vmem:[%s18667_s1 + $0x20] sm:$0xff] }
0x20a3   :  { %v14330_v44 = vpop.eup %14329  ;;  %v5270_v10 = vadd.f32 1.0, %v14328_v13  ;;  %v5273_v0 = vmul.f32 -0.5, %v14328_v13  ;;  %v5257_v35 = vmul.f32 %v14324_v36, %v5256_v1  ;;  %v5276_v54 = vand.u32 2147483647, %v14328_v13 }
0x20a4   :  { %v5261_v7 = vadd.f32 1.0, %v14330_v44  ;;  %v5264_v6 = vmul.f32 -0.5, %v14330_v44  ;;  %v5248_v25 = vmul.f32 %v14326_v2, %v5247_v52  ;;  %v5267_v47 = vand.u32 2147483647, %v14330_v44 }
0x20a5   :  { %14335 = vlog2.f32 %v5270_v10  ;;  %v5274_v58 = vadd.f32 1.0, %v5273_v0  ;;  %v5218_v2 = vmax.f32 %v16453_v55, 0.0  ;;  %vm5277_vm15 = vcmp.lt.f32.partialorder %v5276_v54, 0.0004427343 }
0x20a6   :  { %14337 = vlog2.f32 %v5261_v7  ;;  %v5265_v26 = vadd.f32 1.0, %v5264_v6  ;;  %v5217_v6 = vmax.f32 %v16455_v63, 0.0  ;;  %vm5268_vm4 = vcmp.lt.f32.partialorder %v5267_v47, 0.0004427343  ;;  %v5356_v54 = vpop.permute.xlu0 %5355 }
0x20a7   :  { %v5275_v52 = vmul.f32 %v14328_v13, %v5274_v58  ;;  %v5363_v58 = vadd.f32 %v5352_v21, %v16174_v9  ;;  %v11522_v9 = vld [vmem:[%s18667_s1 + $0x30] sm:$0xff] }
0x20ab   :  { %v14332_v50 = vpop.eup %14331 }
0x20ac   :  { %v14334_v29 = vpop.eup %14333  ;;  %v5254_v28 = vmul.f32 0.6931472, %v14332_v50 }
0x20ad   :  { %v5245_v15 = vmul.f32 0.6931472, %v14334_v29  ;;  %v5266_v29 = vmul.f32 %v14330_v44, %v5265_v26 }
0x20ae   :  { %v5260_v10 = vsel %vm5259_vm12, %v5257_v35, %v5254_v28 }
0x20af   :  { %v14336_v7 = vpop.eup %14335  ;;  %v5280_v51 = vadd.f32 %v5260_v10, %v5216_v30  ;;  %v5251_v36 = vsel %vm5250_vm13, %v5248_v25, %v5245_v15  ;;  %v5358_v15 = vpop.permute.xlu1 %5357 }
0x20b0   :  { %v14338_v1 = vpop.eup %14337  ;;  %v5279_v57 = vadd.f32 %v5251_v36, %v5215_v17  ;;  %v5272_v0 = vmul.f32 0.6931472, %v14336_v7  ;;  %v5366_v47 = vadd.f32 %v5358_v15, %v16197_v23 }
0x20b1   :  { %v16478_v50 = vsel %vm5220_vm11, %v16447_v45, %v5280_v51  ;;  %v5263_v30 = vmul.f32 0.6931472, %v14338_v1  ;;  %v11523_v45 = vld [vmem:[%s18667_s1 + $0x38] sm:$0xff] }
0x20b2   :  { %v5373_v28 = vmul.f32 %v11521_v24, %v16478_v50  ;;  %v16482_v35 = vsel %vm5219_vm14, %v16449_v8, %v5279_v57  ;;  %v5278_v13 = vsel %vm5277_vm15, %v5275_v52, %v5272_v0  ;;  %v14806_v24 = vld [vmem:[%s18658_s10] ss:$0 sm:$0xff] }
0x20b3   :  { %v5282_v25 = vadd.f32 %v5278_v13, %v5218_v2  ;;  %v5269_v10 = vsel %vm5268_vm4, %v5266_v29, %v5263_v30  ;;  %v5372_v17 = vmul.f32 %v11520_v22, %v16482_v35 }
0x20b4   :  { %v16489_v44 = vadd.f32 %v5373_v28, %v5364_v3  ;;  %v5281_v8 = vadd.f32 %v5269_v10, %v5217_v6 }
0x20b5   :  { %v16497_v26 = vsel %vm5222_vm5, %v16453_v55, %v5282_v25  ;;  %v16501_v21 = vadd.f32 %v5372_v17, %v5363_v58  ;;  %v5365_v55 = vadd.f32 %v5356_v54, %v16199_v41 }
0x20b6   :  { %11525 = vst.msk [vmem:[%s18655_s21 + $0x48] sm:$0xff] %vm89_vm1, %v16489_v44  ;;  %v16510_v3 = vsel %vm5221_vm6, %v16455_v63, %v5281_v8  ;;  %v5375_v7 = vmul.f32 %v11523_v45, %v16497_v26 }
0x20b7   :  { %11524 = vst.msk [vmem:[%s18655_s21 + $0x40] sm:$0xff] %vm89_vm1, %v16501_v21  ;;  %12789 = vmatprep.mubr.msk.f32.mxu0 %vm89_vm1, %v16501_v21  ;;  %v5374_v23 = vmul.f32 %v11522_v9, %v16510_v3 }
0x20b8   :  { %12790 = vmatmul.mubr.msk.f32.vlgmr.msra.gmra.mrb[84].mxu0 %vm89_vm1, %v16489_v44  ;;  %v16524_v63 = vadd.f32 %v5375_v7, %v5366_v47 }
0x20b9   :  { %v16526_v51 = vadd.f32 %v5374_v23, %v5365_v55  ;;  %13598 = vmatpush3.bf16.msra.mxu0 %v15742_v27 }
0x20ba   :  { %11527 = vst.msk [vmem:[%s18655_s21 + $0x58] sm:$0xff] %vm89_vm1, %v16524_v63  ;;  %13600 = vmatprep.subr.bf16.mxu0 %v15752_v31 }
0x20bb   :  { %11526 = vst.msk [vmem:[%s18655_s21 + $0x50] sm:$0xff] %vm89_vm1, %v16526_v51  ;;  %12792 = vmatprep.mubr.msk.f32.mxu0 %vm89_vm1, %v16526_v51 }
0x20bc   :  { %12793 = vmatmul.mubr.msk.f32.gmra.mrb[86].mxu0 %vm89_vm1, %v16524_v63 }
0x20bd   :  { %13602 = vmatpush3.bf16.msra.mxu0 %v15752_v31 }
0x20be   :  { %13604 = vmatprep.subr.bf16.mxu0 %v15762_v33 }
0x20c1   :  { %13606 = vmatpush3.bf16.msra.mxu0 %v15762_v33 }
0x20c2   :  { %13608 = vmatprep.subr.bf16.mxu0 %v15772_v34 }
0x20c5   :  { %13610 = vmatpush3.bf16.msra.mxu0 %v15772_v34 }
0x20c6   :  { %13628 = vmatprep.subr.bf16.mxu0 %v15901_v61 }
0x218b   :  { %v12791_v41 = vpop.f32.mrb[84].mxu0 }
0x218c   :  { %v16553_v36 = vadd.f32 %v14806_v24, %v12791_v41  ;;  %v5565_v2 = vpop.f32.mrb[85].mxu0 }
0x218d   :  { %v16555_v1 = vadd.f32 %v14806_v24, %v5565_v2 }
0x218e   :  { %v5601_v57 = vand.u32 2147483647, %v16553_v36  ;;  %vm5593_vm10 = vcmp.ne.f32.partialorder %v16553_v36, %v16553_v36 }
0x218f   :  { %v5600_v0 = vand.u32 2147483647, %v16555_v1  ;;  %v12794_v52 = vpop.f32.mrb[86].mxu0  ;;  %vm5592_vm11 = vcmp.ne.f32.partialorder %v16555_v1, %v16555_v1 }
0x2190   :  { %v5605_v6 = vsub.f32 0.0, %v5601_v57  ;;  %v16559_v22 = vadd.f32 %v14806_v24, %v12794_v52  ;;  %v5575_v30 = vpop.f32.mrb[87].mxu0 }
0x2191   :  { %v5604_v29 = vsub.f32 0.0, %v5600_v0  ;;  %v16561_v28 = vadd.f32 %v14806_v24, %v5575_v30 }
0x2192   :  { %v5610_v13 = vmul.f32 1.442695, %v5605_v6  ;;  %v5603_v58 = vand.u32 2147483647, %v16559_v22  ;;  %vm5595_vm15 = vcmp.ne.f32.partialorder %v16559_v22, %v16559_v22 }
0x2193   :  { %v5608_v15 = vmul.f32 1.442695, %v5604_v29  ;;  %v5602_v25 = vand.u32 2147483647, %v16561_v28  ;;  %vm5594_vm14 = vcmp.ne.f32.partialorder %v16561_v28, %v16561_v28 }
0x2194   :  { %14339 = vpow2.f32 %v5610_v13  ;;  %v5607_v10 = vsub.f32 0.0, %v5603_v58 }
0x2195   :  { %14341 = vpow2.f32 %v5608_v15  ;;  %v5606_v17 = vsub.f32 0.0, %v5602_v25  ;;  %v5589_v15 = vmax.f32 %v16553_v36, 0.0 }
0x2196   :  { %v5614_v45 = vmul.f32 1.442695, %v5607_v10 }
0x2197   :  { %v5612_v54 = vmul.f32 1.442695, %v5606_v17 }
0x2198   :  { %14343 = vpow2.f32 %v5614_v45 }
0x2199   :  { %14345 = vpow2.f32 %v5612_v54 }
0x219e   :  { %v14340_v8 = vpop.eup %14339 }
0x219f   :  { %v14342_v9 = vpop.eup %14341  ;;  %v5625_v47 = vadd.f32 1.0, %v14340_v8  ;;  %v5628_v24 = vmul.f32 -0.5, %v14340_v8  ;;  %v5631_v52 = vand.u32 2147483647, %v14340_v8 }
0x21a0   :  { %v5616_v7 = vadd.f32 1.0, %v14342_v9  ;;  %v5619_v57 = vmul.f32 -0.5, %v14342_v9  ;;  %v5622_v13 = vand.u32 2147483647, %v14342_v9 }
0x21a1   :  { %14347 = vlog2.f32 %v5625_v47  ;;  %v5629_v0 = vadd.f32 1.0, %v5628_v24  ;;  %vm5632_vm8 = vcmp.lt.f32.partialorder %v5631_v52, 0.0004427343  ;;  %v5588_v24 = vmax.f32 %v16555_v1, 0.0 }
0x21a2   :  { %v14344_v55 = vpop.eup %14343  ;;  %14349 = vlog2.f32 %v5616_v7  ;;  %v5620_v30 = vadd.f32 1.0, %v5619_v57  ;;  %vm5623_vm9 = vcmp.lt.f32.partialorder %v5622_v13, 0.0004427343  ;;  %v5591_v52 = vmax.f32 %v16559_v22, 0.0 }
0x21a3   :  { %v14346_v23 = vpop.eup %14345  ;;  %v5643_v41 = vadd.f32 1.0, %v14344_v55  ;;  %v5646_v6 = vmul.f32 -0.5, %v14344_v55  ;;  %v5630_v17 = vmul.f32 %v14340_v8, %v5629_v0  ;;  %v5649_v48 = vand.u32 2147483647, %v14344_v55 }
0x21a4   :  { %v5634_v2 = vadd.f32 1.0, %v14346_v23  ;;  %v5637_v29 = vmul.f32 -0.5, %v14346_v23  ;;  %v5621_v47 = vmul.f32 %v14342_v9, %v5620_v30 }
0x21a5   :  { %14351 = vlog2.f32 %v5643_v41  ;;  %v5647_v45 = vadd.f32 1.0, %v5646_v6  ;;  %vm5650_vm12 = vcmp.lt.f32.partialorder %v5649_v48, 0.0004427343 }
0x21a6   :  { %14353 = vlog2.f32 %v5634_v2  ;;  %v5638_v7 = vadd.f32 1.0, %v5637_v29  ;;  %v5640_v2 = vand.u32 2147483647, %v14346_v23  ;;  %v5590_v29 = vmax.f32 %v16561_v28, 0.0 }
0x21a7   :  { %v5648_v9 = vmul.f32 %v14344_v55, %v5647_v45 }
0x21a8   :  { %v5639_v30 = vmul.f32 %v14346_v23, %v5638_v7  ;;  %vm5641_vm13 = vcmp.lt.f32.partialorder %v5640_v2, 0.0004427343 }
0x21ab   :  { %v14348_v58 = vpop.eup %14347 }
0x21ac   :  { %v14350_v25 = vpop.eup %14349  ;;  %v5627_v10 = vmul.f32 0.6931472, %v14348_v58 }
0x21ad   :  { %v5618_v54 = vmul.f32 0.6931472, %v14350_v25 }
0x21ae   :  { %v5633_v41 = vsel %vm5632_vm8, %v5630_v17, %v5627_v10 }
0x21af   :  { %v14352_v57 = vpop.eup %14351  ;;  %v5653_v20 = vadd.f32 %v5633_v41, %v5589_v15  ;;  %v5624_v43 = vsel %vm5623_vm9, %v5621_v47, %v5618_v54 }
0x21b0   :  { %v14354_v37 = vpop.eup %14353  ;;  %v5652_v8 = vadd.f32 %v5624_v43, %v5588_v24  ;;  %v5645_v0 = vmul.f32 0.6931472, %v14352_v57 }
0x21b1   :  { %v5636_v6 = vmul.f32 0.6931472, %v14354_v37  ;;  %v5657_v43 = vsel %vm5593_vm10, %v16553_v36, %v5653_v20 }
0x21b2   :  { %v5656_v13 = vsel %vm5592_vm11, %v16555_v1, %v5652_v8  ;;  %v5651_v58 = vsel %vm5650_vm12, %v5648_v9, %v5645_v0  ;;  %v14807_v1 = vld [vmem:[%s18660_s12] ss:$0 sm:$0xff] }
0x21b3   :  { %12811 = vmatprep.mubr.msk.f32.mxu0 %vm3389_vm7, %v5656_v13  ;;  %v5642_v15 = vsel %vm5641_vm13, %v5639_v30, %v5636_v6  ;;  %v5655_v55 = vadd.f32 %v5651_v58, %v5591_v52 }
0x21b4   :  { %12812 = vmatmul.mubr.msk.f32.vlgmr.msra.gmra.mrb[88].mxu0 %vm3389_vm7, %v5657_v43  ;;  %v5654_v37 = vadd.f32 %v5642_v15, %v5590_v29 }
0x21b5   :  { %13630 = vmatpush3.bf16.msra.mxu0 %v15901_v61  ;;  %v5659_v20 = vsel %vm5595_vm15, %v16559_v22, %v5655_v55 }
0x21b6   :  { %v5658_v48 = vsel %vm5594_vm14, %v16561_v28, %v5654_v37  ;;  %13632 = vmatprep.subr.bf16.mxu0 %v15906_v32 }
0x21b7   :  { %12814 = vmatprep.mubr.msk.f32.mxu0 %vm3389_vm7, %v5658_v48 }
0x21b8   :  { %12815 = vmatmul.mubr.msk.f32.gmra.mrb[90].mxu0 %vm3389_vm7, %v5659_v20 }
0x21b9   :  { %13634 = vmatpush3.bf16.msra.mxu0 %v15906_v32 }
0x21ba   :  { %12853 = vmatprep.subr.msk.mxu0 %vm102_vm0, %v16321_v5 }
0x2287   :  { %v12813_v36 = vpop.f32.mrb[88].mxu0 }
0x2288   :  { %v16596_v28 = vadd.f32 %v14807_v1, %v12813_v36  ;;  %v5738_v23 = vpop.f32.mrb[89].mxu0 }
0x2289   :  { %v16598_v25 = vadd.f32 %v14807_v1, %v5738_v23 }
0x228a   :  { %v5770_v10 = vand.u32 2147483647, %v16596_v28  ;;  %vm5762_vm6 = vcmp.ne.f32.partialorder %v16596_v28, %v16596_v28 }
0x228b   :  { %v5769_v22 = vand.u32 2147483647, %v16598_v25  ;;  %v12816_v17 = vpop.f32.mrb[90].mxu0  ;;  %vm5761_vm8 = vcmp.ne.f32.partialorder %v16598_v25, %v16598_v25 }
0x228c   :  { %v5774_v45 = vsub.f32 0.0, %v5770_v10  ;;  %v16602_v54 = vadd.f32 %v14807_v1, %v12816_v17  ;;  %v5748_v47 = vpop.f32.mrb[91].mxu0 }
0x228d   :  { %v5773_v5 = vsub.f32 0.0, %v5769_v22  ;;  %v16604_v7 = vadd.f32 %v14807_v1, %v5748_v47 }
0x228e   :  { %v5779_v41 = vmul.f32 1.442695, %v5774_v45  ;;  %v5772_v24 = vand.u32 2147483647, %v16602_v54  ;;  %v5758_v45 = vmax.f32 %v16596_v28, 0.0  ;;  %vm5764_vm12 = vcmp.ne.f32.partialorder %v16602_v54, %v16602_v54 }
0x228f   :  { %v5777_v2 = vmul.f32 1.442695, %v5773_v5  ;;  %v5771_v57 = vand.u32 2147483647, %v16604_v7  ;;  %vm5763_vm11 = vcmp.ne.f32.partialorder %v16604_v7, %v16604_v7 }
0x2290   :  { %14355 = vpow2.f32 %v5779_v41  ;;  %v5776_v8 = vsub.f32 0.0, %v5772_v24 }
0x2291   :  { %14357 = vpow2.f32 %v5777_v2  ;;  %v5775_v0 = vsub.f32 0.0, %v5771_v57 }
0x2292   :  { %v5783_v9 = vmul.f32 1.442695, %v5776_v8 }
0x2293   :  { %v5781_v52 = vmul.f32 1.442695, %v5775_v0 }
0x2294   :  { %14359 = vpow2.f32 %v5783_v9 }
0x2295   :  { %14361 = vpow2.f32 %v5781_v52  ;;  %v5757_v52 = vmax.f32 %v16598_v25, 0.0 }
0x229a   :  { %v14356_v6 = vpop.eup %14355 }
0x229b   :  { %v14358_v30 = vpop.eup %14357  ;;  %v5794_v29 = vadd.f32 1.0, %v14356_v6  ;;  %v5797_v55 = vmul.f32 -0.5, %v14356_v6  ;;  %v5800_v36 = vand.u32 2147483647, %v14356_v6 }
0x229c   :  { %v5785_v13 = vadd.f32 1.0, %v14358_v30  ;;  %v5788_v48 = vmul.f32 -0.5, %v14358_v30  ;;  %v5791_v22 = vand.u32 2147483647, %v14358_v30 }
0x229d   :  { %14363 = vlog2.f32 %v5794_v29  ;;  %v5798_v20 = vadd.f32 1.0, %v5797_v55  ;;  %vm5801_vm4 = vcmp.lt.f32.partialorder %v5800_v36, 0.0004427343 }
0x229e   :  { %v14360_v58 = vpop.eup %14359  ;;  %14365 = vlog2.f32 %v5785_v13  ;;  %v5789_v23 = vadd.f32 1.0, %v5788_v48  ;;  %vm5792_vm5 = vcmp.lt.f32.partialorder %v5791_v22, 0.0004427343 }
0x229f   :  { %v14362_v43 = vpop.eup %14361  ;;  %v5812_v15 = vadd.f32 1.0, %v14360_v58  ;;  %v5815_v1 = vmul.f32 -0.5, %v14360_v58  ;;  %v5799_v41 = vmul.f32 %v14356_v6, %v5798_v20  ;;  %v5818_v0 = vand.u32 2147483647, %v14360_v58 }
0x22a0   :  { %v5803_v37 = vadd.f32 1.0, %v14362_v43  ;;  %v5806_v10 = vmul.f32 -0.5, %v14362_v43  ;;  %v5790_v57 = vmul.f32 %v14358_v30, %v5789_v23  ;;  %v5809_v29 = vand.u32 2147483647, %v14362_v43 }
0x22a1   :  { %14367 = vlog2.f32 %v5812_v15  ;;  %v5816_v24 = vadd.f32 1.0, %v5815_v1  ;;  %v5760_v20 = vmax.f32 %v16602_v54, 0.0  ;;  %vm5819_vm9 = vcmp.lt.f32.partialorder %v5818_v0, 0.0004427343 }
0x22a2   :  { %14369 = vlog2.f32 %v5803_v37  ;;  %v5807_v8 = vadd.f32 1.0, %v5806_v10  ;;  %v5759_v23 = vmax.f32 %v16604_v7, 0.0  ;;  %vm5810_vm10 = vcmp.lt.f32.partialorder %v5809_v29, 0.0004427343 }
0x22a3   :  { %v5817_v30 = vmul.f32 %v14360_v58, %v5816_v24 }
0x22a4   :  { %v5808_v1 = vmul.f32 %v14362_v43, %v5807_v8 }
0x22a7   :  { %v14364_v17 = vpop.eup %14363 }
0x22a8   :  { %v14366_v47 = vpop.eup %14365  ;;  %v5796_v5 = vmul.f32 0.6931472, %v14364_v17 }
0x22a9   :  { %v5787_v2 = vmul.f32 0.6931472, %v14366_v47 }
0x22aa   :  { %v5802_v9 = vsel %vm5801_vm4, %v5799_v41, %v5796_v5 }
0x22ab   :  { %v14368_v13 = vpop.eup %14367  ;;  %v5822_v15 = vadd.f32 %v5802_v9, %v5758_v45  ;;  %v5793_v55 = vsel %vm5792_vm5, %v5790_v57, %v5787_v2 }
0x22ac   :  { %v14370_v37 = vpop.eup %14369  ;;  %v5821_v6 = vadd.f32 %v5793_v55, %v5757_v52  ;;  %v5814_v48 = vmul.f32 0.6931472, %v14368_v13 }
0x22ad   :  { %v5805_v36 = vmul.f32 0.6931472, %v14370_v37  ;;  %v5826_v17 = vsel %vm5762_vm6, %v16596_v28, %v5822_v15 }
0x22ae   :  { %v5825_v10 = vsel %vm5761_vm8, %v16598_v25, %v5821_v6  ;;  %v5820_v22 = vsel %vm5819_vm9, %v5817_v30, %v5814_v48 }
0x22af   :  { %12833 = vmatprep.mubr.msk.f32.mxu1 %vm3389_vm7, %v5825_v10  ;;  %v5811_v45 = vsel %vm5810_vm10, %v5808_v1, %v5805_v36  ;;  %v5824_v58 = vadd.f32 %v5820_v22, %v5760_v20 }
0x22b0   :  { %12834 = vmatmul.mubr.msk.f32.vlgmr.msra.gmra.mrb[60].mxu1 %vm3389_vm7, %v5826_v17  ;;  %v5823_v47 = vadd.f32 %v5811_v45, %v5759_v23 }
0x22b1   :  { %13638 = vmatpush3.bf16.msra.mxu1 %v15931_v40  ;;  %v5828_v28 = vsel %vm5764_vm12, %v16602_v54, %v5824_v58 }
0x22b2   :  { %v5827_v25 = vsel %vm5763_vm11, %v16604_v7, %v5823_v47  ;;  %13640 = vmatprep.subr.bf16.mxu1 %v15936_v42  ;;  %v14808_v7 = vld [vmem:[%s18663_s14] ss:$0 sm:$0xff] }
0x22b3   :  { %12836 = vmatprep.mubr.msk.f32.mxu1 %vm3389_vm7, %v5827_v25 }
0x22b4   :  { %12837 = vmatmul.mubr.msk.f32.gmra.mrb[62].mxu1 %vm3389_vm7, %v5828_v28 }
0x22b5   :  { %13642 = vmatpush3.bf16.msra.mxu1 %v15936_v42 }
0x22b6   :  { %13644 = vmatprep.subr.bf16.mxu1 %v16012_v38 }
0x22b9   :  { %13646 = vmatpush3.bf16.msra.mxu1 %v16012_v38 }
0x22ba   :  { %13648 = vmatprep.subr.bf16.mxu1 %v16022_v18 }
0x22bd   :  { %13650 = vmatpush3.bf16.msra.mxu1 %v16022_v18 }
0x22be   :  { %13652 = vmatprep.subr.bf16.mxu1 %v16035_v59 }
0x22c1   :  { %13654 = vmatpush3.bf16.msra.mxu1 %v16035_v59 }
0x22c2   :  { %13656 = vmatprep.subr.bf16.mxu1 %v16040_v60 }
0x22c5   :  { %13658 = vmatpush3.bf16.msra.mxu1 %v16040_v60 }
0x22c6   :  { %13660 = vmatprep.subr.bf16.mxu1 %v16051_v46 }
0x22c9   :  { %13662 = vmatpush3.bf16.msra.mxu1 %v16051_v46 }
0x22ca   :  { %13664 = vmatprep.subr.bf16.mxu1 %v16061_v49 }
0x22cd   :  { %13666 = vmatpush3.bf16.msra.mxu1 %v16061_v49 }
0x22ce   :  { %13684 = vmatprep.subr.bf16.mxu1 %v15820_v56 }
0x2383   :  { %v12835_v54 = vpop.f32.mrb[60].mxu1 }
0x2384   :  { %v16650_v43 = vadd.f32 %v14808_v7, %v12835_v54  ;;  %v5907_v5 = vpop.f32.mrb[61].mxu1 }
0x2385   :  { %v16652_v41 = vadd.f32 %v14808_v7, %v5907_v5 }
0x2386   :  { %18749 = vst [vmem:[#allocation24_spill] sm:$0xff] %v16650_v43  ;;  %v5939_v24 = vand.u32 2147483647, %v16650_v43  ;;  %v6466_v2 = vmul.f32 0.1, %v16650_v43  ;;  %vm5931_vm15 = vcmp.ne.f32.partialorder %v16650_v43, %v16650_v43 }
0x2387   :  { %18750 = vst [vmem:[#allocation25_spill] sm:$0xff] %v16652_v41  ;;  %v5938_v57 = vand.u32 2147483647, %v16652_v41  ;;  %v12838_v8 = vpop.f32.mrb[62].mxu1  ;;  %v6465_v0 = vmul.f32 0.1, %v16652_v41  ;;  %vm5930_vm4 = vcmp.ne.f32.partialorder %v16652_v41, %v16652_v41 }
0x2388   :  { %v5943_v9 = vsub.f32 0.0, %v5939_v24  ;;  %v16658_v52 = vadd.f32 %v14808_v7, %v12838_v8  ;;  %6475 = vrot.lane.b32.xlu1 %v6466_v2, %s14847_s4  ;;  %v5917_v29 = vpop.f32.mrb[63].mxu1 }
0x2389   :  { %v5942_v13 = vsub.f32 0.0, %v5938_v57  ;;  %v16661_v15 = vadd.f32 %v14808_v7, %v5917_v29  ;;  %6473 = vrot.lane.b32.xlu0 %v6465_v0, %s14847_s4 }
0x238a   :  { %18751 = vst [vmem:[#allocation26_spill] sm:$0xff] %v16658_v52  ;;  %v5948_v55 = vmul.f32 1.442695, %v5943_v9  ;;  %v5941_v37 = vand.u32 2147483647, %v16658_v52  ;;  %vm5933_vm9 = vcmp.ne.f32.partialorder %v16658_v52, %v16658_v52 }
0x238b   :  { %18752 = vst [vmem:[#allocation27_spill] sm:$0xff] %v16661_v15  ;;  %v6468_v6 = vmul.f32 0.1, %v16658_v52  ;;  %v5946_v48 = vmul.f32 1.442695, %v5942_v13  ;;  %v5927_v13 = vmax.f32 %v16650_v43, 0.0  ;;  %vm5932_vm8 = vcmp.ne.f32.partialorder %v16661_v15, %v16661_v15 }
0x238c   :  { %v5940_v30 = vand.u32 2147483647, %v16661_v15  ;;  %v6467_v20 = vmul.f32 0.1, %v16661_v15  ;;  %14371 = vpow2.f32 %v5948_v55  ;;  %v5945_v36 = vsub.f32 0.0, %v5941_v37 }
0x238d   :  { %6479 = vrot.lane.b32.xlu1 %v6468_v6, %s14847_s4  ;;  %14373 = vpow2.f32 %v5946_v48 }
0x238e   :  { %v5944_v1 = vsub.f32 0.0, %v5940_v30  ;;  %6477 = vrot.lane.b32.xlu0 %v6467_v20, %s14847_s4  ;;  %v5952_v23 = vmul.f32 1.442695, %v5945_v36 }
0x2390   :  { %v5950_v10 = vmul.f32 1.442695, %v5944_v1  ;;  %14375 = vpow2.f32 %v5952_v23  ;;  %v5926_v23 = vmax.f32 %v16652_v41, 0.0 }
0x2392   :  { %14377 = vpow2.f32 %v5950_v10 }
0x2396   :  { %v14372_v22 = vpop.eup %14371 }
0x2397   :  { %v14374_v17 = vpop.eup %14373  ;;  %v5963_v45 = vadd.f32 1.0, %v14372_v22  ;;  %v5966_v54 = vmul.f32 -0.5, %v14372_v22  ;;  %v5969_v2 = vand.u32 2147483647, %v14372_v22 }
0x2398   :  { %v5954_v58 = vadd.f32 1.0, %v14374_v17  ;;  %v5957_v5 = vmul.f32 -0.5, %v14374_v17  ;;  %v5960_v9 = vand.u32 2147483647, %v14374_v17 }
0x2399   :  { %14379 = vlog2.f32 %v5963_v45  ;;  %v5967_v24 = vadd.f32 1.0, %v5966_v54  ;;  %vm5970_vm13 = vcmp.lt.f32.partialorder %v5969_v2, 0.0004427343 }
0x239a   :  { %v14376_v47 = vpop.eup %14375  ;;  %14381 = vlog2.f32 %v5954_v58  ;;  %v5958_v8 = vadd.f32 1.0, %v5957_v5  ;;  %vm5961_vm14 = vcmp.lt.f32.partialorder %v5960_v9, 0.0004427343 }
0x239b   :  { %v5981_v28 = vadd.f32 1.0, %v14376_v47  ;;  %v5984_v57 = vmul.f32 -0.5, %v14376_v47  ;;  %v5968_v6 = vmul.f32 %v14372_v22, %v5967_v24  ;;  %v5987_v1 = vand.u32 2147483647, %v14376_v47 }
0x239c   :  { %v14378_v25 = vpop.eup %14377  ;;  %v5959_v20 = vmul.f32 %v14374_v17, %v5958_v8 }
0x239d   :  { %v5972_v7 = vadd.f32 1.0, %v14378_v25  ;;  %14383 = vlog2.f32 %v5981_v28  ;;  %v5975_v0 = vmul.f32 -0.5, %v14378_v25  ;;  %v5985_v48 = vadd.f32 1.0, %v5984_v57 }
0x239e   :  { %v5978_v45 = vand.u32 2147483647, %v14378_v25  ;;  %v5929_v57 = vmax.f32 %v16658_v52, 0.0  ;;  %vm5988_vm5 = vcmp.lt.f32.partialorder %v5987_v1, 0.0004427343  ;;  %v6510_v1 = vld [vmem:[#allocation3 + $0x90] sm:$0xff] }
0x239f   :  { %14385 = vlog2.f32 %v5972_v7  ;;  %v5976_v36 = vadd.f32 1.0, %v5975_v0  ;;  %v5986_v17 = vmul.f32 %v14376_v47, %v5985_v48  ;;  %v5928_v0 = vmax.f32 %v16661_v15, 0.0 }
0x23a0   :  { %vm5979_vm6 = vcmp.lt.f32.partialorder %v5978_v45, 0.0004427343 }
0x23a1   :  { %v5977_v2 = vmul.f32 %v14378_v25, %v5976_v36  ;;  %v6509_v36 = vld [vmem:[#allocation3 + $0x88] sm:$0xff] }
0x23a3   :  { %v14380_v29 = vpop.eup %14379 }
0x23a4   :  { %v14382_v55 = vpop.eup %14381  ;;  %v5965_v37 = vmul.f32 0.6931472, %v14380_v29 }
0x23a5   :  { %v5956_v30 = vmul.f32 0.6931472, %v14382_v55  ;;  %v16688_v55 = vld [vmem:[%s18662_s17] sm:$0xf] }
0x23a6   :  { %v5971_v10 = vsel %vm5970_vm13, %v5968_v6, %v5965_v37  ;;  %v14810_v6 = vld [vmem:[%s18727_s5] sm:$0xff] }
0x23a7   :  { %v14384_v58 = vpop.eup %14383  ;;  %v5962_v28 = vsel %vm5961_vm14, %v5959_v20, %v5956_v30  ;;  %v5991_v54 = vadd.f32 %v5971_v10, %v5927_v13  ;;  %v14811_v30 = vld [vmem:[%s18728_s30] sm:$0xf] }
0x23a8   :  { %v5990_v22 = vadd.f32 %v5962_v28, %v5926_v23  ;;  %v5983_v5 = vmul.f32 0.6931472, %v14384_v58  ;;  %v6508_v20 = vld [vmem:[#allocation3 + $0x80] sm:$0xff]  ;;  %v6511_v23 = vld [vmem:[#allocation3 + $0x98] sm:$0xff] }
0x23a9   :  { %v14386_v7 = vpop.eup %14385  ;;  %v5995_v29 = vsel %vm5931_vm15, %v16650_v43, %v5991_v54 }
0x23aa   :  { %v5974_v24 = vmul.f32 0.6931472, %v14386_v7  ;;  %v5994_v8 = vsel %vm5930_vm4, %v16652_v41, %v5990_v22  ;;  %v5989_v9 = vsel %vm5988_vm5, %v5986_v17, %v5983_v5  ;;  %v14812_v7 = vld [vmem:[%s18665_s18] ss:$0 sm:$0xff] }
0x23ab   :  { %12847 = vmatprep.mubr.msk.f32.mxu0 %vm197_vm2, %v5994_v8  ;;  %v5993_v47 = vadd.f32 %v5989_v9, %v5929_v57 }
0x23ac   :  { %v5980_v13 = vsel %vm5979_vm6, %v5977_v2, %v5974_v24  ;;  %12848 = vmatmul.mubr.msk.f32.vlgmr.msra.gmra.mrb[92].mxu0 %vm197_vm2, %v5995_v29 }
0x23ad   :  { %v5992_v25 = vadd.f32 %v5980_v13, %v5928_v0  ;;  %12854 = vmatpush3.msk.msra.mxu0 %vm102_vm0, %v16688_v55  ;;  %v5997_v48 = vsel %vm5933_vm9, %v16658_v52, %v5993_v47 }
0x23ae   :  { %12899 = vmatprep.subr.mxu0 %v14810_v6 }
0x23af   :  { %v5996_v37 = vsel %vm5932_vm8, %v16661_v15, %v5992_v25 }
0x23b0   :  { %12850 = vmatprep.mubr.msk.f32.mxu0 %vm197_vm2, %v5996_v37 }
0x23b1   :  { %12851 = vmatmul.mubr.msk.f32.gmra.mrb[94].mxu0 %vm197_vm2, %v5997_v48 }
0x23b2   :  { %12855 = vmatprep.mubr.msk.f32.mxu0 %vm89_vm1, %v16501_v21 }
0x23b5   :  { %12856 = vmatmul.mubr.msk.f32.vlgmr.msra.gmra.mrb[96].mxu0 %vm89_vm1, %v16489_v44 }
0x23b6   :  { %12858 = vmatprep.mubr.msk.f32.mxu0 %vm89_vm1, %v16526_v51  ;;  %12900 = vmatpush3.msra.mxu0 %v14810_v6 }
0x23b7   :  { %12907 = vmatprep.subr.msk.mxu0 %vm102_vm0, %v14811_v30 }
0x23b9   :  { %12859 = vmatmul.mubr.msk.f32.gmra.mrb[98].mxu0 %vm89_vm1, %v16524_v63 }
0x23ba   :  { %12901 = vmatprep.mubr.msk.f32.mxu0 %vm3013_vm3, %v6508_v20 }
0x23bd   :  { %12902 = vmatmul.mubr.msk.f32.vlgmr.msra.gmra.mrb[100].mxu0 %vm3013_vm3, %v6509_v36 }
0x23be   :  { %12904 = vmatprep.mubr.msk.f32.mxu0 %vm3013_vm3, %v6510_v1  ;;  %12908 = vmatpush3.msk.msra.mxu0 %vm102_vm0, %v14811_v30 }
0x23bf   :  { %13668 = vmatprep.subr.bf16.mxu0 %v15742_v27 }
0x23c1   :  { %12905 = vmatmul.mubr.msk.f32.gmra.mrb[102].mxu0 %vm3013_vm3, %v6511_v23 }
0x247f   :  { %v16721_v10 = vpop.f32.mrb[92].mxu0 }
0x2480   :  { %18753 = vst [vmem:[#allocation28_spill] sm:$0xff] %v16721_v10  ;;  %v16723_v45 = vpop.f32.mrb[93].mxu0 }
0x2481   :  { %18754 = vst [vmem:[#allocation29_spill] sm:$0xff] %v16723_v45 }
0x2484   :  { %v16725_v58 = vpop.f32.mrb[94].mxu0 }
0x2485   :  { %18755 = vst [vmem:[#allocation30_spill] sm:$0xff] %v16725_v58  ;;  %v16727_v28 = vpop.f32.mrb[95].mxu0 }
0x2486   :  { %18756 = vst [vmem:[#allocation31_spill] sm:$0xff] %v16727_v28 }
0x2488   :  { %v12857_v54 = vpop.f32.mrb[96].mxu0 }
0x2489   :  { %v16732_v22 = vadd.f32 %v14812_v7, %v12857_v54  ;;  %v6161_v5 = vpop.f32.mrb[97].mxu0 }
0x248a   :  { %v16734_v17 = vadd.f32 %v14812_v7, %v6161_v5 }
0x248b   :  { %v6193_v24 = vand.u32 2147483647, %v16732_v22  ;;  %vm6185_vm12 = vcmp.ne.f32.partialorder %v16732_v22, %v16732_v22 }
0x248c   :  { %v6192_v2 = vand.u32 2147483647, %v16734_v17  ;;  %v12860_v57 = vpop.f32.mrb[98].mxu0  ;;  %vm6184_vm13 = vcmp.ne.f32.partialorder %v16734_v17, %v16734_v17 }
0x248d   :  { %v6197_v8 = vsub.f32 0.0, %v6193_v24  ;;  %v16738_v0 = vadd.f32 %v14812_v7, %v12860_v57  ;;  %v6171_v9 = vpop.f32.mrb[99].mxu0 }
0x248e   :  { %v6196_v29 = vsub.f32 0.0, %v6192_v2  ;;  %v16740_v13 = vadd.f32 %v14812_v7, %v6171_v9 }
0x248f   :  { %v6202_v47 = vmul.f32 1.442695, %v6197_v8  ;;  %v6195_v25 = vand.u32 2147483647, %v16738_v0  ;;  %vm6187_vm5 = vcmp.ne.f32.partialorder %v16738_v0, %v16738_v0 }
0x2490   :  { %v6200_v37 = vmul.f32 1.442695, %v6196_v29  ;;  %v6194_v6 = vand.u32 2147483647, %v16740_v13  ;;  %vm6186_vm4 = vcmp.ne.f32.partialorder %v16740_v13, %v16740_v13 }
0x2491   :  { %14387 = vpow2.f32 %v6202_v47  ;;  %v6199_v48 = vsub.f32 0.0, %v6195_v25 }
0x2492   :  { %14389 = vpow2.f32 %v6200_v37  ;;  %v6198_v30 = vsub.f32 0.0, %v6194_v6 }
0x2493   :  { %v6206_v20 = vmul.f32 1.442695, %v6199_v48 }
0x2494   :  { %v6204_v36 = vmul.f32 1.442695, %v6198_v30 }
0x2495   :  { %14391 = vpow2.f32 %v6206_v20  ;;  %v6181_v20 = vmax.f32 %v16732_v22, 0.0 }
0x2496   :  { %14393 = vpow2.f32 %v6204_v36 }
0x249b   :  { %v14388_v1 = vpop.eup %14387 }
0x249c   :  { %v14390_v23 = vpop.eup %14389  ;;  %v6217_v54 = vadd.f32 1.0, %v14388_v1  ;;  %v6220_v57 = vmul.f32 -0.5, %v14388_v1  ;;  %v6223_v47 = vand.u32 2147483647, %v14388_v1 }
0x249d   :  { %v6208_v5 = vadd.f32 1.0, %v14390_v23  ;;  %v6211_v9 = vmul.f32 -0.5, %v14390_v23  ;;  %v6214_v48 = vand.u32 2147483647, %v14390_v23 }
0x249e   :  { %14395 = vlog2.f32 %v6217_v54  ;;  %v6221_v29 = vadd.f32 1.0, %v6220_v57  ;;  %vm6224_vm10 = vcmp.lt.f32.partialorder %v6223_v47, 0.0004427343 }
0x249f   :  { %v14392_v7 = vpop.eup %14391  ;;  %14397 = vlog2.f32 %v6208_v5  ;;  %v6212_v37 = vadd.f32 1.0, %v6211_v9  ;;  %vm6215_vm11 = vcmp.lt.f32.partialorder %v6214_v48, 0.0004427343 }
0x24a0   :  { %v14394_v24 = vpop.eup %14393  ;;  %v6235_v2 = vadd.f32 1.0, %v14392_v7  ;;  %v6238_v25 = vmul.f32 -0.5, %v14392_v7  ;;  %v6222_v15 = vmul.f32 %v14388_v1, %v6221_v29  ;;  %v6241_v28 = vand.u32 2147483647, %v14392_v7 }
0x24a1   :  { %v6226_v8 = vadd.f32 1.0, %v14394_v24  ;;  %v6229_v6 = vmul.f32 -0.5, %v14394_v24  ;;  %v6213_v41 = vmul.f32 %v14390_v23, %v6212_v37  ;;  %v6183_v37 = vmax.f32 %v16738_v0, 0.0 }
0x24a2   :  { %14399 = vlog2.f32 %v6235_v2  ;;  %v6239_v5 = vadd.f32 1.0, %v6238_v25  ;;  %v6180_v2 = vmax.f32 %v16734_v17, 0.0  ;;  %vm6242_vm14 = vcmp.lt.f32.partialorder %v6241_v28, 0.0004427343 }
0x24a3   :  { %14401 = vlog2.f32 %v6226_v8  ;;  %v6230_v43 = vadd.f32 1.0, %v6229_v6  ;;  %v6232_v8 = vand.u32 2147483647, %v14394_v24 }
0x24a4   :  { %v6240_v23 = vmul.f32 %v14392_v7, %v6239_v5 }
0x24a5   :  { %v6231_v25 = vmul.f32 %v14394_v24, %v6230_v43  ;;  %vm6233_vm15 = vcmp.lt.f32.partialorder %v6232_v8, 0.0004427343 }
0x24a8   :  { %v14396_v30 = vpop.eup %14395 }
0x24a9   :  { %v14398_v36 = vpop.eup %14397  ;;  %v6219_v54 = vmul.f32 0.6931472, %v14396_v30 }
0x24aa   :  { %v6210_v52 = vmul.f32 0.6931472, %v14398_v36 }
0x24ab   :  { %v6225_v57 = vsel %vm6224_vm10, %v6222_v15, %v6219_v54 }
0x24ac   :  { %v14400_v9 = vpop.eup %14399  ;;  %v6216_v58 = vsel %vm6215_vm11, %v6213_v41, %v6210_v52  ;;  %v6245_v45 = vadd.f32 %v6225_v57, %v6181_v20  ;;  %v6182_v41 = vmax.f32 %v16740_v13, 0.0 }
0x24ad   :  { %v14402_v10 = vpop.eup %14401  ;;  %v6244_v1 = vadd.f32 %v6216_v58, %v6180_v2  ;;  %v6237_v29 = vmul.f32 0.6931472, %v14400_v9 }
0x24ae   :  { %v6228_v47 = vmul.f32 0.6931472, %v14402_v10  ;;  %v6249_v6 = vsel %vm6185_vm12, %v16732_v22, %v6245_v45  ;;  %v14813_v22 = vld [vmem:[%s18666_s20] ss:$0 sm:$0xff] }
0x24af   :  { %v6248_v15 = vsel %vm6184_vm13, %v16734_v17, %v6244_v1  ;;  %v6243_v52 = vsel %vm6242_vm14, %v6240_v23, %v6237_v29 }
0x24b0   :  { %12893 = vmatprep.mubr.f32.mxu1 %v6248_v15  ;;  %v6234_v58 = vsel %vm6233_vm15, %v6231_v25, %v6228_v47  ;;  %v6247_v48 = vadd.f32 %v6243_v52, %v6183_v37 }
0x24b1   :  { %12894 = vmatmul.mubr.f32.vlgmr.msra.gmra.mrb[64].mxu1 %v6249_v6  ;;  %v6246_v10 = vadd.f32 %v6234_v58, %v6182_v41 }
0x24b2   :  { %13686 = vmatpush3.bf16.msra.mxu1 %v15820_v56  ;;  %v6251_v28 = vsel %vm6187_vm5, %v16738_v0, %v6247_v48 }
0x24b3   :  { %v6250_v43 = vsel %vm6186_vm4, %v16740_v13, %v6246_v10  ;;  %13688 = vmatprep.subr.bf16.mxu1 %v15830_v4 }
0x24b4   :  { %12896 = vmatprep.mubr.f32.mxu1 %v6250_v43 }
0x24b5   :  { %12897 = vmatmul.mubr.f32.gmra.mrb[66].mxu1 %v6251_v28 }
0x24b6   :  { %13690 = vmatpush3.bf16.msra.mxu1 %v15830_v4 }
0x24b7   :  { %13692 = vmatprep.subr.bf16.mxu1 %v15840_v16 }
0x24ba   :  { %13694 = vmatpush3.bf16.msra.mxu1 %v15840_v16 }
0x24bb   :  { %13696 = vmatprep.subr.bf16.mxu1 %v15850_v62 }
0x24be   :  { %13698 = vmatpush3.bf16.msra.mxu1 %v15850_v62 }
0x24bf   :  { %13708 = vmatprep.subr.bf16.mxu1 %v15931_v40 }
0x2584   :  { %v12895_v45 = vpop.f32.mrb[64].mxu1 }
0x2585   :  { %v16774_v17 = vadd.f32 %v14813_v22, %v12895_v45  ;;  %v6318_v0 = vpop.f32.mrb[65].mxu1  ;;  %v6476_v45 = vpop.permute.xlu1 %6475 }
0x2586   :  { %v16776_v13 = vadd.f32 %v14813_v22, %v6318_v0 }
0x2587   :  { %v6350_v7 = vand.u32 2147483647, %v16774_v17  ;;  %vm6342_vm6 = vcmp.ne.f32.partialorder %v16774_v17, %v16774_v17 }
0x2588   :  { %v6349_v24 = vand.u32 2147483647, %v16776_v13  ;;  %v12898_v30 = vpop.f32.mrb[66].mxu1  ;;  %vm6341_vm10 = vcmp.ne.f32.partialorder %v16776_v13, %v16776_v13 }
0x2589   :  { %v6354_v20 = vsub.f32 0.0, %v6350_v7  ;;  %v16780_v36 = vadd.f32 %v14813_v22, %v12898_v30  ;;  %v6328_v54 = vpop.f32.mrb[67].mxu1 }
0x258a   :  { %v6353_v5 = vsub.f32 0.0, %v6349_v24  ;;  %v16782_v2 = vadd.f32 %v14813_v22, %v6328_v54 }
0x258b   :  { %v6359_v57 = vmul.f32 1.442695, %v6354_v20  ;;  %v6352_v8 = vand.u32 2147483647, %v16780_v36  ;;  %vm6344_vm13 = vcmp.ne.f32.partialorder %v16780_v36, %v16780_v36 }
0x258c   :  { %v6357_v9 = vmul.f32 1.442695, %v6353_v5  ;;  %v6351_v1 = vand.u32 2147483647, %v16782_v2  ;;  %v6486_v5 = vadd.f32 %v6476_v45, %v16489_v44  ;;  %v11555_v45 = vld [vmem:[%s18667_s1 + $0x48] sm:$0xff]  ;;  %vm6343_vm14 = vcmp.ne.f32.partialorder %v16782_v2, %v16782_v2 }
0x258d   :  { %14403 = vpow2.f32 %v6359_v57  ;;  %v6356_v29 = vsub.f32 0.0, %v6352_v8  ;;  %v6338_v57 = vmax.f32 %v16774_v17, 0.0 }
0x258e   :  { %14405 = vpow2.f32 %v6357_v9  ;;  %v6355_v23 = vsub.f32 0.0, %v6351_v1 }
0x258f   :  { %v6363_v47 = vmul.f32 1.442695, %v6356_v29 }
0x2590   :  { %v6361_v25 = vmul.f32 1.442695, %v6355_v23 }
0x2591   :  { %14407 = vpow2.f32 %v6363_v47 }
0x2592   :  { %14409 = vpow2.f32 %v6361_v25 }
0x2597   :  { %v14404_v37 = vpop.eup %14403 }
0x2598   :  { %v14406_v15 = vpop.eup %14405  ;;  %v6374_v41 = vadd.f32 1.0, %v14404_v37  ;;  %v6377_v10 = vmul.f32 -0.5, %v14404_v37  ;;  %v6380_v0 = vand.u32 2147483647, %v14404_v37 }
0x2599   :  { %v6365_v52 = vadd.f32 1.0, %v14406_v15  ;;  %v6368_v28 = vmul.f32 -0.5, %v14406_v15  ;;  %v6371_v20 = vand.u32 2147483647, %v14406_v15 }
0x259a   :  { %14411 = vlog2.f32 %v6374_v41  ;;  %v6378_v22 = vadd.f32 1.0, %v6377_v10  ;;  %vm6381_vm8 = vcmp.lt.f32.partialorder %v6380_v0, 0.0004427343  ;;  %v6337_v10 = vmax.f32 %v16776_v13, 0.0 }
0x259b   :  { %v14408_v6 = vpop.eup %14407  ;;  %14413 = vlog2.f32 %v6365_v52  ;;  %v6369_v24 = vadd.f32 1.0, %v6368_v28  ;;  %v6474_v52 = vpop.permute.xlu0 %6473  ;;  %vm6372_vm9 = vcmp.lt.f32.partialorder %v6371_v20, 0.0004427343  ;;  %v11554_v20 = vld [vmem:[%s18667_s1 + $0x40] sm:$0xff] }
0x259c   :  { %v14410_v58 = vpop.eup %14409  ;;  %v6392_v48 = vadd.f32 1.0, %v14408_v6  ;;  %v6395_v7 = vmul.f32 -0.5, %v14408_v6  ;;  %v6379_v1 = vmul.f32 %v14404_v37, %v6378_v22  ;;  %v6398_v25 = vand.u32 2147483647, %v14408_v6 }
0x259d   :  { %v6383_v43 = vadd.f32 1.0, %v14410_v58  ;;  %v6386_v30 = vmul.f32 -0.5, %v14410_v58  ;;  %v6370_v47 = vmul.f32 %v14406_v15, %v6369_v24  ;;  %v6389_v44 = vand.u32 2147483647, %v14410_v58 }
0x259e   :  { %14415 = vlog2.f32 %v6392_v48  ;;  %v6396_v29 = vadd.f32 1.0, %v6395_v7  ;;  %v6340_v15 = vmax.f32 %v16780_v36, 0.0  ;;  %vm6399_vm11 = vcmp.lt.f32.partialorder %v6398_v25, 0.0004427343 }
0x259f   :  { %14417 = vlog2.f32 %v6383_v43  ;;  %v6387_v41 = vadd.f32 1.0, %v6386_v30  ;;  %v6339_v30 = vmax.f32 %v16782_v2, 0.0  ;;  %vm6390_vm12 = vcmp.lt.f32.partialorder %v6389_v44, 0.0004427343  ;;  %v6478_v25 = vpop.permute.xlu0 %6477 }
0x25a0   :  { %v6397_v24 = vmul.f32 %v14408_v6, %v6396_v29  ;;  %v6485_v29 = vadd.f32 %v6474_v52, %v16501_v21  ;;  %v11556_v21 = vld [vmem:[%s18667_s1 + $0x50] sm:$0xff] }
0x25a4   :  { %v14412_v54 = vpop.eup %14411 }
0x25a5   :  { %v14414_v8 = vpop.eup %14413  ;;  %v6376_v9 = vmul.f32 0.6931472, %v14412_v54 }
0x25a6   :  { %v6367_v23 = vmul.f32 0.6931472, %v14414_v8  ;;  %v6388_v8 = vmul.f32 %v14410_v58, %v6387_v41 }
0x25a7   :  { %v6382_v48 = vsel %vm6381_vm8, %v6379_v1, %v6376_v9 }
0x25a8   :  { %v14416_v43 = vpop.eup %14415  ;;  %v6402_v28 = vadd.f32 %v6382_v48, %v6338_v57  ;;  %v6373_v37 = vsel %vm6372_vm9, %v6370_v47, %v6367_v23  ;;  %v6480_v23 = vpop.permute.xlu1 %6479 }
0x25a9   :  { %v14418_v22 = vpop.eup %14417  ;;  %v6401_v0 = vadd.f32 %v6373_v37, %v6337_v10  ;;  %v6394_v7 = vmul.f32 0.6931472, %v14416_v43  ;;  %v6488_v44 = vadd.f32 %v6480_v23, %v16524_v63 }
0x25aa   :  { %v16805_v54 = vsel %vm6342_vm6, %v16774_v17, %v6402_v28  ;;  %v6385_v57 = vmul.f32 0.6931472, %v14418_v22  ;;  %v11557_v17 = vld [vmem:[%s18667_s1 + $0x58] sm:$0xff] }
0x25ab   :  { %v6495_v9 = vmul.f32 %v11555_v45, %v16805_v54  ;;  %v16809_v1 = vsel %vm6341_vm10, %v16776_v13, %v6401_v0  ;;  %v6400_v6 = vsel %vm6399_vm11, %v6397_v24, %v6394_v7  ;;  %v14814_v45 = vld [vmem:[%s18658_s10] ss:$0 sm:$0xff] }
0x25ac   :  { %v6404_v47 = vadd.f32 %v6400_v6, %v6340_v15  ;;  %v6391_v48 = vsel %vm6390_vm12, %v6388_v8, %v6385_v57  ;;  %v6494_v10 = vmul.f32 %v11554_v20, %v16809_v1 }
0x25ad   :  { %v16816_v58 = vadd.f32 %v6495_v9, %v6486_v5  ;;  %v6403_v13 = vadd.f32 %v6391_v48, %v6339_v30 }
0x25ae   :  { %v16824_v41 = vsel %vm6344_vm13, %v16780_v36, %v6404_v47  ;;  %v16828_v52 = vadd.f32 %v6494_v10, %v6485_v29  ;;  %v6487_v36 = vadd.f32 %v6478_v25, %v16526_v51 }
0x25af   :  { %18757 = vst [vmem:[#allocation32_spill] sm:$0xff] %v16824_v41  ;;  %11559 = vst.msk [vmem:[%s18655_s21 + $0x68] sm:$0xff] %vm89_vm1, %v16816_v58  ;;  %v16837_v5 = vsel %vm6343_vm14, %v16782_v2, %v6403_v13  ;;  %v6497_v43 = vmul.f32 %v11557_v17, %v16824_v41 }
0x25b0   :  { %18758 = vst [vmem:[#allocation33_spill] sm:$0xff] %v16837_v5  ;;  %11558 = vst.msk [vmem:[%s18655_s21 + $0x60] sm:$0xff] %vm89_vm1, %v16828_v52  ;;  %12909 = vmatprep.mubr.msk.f32.mxu0 %vm89_vm1, %v16828_v52  ;;  %v6496_v63 = vmul.f32 %v11556_v21, %v16837_v5 }
0x25b1   :  { %12910 = vmatmul.mubr.msk.f32.vlgmr.msra.gmra.mrb[100].mxu0 %vm89_vm1, %v16816_v58  ;;  %v16851_v2 = vadd.f32 %v6497_v43, %v6488_v44 }
0x25b2   :  { %v16853_v28 = vadd.f32 %v6496_v63, %v6487_v36  ;;  %13670 = vmatpush3.bf16.msra.mxu0 %v15742_v27 }
0x25b3   :  { %11561 = vst.msk [vmem:[%s18655_s21 + $0x78] sm:$0xff] %vm89_vm1, %v16851_v2  ;;  %13672 = vmatprep.subr.bf16.mxu0 %v15752_v31 }
0x25b4   :  { %11560 = vst.msk [vmem:[%s18655_s21 + $0x70] sm:$0xff] %vm89_vm1, %v16853_v28  ;;  %12912 = vmatprep.mubr.msk.f32.mxu0 %vm89_vm1, %v16853_v28 }
0x25b5   :  { %12913 = vmatmul.mubr.msk.f32.gmra.mrb[102].mxu0 %vm89_vm1, %v16851_v2 }
0x25b6   :  { %13674 = vmatpush3.bf16.msra.mxu0 %v15752_v31 }
0x25b7   :  { %13676 = vmatprep.subr.bf16.mxu0 %v15762_v33 }
0x25ba   :  { %13678 = vmatpush3.bf16.msra.mxu0 %v15762_v33 }
0x25bb   :  { %13680 = vmatprep.subr.bf16.mxu0 %v15772_v34 }
0x25be   :  { %13682 = vmatpush3.bf16.msra.mxu0 %v15772_v34 }
0x25bf   :  { %13700 = vmatprep.subr.bf16.mxu0 %v15901_v61 }
0x2684   :  { %v12911_v51 = vpop.f32.mrb[100].mxu0 }
0x2685   :  { %v16880_v37 = vadd.f32 %v14814_v45, %v12911_v51  ;;  %v6687_v15 = vpop.f32.mrb[101].mxu0 }
0x2686   :  { %v16882_v22 = vadd.f32 %v14814_v45, %v6687_v15 }
0x2687   :  { %v6723_v0 = vand.u32 2147483647, %v16880_v37  ;;  %vm6715_vm5 = vcmp.ne.f32.partialorder %v16880_v37, %v16880_v37 }
0x2688   :  { %v6722_v7 = vand.u32 2147483647, %v16882_v22  ;;  %v12914_v24 = vpop.f32.mrb[102].mxu0  ;;  %vm6714_vm6 = vcmp.ne.f32.partialorder %v16882_v22, %v16882_v22 }
0x2689   :  { %v6727_v30 = vsub.f32 0.0, %v6723_v0  ;;  %v16886_v20 = vadd.f32 %v14814_v45, %v12914_v24  ;;  %v6697_v57 = vpop.f32.mrb[103].mxu0 }
0x268a   :  { %v6726_v8 = vsub.f32 0.0, %v6722_v7  ;;  %v16888_v9 = vadd.f32 %v14814_v45, %v6697_v57 }
0x268b   :  { %v6732_v6 = vmul.f32 1.442695, %v6727_v30  ;;  %v6725_v29 = vand.u32 2147483647, %v16886_v20  ;;  %vm6717_vm11 = vcmp.ne.f32.partialorder %v16886_v20, %v16886_v20 }
0x268c   :  { %v6730_v23 = vmul.f32 1.442695, %v6726_v8  ;;  %v6724_v47 = vand.u32 2147483647, %v16888_v9  ;;  %vm6716_vm10 = vcmp.ne.f32.partialorder %v16888_v9, %v16888_v9 }
0x268d   :  { %14419 = vpow2.f32 %v6732_v6  ;;  %v6729_v48 = vsub.f32 0.0, %v6725_v29 }
0x268e   :  { %14421 = vpow2.f32 %v6730_v23  ;;  %v6728_v10 = vsub.f32 0.0, %v6724_v47  ;;  %v6711_v23 = vmax.f32 %v16880_v37, 0.0 }
0x268f   :  { %v6736_v17 = vmul.f32 1.442695, %v6729_v48 }
0x2690   :  { %v6734_v25 = vmul.f32 1.442695, %v6728_v10 }
0x2691   :  { %14423 = vpow2.f32 %v6736_v17 }
0x2692   :  { %14425 = vpow2.f32 %v6734_v25 }
0x2697   :  { %v14420_v13 = vpop.eup %14419 }
0x2698   :  { %v14422_v21 = vpop.eup %14421  ;;  %v6747_v44 = vadd.f32 1.0, %v14420_v13  ;;  %v6750_v45 = vmul.f32 -0.5, %v14420_v13  ;;  %v6753_v24 = vand.u32 2147483647, %v14420_v13 }
0x2699   :  { %v6738_v43 = vadd.f32 1.0, %v14422_v21  ;;  %v6741_v0 = vmul.f32 -0.5, %v14422_v21  ;;  %v6744_v6 = vand.u32 2147483647, %v14422_v21 }
0x269a   :  { %14427 = vlog2.f32 %v6747_v44  ;;  %v6751_v7 = vadd.f32 1.0, %v6750_v45  ;;  %vm6754_vm15 = vcmp.lt.f32.partialorder %v6753_v24, 0.0004427343  ;;  %v6710_v45 = vmax.f32 %v16882_v22, 0.0 }
0x269b   :  { %v14424_v36 = vpop.eup %14423  ;;  %14429 = vlog2.f32 %v6738_v43  ;;  %v6742_v57 = vadd.f32 1.0, %v6741_v0  ;;  %vm6745_vm4 = vcmp.lt.f32.partialorder %v6744_v6, 0.0004427343  ;;  %v6713_v24 = vmax.f32 %v16886_v20, 0.0 }
0x269c   :  { %v14426_v63 = vpop.eup %14425  ;;  %v6765_v51 = vadd.f32 1.0, %v14424_v36  ;;  %v6768_v30 = vmul.f32 -0.5, %v14424_v36  ;;  %v6752_v10 = vmul.f32 %v14420_v13, %v6751_v7  ;;  %v6771_v39 = vand.u32 2147483647, %v14424_v36 }
0x269d   :  { %v6756_v15 = vadd.f32 1.0, %v14426_v63  ;;  %v6759_v8 = vmul.f32 -0.5, %v14426_v63  ;;  %v6743_v44 = vmul.f32 %v14422_v21, %v6742_v57 }
0x269e   :  { %14431 = vlog2.f32 %v6765_v51  ;;  %v6769_v17 = vadd.f32 1.0, %v6768_v30  ;;  %vm6772_vm8 = vcmp.lt.f32.partialorder %v6771_v39, 0.0004427343 }
0x269f   :  { %14433 = vlog2.f32 %v6756_v15  ;;  %v6760_v43 = vadd.f32 1.0, %v6759_v8  ;;  %v6762_v15 = vand.u32 2147483647, %v14426_v63  ;;  %v6712_v8 = vmax.f32 %v16888_v9, 0.0 }
0x26a0   :  { %v6770_v21 = vmul.f32 %v14424_v36, %v6769_v17 }
0x26a1   :  { %v6761_v57 = vmul.f32 %v14426_v63, %v6760_v43  ;;  %vm6763_vm9 = vcmp.lt.f32.partialorder %v6762_v15, 0.0004427343 }
0x26a4   :  { %v14428_v29 = vpop.eup %14427 }
0x26a5   :  { %v14430_v47 = vpop.eup %14429  ;;  %v6749_v48 = vmul.f32 0.6931472, %v14428_v29 }
0x26a6   :  { %v6740_v25 = vmul.f32 0.6931472, %v14430_v47 }
0x26a7   :  { %v6755_v51 = vsel %vm6754_vm15, %v6752_v10, %v6749_v48 }
0x26a8   :  { %v14432_v0 = vpop.eup %14431  ;;  %v6775_v53 = vadd.f32 %v6755_v51, %v6711_v23  ;;  %v6746_v5 = vsel %vm6745_vm4, %v6743_v44, %v6740_v25 }
0x26a9   :  { %v14434_v41 = vpop.eup %14433  ;;  %v6774_v13 = vadd.f32 %v6746_v5, %v6710_v45  ;;  %v6767_v7 = vmul.f32 0.6931472, %v14432_v0 }
0x26aa   :  { %v6758_v30 = vmul.f32 0.6931472, %v14434_v41  ;;  %v6779_v5 = vsel %vm6715_vm5, %v16880_v37, %v6775_v53 }
0x26ab   :  { %v6778_v6 = vsel %vm6714_vm6, %v16882_v22, %v6774_v13  ;;  %v6773_v29 = vsel %vm6772_vm8, %v6770_v21, %v6767_v7  ;;  %v14815_v22 = vld [vmem:[%s18660_s12] ss:$0 sm:$0xff] }
0x26ac   :  { %12931 = vmatprep.mubr.msk.f32.mxu0 %vm3389_vm7, %v6778_v6  ;;  %v6764_v23 = vsel %vm6763_vm9, %v6761_v57, %v6758_v30  ;;  %v6777_v36 = vadd.f32 %v6773_v29, %v6713_v24 }
0x26ad   :  { %12932 = vmatmul.mubr.msk.f32.vlgmr.msra.gmra.mrb[104].mxu0 %vm3389_vm7, %v6779_v5  ;;  %v6776_v41 = vadd.f32 %v6764_v23, %v6712_v8 }
0x26ae   :  { %13702 = vmatpush3.bf16.msra.mxu0 %v15901_v61  ;;  %v6781_v53 = vsel %vm6717_vm11, %v16886_v20, %v6777_v36 }
0x26af   :  { %v6780_v39 = vsel %vm6716_vm10, %v16888_v9, %v6776_v41  ;;  %13704 = vmatprep.subr.bf16.mxu0 %v15906_v32 }
0x26b0   :  { %12934 = vmatprep.mubr.msk.f32.mxu0 %vm3389_vm7, %v6780_v39 }
0x26b1   :  { %12935 = vmatmul.mubr.msk.f32.gmra.mrb[106].mxu0 %vm3389_vm7, %v6781_v53 }
0x26b2   :  { %13706 = vmatpush3.bf16.msra.mxu0 %v15906_v32 }
0x26b3   :  { %12973 = vmatprep.subr.msk.mxu0 %vm102_vm0, %v16688_v55 }
0x2780   :  { %v12933_v37 = vpop.f32.mrb[104].mxu0 }
0x2781   :  { %v16923_v9 = vadd.f32 %v14815_v22, %v12933_v37  ;;  %v6860_v63 = vpop.f32.mrb[105].mxu0 }
0x2782   :  { %v16925_v47 = vadd.f32 %v14815_v22, %v6860_v63 }
0x2783   :  { %v6892_v48 = vand.u32 2147483647, %v16923_v9  ;;  %vm6884_vm14 = vcmp.ne.f32.partialorder %v16923_v9, %v16923_v9 }
0x2784   :  { %v6891_v20 = vand.u32 2147483647, %v16925_v47  ;;  %v12936_v10 = vpop.f32.mrb[106].mxu0  ;;  %vm6883_vm15 = vcmp.ne.f32.partialorder %v16925_v47, %v16925_v47 }
0x2785   :  { %v6896_v17 = vsub.f32 0.0, %v6892_v48  ;;  %v16929_v25 = vadd.f32 %v14815_v22, %v12936_v10  ;;  %v6870_v44 = vpop.f32.mrb[107].mxu0 }
0x2786   :  { %v6895_v55 = vsub.f32 0.0, %v6891_v20  ;;  %v16931_v43 = vadd.f32 %v14815_v22, %v6870_v44 }
0x2787   :  { %v6901_v51 = vmul.f32 1.442695, %v6896_v17  ;;  %v6894_v45 = vand.u32 2147483647, %v16929_v25  ;;  %v6880_v17 = vmax.f32 %v16923_v9, 0.0  ;;  %vm6886_vm8 = vcmp.ne.f32.partialorder %v16929_v25, %v16929_v25 }
0x2788   :  { %v6899_v15 = vmul.f32 1.442695, %v6895_v55  ;;  %v6893_v0 = vand.u32 2147483647, %v16931_v43  ;;  %vm6885_vm6 = vcmp.ne.f32.partialorder %v16931_v43, %v16931_v43 }
0x2789   :  { %14435 = vpow2.f32 %v6901_v51  ;;  %v6898_v13 = vsub.f32 0.0, %v6894_v45 }
0x278a   :  { %14437 = vpow2.f32 %v6899_v15  ;;  %v6897_v7 = vsub.f32 0.0, %v6893_v0 }
0x278b   :  { %v6905_v21 = vmul.f32 1.442695, %v6898_v13 }
0x278c   :  { %v6903_v24 = vmul.f32 1.442695, %v6897_v7 }
0x278d   :  { %14439 = vpow2.f32 %v6905_v21 }
0x278e   :  { %14441 = vpow2.f32 %v6903_v24  ;;  %v6879_v24 = vmax.f32 %v16925_v47, 0.0 }
0x2793   :  { %v14436_v30 = vpop.eup %14435 }
0x2794   :  { %v14438_v57 = vpop.eup %14437  ;;  %v6916_v8 = vadd.f32 1.0, %v14436_v30  ;;  %v6919_v36 = vmul.f32 -0.5, %v14436_v30  ;;  %v6922_v37 = vand.u32 2147483647, %v14436_v30 }
0x2795   :  { %v6907_v6 = vadd.f32 1.0, %v14438_v57  ;;  %v6910_v39 = vmul.f32 -0.5, %v14438_v57  ;;  %v6913_v20 = vand.u32 2147483647, %v14438_v57 }
0x2796   :  { %14443 = vlog2.f32 %v6916_v8  ;;  %v6920_v53 = vadd.f32 1.0, %v6919_v36  ;;  %vm6923_vm12 = vcmp.lt.f32.partialorder %v6922_v37, 0.0004427343 }
0x2797   :  { %v14440_v29 = vpop.eup %14439  ;;  %14445 = vlog2.f32 %v6907_v6  ;;  %v6911_v63 = vadd.f32 1.0, %v6910_v39  ;;  %vm6914_vm13 = vcmp.lt.f32.partialorder %v6913_v20, 0.0004427343 }
0x2798   :  { %v14442_v5 = vpop.eup %14441  ;;  %v6934_v23 = vadd.f32 1.0, %v14440_v29  ;;  %v6937_v22 = vmul.f32 -0.5, %v14440_v29  ;;  %v6921_v51 = vmul.f32 %v14436_v30, %v6920_v53  ;;  %v6940_v7 = vand.u32 2147483647, %v14440_v29 }
0x2799   :  { %v6925_v41 = vadd.f32 1.0, %v14442_v5  ;;  %v6928_v48 = vmul.f32 -0.5, %v14442_v5  ;;  %v6912_v0 = vmul.f32 %v14438_v57, %v6911_v63  ;;  %v6931_v8 = vand.u32 2147483647, %v14442_v5 }
0x279a   :  { %14447 = vlog2.f32 %v6934_v23  ;;  %v6938_v45 = vadd.f32 1.0, %v6937_v22  ;;  %v6882_v53 = vmax.f32 %v16929_v25, 0.0  ;;  %vm6941_vm4 = vcmp.lt.f32.partialorder %v6940_v7, 0.0004427343 }
0x279b   :  { %14449 = vlog2.f32 %v6925_v41  ;;  %v6929_v13 = vadd.f32 1.0, %v6928_v48  ;;  %v6881_v63 = vmax.f32 %v16931_v43, 0.0  ;;  %vm6932_vm5 = vcmp.lt.f32.partialorder %v6931_v8, 0.0004427343 }
0x279c   :  { %v6939_v57 = vmul.f32 %v14440_v29, %v6938_v45 }
0x279d   :  { %v6930_v22 = vmul.f32 %v14442_v5, %v6929_v13 }
0x27a0   :  { %v14444_v10 = vpop.eup %14443 }
0x27a1   :  { %v14446_v44 = vpop.eup %14445  ;;  %v6918_v55 = vmul.f32 0.6931472, %v14444_v10 }
0x27a2   :  { %v6909_v15 = vmul.f32 0.6931472, %v14446_v44 }
0x27a3   :  { %v6924_v21 = vsel %vm6923_vm12, %v6921_v51, %v6918_v55 }
0x27a4   :  { %v14448_v6 = vpop.eup %14447  ;;  %v6944_v23 = vadd.f32 %v6924_v21, %v6880_v17  ;;  %v6915_v36 = vsel %vm6914_vm13, %v6912_v0, %v6909_v15 }
0x27a5   :  { %v14450_v41 = vpop.eup %14449  ;;  %v6943_v30 = vadd.f32 %v6915_v36, %v6879_v24  ;;  %v6936_v39 = vmul.f32 0.6931472, %v14448_v6 }
0x27a6   :  { %v6927_v37 = vmul.f32 0.6931472, %v14450_v41  ;;  %v6948_v10 = vsel %vm6884_vm14, %v16923_v9, %v6944_v23 }
0x27a7   :  { %v6947_v48 = vsel %vm6883_vm15, %v16925_v47, %v6943_v30  ;;  %v6942_v20 = vsel %vm6941_vm4, %v6939_v57, %v6936_v39 }
0x27a8   :  { %12953 = vmatprep.mubr.msk.f32.mxu1 %vm3389_vm7, %v6947_v48  ;;  %v6933_v17 = vsel %vm6932_vm5, %v6930_v22, %v6927_v37  ;;  %v6946_v29 = vadd.f32 %v6942_v20, %v6882_v53 }
0x27a9   :  { %12954 = vmatmul.mubr.msk.f32.vlgmr.msra.gmra.mrb[68].mxu1 %vm3389_vm7, %v6948_v10  ;;  %v6945_v44 = vadd.f32 %v6933_v17, %v6881_v63 }
0x27aa   :  { %13710 = vmatpush3.bf16.msra.mxu1 %v15931_v40  ;;  %v6950_v9 = vsel %vm6886_vm8, %v16929_v25, %v6946_v29 }
0x27ab   :  { %v6949_v47 = vsel %vm6885_vm6, %v16931_v43, %v6945_v44  ;;  %13712 = vmatprep.subr.bf16.mxu1 %v15936_v42  ;;  %v14816_v43 = vld [vmem:[%s18663_s14] ss:$0 sm:$0xff] }
0x27ac   :  { %12956 = vmatprep.mubr.msk.f32.mxu1 %vm3389_vm7, %v6949_v47 }
0x27ad   :  { %12957 = vmatmul.mubr.msk.f32.gmra.mrb[70].mxu1 %vm3389_vm7, %v6950_v9 }
0x27ae   :  { %13714 = vmatpush3.bf16.msra.mxu1 %v15936_v42 }
0x27af   :  { %13716 = vmatprep.subr.bf16.mxu1 %v16012_v38 }
0x27b2   :  { %13718 = vmatpush3.bf16.msra.mxu1 %v16012_v38 }
0x27b3   :  { %13720 = vmatprep.subr.bf16.mxu1 %v16022_v18 }
0x27b6   :  { %13722 = vmatpush3.bf16.msra.mxu1 %v16022_v18 }
0x27b7   :  { %13724 = vmatprep.subr.bf16.mxu1 %v16035_v59 }
0x27ba   :  { %13726 = vmatpush3.bf16.msra.mxu1 %v16035_v59 }
0x27bb   :  { %13728 = vmatprep.subr.bf16.mxu1 %v16040_v60 }
0x27be   :  { %13730 = vmatpush3.bf16.msra.mxu1 %v16040_v60 }
0x27bf   :  { %13732 = vmatprep.subr.bf16.mxu1 %v16051_v46 }
0x27c2   :  { %13734 = vmatpush3.bf16.msra.mxu1 %v16051_v46 }
0x27c3   :  { %13736 = vmatprep.subr.bf16.mxu1 %v16061_v49 }
0x27c6   :  { %13738 = vmatpush3.bf16.msra.mxu1 %v16061_v49 }
0x27c7   :  { %13756 = vmatprep.subr.bf16.mxu1 %v15820_v56 }
0x287c   :  { %v12955_v25 = vpop.f32.mrb[68].mxu1 }
0x287d   :  { %v16977_v5 = vadd.f32 %v14816_v43, %v12955_v25  ;;  %v7029_v55 = vpop.f32.mrb[69].mxu1 }
0x287e   :  { %v16979_v51 = vadd.f32 %v14816_v43, %v7029_v55 }
0x287f   :  { %18759 = vst [vmem:[#allocation34_spill] sm:$0xff] %v16977_v5  ;;  %v7061_v45 = vand.u32 2147483647, %v16977_v5  ;;  %v7588_v15 = vmul.f32 0.1, %v16977_v5  ;;  %vm7053_vm11 = vcmp.ne.f32.partialorder %v16977_v5, %v16977_v5 }
0x2880   :  { %18760 = vst [vmem:[#allocation35_spill] sm:$0xff] %v16979_v51  ;;  %v7060_v0 = vand.u32 2147483647, %v16979_v51  ;;  %v12958_v13 = vpop.f32.mrb[70].mxu1  ;;  %v7587_v7 = vmul.f32 0.1, %v16979_v51  ;;  %vm7052_vm12 = vcmp.ne.f32.partialorder %v16979_v51, %v16979_v51 }
0x2881   :  { %v7065_v21 = vsub.f32 0.0, %v7061_v45  ;;  %v16985_v24 = vadd.f32 %v14816_v43, %v12958_v13  ;;  %7597 = vrot.lane.b32.xlu1 %v7588_v15, %s14847_s4  ;;  %v7039_v8 = vpop.f32.mrb[71].mxu1 }
0x2882   :  { %v7064_v6 = vsub.f32 0.0, %v7060_v0  ;;  %v16988_v23 = vadd.f32 %v14816_v43, %v7039_v8  ;;  %7595 = vrot.lane.b32.xlu0 %v7587_v7, %s14847_s4 }
0x2883   :  { %18761 = vst [vmem:[#allocation36_spill] sm:$0xff] %v16985_v24  ;;  %v7070_v36 = vmul.f32 1.442695, %v7065_v21  ;;  %v7063_v41 = vand.u32 2147483647, %v16985_v24  ;;  %vm7055_vm4 = vcmp.ne.f32.partialorder %v16985_v24, %v16985_v24 }
0x2884   :  { %18762 = vst [vmem:[#allocation37_spill] sm:$0xff] %v16988_v23  ;;  %v7590_v30 = vmul.f32 0.1, %v16985_v24  ;;  %v7068_v39 = vmul.f32 1.442695, %v7064_v6  ;;  %v7049_v6 = vmax.f32 %v16977_v5, 0.0  ;;  %vm7054_vm15 = vcmp.ne.f32.partialorder %v16988_v23, %v16988_v23 }
0x2885   :  { %v7062_v57 = vand.u32 2147483647, %v16988_v23  ;;  %v7589_v53 = vmul.f32 0.1, %v16988_v23  ;;  %14451 = vpow2.f32 %v7070_v36  ;;  %v7067_v37 = vsub.f32 0.0, %v7063_v41 }
0x2886   :  { %7601 = vrot.lane.b32.xlu1 %v7590_v30, %s14847_s4  ;;  %14453 = vpow2.f32 %v7068_v39 }
0x2887   :  { %v7066_v22 = vsub.f32 0.0, %v7062_v57  ;;  %7599 = vrot.lane.b32.xlu0 %v7589_v53, %s14847_s4  ;;  %v7074_v63 = vmul.f32 1.442695, %v7067_v37 }
0x2889   :  { %v7072_v48 = vmul.f32 1.442695, %v7066_v22  ;;  %14455 = vpow2.f32 %v7074_v63  ;;  %v7048_v63 = vmax.f32 %v16979_v51, 0.0 }
0x288b   :  { %14457 = vpow2.f32 %v7072_v48 }
0x288f   :  { %v14452_v20 = vpop.eup %14451 }
0x2890   :  { %v14454_v10 = vpop.eup %14453  ;;  %v7085_v17 = vadd.f32 1.0, %v14452_v20  ;;  %v7088_v25 = vmul.f32 -0.5, %v14452_v20  ;;  %v7091_v15 = vand.u32 2147483647, %v14452_v20 }
0x2891   :  { %v7076_v29 = vadd.f32 1.0, %v14454_v10  ;;  %v7079_v55 = vmul.f32 -0.5, %v14454_v10  ;;  %v7082_v21 = vand.u32 2147483647, %v14454_v10 }
0x2892   :  { %14459 = vlog2.f32 %v7085_v17  ;;  %v7089_v45 = vadd.f32 1.0, %v7088_v25  ;;  %vm7092_vm9 = vcmp.lt.f32.partialorder %v7091_v15, 0.0004427343 }
0x2893   :  { %v14456_v44 = vpop.eup %14455  ;;  %14461 = vlog2.f32 %v7076_v29  ;;  %v7080_v13 = vadd.f32 1.0, %v7079_v55  ;;  %vm7083_vm10 = vcmp.lt.f32.partialorder %v7082_v21, 0.0004427343 }
0x2894   :  { %v7103_v9 = vadd.f32 1.0, %v14456_v44  ;;  %v7106_v0 = vmul.f32 -0.5, %v14456_v44  ;;  %v7090_v30 = vmul.f32 %v14452_v20, %v7089_v45  ;;  %v7109_v22 = vand.u32 2147483647, %v14456_v44 }
0x2895   :  { %v14458_v47 = vpop.eup %14457  ;;  %v7081_v53 = vmul.f32 %v14454_v10, %v7080_v13 }
0x2896   :  { %v7094_v43 = vadd.f32 1.0, %v14458_v47  ;;  %14463 = vlog2.f32 %v7103_v9  ;;  %v7097_v7 = vmul.f32 -0.5, %v14458_v47  ;;  %v7107_v39 = vadd.f32 1.0, %v7106_v0 }
0x2897   :  { %v7100_v17 = vand.u32 2147483647, %v14458_v47  ;;  %v7051_v0 = vmax.f32 %v16985_v24, 0.0  ;;  %vm7110_vm13 = vcmp.lt.f32.partialorder %v7109_v22, 0.0004427343  ;;  %v7632_v22 = vld [vmem:[#allocation3 + $0xb0] sm:$0xff] }
0x2898   :  { %14465 = vlog2.f32 %v7094_v43  ;;  %v7098_v37 = vadd.f32 1.0, %v7097_v7  ;;  %v7108_v10 = vmul.f32 %v14456_v44, %v7107_v39  ;;  %v7050_v7 = vmax.f32 %v16988_v23, 0.0 }
0x2899   :  { %vm7101_vm14 = vcmp.lt.f32.partialorder %v7100_v17, 0.0004427343 }
0x289a   :  { %v7099_v15 = vmul.f32 %v14458_v47, %v7098_v37  ;;  %v7631_v37 = vld [vmem:[#allocation3 + $0xa8] sm:$0xff] }
0x289c   :  { %v14460_v8 = vpop.eup %14459 }
0x289d   :  { %v14462_v36 = vpop.eup %14461  ;;  %v7087_v41 = vmul.f32 0.6931472, %v14460_v8 }
0x289e   :  { %v7078_v57 = vmul.f32 0.6931472, %v14462_v36  ;;  %v17015_v36 = vld [vmem:[%s18662_s17] sm:$0xf] }
0x289f   :  { %v7093_v48 = vsel %vm7092_vm9, %v7090_v30, %v7087_v41  ;;  %v14818_v30 = vld [vmem:[%s18727_s5] sm:$0xff] }
0x28a0   :  { %v14464_v29 = vpop.eup %14463  ;;  %v7084_v9 = vsel %vm7083_vm10, %v7081_v53, %v7078_v57  ;;  %v7113_v25 = vadd.f32 %v7093_v48, %v7049_v6  ;;  %v14819_v57 = vld [vmem:[%s18728_s30] sm:$0xf] }
0x28a1   :  { %v7112_v20 = vadd.f32 %v7084_v9, %v7048_v63  ;;  %v7105_v55 = vmul.f32 0.6931472, %v14464_v29  ;;  %v7630_v53 = vld [vmem:[#allocation3 + $0xa0] sm:$0xff]  ;;  %v7633_v63 = vld [vmem:[#allocation3 + $0xb8] sm:$0xff] }
0x28a2   :  { %v14466_v43 = vpop.eup %14465  ;;  %v7117_v8 = vsel %vm7053_vm11, %v16977_v5, %v7113_v25 }
0x28a3   :  { %v7096_v45 = vmul.f32 0.6931472, %v14466_v43  ;;  %v7116_v13 = vsel %vm7052_vm12, %v16979_v51, %v7112_v20  ;;  %v7111_v21 = vsel %vm7110_vm13, %v7108_v10, %v7105_v55  ;;  %v14820_v43 = vld [vmem:[%s18665_s18] ss:$0 sm:$0xff] }
0x28a4   :  { %12967 = vmatprep.mubr.msk.f32.mxu0 %vm197_vm2, %v7116_v13  ;;  %v7115_v44 = vadd.f32 %v7111_v21, %v7051_v0 }
0x28a5   :  { %v7102_v6 = vsel %vm7101_vm14, %v7099_v15, %v7096_v45  ;;  %12968 = vmatmul.mubr.msk.f32.vlgmr.msra.gmra.mrb[108].mxu0 %vm197_vm2, %v7117_v8 }
0x28a6   :  { %v7114_v47 = vadd.f32 %v7102_v6, %v7050_v7  ;;  %12974 = vmatpush3.msk.msra.mxu0 %vm102_vm0, %v17015_v36  ;;  %v7119_v39 = vsel %vm7055_vm4, %v16985_v24, %v7115_v44 }
0x28a7   :  { %13019 = vmatprep.subr.mxu0 %v14818_v30 }
0x28a8   :  { %v7118_v41 = vsel %vm7054_vm15, %v16988_v23, %v7114_v47 }
0x28a9   :  { %12970 = vmatprep.mubr.msk.f32.mxu0 %vm197_vm2, %v7118_v41 }
0x28aa   :  { %12971 = vmatmul.mubr.msk.f32.gmra.mrb[110].mxu0 %vm197_vm2, %v7119_v39 }
0x28ab   :  { %12975 = vmatprep.mubr.msk.f32.mxu0 %vm89_vm1, %v16828_v52 }
0x28ae   :  { %12976 = vmatmul.mubr.msk.f32.vlgmr.msra.gmra.mrb[112].mxu0 %vm89_vm1, %v16816_v58 }
0x28af   :  { %12978 = vmatprep.mubr.msk.f32.mxu0 %vm89_vm1, %v16853_v28  ;;  %13020 = vmatpush3.msra.mxu0 %v14818_v30 }
0x28b0   :  { %13027 = vmatprep.subr.msk.mxu0 %vm102_vm0, %v14819_v57 }
0x28b2   :  { %12979 = vmatmul.mubr.msk.f32.gmra.mrb[114].mxu0 %vm89_vm1, %v16851_v2 }
0x28b3   :  { %13021 = vmatprep.mubr.msk.f32.mxu0 %vm3013_vm3, %v7630_v53 }
0x28b6   :  { %13022 = vmatmul.mubr.msk.f32.vlgmr.msra.gmra.mrb[116].mxu0 %vm3013_vm3, %v7631_v37 }
0x28b7   :  { %13024 = vmatprep.mubr.msk.f32.mxu0 %vm3013_vm3, %v7632_v22  ;;  %13028 = vmatpush3.msk.msra.mxu0 %vm102_vm0, %v14819_v57 }
0x28b8   :  { %13740 = vmatprep.subr.bf16.mxu0 %v15742_v27 }
0x28ba   :  { %13025 = vmatmul.mubr.msk.f32.gmra.mrb[118].mxu0 %vm3013_vm3, %v7633_v63 }
0x2978   :  { %v17048_v48 = vpop.f32.mrb[108].mxu0 }
0x2979   :  { %18763 = vst [vmem:[#allocation38_spill] sm:$0xff] %v17048_v48  ;;  %v17050_v17 = vpop.f32.mrb[109].mxu0 }
0x297a   :  { %18764 = vst [vmem:[#allocation39_spill] sm:$0xff] %v17050_v17 }
0x297d   :  { %v17052_v29 = vpop.f32.mrb[110].mxu0 }
0x297e   :  { %18765 = vst [vmem:[#allocation40_spill] sm:$0xff] %v17052_v29  ;;  %v17054_v9 = vpop.f32.mrb[111].mxu0 }
0x297f   :  { %18766 = vst [vmem:[#allocation41_spill] sm:$0xff] %v17054_v9 }
0x2981   :  { %v12977_v25 = vpop.f32.mrb[112].mxu0 }
0x2982   :  { %v17059_v20 = vadd.f32 %v14820_v43, %v12977_v25  ;;  %v7283_v55 = vpop.f32.mrb[113].mxu0 }
0x2983   :  { %v17061_v10 = vadd.f32 %v14820_v43, %v7283_v55 }
0x2984   :  { %v7315_v45 = vand.u32 2147483647, %v17059_v20  ;;  %vm7307_vm8 = vcmp.ne.f32.partialorder %v17059_v20, %v17059_v20 }
0x2985   :  { %v7314_v15 = vand.u32 2147483647, %v17061_v10  ;;  %v12980_v0 = vpop.f32.mrb[114].mxu0  ;;  %vm7306_vm9 = vcmp.ne.f32.partialorder %v17061_v10, %v17061_v10 }
0x2986   :  { %v7319_v13 = vsub.f32 0.0, %v7315_v45  ;;  %v17065_v7 = vadd.f32 %v14820_v43, %v12980_v0  ;;  %v7293_v21 = vpop.f32.mrb[115].mxu0 }
0x2987   :  { %v7318_v8 = vsub.f32 0.0, %v7314_v15  ;;  %v17067_v6 = vadd.f32 %v14820_v43, %v7293_v21 }
0x2988   :  { %v7324_v44 = vmul.f32 1.442695, %v7319_v13  ;;  %v7317_v47 = vand.u32 2147483647, %v17065_v7  ;;  %vm7309_vm13 = vcmp.ne.f32.partialorder %v17065_v7, %v17065_v7 }
0x2989   :  { %v7322_v41 = vmul.f32 1.442695, %v7318_v8  ;;  %v7316_v30 = vand.u32 2147483647, %v17067_v6  ;;  %vm7308_vm12 = vcmp.ne.f32.partialorder %v17067_v6, %v17067_v6 }
0x298a   :  { %14467 = vpow2.f32 %v7324_v44  ;;  %v7321_v39 = vsub.f32 0.0, %v7317_v47 }
0x298b   :  { %14469 = vpow2.f32 %v7322_v41  ;;  %v7320_v57 = vsub.f32 0.0, %v7316_v30 }
0x298c   :  { %v7328_v53 = vmul.f32 1.442695, %v7321_v39 }
0x298d   :  { %v7326_v37 = vmul.f32 1.442695, %v7320_v57 }
0x298e   :  { %14471 = vpow2.f32 %v7328_v53  ;;  %v7303_v53 = vmax.f32 %v17059_v20, 0.0 }
0x298f   :  { %14473 = vpow2.f32 %v7326_v37 }
0x2994   :  { %v14468_v22 = vpop.eup %14467 }
0x2995   :  { %v14470_v63 = vpop.eup %14469  ;;  %v7339_v25 = vadd.f32 1.0, %v14468_v22  ;;  %v7342_v0 = vmul.f32 -0.5, %v14468_v22  ;;  %v7345_v44 = vand.u32 2147483647, %v14468_v22 }
0x2996   :  { %v7330_v55 = vadd.f32 1.0, %v14470_v63  ;;  %v7333_v21 = vmul.f32 -0.5, %v14470_v63  ;;  %v7336_v39 = vand.u32 2147483647, %v14470_v63 }
0x2997   :  { %14475 = vlog2.f32 %v7339_v25  ;;  %v7343_v8 = vadd.f32 1.0, %v7342_v0  ;;  %vm7346_vm5 = vcmp.lt.f32.partialorder %v7345_v44, 0.0004427343 }
0x2998   :  { %v14472_v43 = vpop.eup %14471  ;;  %14477 = vlog2.f32 %v7330_v55  ;;  %v7334_v41 = vadd.f32 1.0, %v7333_v21  ;;  %vm7337_vm6 = vcmp.lt.f32.partialorder %v7336_v39, 0.0004427343 }
0x2999   :  { %v14474_v45 = vpop.eup %14473  ;;  %v7357_v15 = vadd.f32 1.0, %v14472_v43  ;;  %v7360_v47 = vmul.f32 -0.5, %v14472_v43  ;;  %v7344_v23 = vmul.f32 %v14468_v22, %v7343_v8  ;;  %v7363_v9 = vand.u32 2147483647, %v14472_v43 }
0x299a   :  { %v7348_v13 = vadd.f32 1.0, %v14474_v45  ;;  %v7351_v30 = vmul.f32 -0.5, %v14474_v45  ;;  %v7335_v51 = vmul.f32 %v14470_v63, %v7334_v41  ;;  %v7305_v41 = vmax.f32 %v17065_v7, 0.0 }
0x299b   :  { %14479 = vlog2.f32 %v7357_v15  ;;  %v7361_v55 = vadd.f32 1.0, %v7360_v47  ;;  %v7302_v15 = vmax.f32 %v17061_v10, 0.0  ;;  %vm7364_vm10 = vcmp.lt.f32.partialorder %v7363_v9, 0.0004427343 }
0x299c   :  { %14481 = vlog2.f32 %v7348_v13  ;;  %v7352_v5 = vadd.f32 1.0, %v7351_v30  ;;  %v7354_v13 = vand.u32 2147483647, %v14474_v45 }
0x299d   :  { %v7362_v63 = vmul.f32 %v14472_v43, %v7361_v55 }
0x299e   :  { %v7353_v47 = vmul.f32 %v14474_v45, %v7352_v5  ;;  %vm7355_vm11 = vcmp.lt.f32.partialorder %v7354_v13, 0.0004427343 }
0x29a1   :  { %v14476_v57 = vpop.eup %14475 }
0x29a2   :  { %v14478_v37 = vpop.eup %14477  ;;  %v7341_v25 = vmul.f32 0.6931472, %v14476_v57 }
0x29a3   :  { %v7332_v24 = vmul.f32 0.6931472, %v14478_v37 }
0x29a4   :  { %v7347_v0 = vsel %vm7346_vm5, %v7344_v23, %v7341_v25 }
0x29a5   :  { %v14480_v21 = vpop.eup %14479  ;;  %v7338_v29 = vsel %vm7337_vm6, %v7335_v51, %v7332_v24  ;;  %v7367_v17 = vadd.f32 %v7347_v0, %v7303_v53  ;;  %v7304_v51 = vmax.f32 %v17067_v6, 0.0 }
0x29a6   :  { %v14482_v48 = vpop.eup %14481  ;;  %v7366_v22 = vadd.f32 %v7338_v29, %v7302_v15  ;;  %v7359_v8 = vmul.f32 0.6931472, %v14480_v21 }
0x29a7   :  { %v7350_v44 = vmul.f32 0.6931472, %v14482_v48  ;;  %v7371_v30 = vsel %vm7307_vm8, %v17059_v20, %v7367_v17  ;;  %v14821_v20 = vld [vmem:[%s18666_s20] ss:$0 sm:$0xff] }
0x29a8   :  { %v7370_v23 = vsel %vm7306_vm9, %v17061_v10, %v7366_v22  ;;  %v7365_v24 = vsel %vm7364_vm10, %v7362_v63, %v7359_v8 }
0x29a9   :  { %13013 = vmatprep.mubr.f32.mxu1 %v7370_v23  ;;  %v7356_v29 = vsel %vm7355_vm11, %v7353_v47, %v7350_v44  ;;  %v7369_v39 = vadd.f32 %v7365_v24, %v7305_v41 }
0x29aa   :  { %13014 = vmatmul.mubr.f32.vlgmr.msra.gmra.mrb[72].mxu1 %v7371_v30  ;;  %v7368_v48 = vadd.f32 %v7356_v29, %v7304_v51 }
0x29ab   :  { %13758 = vmatpush3.bf16.msra.mxu1 %v15820_v56  ;;  %v7373_v9 = vsel %vm7309_vm13, %v17065_v7, %v7369_v39 }
0x29ac   :  { %v7372_v5 = vsel %vm7308_vm12, %v17067_v6, %v7368_v48  ;;  %13760 = vmatprep.subr.bf16.mxu1 %v15830_v4 }
0x29ad   :  { %13016 = vmatprep.mubr.f32.mxu1 %v7372_v5 }
0x29ae   :  { %13017 = vmatmul.mubr.f32.gmra.mrb[74].mxu1 %v7373_v9 }
0x29af   :  { %13762 = vmatpush3.bf16.msra.mxu1 %v15830_v4 }
0x29b0   :  { %13764 = vmatprep.subr.bf16.mxu1 %v15840_v16 }
0x29b3   :  { %13766 = vmatpush3.bf16.msra.mxu1 %v15840_v16 }
0x29b4   :  { %13768 = vmatprep.subr.bf16.mxu1 %v15850_v62 }
0x29b7   :  { %13770 = vmatpush3.bf16.msra.mxu1 %v15850_v62 }
0x29b8   :  { %13780 = vmatprep.subr.bf16.mxu1 %v15931_v40 }
0x2a7d   :  { %v13015_v17 = vpop.f32.mrb[72].mxu1 }
0x2a7e   :  { %v17101_v10 = vadd.f32 %v14821_v20, %v13015_v17  ;;  %v7440_v7 = vpop.f32.mrb[73].mxu1  ;;  %v7598_v17 = vpop.permute.xlu1 %7597 }
0x2a7f   :  { %v17103_v6 = vadd.f32 %v14821_v20, %v7440_v7 }
0x2a80   :  { %v7472_v43 = vand.u32 2147483647, %v17101_v10  ;;  %vm7464_vm14 = vcmp.ne.f32.partialorder %v17101_v10, %v17101_v10 }
0x2a81   :  { %v7471_v45 = vand.u32 2147483647, %v17103_v6  ;;  %v13018_v57 = vpop.f32.mrb[74].mxu1  ;;  %vm7463_vm5 = vcmp.ne.f32.partialorder %v17103_v6, %v17103_v6 }
0x2a82   :  { %v7476_v53 = vsub.f32 0.0, %v7472_v43  ;;  %v17107_v37 = vadd.f32 %v14821_v20, %v13018_v57  ;;  %v7450_v25 = vpop.f32.mrb[75].mxu1 }
0x2a83   :  { %v7475_v55 = vsub.f32 0.0, %v7471_v45  ;;  %v17109_v15 = vadd.f32 %v14821_v20, %v7450_v25 }
0x2a84   :  { %v7481_v0 = vmul.f32 1.442695, %v7476_v53  ;;  %v7474_v13 = vand.u32 2147483647, %v17107_v37  ;;  %vm7466_vm9 = vcmp.ne.f32.partialorder %v17107_v37, %v17107_v37 }
0x2a85   :  { %v7479_v21 = vmul.f32 1.442695, %v7475_v55  ;;  %v7473_v22 = vand.u32 2147483647, %v17109_v15  ;;  %v7608_v55 = vadd.f32 %v7598_v17, %v16816_v58  ;;  %v11589_v17 = vld [vmem:[%s18667_s1 + $0x68] sm:$0xff]  ;;  %vm7465_vm10 = vcmp.ne.f32.partialorder %v17109_v15, %v17109_v15 }
0x2a86   :  { %14483 = vpow2.f32 %v7481_v0  ;;  %v7478_v8 = vsub.f32 0.0, %v7474_v13  ;;  %v7460_v0 = vmax.f32 %v17101_v10, 0.0 }
0x2a87   :  { %14485 = vpow2.f32 %v7479_v21  ;;  %v7477_v63 = vsub.f32 0.0, %v7473_v22 }
0x2a88   :  { %v7485_v44 = vmul.f32 1.442695, %v7478_v8 }
0x2a89   :  { %v7483_v47 = vmul.f32 1.442695, %v7477_v63 }
0x2a8a   :  { %14487 = vpow2.f32 %v7485_v44 }
0x2a8b   :  { %14489 = vpow2.f32 %v7483_v47 }
0x2a90   :  { %v14484_v41 = vpop.eup %14483 }
0x2a91   :  { %v14486_v23 = vpop.eup %14485  ;;  %v7496_v51 = vadd.f32 1.0, %v14484_v41  ;;  %v7499_v48 = vmul.f32 -0.5, %v14484_v41  ;;  %v7502_v7 = vand.u32 2147483647, %v14484_v41 }
0x2a92   :  { %v7487_v24 = vadd.f32 1.0, %v14486_v23  ;;  %v7490_v9 = vmul.f32 -0.5, %v14486_v23  ;;  %v7493_v53 = vand.u32 2147483647, %v14486_v23 }
0x2a93   :  { %14491 = vlog2.f32 %v7496_v51  ;;  %v7500_v20 = vadd.f32 1.0, %v7499_v48  ;;  %vm7503_vm15 = vcmp.lt.f32.partialorder %v7502_v7, 0.0004427343  ;;  %v7459_v48 = vmax.f32 %v17103_v6, 0.0 }
0x2a94   :  { %v14488_v30 = vpop.eup %14487  ;;  %14493 = vlog2.f32 %v7487_v24  ;;  %v7491_v45 = vadd.f32 1.0, %v7490_v9  ;;  %v7596_v24 = vpop.permute.xlu0 %7595  ;;  %vm7494_vm4 = vcmp.lt.f32.partialorder %v7493_v53, 0.0004427343  ;;  %v11588_v53 = vld [vmem:[%s18667_s1 + $0x60] sm:$0xff] }
0x2a95   :  { %v14490_v29 = vpop.eup %14489  ;;  %v7514_v39 = vadd.f32 1.0, %v14488_v30  ;;  %v7517_v43 = vmul.f32 -0.5, %v14488_v30  ;;  %v7501_v22 = vmul.f32 %v14484_v41, %v7500_v20  ;;  %v7520_v47 = vand.u32 2147483647, %v14488_v30 }
0x2a96   :  { %v7505_v5 = vadd.f32 1.0, %v14490_v29  ;;  %v7508_v57 = vmul.f32 -0.5, %v14490_v29  ;;  %v7492_v44 = vmul.f32 %v14486_v23, %v7491_v45  ;;  %v7511_v58 = vand.u32 2147483647, %v14490_v29 }
0x2a97   :  { %14495 = vlog2.f32 %v7514_v39  ;;  %v7518_v8 = vadd.f32 1.0, %v7517_v43  ;;  %v7462_v23 = vmax.f32 %v17107_v37, 0.0  ;;  %vm7521_vm6 = vcmp.lt.f32.partialorder %v7520_v47, 0.0004427343 }
0x2a98   :  { %14497 = vlog2.f32 %v7505_v5  ;;  %v7509_v51 = vadd.f32 1.0, %v7508_v57  ;;  %v7461_v57 = vmax.f32 %v17109_v15, 0.0  ;;  %vm7512_vm8 = vcmp.lt.f32.partialorder %v7511_v58, 0.0004427343  ;;  %v7600_v47 = vpop.permute.xlu0 %7599 }
0x2a99   :  { %v7519_v45 = vmul.f32 %v14488_v30, %v7518_v8  ;;  %v7607_v8 = vadd.f32 %v7596_v24, %v16828_v52  ;;  %v11590_v52 = vld [vmem:[%s18667_s1 + $0x70] sm:$0xff] }
0x2a9d   :  { %v14492_v25 = vpop.eup %14491 }
0x2a9e   :  { %v14494_v13 = vpop.eup %14493  ;;  %v7498_v21 = vmul.f32 0.6931472, %v14492_v25 }
0x2a9f   :  { %v7489_v63 = vmul.f32 0.6931472, %v14494_v13  ;;  %v7510_v13 = vmul.f32 %v14490_v29, %v7509_v51 }
0x2aa0   :  { %v7504_v39 = vsel %vm7503_vm15, %v7501_v22, %v7498_v21 }
0x2aa1   :  { %v14496_v5 = vpop.eup %14495  ;;  %v7524_v9 = vadd.f32 %v7504_v39, %v7460_v0  ;;  %v7495_v41 = vsel %vm7494_vm4, %v7492_v44, %v7489_v63  ;;  %v7602_v63 = vpop.permute.xlu1 %7601 }
0x2aa2   :  { %v14498_v20 = vpop.eup %14497  ;;  %v7523_v7 = vadd.f32 %v7495_v41, %v7459_v48  ;;  %v7516_v43 = vmul.f32 0.6931472, %v14496_v5  ;;  %v7610_v58 = vadd.f32 %v7602_v63, %v16851_v2 }
0x2aa3   :  { %v17132_v25 = vsel %vm7464_vm14, %v17101_v10, %v7524_v9  ;;  %v7507_v0 = vmul.f32 0.6931472, %v14498_v20  ;;  %v11591_v10 = vld [vmem:[%s18667_s1 + $0x78] sm:$0xff] }
0x2aa4   :  { %18767 = vst [vmem:[#allocation42_spill] sm:$0xff] %v17132_v25  ;;  %v7617_v21 = vmul.f32 %v11589_v17, %v17132_v25  ;;  %v17136_v22 = vsel %vm7463_vm5, %v17103_v6, %v7523_v7  ;;  %v7522_v30 = vsel %vm7521_vm6, %v7519_v45, %v7516_v43  ;;  %v14822_v17 = vld [vmem:[%s18658_s10] ss:$0 sm:$0xff] }
0x2aa5   :  { %18768 = vst [vmem:[#allocation43_spill] sm:$0xff] %v17136_v22  ;;  %v7526_v44 = vadd.f32 %v7522_v30, %v7462_v23  ;;  %v7513_v39 = vsel %vm7512_vm8, %v7510_v13, %v7507_v0  ;;  %v7616_v48 = vmul.f32 %v11588_v53, %v17136_v22 }
0x2aa6   :  { %v17143_v29 = vadd.f32 %v7617_v21, %v7608_v55  ;;  %v7525_v6 = vadd.f32 %v7513_v39, %v7461_v57 }
0x2aa7   :  { %v17151_v51 = vsel %vm7466_vm9, %v17107_v37, %v7526_v44  ;;  %v17155_v24 = vadd.f32 %v7616_v48, %v7607_v8  ;;  %v7609_v37 = vadd.f32 %v7600_v47, %v16853_v28 }
0x2aa8   :  { %18769 = vst [vmem:[#allocation44_spill] sm:$0xff] %v17151_v51  ;;  %11593 = vst.msk [vmem:[%s18655_s21 + $0x88] sm:$0xff] %vm89_vm1, %v17143_v29  ;;  %v17164_v55 = vsel %vm7465_vm10, %v17109_v15, %v7525_v6  ;;  %v7619_v5 = vmul.f32 %v11591_v10, %v17151_v51 }
0x2aa9   :  { %18770 = vst [vmem:[#allocation45_spill] sm:$0xff] %v17164_v55  ;;  %11592 = vst.msk [vmem:[%s18655_s21 + $0x80] sm:$0xff] %vm89_vm1, %v17155_v24  ;;  %13029 = vmatprep.mubr.msk.f32.mxu0 %vm89_vm1, %v17155_v24  ;;  %v7618_v2 = vmul.f32 %v11590_v52, %v17164_v55 }
0x2aaa   :  { %13030 = vmatmul.mubr.msk.f32.vlgmr.msra.gmra.mrb[116].mxu0 %vm89_vm1, %v17143_v29  ;;  %v17178_v15 = vadd.f32 %v7619_v5, %v7610_v58 }
0x2aab   :  { %v17180_v9 = vadd.f32 %v7618_v2, %v7609_v37  ;;  %13742 = vmatpush3.bf16.msra.mxu0 %v15742_v27 }
0x2aac   :  { %11595 = vst.msk [vmem:[%s18655_s21 + $0x98] sm:$0xff] %vm89_vm1, %v17178_v15  ;;  %13744 = vmatprep.subr.bf16.mxu0 %v15752_v31 }
0x2aad   :  { %11594 = vst.msk [vmem:[%s18655_s21 + $0x90] sm:$0xff] %vm89_vm1, %v17180_v9  ;;  %13032 = vmatprep.mubr.msk.f32.mxu0 %vm89_vm1, %v17180_v9 }
0x2aae   :  { %13033 = vmatmul.mubr.msk.f32.gmra.mrb[118].mxu0 %vm89_vm1, %v17178_v15 }
0x2aaf   :  { %13746 = vmatpush3.bf16.msra.mxu0 %v15752_v31 }
0x2ab0   :  { %13748 = vmatprep.subr.bf16.mxu0 %v15762_v33 }
0x2ab3   :  { %13750 = vmatpush3.bf16.msra.mxu0 %v15762_v33 }
0x2ab4   :  { %13752 = vmatprep.subr.bf16.mxu0 %v15772_v34 }
0x2ab7   :  { %13754 = vmatpush3.bf16.msra.mxu0 %v15772_v34 }
0x2ab8   :  { %13772 = vmatprep.subr.bf16.mxu0 %v15901_v61 }
0x2b7d   :  { %v13031_v28 = vpop.f32.mrb[116].mxu0 }
0x2b7e   :  { %v17207_v41 = vadd.f32 %v14822_v17, %v13031_v28  ;;  %v7809_v23 = vpop.f32.mrb[117].mxu0 }
0x2b7f   :  { %v17209_v20 = vadd.f32 %v14822_v17, %v7809_v23 }
0x2b80   :  { %v7845_v7 = vand.u32 2147483647, %v17207_v41  ;;  %vm7837_vm13 = vcmp.ne.f32.partialorder %v17207_v41, %v17207_v41 }
0x2b81   :  { %v7844_v43 = vand.u32 2147483647, %v17209_v20  ;;  %v13034_v45 = vpop.f32.mrb[118].mxu0  ;;  %vm7836_vm14 = vcmp.ne.f32.partialorder %v17209_v20, %v17209_v20 }
0x2b82   :  { %v7849_v57 = vsub.f32 0.0, %v7845_v7  ;;  %v17213_v53 = vadd.f32 %v14822_v17, %v13034_v45  ;;  %v7819_v0 = vpop.f32.mrb[119].mxu0 }
0x2b83   :  { %v7848_v13 = vsub.f32 0.0, %v7844_v43  ;;  %v17215_v21 = vadd.f32 %v14822_v17, %v7819_v0 }
0x2b84   :  { %v7854_v30 = vmul.f32 1.442695, %v7849_v57  ;;  %v7847_v8 = vand.u32 2147483647, %v17213_v53  ;;  %vm7839_vm6 = vcmp.ne.f32.partialorder %v17213_v53, %v17213_v53 }
0x2b85   :  { %v7852_v63 = vmul.f32 1.442695, %v7848_v13  ;;  %v7846_v44 = vand.u32 2147483647, %v17215_v21  ;;  %vm7838_vm5 = vcmp.ne.f32.partialorder %v17215_v21, %v17215_v21 }
0x2b86   :  { %14499 = vpow2.f32 %v7854_v30  ;;  %v7851_v39 = vsub.f32 0.0, %v7847_v8 }
0x2b87   :  { %14501 = vpow2.f32 %v7852_v63  ;;  %v7850_v48 = vsub.f32 0.0, %v7846_v44  ;;  %v7833_v63 = vmax.f32 %v17207_v41, 0.0 }
0x2b88   :  { %v7858_v10 = vmul.f32 1.442695, %v7851_v39 }
0x2b89   :  { %v7856_v47 = vmul.f32 1.442695, %v7850_v48 }
0x2b8a   :  { %14503 = vpow2.f32 %v7858_v10 }
0x2b8b   :  { %14505 = vpow2.f32 %v7856_v47 }
0x2b90   :  { %v14500_v6 = vpop.eup %14499 }
0x2b91   :  { %v14502_v52 = vpop.eup %14501  ;;  %v7869_v58 = vadd.f32 1.0, %v14500_v6  ;;  %v7872_v17 = vmul.f32 -0.5, %v14500_v6  ;;  %v7875_v45 = vand.u32 2147483647, %v14500_v6 }
0x2b92   :  { %v7860_v5 = vadd.f32 1.0, %v14502_v52  ;;  %v7863_v7 = vmul.f32 -0.5, %v14502_v52  ;;  %v7866_v30 = vand.u32 2147483647, %v14502_v52 }
0x2b93   :  { %14507 = vlog2.f32 %v7869_v58  ;;  %v7873_v43 = vadd.f32 1.0, %v7872_v17  ;;  %vm7876_vm11 = vcmp.lt.f32.partialorder %v7875_v45, 0.0004427343  ;;  %v7832_v17 = vmax.f32 %v17209_v20, 0.0 }
0x2b94   :  { %v14504_v37 = vpop.eup %14503  ;;  %14509 = vlog2.f32 %v7860_v5  ;;  %v7864_v0 = vadd.f32 1.0, %v7863_v7  ;;  %vm7867_vm12 = vcmp.lt.f32.partialorder %v7866_v30, 0.0004427343  ;;  %v7835_v45 = vmax.f32 %v17213_v53, 0.0 }
0x2b95   :  { %v14506_v2 = vpop.eup %14505  ;;  %v7887_v28 = vadd.f32 1.0, %v14504_v37  ;;  %v7890_v57 = vmul.f32 -0.5, %v14504_v37  ;;  %v7874_v48 = vmul.f32 %v14500_v6, %v7873_v43  ;;  %v7893_v55 = vand.u32 2147483647, %v14504_v37 }
0x2b96   :  { %v7878_v23 = vadd.f32 1.0, %v14506_v2  ;;  %v7881_v13 = vmul.f32 -0.5, %v14506_v2  ;;  %v7865_v58 = vmul.f32 %v14502_v52, %v7864_v0 }
0x2b97   :  { %14511 = vlog2.f32 %v7887_v28  ;;  %v7891_v10 = vadd.f32 1.0, %v7890_v57  ;;  %vm7894_vm15 = vcmp.lt.f32.partialorder %v7893_v55, 0.0004427343 }
0x2b98   :  { %14513 = vlog2.f32 %v7878_v23  ;;  %v7882_v5 = vadd.f32 1.0, %v7881_v13  ;;  %v7884_v23 = vand.u32 2147483647, %v14506_v2  ;;  %v7834_v13 = vmax.f32 %v17215_v21, 0.0 }
0x2b99   :  { %v7892_v52 = vmul.f32 %v14504_v37, %v7891_v10 }
0x2b9a   :  { %v7883_v0 = vmul.f32 %v14506_v2, %v7882_v5  ;;  %vm7885_vm4 = vcmp.lt.f32.partialorder %v7884_v23, 0.0004427343 }
0x2b9d   :  { %v14508_v8 = vpop.eup %14507 }
0x2b9e   :  { %v14510_v44 = vpop.eup %14509  ;;  %v7871_v39 = vmul.f32 0.6931472, %v14508_v8 }
0x2b9f   :  { %v7862_v47 = vmul.f32 0.6931472, %v14510_v44 }
0x2ba0   :  { %v7877_v28 = vsel %vm7876_vm11, %v7874_v48, %v7871_v39 }
0x2ba1   :  { %v14512_v7 = vpop.eup %14511  ;;  %v7897_v51 = vadd.f32 %v7877_v28, %v7833_v63  ;;  %v7868_v22 = vsel %vm7867_vm12, %v7865_v58, %v7862_v47 }
0x2ba2   :  { %v14514_v25 = vpop.eup %14513  ;;  %v7896_v6 = vadd.f32 %v7868_v22, %v7832_v17  ;;  %v7889_v43 = vmul.f32 0.6931472, %v14512_v7 }
0x2ba3   :  { %v7880_v57 = vmul.f32 0.6931472, %v14514_v25  ;;  %v7901_v22 = vsel %vm7837_vm13, %v17207_v41, %v7897_v51 }
0x2ba4   :  { %v7900_v30 = vsel %vm7836_vm14, %v17209_v20, %v7896_v6  ;;  %v7895_v8 = vsel %vm7894_vm15, %v7892_v52, %v7889_v43  ;;  %v14823_v20 = vld [vmem:[%s18660_s12] ss:$0 sm:$0xff] }
0x2ba5   :  { %13051 = vmatprep.mubr.msk.f32.mxu0 %vm3389_vm7, %v7900_v30  ;;  %v7886_v63 = vsel %vm7885_vm4, %v7883_v0, %v7880_v57  ;;  %v7899_v37 = vadd.f32 %v7895_v8, %v7835_v45 }
0x2ba6   :  { %13052 = vmatmul.mubr.msk.f32.vlgmr.msra.gmra.mrb[120].mxu0 %vm3389_vm7, %v7901_v22  ;;  %v7898_v25 = vadd.f32 %v7886_v63, %v7834_v13 }
0x2ba7   :  { %13774 = vmatpush3.bf16.msra.mxu0 %v15901_v61  ;;  %v7903_v51 = vsel %vm7839_vm6, %v17213_v53, %v7899_v37 }
0x2ba8   :  { %v7902_v55 = vsel %vm7838_vm5, %v17215_v21, %v7898_v25  ;;  %13776 = vmatprep.subr.bf16.mxu0 %v15906_v32 }
0x2ba9   :  { %13054 = vmatprep.mubr.msk.f32.mxu0 %vm3389_vm7, %v7902_v55 }
0x2baa   :  { %13055 = vmatmul.mubr.msk.f32.gmra.mrb[122].mxu0 %vm3389_vm7, %v7903_v51 }
0x2bab   :  { %13778 = vmatpush3.bf16.msra.mxu0 %v15906_v32 }
0x2bac   :  { %13093 = vmatprep.subr.msk.mxu0 %vm102_vm0, %v17015_v36 }
0x2c79   :  { %v13053_v41 = vpop.f32.mrb[120].mxu0 }
0x2c7a   :  { %v17250_v21 = vadd.f32 %v14823_v20, %v13053_v41  ;;  %v7982_v2 = vpop.f32.mrb[121].mxu0 }
0x2c7b   :  { %v17252_v44 = vadd.f32 %v14823_v20, %v7982_v2 }
0x2c7c   :  { %v8014_v39 = vand.u32 2147483647, %v17250_v21  ;;  %vm8006_vm10 = vcmp.ne.f32.partialorder %v17250_v21, %v17250_v21 }
0x2c7d   :  { %v8013_v53 = vand.u32 2147483647, %v17252_v44  ;;  %v13056_v48 = vpop.f32.mrb[122].mxu0  ;;  %vm8005_vm11 = vcmp.ne.f32.partialorder %v17252_v44, %v17252_v44 }
0x2c7e   :  { %v8018_v10 = vsub.f32 0.0, %v8014_v39  ;;  %v17256_v47 = vadd.f32 %v14823_v20, %v13056_v48  ;;  %v7992_v58 = vpop.f32.mrb[123].mxu0 }
0x2c7f   :  { %v8017_v36 = vsub.f32 0.0, %v8013_v53  ;;  %v17258_v5 = vadd.f32 %v14823_v20, %v7992_v58 }
0x2c80   :  { %v8023_v28 = vmul.f32 1.442695, %v8018_v10  ;;  %v8016_v17 = vand.u32 2147483647, %v17256_v47  ;;  %v8002_v10 = vmax.f32 %v17250_v21, 0.0  ;;  %vm8008_vm15 = vcmp.ne.f32.partialorder %v17256_v47, %v17256_v47 }
0x2c81   :  { %v8021_v23 = vmul.f32 1.442695, %v8017_v36  ;;  %v8015_v7 = vand.u32 2147483647, %v17258_v5  ;;  %vm8007_vm14 = vcmp.ne.f32.partialorder %v17258_v5, %v17258_v5 }
0x2c82   :  { %14515 = vpow2.f32 %v8023_v28  ;;  %v8020_v6 = vsub.f32 0.0, %v8016_v17 }
0x2c83   :  { %14517 = vpow2.f32 %v8021_v23  ;;  %v8019_v43 = vsub.f32 0.0, %v8015_v7 }
0x2c84   :  { %v8027_v52 = vmul.f32 1.442695, %v8020_v6 }
0x2c85   :  { %v8025_v45 = vmul.f32 1.442695, %v8019_v43 }
0x2c86   :  { %14519 = vpow2.f32 %v8027_v52 }
0x2c87   :  { %14521 = vpow2.f32 %v8025_v45  ;;  %v8001_v45 = vmax.f32 %v17252_v44, 0.0 }
0x2c8c   :  { %v14516_v57 = vpop.eup %14515 }
0x2c8d   :  { %v14518_v0 = vpop.eup %14517  ;;  %v8038_v13 = vadd.f32 1.0, %v14516_v57  ;;  %v8041_v37 = vmul.f32 -0.5, %v14516_v57  ;;  %v8044_v41 = vand.u32 2147483647, %v14516_v57 }
0x2c8e   :  { %v8029_v30 = vadd.f32 1.0, %v14518_v0  ;;  %v8032_v55 = vmul.f32 -0.5, %v14518_v0  ;;  %v8035_v53 = vand.u32 2147483647, %v14518_v0 }
0x2c8f   :  { %14523 = vlog2.f32 %v8038_v13  ;;  %v8042_v51 = vadd.f32 1.0, %v8041_v37  ;;  %vm8045_vm8 = vcmp.lt.f32.partialorder %v8044_v41, 0.0004427343 }
0x2c90   :  { %v14520_v8 = vpop.eup %14519  ;;  %14525 = vlog2.f32 %v8029_v30  ;;  %v8033_v2 = vadd.f32 1.0, %v8032_v55  ;;  %vm8036_vm9 = vcmp.lt.f32.partialorder %v8035_v53, 0.0004427343 }
0x2c91   :  { %v14522_v22 = vpop.eup %14521  ;;  %v8056_v63 = vadd.f32 1.0, %v14520_v8  ;;  %v8059_v20 = vmul.f32 -0.5, %v14520_v8  ;;  %v8043_v28 = vmul.f32 %v14516_v57, %v8042_v51  ;;  %v8062_v43 = vand.u32 2147483647, %v14520_v8 }
0x2c92   :  { %v8047_v25 = vadd.f32 1.0, %v14522_v22  ;;  %v8050_v39 = vmul.f32 -0.5, %v14522_v22  ;;  %v8034_v7 = vmul.f32 %v14518_v0, %v8033_v2  ;;  %v8053_v13 = vand.u32 2147483647, %v14522_v22 }
0x2c93   :  { %14527 = vlog2.f32 %v8056_v63  ;;  %v8060_v17 = vadd.f32 1.0, %v8059_v20  ;;  %v8004_v51 = vmax.f32 %v17256_v47, 0.0  ;;  %vm8063_vm12 = vcmp.lt.f32.partialorder %v8062_v43, 0.0004427343 }
0x2c94   :  { %14529 = vlog2.f32 %v8047_v25  ;;  %v8051_v6 = vadd.f32 1.0, %v8050_v39  ;;  %v8003_v2 = vmax.f32 %v17258_v5, 0.0  ;;  %vm8054_vm13 = vcmp.lt.f32.partialorder %v8053_v13, 0.0004427343 }
0x2c95   :  { %v8061_v0 = vmul.f32 %v14520_v8, %v8060_v17 }
0x2c96   :  { %v8052_v20 = vmul.f32 %v14522_v22, %v8051_v6 }
0x2c99   :  { %v14524_v48 = vpop.eup %14523 }
0x2c9a   :  { %v14526_v58 = vpop.eup %14525  ;;  %v8040_v36 = vmul.f32 0.6931472, %v14524_v48 }
0x2c9b   :  { %v8031_v23 = vmul.f32 0.6931472, %v14526_v58 }
0x2c9c   :  { %v8046_v52 = vsel %vm8045_vm8, %v8043_v28, %v8040_v36 }
0x2c9d   :  { %v14528_v30 = vpop.eup %14527  ;;  %v8066_v63 = vadd.f32 %v8046_v52, %v8002_v10  ;;  %v8037_v37 = vsel %vm8036_vm9, %v8034_v7, %v8031_v23 }
0x2c9e   :  { %v14530_v25 = vpop.eup %14529  ;;  %v8065_v57 = vadd.f32 %v8037_v37, %v8001_v45  ;;  %v8058_v55 = vmul.f32 0.6931472, %v14528_v30 }
0x2c9f   :  { %v8049_v41 = vmul.f32 0.6931472, %v14530_v25  ;;  %v8070_v48 = vsel %vm8006_vm10, %v17250_v21, %v8066_v63 }
0x2ca0   :  { %v8069_v39 = vsel %vm8005_vm11, %v17252_v44, %v8065_v57  ;;  %v8064_v53 = vsel %vm8063_vm12, %v8061_v0, %v8058_v55 }
0x2ca1   :  { %13073 = vmatprep.mubr.msk.f32.mxu1 %vm3389_vm7, %v8069_v39  ;;  %v8055_v10 = vsel %vm8054_vm13, %v8052_v20, %v8049_v41  ;;  %v8068_v8 = vadd.f32 %v8064_v53, %v8004_v51 }
0x2ca2   :  { %13074 = vmatmul.mubr.msk.f32.vlgmr.msra.gmra.mrb[76].mxu1 %vm3389_vm7, %v8070_v48  ;;  %v8067_v58 = vadd.f32 %v8055_v10, %v8003_v2 }
0x2ca3   :  { %13782 = vmatpush3.bf16.msra.mxu1 %v15931_v40  ;;  %v8072_v21 = vsel %vm8008_vm15, %v17256_v47, %v8068_v8 }
0x2ca4   :  { %v8071_v44 = vsel %vm8007_vm14, %v17258_v5, %v8067_v58  ;;  %13784 = vmatprep.subr.bf16.mxu1 %v15936_v42  ;;  %v14824_v5 = vld [vmem:[%s18663_s14] ss:$0 sm:$0xff] }
0x2ca5   :  { %13076 = vmatprep.mubr.msk.f32.mxu1 %vm3389_vm7, %v8071_v44 }
0x2ca6   :  { %13077 = vmatmul.mubr.msk.f32.gmra.mrb[78].mxu1 %vm3389_vm7, %v8072_v21 }
0x2ca7   :  { %13786 = vmatpush3.bf16.msra.mxu1 %v15936_v42 }
0x2ca8   :  { %13788 = vmatprep.subr.bf16.mxu1 %v16012_v38 }
0x2cab   :  { %13790 = vmatpush3.bf16.msra.mxu1 %v16012_v38 }
0x2cac   :  { %13792 = vmatprep.subr.bf16.mxu1 %v16022_v18 }
0x2caf   :  { %13794 = vmatpush3.bf16.msra.mxu1 %v16022_v18 }
0x2cb0   :  { %13796 = vmatprep.subr.bf16.mxu1 %v16035_v59 }
0x2cb3   :  { %13798 = vmatpush3.bf16.msra.mxu1 %v16035_v59 }
0x2cb4   :  { %13800 = vmatprep.subr.bf16.mxu1 %v16040_v60 }
0x2cb7   :  { %13802 = vmatpush3.bf16.msra.mxu1 %v16040_v60 }
0x2cb8   :  { %13804 = vmatprep.subr.bf16.mxu1 %v16051_v46 }
0x2cbb   :  { %13806 = vmatpush3.bf16.msra.mxu1 %v16051_v46 }
0x2cbc   :  { %13808 = vmatprep.subr.bf16.mxu1 %v16061_v49 }
0x2cbf   :  { %13810 = vmatpush3.bf16.msra.mxu1 %v16061_v49 }
0x2cc0   :  { %13828 = vmatprep.subr.bf16.mxu1 %v15820_v56 }
0x2d75   :  { %v13075_v47 = vpop.f32.mrb[76].mxu1 }
0x2d76   :  { %v17304_v22 = vadd.f32 %v14824_v5, %v13075_v47  ;;  %v8151_v36 = vpop.f32.mrb[77].mxu1 }
0x2d77   :  { %v17306_v28 = vadd.f32 %v14824_v5, %v8151_v36 }
0x2d78   :  { %18771 = vst [vmem:[#allocation46_spill] sm:$0xff] %v17304_v22  ;;  %v8183_v17 = vand.u32 2147483647, %v17304_v22  ;;  %v8710_v23 = vmul.f32 0.1, %v17304_v22  ;;  %vm8175_vm6 = vcmp.ne.f32.partialorder %v17304_v22, %v17304_v22 }
0x2d79   :  { %18772 = vst [vmem:[#allocation47_spill] sm:$0xff] %v17306_v28  ;;  %v8182_v7 = vand.u32 2147483647, %v17306_v28  ;;  %v13078_v6 = vpop.f32.mrb[78].mxu1  ;;  %v8709_v43 = vmul.f32 0.1, %v17306_v28  ;;  %vm8174_vm8 = vcmp.ne.f32.partialorder %v17306_v28, %v17306_v28 }
0x2d7a   :  { %v8187_v52 = vsub.f32 0.0, %v8183_v17  ;;  %v17312_v45 = vadd.f32 %v14824_v5, %v13078_v6  ;;  %8719 = vrot.lane.b32.xlu1 %v8710_v23, %s14847_s4  ;;  %v8161_v13 = vpop.f32.mrb[79].mxu1 }
0x2d7b   :  { %v8186_v30 = vsub.f32 0.0, %v8182_v7  ;;  %v17315_v63 = vadd.f32 %v14824_v5, %v8161_v13  ;;  %8717 = vrot.lane.b32.xlu0 %v8709_v43, %s14847_s4 }
0x2d7c   :  { %18773 = vst [vmem:[#allocation48_spill] sm:$0xff] %v17312_v45  ;;  %v8192_v37 = vmul.f32 1.442695, %v8187_v52  ;;  %v8185_v25 = vand.u32 2147483647, %v17312_v45  ;;  %vm8177_vm12 = vcmp.ne.f32.partialorder %v17312_v45, %v17312_v45 }
0x2d7d   :  { %18774 = vst [vmem:[#allocation49_spill] sm:$0xff] %v17315_v63  ;;  %v8712_v57 = vmul.f32 0.1, %v17312_v45  ;;  %v8190_v55 = vmul.f32 1.442695, %v8186_v30  ;;  %v8171_v30 = vmax.f32 %v17304_v22, 0.0  ;;  %vm8176_vm11 = vcmp.ne.f32.partialorder %v17315_v63, %v17315_v63 }
0x2d7e   :  { %v8184_v0 = vand.u32 2147483647, %v17315_v63  ;;  %v8711_v51 = vmul.f32 0.1, %v17315_v63  ;;  %14531 = vpow2.f32 %v8192_v37  ;;  %v8189_v41 = vsub.f32 0.0, %v8185_v25 }
0x2d7f   :  { %8723 = vrot.lane.b32.xlu1 %v8712_v57, %s14847_s4  ;;  %14533 = vpow2.f32 %v8190_v55 }
0x2d80   :  { %v8188_v20 = vsub.f32 0.0, %v8184_v0  ;;  %8721 = vrot.lane.b32.xlu0 %v8711_v51, %s14847_s4  ;;  %v8196_v2 = vmul.f32 1.442695, %v8189_v41 }
0x2d82   :  { %v8194_v39 = vmul.f32 1.442695, %v8188_v20  ;;  %14535 = vpow2.f32 %v8196_v2  ;;  %v8170_v2 = vmax.f32 %v17306_v28, 0.0 }
0x2d84   :  { %14537 = vpow2.f32 %v8194_v39 }
0x2d88   :  { %v14532_v53 = vpop.eup %14531 }
0x2d89   :  { %v14534_v48 = vpop.eup %14533  ;;  %v8207_v10 = vadd.f32 1.0, %v14532_v53  ;;  %v8210_v47 = vmul.f32 -0.5, %v14532_v53  ;;  %v8213_v23 = vand.u32 2147483647, %v14532_v53 }
0x2d8a   :  { %v8198_v8 = vadd.f32 1.0, %v14534_v48  ;;  %v8201_v36 = vmul.f32 -0.5, %v14534_v48  ;;  %v8204_v52 = vand.u32 2147483647, %v14534_v48 }
0x2d8b   :  { %14539 = vlog2.f32 %v8207_v10  ;;  %v8211_v17 = vadd.f32 1.0, %v8210_v47  ;;  %vm8214_vm4 = vcmp.lt.f32.partialorder %v8213_v23, 0.0004427343 }
0x2d8c   :  { %v14536_v58 = vpop.eup %14535  ;;  %14541 = vlog2.f32 %v8198_v8  ;;  %v8202_v6 = vadd.f32 1.0, %v8201_v36  ;;  %vm8205_vm5 = vcmp.lt.f32.partialorder %v8204_v52, 0.0004427343 }
0x2d8d   :  { %v8225_v21 = vadd.f32 1.0, %v14536_v58  ;;  %v8228_v7 = vmul.f32 -0.5, %v14536_v58  ;;  %v8212_v57 = vmul.f32 %v14532_v53, %v8211_v17  ;;  %v8231_v20 = vand.u32 2147483647, %v14536_v58 }
0x2d8e   :  { %v14538_v44 = vpop.eup %14537  ;;  %v8203_v51 = vmul.f32 %v14534_v48, %v8202_v6 }
0x2d8f   :  { %v8216_v5 = vadd.f32 1.0, %v14538_v44  ;;  %14543 = vlog2.f32 %v8225_v21  ;;  %v8219_v43 = vmul.f32 -0.5, %v14538_v44  ;;  %v8229_v55 = vadd.f32 1.0, %v8228_v7 }
0x2d90   :  { %v8222_v10 = vand.u32 2147483647, %v14538_v44  ;;  %v8173_v7 = vmax.f32 %v17312_v45, 0.0  ;;  %vm8232_vm9 = vcmp.lt.f32.partialorder %v8231_v20, 0.0004427343  ;;  %v8754_v20 = vld [vmem:[#allocation3 + $0xd0] sm:$0xff] }
0x2d91   :  { %14545 = vlog2.f32 %v8216_v5  ;;  %v8220_v41 = vadd.f32 1.0, %v8219_v43  ;;  %v8230_v48 = vmul.f32 %v14536_v58, %v8229_v55  ;;  %v8172_v43 = vmax.f32 %v17315_v63, 0.0 }
0x2d92   :  { %vm8223_vm10 = vcmp.lt.f32.partialorder %v8222_v10, 0.0004427343 }
0x2d93   :  { %v8221_v23 = vmul.f32 %v14538_v44, %v8220_v41  ;;  %v8753_v41 = vld [vmem:[#allocation3 + $0xc8] sm:$0xff] }
0x2d95   :  { %v14540_v13 = vpop.eup %14539 }
0x2d96   :  { %v14542_v37 = vpop.eup %14541  ;;  %v8209_v25 = vmul.f32 0.6931472, %v14540_v13 }
0x2d97   :  { %v8200_v0 = vmul.f32 0.6931472, %v14542_v37  ;;  %v17342_v37 = vld [vmem:[%s18662_s17] sm:$0xf] }
0x2d98   :  { %v8215_v39 = vsel %vm8214_vm4, %v8212_v57, %v8209_v25  ;;  %v14826_v57 = vld [vmem:[%s18727_s5] sm:$0xff] }
0x2d99   :  { %v14544_v8 = vpop.eup %14543  ;;  %v8206_v21 = vsel %vm8205_vm5, %v8203_v51, %v8200_v0  ;;  %v8235_v47 = vadd.f32 %v8215_v39, %v8171_v30  ;;  %v14827_v0 = vld [vmem:[%s18728_s30] sm:$0xf] }
0x2d9a   :  { %v8234_v53 = vadd.f32 %v8206_v21, %v8170_v2  ;;  %v8227_v36 = vmul.f32 0.6931472, %v14544_v8  ;;  %v8752_v51 = vld [vmem:[#allocation3 + $0xc0] sm:$0xff]  ;;  %v8755_v2 = vld [vmem:[#allocation3 + $0xd8] sm:$0xff] }
0x2d9b   :  { %v14546_v5 = vpop.eup %14545  ;;  %v8239_v13 = vsel %vm8175_vm6, %v17304_v22, %v8235_v47 }
0x2d9c   :  { %v8218_v17 = vmul.f32 0.6931472, %v14546_v5  ;;  %v8238_v6 = vsel %vm8174_vm8, %v17306_v28, %v8234_v53  ;;  %v8233_v52 = vsel %vm8232_vm9, %v8230_v48, %v8227_v36  ;;  %v14828_v5 = vld [vmem:[%s18665_s18] ss:$0 sm:$0xff] }
0x2d9d   :  { %13087 = vmatprep.mubr.msk.f32.mxu0 %vm197_vm2, %v8238_v6  ;;  %v8237_v58 = vadd.f32 %v8233_v52, %v8173_v7 }
0x2d9e   :  { %v8224_v30 = vsel %vm8223_vm10, %v8221_v23, %v8218_v17  ;;  %13088 = vmatmul.mubr.msk.f32.vlgmr.msra.gmra.mrb[124].mxu0 %vm197_vm2, %v8239_v13 }
0x2d9f   :  { %v8236_v44 = vadd.f32 %v8224_v30, %v8172_v43  ;;  %13094 = vmatpush3.msk.msra.mxu0 %vm102_vm0, %v17342_v37  ;;  %v8241_v55 = vsel %vm8177_vm12, %v17312_v45, %v8237_v58 }
0x2da0   :  { %13139 = vmatprep.subr.mxu0 %v14826_v57 }
0x2da1   :  { %v8240_v25 = vsel %vm8176_vm11, %v17315_v63, %v8236_v44 }
0x2da2   :  { %13090 = vmatprep.mubr.msk.f32.mxu0 %vm197_vm2, %v8240_v25 }
0x2da3   :  { %13091 = vmatmul.mubr.msk.f32.gmra.mrb[126].mxu0 %vm197_vm2, %v8241_v55 }
0x2da4   :  { %13095 = vmatprep.mubr.msk.f32.mxu0 %vm89_vm1, %v17155_v24 }
0x2da7   :  { %13096 = vmatmul.mubr.msk.f32.vlgmr.msra.gmra.mrb[128].mxu0 %vm89_vm1, %v17143_v29 }
0x2da8   :  { %13098 = vmatprep.mubr.msk.f32.mxu0 %vm89_vm1, %v17180_v9  ;;  %13140 = vmatpush3.msra.mxu0 %v14826_v57 }
0x2da9   :  { %13147 = vmatprep.subr.msk.mxu0 %vm102_vm0, %v14827_v0 }
0x2dab   :  { %13099 = vmatmul.mubr.msk.f32.gmra.mrb[130].mxu0 %vm89_vm1, %v17178_v15 }
0x2dac   :  { %13141 = vmatprep.mubr.msk.f32.mxu0 %vm3013_vm3, %v8752_v51 }
0x2daf   :  { %13142 = vmatmul.mubr.msk.f32.vlgmr.msra.gmra.mrb[132].mxu0 %vm3013_vm3, %v8753_v41 }
0x2db0   :  { %13144 = vmatprep.mubr.msk.f32.mxu0 %vm3013_vm3, %v8754_v20  ;;  %13148 = vmatpush3.msk.msra.mxu0 %vm102_vm0, %v14827_v0 }
0x2db1   :  { %13812 = vmatprep.subr.bf16.mxu0 %v15742_v27 }
0x2db3   :  { %13145 = vmatmul.mubr.msk.f32.gmra.mrb[134].mxu0 %vm3013_vm3, %v8755_v2 }
0x2e71   :  { %v17375_v39 = vpop.f32.mrb[124].mxu0 }
0x2e72   :  { %18775 = vst [vmem:[#allocation50_spill] sm:$0xff] %v17375_v39  ;;  %v17377_v10 = vpop.f32.mrb[125].mxu0 }
0x2e73   :  { %18776 = vst [vmem:[#allocation51_spill] sm:$0xff] %v17377_v10 }
0x2e76   :  { %v17379_v8 = vpop.f32.mrb[126].mxu0 }
0x2e77   :  { %18777 = vst [vmem:[#allocation52_spill] sm:$0xff] %v17379_v8  ;;  %v17381_v21 = vpop.f32.mrb[127].mxu0 }
0x2e78   :  { %18778 = vst [vmem:[#allocation53_spill] sm:$0xff] %v17381_v21 }
0x2e7a   :  { %v13097_v47 = vpop.f32.mrb[128].mxu0 }
0x2e7b   :  { %v17386_v53 = vadd.f32 %v14828_v5, %v13097_v47  ;;  %v8405_v36 = vpop.f32.mrb[129].mxu0 }
0x2e7c   :  { %v17388_v48 = vadd.f32 %v14828_v5, %v8405_v36 }
0x2e7d   :  { %v8437_v17 = vand.u32 2147483647, %v17386_v53  ;;  %vm8429_vm15 = vcmp.ne.f32.partialorder %v17386_v53, %v17386_v53 }
0x2e7e   :  { %v8436_v23 = vand.u32 2147483647, %v17388_v48  ;;  %v13100_v7 = vpop.f32.mrb[130].mxu0  ;;  %vm8428_vm4 = vcmp.ne.f32.partialorder %v17388_v48, %v17388_v48 }
0x2e7f   :  { %v8441_v6 = vsub.f32 0.0, %v8437_v17  ;;  %v17392_v43 = vadd.f32 %v14828_v5, %v13100_v7  ;;  %v8415_v52 = vpop.f32.mrb[131].mxu0 }
0x2e80   :  { %v8440_v13 = vsub.f32 0.0, %v8436_v23  ;;  %v17394_v30 = vadd.f32 %v14828_v5, %v8415_v52 }
0x2e81   :  { %v8446_v58 = vmul.f32 1.442695, %v8441_v6  ;;  %v8439_v44 = vand.u32 2147483647, %v17392_v43  ;;  %vm8431_vm9 = vcmp.ne.f32.partialorder %v17392_v43, %v17392_v43 }
0x2e82   :  { %v8444_v25 = vmul.f32 1.442695, %v8440_v13  ;;  %v8438_v57 = vand.u32 2147483647, %v17394_v30  ;;  %vm8430_vm8 = vcmp.ne.f32.partialorder %v17394_v30, %v17394_v30 }
0x2e83   :  { %14547 = vpow2.f32 %v8446_v58  ;;  %v8443_v55 = vsub.f32 0.0, %v8439_v44 }
0x2e84   :  { %14549 = vpow2.f32 %v8444_v25  ;;  %v8442_v0 = vsub.f32 0.0, %v8438_v57 }
0x2e85   :  { %v8450_v51 = vmul.f32 1.442695, %v8443_v55 }
0x2e86   :  { %v8448_v41 = vmul.f32 1.442695, %v8442_v0 }
0x2e87   :  { %14551 = vpow2.f32 %v8450_v51  ;;  %v8425_v51 = vmax.f32 %v17386_v53, 0.0 }
0x2e88   :  { %14553 = vpow2.f32 %v8448_v41 }
0x2e8d   :  { %v14548_v20 = vpop.eup %14547 }
0x2e8e   :  { %v14550_v2 = vpop.eup %14549  ;;  %v8461_v47 = vadd.f32 1.0, %v14548_v20  ;;  %v8464_v7 = vmul.f32 -0.5, %v14548_v20  ;;  %v8467_v58 = vand.u32 2147483647, %v14548_v20 }
0x2e8f   :  { %v8452_v36 = vadd.f32 1.0, %v14550_v2  ;;  %v8455_v52 = vmul.f32 -0.5, %v14550_v2  ;;  %v8458_v55 = vand.u32 2147483647, %v14550_v2 }
0x2e90   :  { %14555 = vlog2.f32 %v8461_v47  ;;  %v8465_v13 = vadd.f32 1.0, %v8464_v7  ;;  %vm8468_vm13 = vcmp.lt.f32.partialorder %v8467_v58, 0.0004427343 }
0x2e91   :  { %v14552_v5 = vpop.eup %14551  ;;  %14557 = vlog2.f32 %v8452_v36  ;;  %v8456_v25 = vadd.f32 1.0, %v8455_v52  ;;  %vm8459_vm14 = vcmp.lt.f32.partialorder %v8458_v55, 0.0004427343 }
0x2e92   :  { %v14554_v17 = vpop.eup %14553  ;;  %v8479_v23 = vadd.f32 1.0, %v14552_v5  ;;  %v8482_v44 = vmul.f32 -0.5, %v14552_v5  ;;  %v8466_v63 = vmul.f32 %v14548_v20, %v8465_v13  ;;  %v8485_v21 = vand.u32 2147483647, %v14552_v5 }
0x2e93   :  { %v8470_v6 = vadd.f32 1.0, %v14554_v17  ;;  %v8473_v57 = vmul.f32 -0.5, %v14554_v17  ;;  %v8457_v28 = vmul.f32 %v14550_v2, %v8456_v25  ;;  %v8427_v25 = vmax.f32 %v17392_v43, 0.0 }
0x2e94   :  { %14559 = vlog2.f32 %v8479_v23  ;;  %v8483_v36 = vadd.f32 1.0, %v8482_v44  ;;  %v8424_v23 = vmax.f32 %v17388_v48, 0.0  ;;  %vm8486_vm5 = vcmp.lt.f32.partialorder %v8485_v21, 0.0004427343 }
0x2e95   :  { %14561 = vlog2.f32 %v8470_v6  ;;  %v8474_v22 = vadd.f32 1.0, %v8473_v57  ;;  %v8476_v6 = vand.u32 2147483647, %v14554_v17 }
0x2e96   :  { %v8484_v2 = vmul.f32 %v14552_v5, %v8483_v36 }
0x2e97   :  { %v8475_v44 = vmul.f32 %v14554_v17, %v8474_v22  ;;  %vm8477_vm6 = vcmp.lt.f32.partialorder %v8476_v6, 0.0004427343 }
0x2e9a   :  { %v14556_v0 = vpop.eup %14555 }
0x2e9b   :  { %v14558_v41 = vpop.eup %14557  ;;  %v8463_v47 = vmul.f32 0.6931472, %v14556_v0 }
0x2e9c   :  { %v8454_v45 = vmul.f32 0.6931472, %v14558_v41 }
0x2e9d   :  { %v8469_v7 = vsel %vm8468_vm13, %v8466_v63, %v8463_v47 }
0x2e9e   :  { %v14560_v52 = vpop.eup %14559  ;;  %v8460_v8 = vsel %vm8459_vm14, %v8457_v28, %v8454_v45  ;;  %v8489_v10 = vadd.f32 %v8469_v7, %v8425_v51  ;;  %v8426_v28 = vmax.f32 %v17394_v30, 0.0 }
0x2e9f   :  { %v14562_v39 = vpop.eup %14561  ;;  %v8488_v20 = vadd.f32 %v8460_v8, %v8424_v23  ;;  %v8481_v13 = vmul.f32 0.6931472, %v14560_v52 }
0x2ea0   :  { %v8472_v58 = vmul.f32 0.6931472, %v14562_v39  ;;  %v8493_v57 = vsel %vm8429_vm15, %v17386_v53, %v8489_v10  ;;  %v14829_v53 = vld [vmem:[%s18666_s20] ss:$0 sm:$0xff] }
0x2ea1   :  { %v8492_v63 = vsel %vm8428_vm4, %v17388_v48, %v8488_v20  ;;  %v8487_v45 = vsel %vm8486_vm5, %v8484_v2, %v8481_v13 }
0x2ea2   :  { %13133 = vmatprep.mubr.f32.mxu1 %v8492_v63  ;;  %v8478_v8 = vsel %vm8477_vm6, %v8475_v44, %v8472_v58  ;;  %v8491_v55 = vadd.f32 %v8487_v45, %v8427_v25 }
0x2ea3   :  { %13134 = vmatmul.mubr.f32.vlgmr.msra.gmra.mrb[80].mxu1 %v8493_v57  ;;  %v8490_v39 = vadd.f32 %v8478_v8, %v8426_v28 }
0x2ea4   :  { %13830 = vmatpush3.bf16.msra.mxu1 %v15820_v56  ;;  %v8495_v21 = vsel %vm8431_vm9, %v17392_v43, %v8491_v55 }
0x2ea5   :  { %v8494_v22 = vsel %vm8430_vm8, %v17394_v30, %v8490_v39  ;;  %13832 = vmatprep.subr.bf16.mxu1 %v15830_v4 }
0x2ea6   :  { %13136 = vmatprep.mubr.f32.mxu1 %v8494_v22 }
0x2ea7   :  { %13137 = vmatmul.mubr.f32.gmra.mrb[82].mxu1 %v8495_v21 }
0x2ea8   :  { %13834 = vmatpush3.bf16.msra.mxu1 %v15830_v4 }
0x2ea9   :  { %13836 = vmatprep.subr.bf16.mxu1 %v15840_v16 }
0x2eac   :  { %13838 = vmatpush3.bf16.msra.mxu1 %v15840_v16 }
0x2ead   :  { %13840 = vmatprep.subr.bf16.mxu1 %v15850_v62 }
0x2eb0   :  { %13842 = vmatpush3.bf16.msra.mxu1 %v15850_v62 }
0x2eb1   :  { %13852 = vmatprep.subr.bf16.mxu1 %v15931_v40 }
0x2f76   :  { %v13135_v10 = vpop.f32.mrb[80].mxu1 }
0x2f77   :  { %v17428_v48 = vadd.f32 %v14829_v53, %v13135_v10  ;;  %v8562_v43 = vpop.f32.mrb[81].mxu1  ;;  %v8720_v10 = vpop.permute.xlu1 %8719 }
0x2f78   :  { %v17430_v30 = vadd.f32 %v14829_v53, %v8562_v43 }
0x2f79   :  { %v8594_v5 = vand.u32 2147483647, %v17428_v48  ;;  %vm8586_vm10 = vcmp.ne.f32.partialorder %v17428_v48, %v17428_v48 }
0x2f7a   :  { %v8593_v17 = vand.u32 2147483647, %v17430_v30  ;;  %v13138_v0 = vpop.f32.mrb[82].mxu1  ;;  %vm8585_vm13 = vcmp.ne.f32.partialorder %v17430_v30, %v17430_v30 }
0x2f7b   :  { %v8598_v51 = vsub.f32 0.0, %v8594_v5  ;;  %v17434_v41 = vadd.f32 %v14829_v53, %v13138_v0  ;;  %v8572_v47 = vpop.f32.mrb[83].mxu1 }
0x2f7c   :  { %v8597_v36 = vsub.f32 0.0, %v8593_v17  ;;  %v17436_v23 = vadd.f32 %v14829_v53, %v8572_v47 }
0x2f7d   :  { %v8603_v7 = vmul.f32 1.442695, %v8598_v51  ;;  %v8596_v6 = vand.u32 2147483647, %v17434_v41  ;;  %vm8588_vm4 = vcmp.ne.f32.partialorder %v17434_v41, %v17434_v41 }
0x2f7e   :  { %v8601_v52 = vmul.f32 1.442695, %v8597_v36  ;;  %v8595_v20 = vand.u32 2147483647, %v17436_v23  ;;  %v8730_v36 = vadd.f32 %v8720_v10, %v17143_v29  ;;  %v11623_v10 = vld [vmem:[%s18667_s1 + $0x88] sm:$0xff]  ;;  %vm8587_vm5 = vcmp.ne.f32.partialorder %v17436_v23, %v17436_v23 }
0x2f7f   :  { %14563 = vpow2.f32 %v8603_v7  ;;  %v8600_v13 = vsub.f32 0.0, %v8596_v6  ;;  %v8582_v7 = vmax.f32 %v17428_v48, 0.0 }
0x2f80   :  { %14565 = vpow2.f32 %v8601_v52  ;;  %v8599_v2 = vsub.f32 0.0, %v8595_v20 }
0x2f81   :  { %v8607_v58 = vmul.f32 1.442695, %v8600_v13 }
0x2f82   :  { %v8605_v44 = vmul.f32 1.442695, %v8599_v2 }
0x2f83   :  { %14567 = vpow2.f32 %v8607_v58 }
0x2f84   :  { %14569 = vpow2.f32 %v8605_v44 }
0x2f89   :  { %v14564_v25 = vpop.eup %14563 }
0x2f8a   :  { %v14566_v63 = vpop.eup %14565  ;;  %v8618_v28 = vadd.f32 1.0, %v14564_v25  ;;  %v8621_v39 = vmul.f32 -0.5, %v14564_v25  ;;  %v8624_v43 = vand.u32 2147483647, %v14564_v25 }
0x2f8b   :  { %v8609_v45 = vadd.f32 1.0, %v14566_v63  ;;  %v8612_v21 = vmul.f32 -0.5, %v14566_v63  ;;  %v8615_v51 = vand.u32 2147483647, %v14566_v63 }
0x2f8c   :  { %14571 = vlog2.f32 %v8618_v28  ;;  %v8622_v53 = vadd.f32 1.0, %v8621_v39  ;;  %vm8625_vm11 = vcmp.lt.f32.partialorder %v8624_v43, 0.0004427343  ;;  %v8581_v39 = vmax.f32 %v17430_v30, 0.0 }
0x2f8d   :  { %v14568_v57 = vpop.eup %14567  ;;  %14573 = vlog2.f32 %v8609_v45  ;;  %v8613_v17 = vadd.f32 1.0, %v8612_v21  ;;  %v8718_v45 = vpop.permute.xlu0 %8717  ;;  %vm8616_vm12 = vcmp.lt.f32.partialorder %v8615_v51, 0.0004427343  ;;  %v11622_v51 = vld [vmem:[%s18667_s1 + $0x80] sm:$0xff] }
0x2f8e   :  { %v14570_v8 = vpop.eup %14569  ;;  %v8636_v55 = vadd.f32 1.0, %v14568_v57  ;;  %v8639_v5 = vmul.f32 -0.5, %v14568_v57  ;;  %v8623_v20 = vmul.f32 %v14564_v25, %v8622_v53  ;;  %v8642_v44 = vand.u32 2147483647, %v14568_v57 }
0x2f8f   :  { %v8627_v22 = vadd.f32 1.0, %v14570_v8  ;;  %v8630_v0 = vmul.f32 -0.5, %v14570_v8  ;;  %v8614_v58 = vmul.f32 %v14566_v63, %v8613_v17  ;;  %v8633_v29 = vand.u32 2147483647, %v14570_v8 }
0x2f90   :  { %14575 = vlog2.f32 %v8636_v55  ;;  %v8640_v13 = vadd.f32 1.0, %v8639_v5  ;;  %v8584_v63 = vmax.f32 %v17434_v41, 0.0  ;;  %vm8643_vm14 = vcmp.lt.f32.partialorder %v8642_v44, 0.0004427343 }
0x2f91   :  { %14577 = vlog2.f32 %v8627_v22  ;;  %v8631_v28 = vadd.f32 1.0, %v8630_v0  ;;  %v8583_v0 = vmax.f32 %v17436_v23, 0.0  ;;  %vm8634_vm15 = vcmp.lt.f32.partialorder %v8633_v29, 0.0004427343  ;;  %v8722_v44 = vpop.permute.xlu0 %8721 }
0x2f92   :  { %v8641_v17 = vmul.f32 %v14568_v57, %v8640_v13  ;;  %v8729_v13 = vadd.f32 %v8718_v45, %v17155_v24  ;;  %v11624_v24 = vld [vmem:[%s18667_s1 + $0x90] sm:$0xff] }
0x2f96   :  { %v14572_v47 = vpop.eup %14571 }
0x2f97   :  { %v14574_v6 = vpop.eup %14573  ;;  %v8620_v52 = vmul.f32 0.6931472, %v14572_v47 }
0x2f98   :  { %v8611_v2 = vmul.f32 0.6931472, %v14574_v6  ;;  %v8632_v6 = vmul.f32 %v14570_v8, %v8631_v28 }
0x2f99   :  { %v8626_v55 = vsel %vm8625_vm11, %v8623_v20, %v8620_v52 }
0x2f9a   :  { %v14576_v22 = vpop.eup %14575  ;;  %v8646_v21 = vadd.f32 %v8626_v55, %v8582_v7  ;;  %v8617_v25 = vsel %vm8616_vm12, %v8614_v58, %v8611_v2  ;;  %v8724_v2 = vpop.permute.xlu1 %8723 }
0x2f9b   :  { %v14578_v53 = vpop.eup %14577  ;;  %v8645_v43 = vadd.f32 %v8617_v25, %v8581_v39  ;;  %v8638_v5 = vmul.f32 0.6931472, %v14576_v22  ;;  %v8732_v29 = vadd.f32 %v8724_v2, %v17178_v15 }
0x2f9c   :  { %v17459_v47 = vsel %vm8586_vm10, %v17428_v48, %v8646_v21  ;;  %v8629_v7 = vmul.f32 0.6931472, %v14578_v53  ;;  %v11625_v48 = vld [vmem:[%s18667_s1 + $0x98] sm:$0xff] }
0x2f9d   :  { %v8739_v52 = vmul.f32 %v11623_v10, %v17459_v47  ;;  %v17463_v20 = vsel %vm8585_vm13, %v17430_v30, %v8645_v43  ;;  %v8644_v57 = vsel %vm8643_vm14, %v8641_v17, %v8638_v5  ;;  %v14830_v10 = vld [vmem:[%s18658_s10] ss:$0 sm:$0xff] }
0x2f9e   :  { %v8648_v58 = vadd.f32 %v8644_v57, %v8584_v63  ;;  %v8635_v55 = vsel %vm8634_vm15, %v8632_v6, %v8629_v7  ;;  %v8738_v39 = vmul.f32 %v11622_v51, %v17463_v20 }
0x2f9f   :  { %v17470_v8 = vadd.f32 %v8739_v52, %v8730_v36  ;;  %v8647_v30 = vadd.f32 %v8635_v55, %v8583_v0 }
0x2fa0   :  { %v17478_v28 = vsel %vm8588_vm4, %v17434_v41, %v8648_v58  ;;  %v17482_v45 = vadd.f32 %v8738_v39, %v8729_v13  ;;  %v8731_v41 = vadd.f32 %v8722_v44, %v17180_v9 }
0x2fa1   :  { %11627 = vst.msk [vmem:[%s18655_s21 + $0xa8] sm:$0xff] %vm89_vm1, %v17470_v8  ;;  %v17491_v36 = vsel %vm8587_vm5, %v17436_v23, %v8647_v30  ;;  %v8741_v22 = vmul.f32 %v11625_v48, %v17478_v28 }
0x2fa2   :  { %11626 = vst.msk [vmem:[%s18655_s21 + $0xa0] sm:$0xff] %vm89_vm1, %v17482_v45  ;;  %13149 = vmatprep.mubr.msk.f32.mxu0 %vm89_vm1, %v17482_v45  ;;  %v8740_v15 = vmul.f32 %v11624_v24, %v17491_v36 }
0x2fa3   :  { %13150 = vmatmul.mubr.msk.f32.vlgmr.msra.gmra.mrb[132].mxu0 %vm89_vm1, %v17470_v8  ;;  %v17505_v23 = vadd.f32 %v8741_v22, %v8732_v29 }
0x2fa4   :  { %v17507_v21 = vadd.f32 %v8740_v15, %v8731_v41  ;;  %13814 = vmatpush3.bf16.msra.mxu0 %v15742_v27 }
0x2fa5   :  { %11629 = vst.msk [vmem:[%s18655_s21 + $0xb8] sm:$0xff] %vm89_vm1, %v17505_v23  ;;  %13816 = vmatprep.subr.bf16.mxu0 %v15752_v31 }
0x2fa6   :  { %11628 = vst.msk [vmem:[%s18655_s21 + $0xb0] sm:$0xff] %vm89_vm1, %v17507_v21  ;;  %13152 = vmatprep.mubr.msk.f32.mxu0 %vm89_vm1, %v17507_v21 }
0x2fa7   :  { %13153 = vmatmul.mubr.msk.f32.gmra.mrb[134].mxu0 %vm89_vm1, %v17505_v23 }
0x2fa8   :  { %13818 = vmatpush3.bf16.msra.mxu0 %v15752_v31 }
0x2fa9   :  { %13820 = vmatprep.subr.bf16.mxu0 %v15762_v33 }
0x2fac   :  { %13822 = vmatpush3.bf16.msra.mxu0 %v15762_v33 }
0x2fad   :  { %13824 = vmatprep.subr.bf16.mxu0 %v15772_v34 }
0x2fb0   :  { %13826 = vmatpush3.bf16.msra.mxu0 %v15772_v34 }
0x2fb1   :  { %13844 = vmatprep.subr.bf16.mxu0 %v15901_v61 }
0x3076   :  { %v13151_v9 = vpop.f32.mrb[132].mxu0 }
0x3077   :  { %v17534_v25 = vadd.f32 %v14830_v10, %v13151_v9  ;;  %v8931_v63 = vpop.f32.mrb[133].mxu0 }
0x3078   :  { %v17536_v53 = vadd.f32 %v14830_v10, %v8931_v63 }
0x3079   :  { %v8967_v43 = vand.u32 2147483647, %v17534_v25  ;;  %vm8959_vm9 = vcmp.ne.f32.partialorder %v17534_v25, %v17534_v25 }
0x307a   :  { %v8966_v5 = vand.u32 2147483647, %v17536_v53  ;;  %v13154_v17 = vpop.f32.mrb[134].mxu0  ;;  %vm8958_vm10 = vcmp.ne.f32.partialorder %v17536_v53, %v17536_v53 }
0x307b   :  { %v8971_v0 = vsub.f32 0.0, %v8967_v43  ;;  %v17540_v51 = vadd.f32 %v14830_v10, %v13154_v17  ;;  %v8941_v7 = vpop.f32.mrb[135].mxu0 }
0x307c   :  { %v8970_v6 = vsub.f32 0.0, %v8966_v5  ;;  %v17542_v52 = vadd.f32 %v14830_v10, %v8941_v7 }
0x307d   :  { %v8976_v57 = vmul.f32 1.442695, %v8971_v0  ;;  %v8969_v13 = vand.u32 2147483647, %v17540_v51  ;;  %vm8961_vm14 = vcmp.ne.f32.partialorder %v17540_v51, %v17540_v51 }
0x307e   :  { %v8974_v2 = vmul.f32 1.442695, %v8970_v6  ;;  %v8968_v58 = vand.u32 2147483647, %v17542_v52  ;;  %vm8960_vm13 = vcmp.ne.f32.partialorder %v17542_v52, %v17542_v52 }
0x307f   :  { %14579 = vpow2.f32 %v8976_v57  ;;  %v8973_v55 = vsub.f32 0.0, %v8969_v13 }
0x3080   :  { %14581 = vpow2.f32 %v8974_v2  ;;  %v8972_v39 = vsub.f32 0.0, %v8968_v58  ;;  %v8955_v2 = vmax.f32 %v17534_v25, 0.0 }
0x3081   :  { %v8980_v48 = vmul.f32 1.442695, %v8973_v55 }
0x3082   :  { %v8978_v44 = vmul.f32 1.442695, %v8972_v39 }
0x3083   :  { %14583 = vpow2.f32 %v8980_v48 }
0x3084   :  { %14585 = vpow2.f32 %v8978_v44 }
0x3089   :  { %v14580_v30 = vpop.eup %14579 }
0x308a   :  { %v14582_v24 = vpop.eup %14581  ;;  %v8991_v29 = vadd.f32 1.0, %v14580_v30  ;;  %v8994_v10 = vmul.f32 -0.5, %v14580_v30  ;;  %v8997_v17 = vand.u32 2147483647, %v14580_v30 }
0x308b   :  { %v8982_v22 = vadd.f32 1.0, %v14582_v24  ;;  %v8985_v43 = vmul.f32 -0.5, %v14582_v24  ;;  %v8988_v57 = vand.u32 2147483647, %v14582_v24 }
0x308c   :  { %14587 = vlog2.f32 %v8991_v29  ;;  %v8995_v5 = vadd.f32 1.0, %v8994_v10  ;;  %vm8998_vm6 = vcmp.lt.f32.partialorder %v8997_v17, 0.0004427343  ;;  %v8954_v10 = vmax.f32 %v17536_v53, 0.0 }
0x308d   :  { %v14584_v41 = vpop.eup %14583  ;;  %14589 = vlog2.f32 %v8982_v22  ;;  %v8986_v7 = vadd.f32 1.0, %v8985_v43  ;;  %vm8989_vm8 = vcmp.lt.f32.partialorder %v8988_v57, 0.0004427343  ;;  %v8957_v17 = vmax.f32 %v17540_v51, 0.0 }
0x308e   :  { %v14586_v15 = vpop.eup %14585  ;;  %v9009_v9 = vadd.f32 1.0, %v14584_v41  ;;  %v9012_v0 = vmul.f32 -0.5, %v14584_v41  ;;  %v8996_v39 = vmul.f32 %v14580_v30, %v8995_v5  ;;  %v9015_v34 = vand.u32 2147483647, %v14584_v41 }
0x308f   :  { %v9000_v63 = vadd.f32 1.0, %v14586_v15  ;;  %v9003_v6 = vmul.f32 -0.5, %v14586_v15  ;;  %v8987_v29 = vmul.f32 %v14582_v24, %v8986_v7 }
0x3090   :  { %14591 = vlog2.f32 %v9009_v9  ;;  %v9013_v48 = vadd.f32 1.0, %v9012_v0  ;;  %vm9016_vm11 = vcmp.lt.f32.partialorder %v9015_v34, 0.0004427343 }
0x3091   :  { %14593 = vlog2.f32 %v9000_v63  ;;  %v9004_v22 = vadd.f32 1.0, %v9003_v6  ;;  %v9006_v63 = vand.u32 2147483647, %v14586_v15  ;;  %v8956_v6 = vmax.f32 %v17542_v52, 0.0 }
0x3092   :  { %v9014_v24 = vmul.f32 %v14584_v41, %v9013_v48 }
0x3093   :  { %v9005_v7 = vmul.f32 %v14586_v15, %v9004_v22  ;;  %vm9007_vm12 = vcmp.lt.f32.partialorder %v9006_v63, 0.0004427343 }
0x3096   :  { %v14588_v13 = vpop.eup %14587 }
0x3097   :  { %v14590_v58 = vpop.eup %14589  ;;  %v8993_v55 = vmul.f32 0.6931472, %v14588_v13 }
0x3098   :  { %v8984_v44 = vmul.f32 0.6931472, %v14590_v58 }
0x3099   :  { %v8999_v9 = vsel %vm8998_vm6, %v8996_v39, %v8993_v55 }
0x309a   :  { %v14592_v43 = vpop.eup %14591  ;;  %v9019_v33 = vadd.f32 %v8999_v9, %v8955_v2  ;;  %v8990_v31 = vsel %vm8989_vm8, %v8987_v29, %v8984_v44 }
0x309b   :  { %v14594_v62 = vpop.eup %14593  ;;  %v9018_v30 = vadd.f32 %v8990_v31, %v8954_v10  ;;  %v9011_v5 = vmul.f32 0.6931472, %v14592_v43 }
0x309c   :  { %v9002_v0 = vmul.f32 0.6931472, %v14594_v62  ;;  %v9023_v31 = vsel %vm8959_vm9, %v17534_v25, %v9019_v33 }
0x309d   :  { %v9022_v57 = vsel %vm8958_vm10, %v17536_v53, %v9018_v30  ;;  %v9017_v13 = vsel %vm9016_vm11, %v9014_v24, %v9011_v5  ;;  %v14831_v53 = vld [vmem:[%s18660_s12] ss:$0 sm:$0xff] }
0x309e   :  { %13171 = vmatprep.mubr.msk.f32.mxu0 %vm3389_vm7, %v9022_v57  ;;  %v9008_v2 = vsel %vm9007_vm12, %v9005_v7, %v9002_v0  ;;  %v9021_v41 = vadd.f32 %v9017_v13, %v8957_v17 }
0x309f   :  { %13172 = vmatmul.mubr.msk.f32.vlgmr.msra.gmra.mrb[136].mxu0 %vm3389_vm7, %v9023_v31  ;;  %v9020_v62 = vadd.f32 %v9008_v2, %v8956_v6 }
0x30a0   :  { %13846 = vmatpush3.bf16.msra.mxu0 %v15901_v61  ;;  %v9025_v33 = vsel %vm8961_vm14, %v17540_v51, %v9021_v41 }
0x30a1   :  { %v9024_v34 = vsel %vm8960_vm13, %v17542_v52, %v9020_v62  ;;  %13848 = vmatprep.subr.bf16.mxu0 %v15906_v32 }
0x30a2   :  { %13174 = vmatprep.mubr.msk.f32.mxu0 %vm3389_vm7, %v9024_v34 }
0x30a3   :  { %13175 = vmatmul.mubr.msk.f32.gmra.mrb[138].mxu0 %vm3389_vm7, %v9025_v33 }
0x30a4   :  { %13850 = vmatpush3.bf16.msra.mxu0 %v15906_v32 }
0x30a5   :  { %13213 = vmatprep.subr.msk.mxu0 %vm102_vm0, %v17342_v37 }
0x3172   :  { %v13173_v25 = vpop.f32.mrb[136].mxu0 }
0x3173   :  { %v17577_v52 = vadd.f32 %v14831_v53, %v13173_v25  ;;  %v9104_v15 = vpop.f32.mrb[137].mxu0 }
0x3174   :  { %v17579_v58 = vadd.f32 %v14831_v53, %v9104_v15 }
0x3175   :  { %v9136_v55 = vand.u32 2147483647, %v17577_v52  ;;  %vm9128_vm5 = vcmp.ne.f32.partialorder %v17577_v52, %v17577_v52 }
0x3176   :  { %v9135_v51 = vand.u32 2147483647, %v17579_v58  ;;  %v13176_v39 = vpop.f32.mrb[138].mxu0  ;;  %vm9127_vm6 = vcmp.ne.f32.partialorder %v17579_v58, %v17579_v58 }
0x3177   :  { %v9140_v48 = vsub.f32 0.0, %v9136_v55  ;;  %v17583_v44 = vadd.f32 %v14831_v53, %v13176_v39  ;;  %v9114_v29 = vpop.f32.mrb[139].mxu0 }
0x3178   :  { %v9139_v37 = vsub.f32 0.0, %v9135_v51  ;;  %v17585_v22 = vadd.f32 %v14831_v53, %v9114_v29 }
0x3179   :  { %v9145_v9 = vmul.f32 1.442695, %v9140_v48  ;;  %v9138_v10 = vand.u32 2147483647, %v17583_v44  ;;  %v9124_v48 = vmax.f32 %v17577_v52, 0.0  ;;  %vm9130_vm11 = vcmp.ne.f32.partialorder %v17583_v44, %v17583_v44 }
0x317a   :  { %v9143_v63 = vmul.f32 1.442695, %v9139_v37  ;;  %v9137_v43 = vand.u32 2147483647, %v17585_v22  ;;  %vm9129_vm10 = vcmp.ne.f32.partialorder %v17585_v22, %v17585_v22 }
0x317b   :  { %14595 = vpow2.f32 %v9145_v9  ;;  %v9142_v30 = vsub.f32 0.0, %v9138_v10 }
0x317c   :  { %14597 = vpow2.f32 %v9143_v63  ;;  %v9141_v5 = vsub.f32 0.0, %v9137_v43 }
0x317d   :  { %v9149_v24 = vmul.f32 1.442695, %v9142_v30 }
0x317e   :  { %v9147_v17 = vmul.f32 1.442695, %v9141_v5 }
0x317f   :  { %14599 = vpow2.f32 %v9149_v24 }
0x3180   :  { %14601 = vpow2.f32 %v9147_v17  ;;  %v9123_v17 = vmax.f32 %v17579_v58, 0.0 }
0x3185   :  { %v14596_v0 = vpop.eup %14595 }
0x3186   :  { %v14598_v7 = vpop.eup %14597  ;;  %v9160_v6 = vadd.f32 1.0, %v14596_v0  ;;  %v9163_v41 = vmul.f32 -0.5, %v14596_v0  ;;  %v9166_v25 = vand.u32 2147483647, %v14596_v0 }
0x3187   :  { %v9151_v57 = vadd.f32 1.0, %v14598_v7  ;;  %v9154_v34 = vmul.f32 -0.5, %v14598_v7  ;;  %v9157_v51 = vand.u32 2147483647, %v14598_v7 }
0x3188   :  { %14603 = vlog2.f32 %v9160_v6  ;;  %v9164_v33 = vadd.f32 1.0, %v9163_v41  ;;  %vm9167_vm15 = vcmp.lt.f32.partialorder %v9166_v25, 0.0004427343 }
0x3189   :  { %v14600_v13 = vpop.eup %14599  ;;  %14605 = vlog2.f32 %v9151_v57  ;;  %v9155_v15 = vadd.f32 1.0, %v9154_v34  ;;  %vm9158_vm4 = vcmp.lt.f32.partialorder %v9157_v51, 0.0004427343 }
0x318a   :  { %v14602_v31 = vpop.eup %14601  ;;  %v9178_v2 = vadd.f32 1.0, %v14600_v13  ;;  %v9181_v53 = vmul.f32 -0.5, %v14600_v13  ;;  %v9165_v9 = vmul.f32 %v14596_v0, %v9164_v33  ;;  %v9184_v5 = vand.u32 2147483647, %v14600_v13 }
0x318b   :  { %v9169_v62 = vadd.f32 1.0, %v14602_v31  ;;  %v9172_v55 = vmul.f32 -0.5, %v14602_v31  ;;  %v9156_v43 = vmul.f32 %v14598_v7, %v9155_v15  ;;  %v9175_v6 = vand.u32 2147483647, %v14602_v31 }
0x318c   :  { %14607 = vlog2.f32 %v9178_v2  ;;  %v9182_v10 = vadd.f32 1.0, %v9181_v53  ;;  %v9126_v33 = vmax.f32 %v17583_v44, 0.0  ;;  %vm9185_vm8 = vcmp.lt.f32.partialorder %v9184_v5, 0.0004427343 }
0x318d   :  { %14609 = vlog2.f32 %v9169_v62  ;;  %v9173_v30 = vadd.f32 1.0, %v9172_v55  ;;  %v9125_v15 = vmax.f32 %v17585_v22, 0.0  ;;  %vm9176_vm9 = vcmp.lt.f32.partialorder %v9175_v6, 0.0004427343 }
0x318e   :  { %v9183_v7 = vmul.f32 %v14600_v13, %v9182_v10 }
0x318f   :  { %v9174_v53 = vmul.f32 %v14602_v31, %v9173_v30 }
0x3192   :  { %v14604_v39 = vpop.eup %14603 }
0x3193   :  { %v14606_v29 = vpop.eup %14605  ;;  %v9162_v37 = vmul.f32 0.6931472, %v14604_v39 }
0x3194   :  { %v9153_v63 = vmul.f32 0.6931472, %v14606_v29 }
0x3195   :  { %v9168_v24 = vsel %vm9167_vm15, %v9165_v9, %v9162_v37 }
0x3196   :  { %v14608_v57 = vpop.eup %14607  ;;  %v9188_v2 = vadd.f32 %v9168_v24, %v9124_v48  ;;  %v9159_v41 = vsel %vm9158_vm4, %v9156_v43, %v9153_v63 }
0x3197   :  { %v14610_v62 = vpop.eup %14609  ;;  %v9187_v0 = vadd.f32 %v9159_v41, %v9123_v17  ;;  %v9180_v34 = vmul.f32 0.6931472, %v14608_v57 }
0x3198   :  { %v9171_v25 = vmul.f32 0.6931472, %v14610_v62  ;;  %v9192_v39 = vsel %vm9128_vm5, %v17577_v52, %v9188_v2 }
0x3199   :  { %v9191_v55 = vsel %vm9127_vm6, %v17579_v58, %v9187_v0  ;;  %v9186_v51 = vsel %vm9185_vm8, %v9183_v7, %v9180_v34 }
0x319a   :  { %13193 = vmatprep.mubr.msk.f32.mxu1 %vm3389_vm7, %v9191_v55  ;;  %v9177_v48 = vsel %vm9176_vm9, %v9174_v53, %v9171_v25  ;;  %v9190_v13 = vadd.f32 %v9186_v51, %v9126_v33  ;;  %v4167_v55 = vmax.f32 %v16151_v12, 1e-07  ;;  %v5288_v12 = vmax.f32 %v16478_v50, 1e-07 }
0x319b   :  { %13194 = vmatmul.mubr.msk.f32.vlgmr.msra.gmra.mrb[84].mxu1 %vm3389_vm7, %v9192_v39  ;;  %v9189_v29 = vadd.f32 %v9177_v48, %v9125_v15  ;;  %v4166_v39 = vmax.f32 %v16155_v19, 1e-07  ;;  %v4169_v48 = vmax.f32 %v16170_v14, 1e-07  ;;  %v5287_v19 = vmax.f32 %v16482_v35, 1e-07 }
0x319c   :  { %13854 = vmatpush3.bf16.msra.mxu1 %v15931_v40  ;;  %v9194_v52 = vsel %vm9130_vm11, %v17583_v44, %v9190_v13  ;;  %v4168_v13 = vmax.f32 %v16183_v11, 1e-07  ;;  %v5290_v11 = vmax.f32 %v16497_v26, 1e-07 }
0x319d   :  { %v9193_v58 = vsel %vm9129_vm10, %v17585_v22, %v9189_v29  ;;  %13856 = vmatprep.subr.bf16.mxu1 %v15936_v42  ;;  %v14832_v22 = vld [vmem:[%s18663_s14] ss:$0 sm:$0xff] }
0x319e   :  { %13196 = vmatprep.mubr.msk.f32.mxu1 %vm3389_vm7, %v9193_v58 }
0x319f   :  { %13197 = vmatmul.mubr.msk.f32.gmra.mrb[86].mxu1 %vm3389_vm7, %v9194_v52 }
0x31a0   :  { %13858 = vmatpush3.bf16.msra.mxu1 %v15936_v42 }
0x31a1   :  { %13860 = vmatprep.subr.bf16.mxu1 %v16012_v38 }
0x31a4   :  { %13862 = vmatpush3.bf16.msra.mxu1 %v16012_v38 }
0x31a5   :  { %13864 = vmatprep.subr.bf16.mxu1 %v16022_v18 }
0x31a8   :  { %13866 = vmatpush3.bf16.msra.mxu1 %v16022_v18 }
0x31a9   :  { %13868 = vmatprep.subr.bf16.mxu1 %v16035_v59 }
0x31ac   :  { %13870 = vmatpush3.bf16.msra.mxu1 %v16035_v59 }
0x31ad   :  { %13872 = vmatprep.subr.bf16.mxu1 %v16040_v60 }
0x31b0   :  { %13874 = vmatpush3.bf16.msra.mxu1 %v16040_v60 }
0x31b1   :  { %13876 = vmatprep.subr.bf16.mxu1 %v16051_v46 }
0x31b4   :  { %13878 = vmatpush3.bf16.msra.mxu1 %v16051_v46 }
0x31b5   :  { %13880 = vmatprep.subr.bf16.mxu1 %v16061_v49 }
0x31b8   :  { %13882 = vmatpush3.bf16.msra.mxu1 %v16061_v49 }
0x31b9   :  { %13900 = vmatprep.subr.bf16.mxu1 %v15820_v56 }
0x326e   :  { %v13195_v44 = vpop.f32.mrb[84].mxu1 }
0x326f   :  { %v17631_v31 = vadd.f32 %v14832_v22, %v13195_v44  ;;  %v9273_v37 = vpop.f32.mrb[85].mxu1 }
0x3270   :  { %v17633_v9 = vadd.f32 %v14832_v22, %v9273_v37  ;;  %v5289_v37 = vmax.f32 %v16510_v3, 1e-07 }
0x3271   :  { %v9305_v10 = vand.u32 2147483647, %v17631_v31  ;;  %v9832_v63 = vmul.f32 0.1, %v17631_v31  ;;  %vm9297_vm14 = vcmp.ne.f32.partialorder %v17631_v31, %v17631_v31 }
0x3272   :  { %v9304_v43 = vand.u32 2147483647, %v17633_v9  ;;  %v13198_v30 = vpop.f32.mrb[86].mxu1  ;;  %v9831_v5 = vmul.f32 0.1, %v17633_v9  ;;  %vm9296_vm15 = vcmp.ne.f32.partialorder %v17633_v9, %v17633_v9 }
0x3273   :  { %v9309_v24 = vsub.f32 0.0, %v9305_v10  ;;  %v17639_v17 = vadd.f32 %v14832_v22, %v13198_v30  ;;  %9841 = vrot.lane.b32.xlu1 %v9832_v63, %s14847_s4  ;;  %v9283_v6 = vpop.f32.mrb[87].mxu1  ;;  %v6409_v30 = vmax.f32 %v16809_v1, 1e-07  ;;  %v9293_v1 = vmax.f32 %v17631_v31, 0.0 }
0x3274   :  { %v9308_v57 = vsub.f32 0.0, %v9304_v43  ;;  %v17642_v2 = vadd.f32 %v14832_v22, %v9283_v6  ;;  %9839 = vrot.lane.b32.xlu0 %v9831_v5, %s14847_s4  ;;  %v6410_v43 = vmax.f32 %v16805_v54, 1e-07 }
0x3275   :  { %v9314_v41 = vmul.f32 1.442695, %v9309_v24  ;;  %v9307_v62 = vand.u32 2147483647, %v17639_v17  ;;  %v9834_v0 = vmul.f32 0.1, %v17639_v17  ;;  %vm9299_vm8 = vcmp.ne.f32.partialorder %v17639_v17, %v17639_v17 }
0x3276   :  { %v9312_v34 = vmul.f32 1.442695, %v9308_v57  ;;  %v9306_v7 = vand.u32 2147483647, %v17642_v2  ;;  %v9833_v33 = vmul.f32 0.1, %v17642_v2  ;;  %vm9298_vm6 = vcmp.ne.f32.partialorder %v17642_v2, %v17642_v2 }
0x3277   :  { %14611 = vpow2.f32 %v9314_v41  ;;  %v9311_v25 = vsub.f32 0.0, %v9307_v62  ;;  %9845 = vrot.lane.b32.xlu1 %v9834_v0, %s14847_s4  ;;  %v18779_v57 = vld [vmem:[#allocation32_spill] sm:$0xff]  ;;  %v18780_v62 = vld [vmem:[#allocation33_spill] sm:$0xff] }
0x3278   :  { %14613 = vpow2.f32 %v9312_v34  ;;  %v9310_v53 = vsub.f32 0.0, %v9306_v7  ;;  %9843 = vrot.lane.b32.xlu0 %v9833_v33, %s14847_s4  ;;  %v6412_v41 = vmax.f32 %v18779_v57, 1e-07  ;;  %v6411_v0 = vmax.f32 %v18780_v62, 1e-07  ;;  %v18781_v33 = vld [vmem:[#allocation42_spill] sm:$0xff] }
0x3279   :  { %v9318_v15 = vmul.f32 1.442695, %v9311_v25  ;;  %v7532_v54 = vmax.f32 %v18781_v33, 1e-07  ;;  %v18782_v25 = vld [vmem:[#allocation43_spill] sm:$0xff] }
0x327a   :  { %v9316_v51 = vmul.f32 1.442695, %v9310_v53  ;;  %v7531_v53 = vmax.f32 %v18782_v25, 1e-07  ;;  %v14834_v25 = vld [vmem:[%s18727_s5] sm:$0xff] }
0x327b   :  { %14615 = vpow2.f32 %v9318_v15  ;;  %4196 = vrot.lane.b32.xlu1 %v4167_v55, %s14848_s2 }
0x327c   :  { %14617 = vpow2.f32 %v9316_v51  ;;  %4194 = vrot.lane.b32.xlu0 %v4166_v39, %s14848_s2 }
0x327f   :  { %4200 = vrot.lane.b32.xlu1 %v4169_v48, %s14848_s2 }
0x3280   :  { %4198 = vrot.lane.b32.xlu0 %v4168_v13, %s14848_s2 }
0x3281   :  { %v14612_v29 = vpop.eup %14611 }
0x3282   :  { %v14614_v58 = vpop.eup %14613  ;;  %v9329_v52 = vadd.f32 1.0, %v14612_v29  ;;  %v9332_v50 = vmul.f32 -0.5, %v14612_v29  ;;  %v9335_v5 = vand.u32 2147483647, %v14612_v29 }
0x3283   :  { %5317 = vrot.lane.b32.xlu1 %v5288_v12, %s14848_s2  ;;  %v9320_v44 = vadd.f32 1.0, %v14614_v58  ;;  %v9323_v35 = vmul.f32 -0.5, %v14614_v58  ;;  %v9326_v34 = vand.u32 2147483647, %v14614_v58 }
0x3284   :  { %5315 = vrot.lane.b32.xlu0 %v5287_v19, %s14848_s2  ;;  %14619 = vlog2.f32 %v9329_v52  ;;  %v9333_v26 = vadd.f32 1.0, %v9332_v50  ;;  %vm9336_vm12 = vcmp.lt.f32.partialorder %v9335_v5, 0.0004427343  ;;  %v9292_v52 = vmax.f32 %v17633_v9, 0.0 }
0x3285   :  { %v14616_v14 = vpop.eup %14615  ;;  %14621 = vlog2.f32 %v9320_v44  ;;  %v9324_v3 = vadd.f32 1.0, %v9323_v35  ;;  %vm9327_vm13 = vcmp.lt.f32.partialorder %v9326_v34, 0.0004427343 }
0x3286   :  { %v14618_v22 = vpop.eup %14617  ;;  %v9347_v10 = vadd.f32 1.0, %v14616_v14  ;;  %v9350_v24 = vmul.f32 -0.5, %v14616_v14  ;;  %v9334_v51 = vmul.f32 %v14612_v29, %v9333_v26  ;;  %v9353_v19 = vand.u32 2147483647, %v14616_v14  ;;  %v18783_v29 = vld [vmem:[#allocation44_spill] sm:$0xff] }
0x3287   :  { %5321 = vrot.lane.b32.xlu1 %v5290_v11, %s14848_s2  ;;  %v9338_v63 = vadd.f32 1.0, %v14618_v22  ;;  %v9341_v6 = vmul.f32 -0.5, %v14618_v22  ;;  %v9325_v13 = vmul.f32 %v14614_v58, %v9324_v3  ;;  %v9344_v11 = vand.u32 2147483647, %v14618_v22 }
0x3288   :  { %5319 = vrot.lane.b32.xlu0 %v5289_v37, %s14848_s2  ;;  %14623 = vlog2.f32 %v9347_v10  ;;  %v9351_v39 = vadd.f32 1.0, %v9350_v24  ;;  %v9295_v24 = vmax.f32 %v17639_v17, 0.0  ;;  %vm9354_vm4 = vcmp.lt.f32.partialorder %v9353_v19, 0.0004427343  ;;  %v18788_v19 = vld [vmem:[#allocation15_spill] sm:$0xff] }
0x3289   :  { %14625 = vlog2.f32 %v9338_v63  ;;  %v9342_v12 = vadd.f32 1.0, %v9341_v6  ;;  %v7534_v63 = vmax.f32 %v18783_v29, 1e-07  ;;  %v9294_v6 = vmax.f32 %v17642_v2, 0.0 }
0x328a   :  { %vm9345_vm5 = vcmp.lt.f32.partialorder %v9344_v11, 0.0004427343  ;;  %v9876_v11 = vld [vmem:[#allocation3 + $0xf0] sm:$0xff] }
0x328b   :  { %6439 = vrot.lane.b32.xlu1 %v6410_v43, %s14848_s2  ;;  %v9343_v5 = vmul.f32 %v14618_v22, %v9342_v12 }
0x328c   :  { %6437 = vrot.lane.b32.xlu0 %v6409_v30, %s14848_s2  ;;  %v9352_v30 = vmul.f32 %v14616_v14, %v9351_v39 }
0x328e   :  { %v14620_v7 = vpop.eup %14619 }
0x328f   :  { %v14622_v15 = vpop.eup %14621  ;;  %6443 = vrot.lane.b32.xlu1 %v6412_v41, %s14848_s2  ;;  %v9331_v55 = vmul.f32 0.6931472, %v14620_v7  ;;  %v18784_v41 = vld [vmem:[#allocation45_spill] sm:$0xff]  ;;  %v14833_v7 = vld [vmem:[%s18662_s17] sm:$0xf] }
0x3290   :  { %6441 = vrot.lane.b32.xlu0 %v6411_v0, %s14848_s2  ;;  %v9322_v48 = vmul.f32 0.6931472, %v14622_v15  ;;  %v7533_v62 = vmax.f32 %v18784_v41, 1e-07  ;;  %v17723_v15 = vld [vmem:[%s18668_s16] ss:$0 sm:$0xff] }
0x3291   :  { %v9337_v44 = vsel %vm9336_vm12, %v9334_v51, %v9331_v55  ;;  %v8655_v55 = vmax.f32 %v17491_v36, 1e-07  ;;  %v18786_v51 = vld [vmem:[#allocation13_spill] sm:$0xff]  ;;  %v14835_v36 = vld [vmem:[%s18728_s30] sm:$0xf] }
0x3292   :  { %v14624_v37 = vpop.eup %14623  ;;  %v9328_v10 = vsel %vm9327_vm13, %v9325_v13, %v9322_v48  ;;  %v9357_v50 = vadd.f32 %v9337_v44, %v9293_v1  ;;  %v8653_v1 = vmax.f32 %v17463_v20, 1e-07  ;;  %v18785_v20 = vld [vmem:[#allocation12_spill] sm:$0xff]  ;;  %v3819_v39 = vadd.f32 %v17723_v15, %v18786_v51  ;;  %v18787_v13 = vld [vmem:[#allocation14_spill] sm:$0xff]  ;;  %v9875_v44 = vld [vmem:[#allocation3 + $0xe8] sm:$0xff] }
0x3293   :  { %v14626_v35 = vpop.eup %14625  ;;  %7561 = vrot.lane.b32.xlu1 %v7532_v54, %s14848_s2  ;;  %v9356_v58 = vadd.f32 %v9328_v10, %v9292_v52  ;;  %v9349_v43 = vmul.f32 0.6931472, %v14624_v37  ;;  %v8654_v54 = vmax.f32 %v17459_v47, 1e-07  ;;  %v8656_v47 = vmax.f32 %v17478_v28, 1e-07 }
0x3294   :  { %7559 = vrot.lane.b32.xlu0 %v7531_v53, %s14848_s2  ;;  %v9340_v26 = vmul.f32 0.6931472, %v14626_v35  ;;  %v9361_v14 = vsel %vm9297_vm14, %v17631_v31, %v9357_v50  ;;  %v3824_v28 = vadd.f32 %v18785_v20, %v17723_v15  ;;  %v9874_v48 = vld [vmem:[#allocation3 + $0xe0] sm:$0xff]  ;;  %v3834_v12 = vadd.f32 %v18787_v13, %v17723_v15  ;;  %v18790_v50 = vld [vmem:[#allocation21_spill] sm:$0xff]  ;;  %v18791_v35 = vld [vmem:[#allocation22_spill] sm:$0xff] }
0x3295   :  { %v9360_v3 = vsel %vm9296_vm15, %v17633_v9, %v9356_v58  ;;  %v9355_v57 = vsel %vm9354_vm4, %v9352_v30, %v9349_v43  ;;  %v3829_v52 = vadd.f32 %v17723_v15, %v18788_v19  ;;  %v18789_v37 = vld [vmem:[#allocation20_spill] sm:$0xff]  ;;  %v4955_v29 = vadd.f32 %v17723_v15, %v18790_v50  ;;  %v18792_v43 = vld [vmem:[#allocation23_spill] sm:$0xff]  ;;  %v18804_v51 = vld [vmem:[#allocation53_spill] sm:$0xff] }
0x3296   :  { %13207 = vmatprep.mubr.msk.f32.mxu0 %vm197_vm2, %v9360_v3  ;;  %v9346_v0 = vsel %vm9345_vm5, %v9343_v5, %v9340_v26  ;;  %v9359_v22 = vadd.f32 %v9355_v57, %v9295_v24  ;;  %v4960_v10 = vadd.f32 %v18789_v37, %v17723_v15  ;;  %v4970_v58 = vadd.f32 %v18791_v35, %v17723_v15  ;;  %v18793_v26 = vld [vmem:[#allocation28_spill] sm:$0xff]  ;;  %v18794_v24 = vld [vmem:[#allocation29_spill] sm:$0xff] }
0x3297   :  { %13208 = vmatmul.mubr.msk.f32.vlgmr.msra.gmra.mrb[140].mxu0 %vm197_vm2, %v9361_v14  ;;  %7565 = vrot.lane.b32.xlu1 %v7534_v63, %s14848_s2  ;;  %v9358_v34 = vadd.f32 %v9346_v0, %v9294_v6  ;;  %v9877_v63 = vld [vmem:[#allocation3 + $0xf8] sm:$0xff]  ;;  %v4965_v30 = vadd.f32 %v17723_v15, %v18792_v43  ;;  %v6082_v5 = vadd.f32 %v18793_v26, %v17723_v15  ;;  %v18795_v6 = vld [vmem:[#allocation30_spill] sm:$0xff]  ;;  %v18803_v20 = vld [vmem:[#allocation52_spill] sm:$0xff] }
0x3298   :  { %13214 = vmatpush3.msk.msra.mxu0 %vm102_vm0, %v14833_v7  ;;  %7563 = vrot.lane.b32.xlu0 %v7533_v62, %s14848_s2  ;;  %v9363_v53 = vsel %vm9299_vm8, %v17639_v17, %v9359_v22  ;;  %v6077_v3 = vadd.f32 %v17723_v15, %v18794_v24  ;;  %v6092_v57 = vadd.f32 %v18795_v6, %v17723_v15  ;;  %v18796_v14 = vld [vmem:[#allocation31_spill] sm:$0xff]  ;;  %v18797_v62 = vld [vmem:[#allocation38_spill] sm:$0xff]  ;;  %v18799_v7 = vld [vmem:[#allocation40_spill] sm:$0xff] }
0x3299   :  { %v9362_v33 = vsel %vm9298_vm6, %v17642_v2, %v9358_v34  ;;  %13259 = vmatprep.subr.mxu0 %v14834_v25  ;;  %v6087_v41 = vadd.f32 %v17723_v15, %v18796_v14  ;;  %v7204_v0 = vadd.f32 %v18797_v62, %v17723_v15  ;;  %v18798_v22 = vld [vmem:[#allocation39_spill] sm:$0xff] }
0x329a   :  { %13210 = vmatprep.mubr.msk.f32.mxu0 %vm197_vm2, %v9362_v33  ;;  %v7199_v34 = vadd.f32 %v17723_v15, %v18798_v22  ;;  %v7214_v33 = vadd.f32 %v18799_v7, %v17723_v15  ;;  %v18805_v22 = vld [vmem:[#allocation8_spill] sm:$0xff] }
0x329b   :  { %8683 = vrot.lane.b32.xlu1 %v8654_v54, %s14848_s2  ;;  %13211 = vmatmul.mubr.msk.f32.gmra.mrb[142].mxu0 %vm197_vm2, %v9363_v53  ;;  %v18800_v54 = vld [vmem:[#allocation41_spill] sm:$0xff]  ;;  %v18801_v53 = vld [vmem:[#allocation50_spill] sm:$0xff] }
0x329c   :  { %13215 = vmatprep.mubr.msk.f32.mxu0 %vm89_vm1, %v17482_v45  ;;  %8681 = vrot.lane.b32.xlu0 %v8653_v1, %s14848_s2  ;;  %v8326_v1 = vadd.f32 %v18801_v53, %v17723_v15 }
0x329f   :  { %8687 = vrot.lane.b32.xlu1 %v8656_v47, %s14848_s2  ;;  %13216 = vmatmul.mubr.msk.f32.vlgmr.msra.gmra.mrb[144].mxu0 %vm89_vm1, %v17470_v8  ;;  %v18802_v47 = vld [vmem:[#allocation51_spill] sm:$0xff] }
0x32a0   :  { %13218 = vmatprep.mubr.msk.f32.mxu0 %vm89_vm1, %v17507_v21  ;;  %8685 = vrot.lane.b32.xlu0 %v8655_v55, %s14848_s2  ;;  %v8321_v55 = vadd.f32 %v17723_v15, %v18802_v47 }
0x32a1   :  { %13260 = vmatpush3.msra.mxu0 %v14834_v25  ;;  %v7209_v25 = vadd.f32 %v17723_v15, %v18800_v54 }
0x32a2   :  { %13267 = vmatprep.subr.msk.mxu0 %vm102_vm0, %v14835_v36 }
0x32a3   :  { %4176 = vrot.lane.b32.xlu1 %v3824_v28, %s14848_s2  ;;  %13219 = vmatmul.mubr.msk.f32.gmra.mrb[146].mxu0 %vm89_vm1, %v17505_v23  ;;  %v8336_v28 = vadd.f32 %v18803_v20, %v17723_v15 }
0x32a4   :  { %13261 = vmatprep.mubr.msk.f32.mxu0 %vm3013_vm3, %v9874_v48  ;;  %4174 = vrot.lane.b32.xlu0 %v3819_v39, %s14848_s2  ;;  %v8331_v39 = vadd.f32 %v17723_v15, %v18804_v51 }
0x32a7   :  { %4180 = vrot.lane.b32.xlu1 %v3834_v12, %s14848_s2  ;;  %13262 = vmatmul.mubr.msk.f32.vlgmr.msra.gmra.mrb[148].mxu0 %vm3013_vm3, %v9875_v44 }
0x32a8   :  { %13264 = vmatprep.mubr.msk.f32.mxu0 %vm3013_vm3, %v9876_v11  ;;  %4178 = vrot.lane.b32.xlu0 %v3829_v52, %s14848_s2 }
0x32a9   :  { %13268 = vmatpush3.msk.msra.mxu0 %vm102_vm0, %v14835_v36 }
0x32aa   :  { %13884 = vmatprep.subr.bf16.mxu0 %v15742_v27 }
0x32ab   :  { %5297 = vrot.lane.b32.xlu1 %v4960_v10, %s14848_s2  ;;  %13265 = vmatmul.mubr.msk.f32.gmra.mrb[150].mxu0 %vm3013_vm3, %v9877_v63 }
0x32ac   :  { %5295 = vrot.lane.b32.xlu0 %v4955_v29, %s14848_s2 }
0x32af   :  { %5301 = vrot.lane.b32.xlu1 %v4970_v58, %s14848_s2 }
0x32b0   :  { %5299 = vrot.lane.b32.xlu0 %v4965_v30, %s14848_s2 }
0x32b3   :  { %6419 = vrot.lane.b32.xlu1 %v6082_v5, %s14848_s2 }
0x32b4   :  { %6417 = vrot.lane.b32.xlu0 %v6077_v3, %s14848_s2 }
0x32b7   :  { %6423 = vrot.lane.b32.xlu1 %v6092_v57, %s14848_s2 }
0x32b8   :  { %6421 = vrot.lane.b32.xlu0 %v6087_v41, %s14848_s2 }
0x32bb   :  { %7541 = vrot.lane.b32.xlu1 %v7204_v0, %s14848_s2 }
0x32bc   :  { %7539 = vrot.lane.b32.xlu0 %v7199_v34, %s14848_s2 }
0x32bf   :  { %7545 = vrot.lane.b32.xlu1 %v7214_v33, %s14848_s2  ;;  %v18806_v33 = vld [vmem:[#allocation9_spill] sm:$0xff] }
0x32c0   :  { %7543 = vrot.lane.b32.xlu0 %v7209_v25, %s14848_s2 }
0x32c3   :  { %8663 = vrot.lane.b32.xlu1 %v8326_v1, %s14848_s2 }
0x32c4   :  { %8661 = vrot.lane.b32.xlu0 %v8321_v55, %s14848_s2  ;;  %v18807_v55 = vld [vmem:[#allocation10_spill] sm:$0xff] }
0x32c7   :  { %8667 = vrot.lane.b32.xlu1 %v8336_v28, %s14848_s2  ;;  %v18808_v28 = vld [vmem:[#allocation16_spill] sm:$0xff] }
0x32c8   :  { %8665 = vrot.lane.b32.xlu0 %v8331_v39, %s14848_s2 }
0x32e5   :  { %v17804_v36 = vpop.permute.xlu1 %9841 }
0x32e6   :  { %v17806_v48 = vpop.permute.xlu0 %9839 }
0x32e9   :  { %v17808_v13 = vpop.permute.xlu1 %9845 }
0x32ea   :  { %v17810_v12 = vpop.permute.xlu0 %9843 }
0x32ed   :  { %v4197_v19 = vpop.permute.xlu1 %4196 }
0x32ee   :  { %v4195_v52 = vpop.permute.xlu0 %4194  ;;  %14627 = vrcp.f32 %v4197_v19 }
0x32ef   :  { %14629 = vrcp.f32 %v4195_v52 }
0x32f1   :  { %v4201_v44 = vpop.permute.xlu1 %4200 }
0x32f2   :  { %v4199_v11 = vpop.permute.xlu0 %4198 }
0x32f5   :  { %v5318_v37 = vpop.permute.xlu1 %5317 }
0x32f6   :  { %v5316_v10 = vpop.permute.xlu0 %5315  ;;  %14631 = vrcp.f32 %v5318_v37  ;;  %v18810_v37 = vld [vmem:[#allocation17_spill] sm:$0xff] }
0x32f7   :  { %14633 = vrcp.f32 %v5316_v10 }
0x32f8   :  { %14635 = vrcp.f32 %v4201_v44  ;;  %v14628_v25 = vpop.eup %14627  ;;  %v18809_v44 = vld [vmem:[#allocation11_spill] sm:$0xff] }
0x32f9   :  { %v5322_v50 = vpop.permute.xlu1 %5321  ;;  %14637 = vrcp.f32 %v4199_v11  ;;  %v14630_v1 = vpop.eup %14629 }
0x32fa   :  { %v5320_v29 = vpop.permute.xlu0 %5319  ;;  %14639 = vrcp.f32 %v5322_v50 }
0x32fb   :  { %14641 = vrcp.f32 %v5320_v29 }
0x32fd   :  { %v6440_v63 = vpop.permute.xlu1 %6439 }
0x32fe   :  { %v6438_v35 = vpop.permute.xlu0 %6437  ;;  %14643 = vrcp.f32 %v6440_v63 }
0x32ff   :  { %14645 = vrcp.f32 %v6438_v35 }
0x3300   :  { %v14632_v19 = vpop.eup %14631 }
0x3301   :  { %v6444_v58 = vpop.permute.xlu1 %6443  ;;  %v14634_v50 = vpop.eup %14633 }
0x3302   :  { %v6442_v43 = vpop.permute.xlu0 %6441  ;;  %14647 = vrcp.f32 %v6444_v58 }
0x3303   :  { %14649 = vrcp.f32 %v6442_v43 }
0x3305   :  { %v7562_v30 = vpop.permute.xlu1 %7561 }
0x3306   :  { %v7560_v26 = vpop.permute.xlu0 %7559  ;;  %14651 = vrcp.f32 %v7562_v30 }
0x3307   :  { %14653 = vrcp.f32 %v7560_v26 }
0x3309   :  { %v17812_v5 = vpop.permute.xlu1 %7565 }
0x330a   :  { %v17814_v24 = vpop.permute.xlu0 %7563  ;;  %14655 = vrcp.f32 %v17812_v5 }
0x330b   :  { %14657 = vrcp.f32 %v17814_v24  ;;  %v18818_v24 = vld [vmem:[#allocation35_spill] sm:$0xff] }
0x330d   :  { %v17816_v3 = vpop.permute.xlu1 %8683 }
0x330e   :  { %v17818_v6 = vpop.permute.xlu0 %8681 }
0x3311   :  { %v17820_v57 = vpop.permute.xlu1 %8687 }
0x3312   :  { %v17822_v14 = vpop.permute.xlu0 %8685 }
0x3315   :  { %v4177_v41 = vpop.permute.xlu1 %4176 }
0x3316   :  { %v4175_v62 = vpop.permute.xlu0 %4174  ;;  %v4187_v34 = vsub.f32 %v18805_v22, %v4177_v41  ;;  %v14636_v41 = vpop.eup %14635 }
0x3317   :  { %v4186_v54 = vsub.f32 %v18806_v33, %v4175_v62  ;;  %v14638_v35 = vpop.eup %14637  ;;  %v18811_v33 = vld [vmem:[#allocation18_spill] sm:$0xff] }
0x3318   :  { %v4209_v47 = vmul.f32 %v14628_v25, %v4187_v34 }
0x3319   :  { %v4181_v0 = vpop.permute.xlu1 %4180  ;;  %v4207_v52 = vmul.f32 %v14630_v1, %v4186_v54 }
0x331a   :  { %v4179_v7 = vpop.permute.xlu0 %4178  ;;  %v4189_v20 = vsub.f32 %v18807_v55, %v4181_v0  ;;  %v4215_v22 = vmul.f32 %v4209_v47, %v4209_v47  ;;  %v14640_v55 = vpop.eup %14639 }
0x331b   :  { %v4188_v11 = vsub.f32 %v18809_v44, %v4179_v7  ;;  %v4214_v54 = vmul.f32 %v4207_v52, %v4207_v52  ;;  %v14642_v44 = vpop.eup %14641 }
0x331c   :  { %v4213_v34 = vmul.f32 %v14636_v41, %v4189_v20  ;;  %v14644_v41 = vpop.eup %14643 }
0x331d   :  { %v5298_v53 = vpop.permute.xlu1 %5297  ;;  %v4211_v1 = vmul.f32 %v14638_v35, %v4188_v11  ;;  %v18814_v11 = vld [vmem:[#allocation25_spill] sm:$0xff]  ;;  %v14646_v35 = vpop.eup %14645 }
0x331e   :  { %v5308_v51 = vsub.f32 %v18808_v28, %v5298_v53  ;;  %v5296_v39 = vpop.permute.xlu0 %5295  ;;  %v18812_v28 = vld [vmem:[#allocation19_spill] sm:$0xff]  ;;  %v4217_v47 = vmul.f32 %v4213_v34, %v4213_v34  ;;  %v18815_v34 = vld [vmem:[#allocation26_spill] sm:$0xff] }
0x331f   :  { %v5307_v10 = vsub.f32 %v18810_v37, %v5296_v39 }
0x3320   :  { %v5330_v29 = vmul.f32 %v14632_v19, %v5308_v51 }
0x3321   :  { %v5328_v63 = vmul.f32 %v14634_v50, %v5307_v10  ;;  %v5302_v62 = vpop.permute.xlu1 %5301  ;;  %v18813_v10 = vld [vmem:[#allocation24_spill] sm:$0xff] }
0x3322   :  { %v5336_v0 = vmul.f32 %v5330_v29, %v5330_v29  ;;  %v5310_v25 = vsub.f32 %v18811_v33, %v5302_v62  ;;  %v5300_v53 = vpop.permute.xlu0 %5299  ;;  %v4216_v62 = vmul.f32 %v4211_v1, %v4211_v1 }
0x3323   :  { %v5335_v7 = vmul.f32 %v5328_v63, %v5328_v63  ;;  %v5309_v39 = vsub.f32 %v18812_v28, %v5300_v53  ;;  %v18816_v28 = vld [vmem:[#allocation27_spill] sm:$0xff] }
0x3324   :  { %v5340_v58 = vadd.f32 %v5336_v0, %v4215_v22  ;;  %v5334_v51 = vmul.f32 %v14640_v55, %v5310_v25  ;;  %v14648_v25 = vpop.eup %14647 }
0x3325   :  { %v5339_v43 = vadd.f32 %v5335_v7, %v4214_v54  ;;  %v5332_v19 = vmul.f32 %v14642_v44, %v5309_v39  ;;  %v6420_v37 = vpop.permute.xlu1 %6419  ;;  %v14650_v7 = vpop.eup %14649 }
0x3326   :  { %v5338_v20 = vmul.f32 %v5334_v51, %v5334_v51  ;;  %v6430_v50 = vsub.f32 %v18813_v10, %v6420_v37  ;;  %v6418_v29 = vpop.permute.xlu0 %6417 }
0x3327   :  { %v5337_v52 = vmul.f32 %v5332_v19, %v5332_v19  ;;  %v6429_v63 = vsub.f32 %v18814_v11, %v6418_v29  ;;  %v14652_v29 = vpop.eup %14651 }
0x3328   :  { %v5342_v33 = vadd.f32 %v5338_v20, %v4217_v47  ;;  %v6452_v53 = vmul.f32 %v14644_v41, %v6430_v50  ;;  %v18817_v20 = vld [vmem:[#allocation34_spill] sm:$0xff] }
0x3329   :  { %v5341_v30 = vadd.f32 %v5337_v52, %v4216_v62  ;;  %v6450_v22 = vmul.f32 %v14646_v35, %v6429_v63  ;;  %v6424_v0 = vpop.permute.xlu1 %6423  ;;  %v14654_v52 = vpop.eup %14653 }
0x332a   :  { %v6458_v26 = vmul.f32 %v6452_v53, %v6452_v53  ;;  %v6432_v55 = vsub.f32 %v18815_v34, %v6424_v0  ;;  %v6422_v54 = vpop.permute.xlu0 %6421 }
0x332b   :  { %v6457_v1 = vmul.f32 %v6450_v22, %v6450_v22  ;;  %v6431_v39 = vsub.f32 %v18816_v28, %v6422_v54 }
0x332c   :  { %v6462_v44 = vadd.f32 %v6458_v26, %v5340_v58  ;;  %v6456_v51 = vmul.f32 %v14648_v25, %v6432_v55  ;;  %v18819_v58 = vld [vmem:[#allocation36_spill] sm:$0xff]  ;;  %v14656_v26 = vpop.eup %14655  ;;  %v18820_v55 = vld [vmem:[#allocation37_spill] sm:$0xff] }
0x332d   :  { %v6461_v19 = vadd.f32 %v6457_v1, %v5339_v43  ;;  %v6454_v37 = vmul.f32 %v14650_v7, %v6431_v39  ;;  %v7542_v47 = vpop.permute.xlu1 %7541  ;;  %v14658_v7 = vpop.eup %14657 }
0x332e   :  { %v6460_v5 = vmul.f32 %v6456_v51, %v6456_v51  ;;  %v7552_v10 = vsub.f32 %v18817_v20, %v7542_v47  ;;  %v7540_v50 = vpop.permute.xlu0 %7539 }
0x332f   :  { %v6459_v41 = vmul.f32 %v6454_v37, %v6454_v37  ;;  %v7551_v62 = vsub.f32 %v18818_v24, %v7540_v50 }
0x3330   :  { %v6464_v11 = vadd.f32 %v6460_v5, %v5342_v33  ;;  %v7574_v63 = vmul.f32 %v14652_v29, %v7552_v10 }
0x3331   :  { %v6463_v35 = vadd.f32 %v6459_v41, %v5341_v30  ;;  %v7572_v53 = vmul.f32 %v14654_v52, %v7551_v62  ;;  %v7546_v22 = vpop.permute.xlu1 %7545  ;;  %v14836_v41 = vld [vmem:[%s18665_s18] ss:$0 sm:$0xff] }
0x3332   :  { %v7580_v0 = vmul.f32 %v7574_v63, %v7574_v63  ;;  %v7554_v25 = vsub.f32 %v18819_v58, %v7546_v22  ;;  %v7544_v43 = vpop.permute.xlu0 %7543 }
0x3333   :  { %v7579_v34 = vmul.f32 %v7572_v53, %v7572_v53  ;;  %v7553_v54 = vsub.f32 %v18820_v55, %v7544_v43 }
0x3334   :  { %v17842_v1 = vadd.f32 %v7580_v0, %v6462_v44  ;;  %v7578_v28 = vmul.f32 %v14656_v26, %v7554_v25 }
0x3335   :  { %v17844_v39 = vadd.f32 %v7579_v34, %v6461_v19  ;;  %v7576_v51 = vmul.f32 %v14658_v7, %v7553_v54 }
0x3336   :  { %v7582_v33 = vmul.f32 %v7578_v28, %v7578_v28 }
0x3337   :  { %18821 = vst [vmem:[#allocation32_spill] sm:$0xff] %v17844_v39  ;;  %v7581_v37 = vmul.f32 %v7576_v51, %v7576_v51 }
0x3338   :  { %v17846_v30 = vadd.f32 %v7582_v33, %v6464_v11 }
0x3339   :  { %v17848_v47 = vadd.f32 %v7581_v37, %v6463_v35 }
0x333a   :  { %18822 = vst [vmem:[#allocation33_spill] sm:$0xff] %v17846_v30 }
0x333b   :  { %18823 = vst [vmem:[#allocation42_spill] sm:$0xff] %v17848_v47 }
0x336a   :  { %v13209_v5 = vpop.f32.mrb[140].mxu0 }
0x336b   :  { %v9448_v20 = vadd.f32 %v13209_v5, %v17723_v15  ;;  %v9442_v10 = vpop.f32.mrb[141].mxu0 }
0x336c   :  { %v9443_v50 = vadd.f32 %v17723_v15, %v9442_v10 }
0x336d   :  { %9785 = vrot.lane.b32.xlu1 %v9448_v20, %s14848_s2 }
0x336e   :  { %v17853_v44 = vpop.f32.mrb[142].mxu0  ;;  %9783 = vrot.lane.b32.xlu0 %v9443_v50, %s14848_s2 }
0x336f   :  { %v17856_v19 = vpop.f32.mrb[143].mxu0 }
0x3372   :  { %v13217_v29 = vpop.f32.mrb[144].mxu0 }
0x3373   :  { %v17861_v24 = vadd.f32 %v14836_v41, %v13217_v29  ;;  %v9527_v62 = vpop.f32.mrb[145].mxu0 }
0x3374   :  { %v17863_v52 = vadd.f32 %v14836_v41, %v9527_v62 }
0x3375   :  { %v9559_v15 = vand.u32 2147483647, %v17861_v24  ;;  %vm9551_vm10 = vcmp.ne.f32.partialorder %v17861_v24, %v17861_v24 }
0x3376   :  { %v9558_v11 = vand.u32 2147483647, %v17863_v52  ;;  %v13220_v63 = vpop.f32.mrb[146].mxu0  ;;  %vm9550_vm11 = vcmp.ne.f32.partialorder %v17863_v52, %v17863_v52 }
0x3377   :  { %v9563_v35 = vsub.f32 0.0, %v9559_v15  ;;  %v17867_v53 = vadd.f32 %v14836_v41, %v13220_v63  ;;  %v9537_v22 = vpop.f32.mrb[147].mxu0 }
0x3378   :  { %v9562_v0 = vsub.f32 0.0, %v9558_v11  ;;  %v17869_v58 = vadd.f32 %v14836_v41, %v9537_v22 }
0x3379   :  { %v9568_v25 = vmul.f32 1.442695, %v9563_v35  ;;  %v9561_v43 = vand.u32 2147483647, %v17867_v53  ;;  %vm9553_vm15 = vcmp.ne.f32.partialorder %v17867_v53, %v17867_v53 }
0x337a   :  { %v9566_v26 = vmul.f32 1.442695, %v9562_v0  ;;  %v9560_v34 = vand.u32 2147483647, %v17869_v58  ;;  %vm9552_vm14 = vcmp.ne.f32.partialorder %v17869_v58, %v17869_v58 }
0x337b   :  { %14659 = vpow2.f32 %v9568_v25  ;;  %v9565_v55 = vsub.f32 0.0, %v9561_v43  ;;  %v9547_v43 = vmax.f32 %v17861_v24, 0.0 }
0x337c   :  { %14661 = vpow2.f32 %v9566_v26  ;;  %v9564_v54 = vsub.f32 0.0, %v9560_v34 }
0x337d   :  { %v9572_v7 = vmul.f32 1.442695, %v9565_v55 }
0x337e   :  { %v9570_v28 = vmul.f32 1.442695, %v9564_v54 }
0x337f   :  { %14663 = vpow2.f32 %v9572_v7 }
0x3380   :  { %14665 = vpow2.f32 %v9570_v28 }
0x3385   :  { %v14660_v51 = vpop.eup %14659 }
0x3386   :  { %v14662_v33 = vpop.eup %14661  ;;  %v9583_v37 = vadd.f32 1.0, %v14660_v51  ;;  %v9586_v29 = vmul.f32 -0.5, %v14660_v51  ;;  %v9589_v11 = vand.u32 2147483647, %v14660_v51 }
0x3387   :  { %v9574_v5 = vadd.f32 1.0, %v14662_v33  ;;  %v9577_v62 = vmul.f32 -0.5, %v14662_v33  ;;  %v9580_v0 = vand.u32 2147483647, %v14662_v33 }
0x3388   :  { %14667 = vlog2.f32 %v9583_v37  ;;  %v9587_v15 = vadd.f32 1.0, %v9586_v29  ;;  %vm9590_vm3 = vcmp.lt.f32.partialorder %v9589_v11, 0.0004427343 }
0x3389   :  { %v14664_v20 = vpop.eup %14663  ;;  %14669 = vlog2.f32 %v9574_v5  ;;  %v9578_v35 = vadd.f32 1.0, %v9577_v62  ;;  %vm9581_vm9 = vcmp.lt.f32.partialorder %v9580_v0, 0.0004427343  ;;  %v9548_v0 = vmax.f32 %v17869_v58, 0.0 }
0x338a   :  { %v14666_v10 = vpop.eup %14665  ;;  %v9601_v50 = vadd.f32 1.0, %v14664_v20  ;;  %v9604_v63 = vmul.f32 -0.5, %v14664_v20  ;;  %v9588_v55 = vmul.f32 %v14660_v51, %v9587_v15  ;;  %v9607_v5 = vand.u32 2147483647, %v14664_v20 }
0x338b   :  { %v9592_v41 = vadd.f32 1.0, %v14666_v10  ;;  %v9595_v22 = vmul.f32 -0.5, %v14666_v10  ;;  %v9579_v28 = vmul.f32 %v14662_v33, %v9578_v35  ;;  %v9549_v35 = vmax.f32 %v17867_v53, 0.0 }
0x338c   :  { %14671 = vlog2.f32 %v9601_v50  ;;  %v9605_v54 = vadd.f32 1.0, %v9604_v63  ;;  %v9546_v50 = vmax.f32 %v17863_v52, 0.0  ;;  %vm9608_vm12 = vcmp.lt.f32.partialorder %v9607_v5, 0.0004427343 }
0x338d   :  { %14673 = vlog2.f32 %v9592_v41  ;;  %v9596_v37 = vadd.f32 1.0, %v9595_v22  ;;  %v9598_v41 = vand.u32 2147483647, %v14666_v10 }
0x338e   :  { %v9606_v33 = vmul.f32 %v14664_v20, %v9605_v54 }
0x338f   :  { %v9597_v63 = vmul.f32 %v14666_v10, %v9596_v37  ;;  %vm9599_vm13 = vcmp.lt.f32.partialorder %v9598_v41, 0.0004427343 }
0x3392   :  { %v14668_v25 = vpop.eup %14667 }
0x3393   :  { %v14670_v26 = vpop.eup %14669  ;;  %v9585_v34 = vmul.f32 0.6931472, %v14668_v25 }
0x3394   :  { %v9576_v7 = vmul.f32 0.6931472, %v14670_v26 }
0x3395   :  { %v9591_v29 = vsel %vm9590_vm3, %v9588_v55, %v9585_v34 }
0x3396   :  { %v14672_v62 = vpop.eup %14671  ;;  %v9582_v47 = vsel %vm9581_vm9, %v9579_v28, %v9576_v7  ;;  %v9611_v30 = vadd.f32 %v9591_v29, %v9547_v43 }
0x3397   :  { %v14674_v39 = vpop.eup %14673  ;;  %v9610_v51 = vadd.f32 %v9582_v47, %v9546_v50  ;;  %v9603_v15 = vmul.f32 0.6931472, %v14672_v62 }
0x3398   :  { %v9594_v11 = vmul.f32 0.6931472, %v14674_v39  ;;  %v9615_v43 = vsel %vm9551_vm10, %v17861_v24, %v9611_v30  ;;  %v18824_v30 = vld [vmem:[#allocation7_spill] sm:$0xff]  ;;  %v17903_v24 = vld [vmem:[%s18666_s20] ss:$0 sm:$0xff] }
0x3399   :  { %v9614_v22 = vsel %vm9550_vm11, %v17863_v52, %v9610_v51  ;;  %v9609_v25 = vsel %vm9608_vm12, %v9606_v33, %v9603_v15 }
0x339a   :  { %13253 = vmatprep.mubr.f32.mxu1 %v9614_v22  ;;  %v9600_v47 = vsel %vm9599_vm13, %v9597_v63, %v9594_v11  ;;  %v9613_v26 = vadd.f32 %v9609_v25, %v9549_v35 }
0x339b   :  { %13254 = vmatmul.mubr.f32.vlgmr.msra.gmra.mrb[88].mxu1 %v9615_v43  ;;  %v9612_v39 = vadd.f32 %v9600_v47, %v9548_v0 }
0x339c   :  { %13902 = vmatpush3.bf16.msra.mxu1 %v15820_v56  ;;  %v9617_v20 = vsel %vm9553_vm15, %v17867_v53, %v9613_v26 }
0x339d   :  { %v9616_v52 = vsel %vm9552_vm14, %v17869_v58, %v9612_v39  ;;  %13904 = vmatprep.subr.bf16.mxu1 %v15830_v4 }
0x339e   :  { %13256 = vmatprep.mubr.f32.mxu1 %v9616_v52 }
0x339f   :  { %13257 = vmatmul.mubr.f32.gmra.mrb[90].mxu1 %v9617_v20 }
0x33a0   :  { %13906 = vmatpush3.bf16.msra.mxu1 %v15830_v4 }
0x33a1   :  { %13908 = vmatprep.subr.bf16.mxu1 %v15840_v16 }
0x33a4   :  { %13910 = vmatpush3.bf16.msra.mxu1 %v15840_v16 }
0x33a5   :  { %13912 = vmatprep.subr.bf16.mxu1 %v18824_v30 }
0x33a8   :  { %13914 = vmatpush3.bf16.msra.mxu1 %v18824_v30 }
0x33a9   :  { %13924 = vmatprep.subr.bf16.mxu1 %v15931_v40 }
0x346e   :  { %v13255_v56 = vpop.f32.mrb[88].mxu1 }
0x346f   :  { %v17906_v53 = vadd.f32 %v17903_v24, %v13255_v56  ;;  %v9684_v4 = vpop.f32.mrb[89].mxu1 }
0x3470   :  { %v17909_v58 = vadd.f32 %v17903_v24, %v9684_v4 }
0x3471   :  { %v9716_v16 = vand.u32 2147483647, %v17906_v53  ;;  %vm9708_vm4 = vcmp.ne.f32.partialorder %v17906_v53, %v17906_v53 }
0x3472   :  { %v9715_v10 = vand.u32 2147483647, %v17909_v58  ;;  %v13258_v34 = vpop.f32.mrb[90].mxu1  ;;  %vm9707_vm6 = vcmp.ne.f32.partialorder %v17909_v58, %v17909_v58 }
0x3473   :  { %v9720_v55 = vsub.f32 0.0, %v9716_v16  ;;  %v17914_v54 = vadd.f32 %v17903_v24, %v13258_v34  ;;  %v9694_v7 = vpop.f32.mrb[91].mxu1  ;;  %v9852_v16 = vadd.f32 %v17804_v36, %v17470_v8 }
0x3474   :  { %v9719_v28 = vsub.f32 0.0, %v9715_v10  ;;  %v17917_v37 = vadd.f32 %v17903_v24, %v9694_v7  ;;  %v9704_v7 = vmax.f32 %v17906_v53, 0.0 }
0x3475   :  { %v9725_v5 = vmul.f32 1.442695, %v9720_v55  ;;  %v9718_v50 = vand.u32 2147483647, %v17914_v54  ;;  %v9851_v55 = vadd.f32 %v17806_v48, %v17482_v45  ;;  %vm9710_vm10 = vcmp.ne.f32.partialorder %v17914_v54, %v17914_v54 }
0x3476   :  { %v9723_v29 = vmul.f32 1.442695, %v9719_v28  ;;  %v9717_v41 = vand.u32 2147483647, %v17917_v37  ;;  %vm9709_vm11 = vcmp.ne.f32.partialorder %v17917_v37, %v17917_v37 }
0x3477   :  { %14675 = vpow2.f32 %v9725_v5  ;;  %v9722_v62 = vsub.f32 0.0, %v9718_v50 }
0x3478   :  { %14677 = vpow2.f32 %v9723_v29  ;;  %v9721_v51 = vsub.f32 0.0, %v9717_v41 }
0x3479   :  { %v9729_v15 = vmul.f32 1.442695, %v9722_v62 }
0x347a   :  { %v9727_v33 = vmul.f32 1.442695, %v9721_v51 }
0x347b   :  { %14679 = vpow2.f32 %v9729_v15 }
0x347c   :  { %14681 = vpow2.f32 %v9727_v33  ;;  %v9703_v33 = vmax.f32 %v17909_v58, 0.0 }
0x3481   :  { %v14676_v11 = vpop.eup %14675 }
0x3482   :  { %v14678_v63 = vpop.eup %14677  ;;  %v9740_v35 = vadd.f32 1.0, %v14676_v11  ;;  %v9743_v47 = vmul.f32 -0.5, %v14676_v11  ;;  %v9746_v52 = vand.u32 2147483647, %v14676_v11 }
0x3483   :  { %v9731_v22 = vadd.f32 1.0, %v14678_v63  ;;  %v9734_v39 = vmul.f32 -0.5, %v14678_v63  ;;  %v9737_v10 = vand.u32 2147483647, %v14678_v63 }
0x3484   :  { %14683 = vlog2.f32 %v9740_v35  ;;  %v9744_v20 = vadd.f32 1.0, %v9743_v47  ;;  %vm9747_vm5 = vcmp.lt.f32.partialorder %v9746_v52, 0.0004427343  ;;  %v11656_v52 = vld [vmem:[%s18667_s1 + $0xa0] sm:$0xff] }
0x3485   :  { %v14680_v0 = vpop.eup %14679  ;;  %14685 = vlog2.f32 %v9731_v22  ;;  %v9735_v56 = vadd.f32 1.0, %v9734_v39  ;;  %vm9738_vm8 = vcmp.lt.f32.partialorder %v9737_v10, 0.0004427343  ;;  %v9706_v22 = vmax.f32 %v17914_v54, 0.0 }
0x3486   :  { %v14682_v25 = vpop.eup %14681  ;;  %v9758_v43 = vadd.f32 1.0, %v14680_v0  ;;  %v9761_v30 = vmul.f32 -0.5, %v14680_v0  ;;  %v9745_v50 = vmul.f32 %v14676_v11, %v9744_v20  ;;  %v9764_v41 = vand.u32 2147483647, %v14680_v0 }
0x3487   :  { %v9749_v26 = vadd.f32 1.0, %v14682_v25  ;;  %v9752_v4 = vmul.f32 -0.5, %v14682_v25  ;;  %v9736_v51 = vmul.f32 %v14678_v63, %v9735_v56  ;;  %v9755_v8 = vand.u32 2147483647, %v14682_v25  ;;  %v11657_v63 = vld [vmem:[%s18667_s1 + $0xa8] sm:$0xff] }
0x3488   :  { %14687 = vlog2.f32 %v9758_v43  ;;  %v9762_v29 = vadd.f32 1.0, %v9761_v30  ;;  %v9705_v11 = vmax.f32 %v17917_v37, 0.0  ;;  %vm9765_vm3 = vcmp.lt.f32.partialorder %v9764_v41, 0.0004427343 }
0x3489   :  { %14689 = vlog2.f32 %v9749_v26  ;;  %v9753_v15 = vadd.f32 1.0, %v9752_v4  ;;  %vm9756_vm9 = vcmp.lt.f32.partialorder %v9755_v8, 0.0004427343 }
0x348a   :  { %v9763_v39 = vmul.f32 %v14680_v0, %v9762_v29 }
0x348b   :  { %v9754_v30 = vmul.f32 %v14682_v25, %v9753_v15  ;;  %v11659_v25 = vld [vmem:[%s18667_s1 + $0xb8] sm:$0xff] }
0x348e   :  { %v14684_v34 = vpop.eup %14683 }
0x348f   :  { %v14686_v28 = vpop.eup %14685  ;;  %v9742_v5 = vmul.f32 0.6931472, %v14684_v34 }
0x3490   :  { %v9733_v62 = vmul.f32 0.6931472, %v14686_v28 }
0x3491   :  { %v9748_v36 = vsel %vm9747_vm5, %v9745_v50, %v9742_v5 }
0x3492   :  { %v14688_v45 = vpop.eup %14687  ;;  %v9768_v48 = vadd.f32 %v9748_v36, %v9704_v7  ;;  %v9739_v35 = vsel %vm9738_vm8, %v9736_v51, %v9733_v62  ;;  %v9854_v51 = vadd.f32 %v17808_v13, %v17505_v23  ;;  %v9853_v36 = vadd.f32 %v17810_v12, %v17507_v21  ;;  %v18825_v12 = vld [vmem:[#allocation4_spill] sm:$0xff] }
0x3493   :  { %v14690_v43 = vpop.eup %14689  ;;  %v9767_v47 = vadd.f32 %v9739_v35, %v9703_v33  ;;  %v9760_v26 = vmul.f32 0.6931472, %v14688_v45  ;;  %v14838_v33 = vld [vmem:[%s18658_s10] ss:$0 sm:$0xff] }
0x3494   :  { %v9751_v20 = vmul.f32 0.6931472, %v14690_v43  ;;  %v9772_v56 = vsel %vm9708_vm4, %v17906_v53, %v9768_v48 }
0x3495   :  { %v9766_v4 = vsel %vm9765_vm3, %v9763_v39, %v9760_v26  ;;  %v9776_v10 = vmax.f32 %v9772_v56, 1e-07  ;;  %v9861_v34 = vmul.f32 %v11657_v63, %v9772_v56  ;;  %v9771_v0 = vsel %vm9707_vm6, %v17909_v58, %v9767_v47  ;;  %v11658_v58 = vld [vmem:[%s18667_s1 + $0xb0] sm:$0xff] }
0x3496   :  { %v9770_v7 = vadd.f32 %v9766_v4, %v9706_v22  ;;  %v9757_v28 = vsel %vm9756_vm9, %v9754_v30, %v9751_v20  ;;  %v9775_v5 = vmax.f32 %v9771_v0, 1e-07  ;;  %v9860_v50 = vmul.f32 %v11656_v52, %v9771_v0 }
0x3497   :  { %v9769_v53 = vadd.f32 %v9757_v28, %v9705_v11  ;;  %v17952_v29 = vadd.f32 %v9861_v34, %v9852_v16  ;;  %9805 = vrot.lane.b32.xlu1 %v9776_v10, %s14848_s2 }
0x3498   :  { %9803 = vrot.lane.b32.xlu0 %v9775_v5, %s14848_s2  ;;  %v17961_v41 = vadd.f32 %v9860_v50, %v9851_v55  ;;  %v9774_v62 = vsel %vm9710_vm10, %v17914_v54, %v9770_v7 }
0x3499   :  { %11661 = vst.msk [vmem:[%s18655_s21 + $0xc8] sm:$0xff] %vm89_vm1, %v17952_v29  ;;  %v9778_v16 = vmax.f32 %v9774_v62, 1e-07  ;;  %v9773_v15 = vsel %vm9709_vm11, %v17917_v37, %v9769_v53  ;;  %v9863_v8 = vmul.f32 %v11659_v25, %v9774_v62  ;;  %v18827_v37 = vld [vmem:[#allocation6_spill] sm:$0xff] }
0x349a   :  { %11660 = vst.msk [vmem:[%s18655_s21 + $0xc0] sm:$0xff] %vm89_vm1, %v17961_v41  ;;  %13269 = vmatprep.mubr.msk.f32.mxu0 %vm89_vm1, %v17961_v41  ;;  %v9777_v23 = vmax.f32 %v9773_v15, 1e-07  ;;  %v9862_v13 = vmul.f32 %v11658_v58, %v9773_v15 }
0x349b   :  { %9809 = vrot.lane.b32.xlu1 %v9778_v16, %s14848_s2  ;;  %13270 = vmatmul.mubr.msk.f32.vlgmr.msra.gmra.mrb[148].mxu0 %vm89_vm1, %v17952_v29  ;;  %v17984_v54 = vadd.f32 %v9863_v8, %v9854_v51 }
0x349c   :  { %9807 = vrot.lane.b32.xlu0 %v9777_v23, %s14848_s2  ;;  %v17987_v21 = vadd.f32 %v9862_v13, %v9853_v36  ;;  %13886 = vmatpush3.bf16.msra.mxu0 %v15742_v27  ;;  %v18826_v27 = vld [vmem:[#allocation5_spill] sm:$0xff] }
0x349d   :  { %11663 = vst.msk [vmem:[%s18655_s21 + $0xd8] sm:$0xff] %vm89_vm1, %v17984_v54  ;;  %13888 = vmatprep.subr.bf16.mxu0 %v18825_v12 }
0x349e   :  { %11662 = vst.msk [vmem:[%s18655_s21 + $0xd0] sm:$0xff] %vm89_vm1, %v17987_v21  ;;  %13272 = vmatprep.mubr.msk.f32.mxu0 %vm89_vm1, %v17987_v21 }
0x349f   :  { %13273 = vmatmul.mubr.msk.f32.gmra.mrb[150].mxu0 %vm89_vm1, %v17984_v54 }
0x34a0   :  { %13890 = vmatpush3.bf16.msra.mxu0 %v18825_v12 }
0x34a1   :  { %13892 = vmatprep.subr.bf16.mxu0 %v18826_v27 }
0x34a4   :  { %13894 = vmatpush3.bf16.msra.mxu0 %v18826_v27 }
0x34a5   :  { %13896 = vmatprep.subr.bf16.mxu0 %v18827_v37 }
0x34a8   :  { %13898 = vmatpush3.bf16.msra.mxu0 %v18827_v37 }
0x34a9   :  { %13916 = vmatprep.subr.bf16.mxu0 %v15901_v61 }
0x356e   :  { %v13271_v55 = vpop.f32.mrb[148].mxu0 }
0x356f   :  { %v18014_v45 = vadd.f32 %v14838_v33, %v13271_v55  ;;  %v10053_v48 = vpop.f32.mrb[149].mxu0 }
0x3570   :  { %v18016_v35 = vadd.f32 %v14838_v33, %v10053_v48 }
0x3571   :  { %v10089_v22 = vand.u32 2147483647, %v18014_v45  ;;  %v10077_v55 = vmax.f32 %v18014_v45, 0.0  ;;  %vm10081_vm14 = vcmp.ne.f32.partialorder %v18014_v45, %v18014_v45 }
0x3572   :  { %v10088_v11 = vand.u32 2147483647, %v18016_v35  ;;  %v13274_v63 = vpop.f32.mrb[150].mxu0  ;;  %vm10080_vm15 = vcmp.ne.f32.partialorder %v18016_v35, %v18016_v35 }
0x3573   :  { %v10093_v43 = vsub.f32 0.0, %v10089_v22  ;;  %v18020_v47 = vadd.f32 %v14838_v33, %v13274_v63  ;;  %v10063_v26 = vpop.f32.mrb[151].mxu0 }
0x3574   :  { %v10092_v39 = vsub.f32 0.0, %v10088_v11  ;;  %v18022_v52 = vadd.f32 %v14838_v33, %v10063_v26 }
0x3575   :  { %v10098_v20 = vmul.f32 1.442695, %v10093_v43  ;;  %v10091_v30 = vand.u32 2147483647, %v18020_v47  ;;  %vm10083_vm8 = vcmp.ne.f32.partialorder %v18020_v47, %v18020_v47 }
0x3576   :  { %v10096_v56 = vmul.f32 1.442695, %v10092_v39  ;;  %v10090_v4 = vand.u32 2147483647, %v18022_v52  ;;  %vm10082_vm6 = vcmp.ne.f32.partialorder %v18022_v52, %v18022_v52 }
0x3577   :  { %14691 = vpow2.f32 %v10098_v20  ;;  %v10095_v10 = vsub.f32 0.0, %v10091_v30  ;;  %v10076_v30 = vmax.f32 %v18016_v35, 0.0 }
0x3578   :  { %14693 = vpow2.f32 %v10096_v56  ;;  %v10094_v34 = vsub.f32 0.0, %v10090_v4 }
0x3579   :  { %v10102_v0 = vmul.f32 1.442695, %v10095_v10 }
0x357a   :  { %v10100_v7 = vmul.f32 1.442695, %v10094_v34 }
0x357b   :  { %14695 = vpow2.f32 %v10102_v0 }
0x357c   :  { %14697 = vpow2.f32 %v10100_v7 }
0x3581   :  { %v14692_v28 = vpop.eup %14691 }
0x3582   :  { %v14694_v5 = vpop.eup %14693  ;;  %v10113_v50 = vadd.f32 1.0, %v14692_v28  ;;  %v10116_v51 = vmul.f32 -0.5, %v14692_v28  ;;  %v10119_v36 = vand.u32 2147483647, %v14692_v28 }
0x3583   :  { %v10104_v25 = vadd.f32 1.0, %v14694_v5  ;;  %v10107_v15 = vmul.f32 -0.5, %v14694_v5  ;;  %v10110_v27 = vand.u32 2147483647, %v14694_v5 }
0x3584   :  { %14699 = vlog2.f32 %v10113_v50  ;;  %v10117_v8 = vadd.f32 1.0, %v10116_v51  ;;  %vm10120_vm12 = vcmp.lt.f32.partialorder %v10119_v36, 0.0004427343  ;;  %v10079_v50 = vmax.f32 %v18020_v47, 0.0 }
0x3585   :  { %v14696_v53 = vpop.eup %14695  ;;  %14701 = vlog2.f32 %v10104_v25  ;;  %v10108_v13 = vadd.f32 1.0, %v10107_v15  ;;  %vm10111_vm13 = vcmp.lt.f32.partialorder %v10110_v27, 0.0004427343  ;;  %v10078_v51 = vmax.f32 %v18022_v52, 0.0 }
0x3586   :  { %v14698_v58 = vpop.eup %14697  ;;  %v10131_v62 = vadd.f32 1.0, %v14696_v53  ;;  %v10134_v23 = vmul.f32 -0.5, %v14696_v53  ;;  %v10118_v22 = vmul.f32 %v14692_v28, %v10117_v8  ;;  %v10137_v39 = vand.u32 2147483647, %v14696_v53 }
0x3587   :  { %v10122_v16 = vadd.f32 1.0, %v14698_v58  ;;  %v10125_v12 = vmul.f32 -0.5, %v14698_v58  ;;  %v10109_v43 = vmul.f32 %v14694_v5, %v10108_v13  ;;  %v10128_v56 = vand.u32 2147483647, %v14698_v58 }
0x3588   :  { %14703 = vlog2.f32 %v10131_v62  ;;  %v10135_v11 = vadd.f32 1.0, %v10134_v23  ;;  %vm10138_vm4 = vcmp.lt.f32.partialorder %v10137_v39, 0.0004427343 }
0x3589   :  { %14705 = vlog2.f32 %v10122_v16  ;;  %v10126_v26 = vadd.f32 1.0, %v10125_v12  ;;  %vm10129_vm5 = vcmp.lt.f32.partialorder %v10128_v56, 0.0004427343 }
0x358a   :  { %v10136_v5 = vmul.f32 %v14696_v53, %v10135_v11 }
0x358b   :  { %v10127_v62 = vmul.f32 %v14698_v58, %v10126_v26  ;;  %v18055_v58 = vld [vmem:[%s18662_s17] sm:$0xf] }
0x358e   :  { %v14700_v37 = vpop.eup %14699 }
0x358f   :  { %v14702_v33 = vpop.eup %14701  ;;  %v10115_v48 = vmul.f32 0.6931472, %v14700_v37 }
0x3590   :  { %v10106_v63 = vmul.f32 0.6931472, %v14702_v33 }
0x3591   :  { %v10121_v20 = vsel %vm10120_vm12, %v10118_v22, %v10115_v48 }
0x3592   :  { %v14704_v4 = vpop.eup %14703  ;;  %v10141_v10 = vadd.f32 %v10121_v20, %v10077_v55  ;;  %v10112_v34 = vsel %vm10111_vm13, %v10109_v43, %v10106_v63 }
0x3593   :  { %v14706_v0 = vpop.eup %14705  ;;  %v10140_v7 = vadd.f32 %v10112_v34, %v10076_v30  ;;  %v10133_v28 = vmul.f32 0.6931472, %v14704_v4 }
0x3594   :  { %v10124_v25 = vmul.f32 0.6931472, %v14706_v0  ;;  %v10145_v8 = vsel %vm10081_vm14, %v18014_v45, %v10141_v10 }
0x3595   :  { %v10144_v16 = vsel %vm10080_vm15, %v18016_v35, %v10140_v7  ;;  %v10139_v15 = vsel %vm10138_vm4, %v10136_v5, %v10133_v28 }
0x3596   :  { %13291 = vmatprep.mubr.msk.f32.mxu0 %vm3389_vm7, %v10144_v16  ;;  %v10130_v36 = vsel %vm10129_vm5, %v10127_v62, %v10124_v25  ;;  %v10143_v53 = vadd.f32 %v10139_v15, %v10079_v50 }
0x3597   :  { %13292 = vmatmul.mubr.msk.f32.vlgmr.msra.gmra.mrb[152].mxu0 %vm3389_vm7, %v10145_v8  ;;  %v10142_v23 = vadd.f32 %v10130_v36, %v10078_v51 }
0x3598   :  { %13918 = vmatpush3.bf16.msra.mxu0 %v15901_v61  ;;  %v10147_v45 = vsel %vm10083_vm8, %v18020_v47, %v10143_v53 }
0x3599   :  { %v10146_v35 = vsel %vm10082_vm6, %v18022_v52, %v10142_v23  ;;  %13920 = vmatprep.subr.bf16.mxu0 %v15906_v32  ;;  %v14840_v52 = vld [vmem:[%s18660_s12] ss:$0 sm:$0xff] }
0x359a   :  { %13294 = vmatprep.mubr.msk.f32.mxu0 %vm3389_vm7, %v10146_v35 }
0x359b   :  { %13295 = vmatmul.mubr.msk.f32.gmra.mrb[154].mxu0 %vm3389_vm7, %v10147_v45 }
0x359c   :  { %13922 = vmatpush3.bf16.msra.mxu0 %v15906_v32 }
0x359d   :  { %13333 = vmatprep.subr.msk.mxu0 %vm102_vm0, %v18055_v58 }
0x366a   :  { %v13293_v61 = vpop.f32.mrb[152].mxu0 }
0x366b   :  { %v18062_v13 = vadd.f32 %v14840_v52, %v13293_v61  ;;  %v10226_v47 = vpop.f32.mrb[153].mxu0 }
0x366c   :  { %v18064_v12 = vadd.f32 %v14840_v52, %v10226_v47 }
0x366d   :  { %v10258_v32 = vand.u32 2147483647, %v18062_v13  ;;  %v10246_v45 = vmax.f32 %v18062_v13, 0.0  ;;  %vm10250_vm10 = vcmp.ne.f32.partialorder %v18062_v13, %v18062_v13 }
0x366e   :  { %v10257_v27 = vand.u32 2147483647, %v18064_v12  ;;  %v13296_v37 = vpop.f32.mrb[154].mxu0  ;;  %vm10249_vm11 = vcmp.ne.f32.partialorder %v18064_v12, %v18064_v12 }
0x366f   :  { %v10262_v55 = vsub.f32 0.0, %v10258_v32  ;;  %v18068_v33 = vadd.f32 %v14840_v52, %v13296_v37  ;;  %v10236_v48 = vpop.f32.mrb[155].mxu0 }
0x3670   :  { %v10261_v22 = vsub.f32 0.0, %v10257_v27  ;;  %v18070_v11 = vadd.f32 %v14840_v52, %v10236_v48 }
0x3671   :  { %v10267_v63 = vmul.f32 1.442695, %v10262_v55  ;;  %v10260_v43 = vand.u32 2147483647, %v18068_v33  ;;  %vm10252_vm15 = vcmp.ne.f32.partialorder %v18068_v33, %v18068_v33 }
0x3672   :  { %v10265_v26 = vmul.f32 1.442695, %v10261_v22  ;;  %v10259_v39 = vand.u32 2147483647, %v18070_v11  ;;  %vm10251_vm14 = vcmp.ne.f32.partialorder %v18070_v11, %v18070_v11 }
0x3673   :  { %14707 = vpow2.f32 %v10267_v63  ;;  %v10264_v20 = vsub.f32 0.0, %v10260_v43  ;;  %v10245_v63 = vmax.f32 %v18064_v12, 0.0 }
0x3674   :  { %14709 = vpow2.f32 %v10265_v26  ;;  %v10263_v30 = vsub.f32 0.0, %v10259_v39 }
0x3675   :  { %v10271_v56 = vmul.f32 1.442695, %v10264_v20 }
0x3676   :  { %v10269_v4 = vmul.f32 1.442695, %v10263_v30 }
0x3677   :  { %14711 = vpow2.f32 %v10271_v56 }
0x3678   :  { %14713 = vpow2.f32 %v10269_v4 }
0x367d   :  { %v14708_v10 = vpop.eup %14707 }
0x367e   :  { %v14710_v34 = vpop.eup %14709  ;;  %v10282_v0 = vadd.f32 1.0, %v14708_v10  ;;  %v10285_v25 = vmul.f32 -0.5, %v14708_v10  ;;  %v10288_v15 = vand.u32 2147483647, %v14708_v10 }
0x367f   :  { %v10273_v7 = vadd.f32 1.0, %v14710_v34  ;;  %v10276_v51 = vmul.f32 -0.5, %v14710_v34  ;;  %v10279_v23 = vand.u32 2147483647, %v14710_v34 }
0x3680   :  { %14715 = vlog2.f32 %v10282_v0  ;;  %v10286_v16 = vadd.f32 1.0, %v10285_v25  ;;  %vm10289_vm3 = vcmp.lt.f32.partialorder %v10288_v15, 0.0004427343 }
0x3681   :  { %v14712_v28 = vpop.eup %14711  ;;  %14717 = vlog2.f32 %v10273_v7  ;;  %v10277_v36 = vadd.f32 1.0, %v10276_v51  ;;  %vm10280_vm9 = vcmp.lt.f32.partialorder %v10279_v23, 0.0004427343 }
0x3682   :  { %v14714_v5 = vpop.eup %14713  ;;  %v10300_v50 = vadd.f32 1.0, %v14712_v28  ;;  %v10303_v8 = vmul.f32 -0.5, %v14712_v28  ;;  %v10287_v47 = vmul.f32 %v14708_v10, %v10286_v16  ;;  %v10306_v48 = vand.u32 2147483647, %v14712_v28 }
0x3683   :  { %v10291_v62 = vadd.f32 1.0, %v14714_v5  ;;  %v10294_v53 = vmul.f32 -0.5, %v14714_v5  ;;  %v10278_v37 = vmul.f32 %v14710_v34, %v10277_v36  ;;  %v10297_v43 = vand.u32 2147483647, %v14714_v5 }
0x3684   :  { %14719 = vlog2.f32 %v10300_v50  ;;  %v10304_v32 = vadd.f32 1.0, %v10303_v8  ;;  %v10248_v34 = vmax.f32 %v18068_v33, 0.0  ;;  %vm10307_vm12 = vcmp.lt.f32.partialorder %v10306_v48, 0.0004427343 }
0x3685   :  { %14721 = vlog2.f32 %v10291_v62  ;;  %v10295_v55 = vadd.f32 1.0, %v10294_v53  ;;  %v10247_v50 = vmax.f32 %v18070_v11, 0.0  ;;  %vm10298_vm13 = vcmp.lt.f32.partialorder %v10297_v43, 0.0004427343 }
0x3686   :  { %v10305_v10 = vmul.f32 %v14712_v28, %v10304_v32 }
0x3687   :  { %v10296_v7 = vmul.f32 %v14714_v5, %v10295_v55 }
0x368a   :  { %v14716_v35 = vpop.eup %14715 }
0x368b   :  { %v14718_v61 = vpop.eup %14717  ;;  %v10284_v52 = vmul.f32 0.6931472, %v14716_v35 }
0x368c   :  { %v10275_v27 = vmul.f32 0.6931472, %v14718_v61 }
0x368d   :  { %v10290_v22 = vsel %vm10289_vm3, %v10287_v47, %v10284_v52 }
0x368e   :  { %v14720_v26 = vpop.eup %14719  ;;  %v10310_v39 = vadd.f32 %v10290_v22, %v10246_v45  ;;  %v10281_v20 = vsel %vm10280_vm9, %v10278_v37, %v10275_v27 }
0x368f   :  { %v14722_v30 = vpop.eup %14721  ;;  %v10309_v56 = vadd.f32 %v10281_v20, %v10245_v63  ;;  %v10302_v4 = vmul.f32 0.6931472, %v14720_v26 }
0x3690   :  { %v10293_v0 = vmul.f32 0.6931472, %v14722_v30  ;;  %v10314_v51 = vsel %vm10250_vm10, %v18062_v13, %v10310_v39 }
0x3691   :  { %v10313_v25 = vsel %vm10249_vm11, %v18064_v12, %v10309_v56  ;;  %v10308_v62 = vsel %vm10307_vm12, %v10305_v10, %v10302_v4 }
0x3692   :  { %13313 = vmatprep.mubr.msk.f32.mxu1 %vm3389_vm7, %v10313_v25  ;;  %v10299_v16 = vsel %vm10298_vm13, %v10296_v7, %v10293_v0  ;;  %v10312_v28 = vadd.f32 %v10308_v62, %v10248_v34 }
0x3693   :  { %13314 = vmatmul.mubr.msk.f32.vlgmr.msra.gmra.mrb[92].mxu1 %vm3389_vm7, %v10314_v51  ;;  %v10311_v15 = vadd.f32 %v10299_v16, %v10247_v50 }
0x3694   :  { %13926 = vmatpush3.bf16.msra.mxu1 %v15931_v40  ;;  %v10316_v13 = vsel %vm10252_vm15, %v18068_v33, %v10312_v28 }
0x3695   :  { %v10315_v12 = vsel %vm10251_vm14, %v18070_v11, %v10311_v15  ;;  %13928 = vmatprep.subr.bf16.mxu1 %v15936_v42 }
0x3696   :  { %13316 = vmatprep.mubr.msk.f32.mxu1 %vm3389_vm7, %v10315_v12 }
0x3697   :  { %13317 = vmatmul.mubr.msk.f32.gmra.mrb[94].mxu1 %vm3389_vm7, %v10316_v13 }
0x3698   :  { %13930 = vmatpush3.bf16.msra.mxu1 %v15936_v42  ;;  %v14841_v42 = vld [vmem:[%s18663_s14] ss:$0 sm:$0xff] }
0x3699   :  { %13932 = vmatprep.subr.bf16.mxu1 %v16012_v38 }
0x369c   :  { %13934 = vmatpush3.bf16.msra.mxu1 %v16012_v38 }
0x369d   :  { %13936 = vmatprep.subr.bf16.mxu1 %v16022_v18 }
0x36a0   :  { %13938 = vmatpush3.bf16.msra.mxu1 %v16022_v18 }
0x36a1   :  { %13940 = vmatprep.subr.bf16.mxu1 %v16035_v59 }
0x36a4   :  { %13942 = vmatpush3.bf16.msra.mxu1 %v16035_v59 }
0x36a5   :  { %13944 = vmatprep.subr.bf16.mxu1 %v16040_v60 }
0x36a8   :  { %13946 = vmatpush3.bf16.msra.mxu1 %v16040_v60 }
0x36a9   :  { %13948 = vmatprep.subr.bf16.mxu1 %v16051_v46 }
0x36ac   :  { %13950 = vmatpush3.bf16.msra.mxu1 %v16051_v46 }
0x36ad   :  { %13952 = vmatprep.subr.bf16.mxu1 %v16061_v49 }
0x36b0   :  { %13954 = vmatpush3.bf16.msra.mxu1 %v16061_v49 }
0x3766   :  { %v13315_v40 = vpop.f32.mrb[92].mxu1 }
0x3767   :  { %v18115_v38 = vadd.f32 %v14841_v42, %v13315_v40  ;;  %v10395_v18 = vpop.f32.mrb[93].mxu1 }
0x3768   :  { %v18117_v59 = vadd.f32 %v14841_v42, %v10395_v18 }
0x3769   :  { %v10427_v60 = vand.u32 2147483647, %v18115_v38  ;;  %v10415_v50 = vmax.f32 %v18115_v38, 0.0  ;;  %vm10419_vm5 = vcmp.ne.f32.partialorder %v18115_v38, %v18115_v38 }
0x376a   :  { %v10426_v33 = vand.u32 2147483647, %v18117_v59  ;;  %v13318_v11 = vpop.f32.mrb[94].mxu1  ;;  %v10414_v40 = vmax.f32 %v18117_v59, 0.0  ;;  %vm10418_vm6 = vcmp.ne.f32.partialorder %v18117_v59, %v18117_v59 }
0x376b   :  { %v10431_v46 = vsub.f32 0.0, %v10427_v60  ;;  %v18121_v5 = vadd.f32 %v14841_v42, %v13318_v11  ;;  %v10405_v8 = vpop.f32.mrb[95].mxu1 }
0x376c   :  { %v10430_v49 = vsub.f32 0.0, %v10426_v33  ;;  %v18123_v36 = vadd.f32 %v14841_v42, %v10405_v8 }
0x376d   :  { %v10436_v53 = vmul.f32 1.442695, %v10431_v46  ;;  %v10429_v23 = vand.u32 2147483647, %v18121_v5  ;;  %vm10421_vm10 = vcmp.ne.f32.partialorder %v18121_v5, %v18121_v5 }
0x376e   :  { %v10434_v35 = vmul.f32 1.442695, %v10430_v49  ;;  %v10428_v45 = vand.u32 2147483647, %v18123_v36  ;;  %vm10420_vm9 = vcmp.ne.f32.partialorder %v18123_v36, %v18123_v36 }
0x376f   :  { %14723 = vpow2.f32 %v10436_v53  ;;  %v10433_v61 = vsub.f32 0.0, %v10429_v23 }
0x3770   :  { %14725 = vpow2.f32 %v10434_v35  ;;  %v10432_v52 = vsub.f32 0.0, %v10428_v45  ;;  %v10417_v45 = vmax.f32 %v18121_v5, 0.0 }
0x3771   :  { %v10440_v47 = vmul.f32 1.442695, %v10433_v61 }
0x3772   :  { %v10438_v32 = vmul.f32 1.442695, %v10432_v52  ;;  %v10416_v52 = vmax.f32 %v18123_v36, 0.0 }
0x3773   :  { %14727 = vpow2.f32 %v10440_v47 }
0x3774   :  { %14729 = vpow2.f32 %v10438_v32 }
0x3779   :  { %v14724_v27 = vpop.eup %14723 }
0x377a   :  { %v14726_v37 = vpop.eup %14725  ;;  %v10451_v55 = vadd.f32 1.0, %v14724_v27  ;;  %v10454_v26 = vmul.f32 -0.5, %v14724_v27  ;;  %v10457_v56 = vand.u32 2147483647, %v14724_v27 }
0x377b   :  { %v10442_v48 = vadd.f32 1.0, %v14726_v37  ;;  %v10445_v20 = vmul.f32 -0.5, %v14726_v37  ;;  %v10448_v0 = vand.u32 2147483647, %v14726_v37 }
0x377c   :  { %14731 = vlog2.f32 %v10451_v55  ;;  %v10455_v30 = vadd.f32 1.0, %v10454_v26  ;;  %vm10458_vm7 = vcmp.lt.f32.partialorder %v10457_v56, 0.0004427343 }
0x377d   :  { %v14728_v22 = vpop.eup %14727  ;;  %14733 = vlog2.f32 %v10442_v48  ;;  %v10446_v10 = vadd.f32 1.0, %v10445_v20  ;;  %vm10449_vm4 = vcmp.lt.f32.partialorder %v10448_v0, 0.0004427343  ;;  %v14842_v20 = vld [vmem:[%s18665_s18] ss:$0 sm:$0xff] }
0x377e   :  { %v14730_v63 = vpop.eup %14729  ;;  %v10469_v43 = vadd.f32 1.0, %v14728_v22  ;;  %v10472_v4 = vmul.f32 -0.5, %v14728_v22  ;;  %v10456_v51 = vmul.f32 %v14724_v27, %v10455_v30  ;;  %v10475_v13 = vand.u32 2147483647, %v14728_v22 }
0x377f   :  { %v10460_v39 = vadd.f32 1.0, %v14730_v63  ;;  %v10463_v34 = vmul.f32 -0.5, %v14730_v63  ;;  %v10447_v15 = vmul.f32 %v14726_v37, %v10446_v10  ;;  %v10466_v18 = vand.u32 2147483647, %v14730_v63 }
0x3780   :  { %14735 = vlog2.f32 %v10469_v43  ;;  %v10473_v16 = vadd.f32 1.0, %v10472_v4  ;;  %vm10476_vm8 = vcmp.lt.f32.partialorder %v10475_v13, 0.0004427343 }
0x3781   :  { %14737 = vlog2.f32 %v10460_v39  ;;  %v10464_v12 = vadd.f32 1.0, %v10463_v34  ;;  %vm10467_vm3 = vcmp.lt.f32.partialorder %v10466_v18, 0.0004427343 }
0x3782   :  { %v10474_v53 = vmul.f32 %v14728_v22, %v10473_v16 }
0x3783   :  { %v10465_v35 = vmul.f32 %v14730_v63, %v10464_v12 }
0x3786   :  { %v14732_v7 = vpop.eup %14731 }
0x3787   :  { %v14734_v25 = vpop.eup %14733  ;;  %v10453_v62 = vmul.f32 0.6931472, %v14732_v7 }
0x3788   :  { %v10444_v28 = vmul.f32 0.6931472, %v14734_v25 }
0x3789   :  { %v10459_v42 = vsel %vm10458_vm7, %v10456_v51, %v10453_v62 }
0x378a   :  { %v14736_v60 = vpop.eup %14735  ;;  %v10450_v33 = vsel %vm10449_vm4, %v10447_v15, %v10444_v28  ;;  %v10479_v11 = vadd.f32 %v10459_v42, %v10415_v50 }
0x378b   :  { %v14738_v46 = vpop.eup %14737  ;;  %v10478_v8 = vadd.f32 %v10450_v33, %v10414_v40  ;;  %v10471_v49 = vmul.f32 0.6931472, %v14736_v60 }
0x378c   :  { %v10462_v23 = vmul.f32 0.6931472, %v14738_v46  ;;  %v10483_v32 = vsel %vm10419_vm5, %v18115_v38, %v10479_v11 }
0x378d   :  { %v10482_v61 = vsel %vm10418_vm6, %v18117_v59, %v10478_v8  ;;  %v10477_v47 = vsel %vm10476_vm8, %v10474_v53, %v10471_v49 }
0x378e   :  { %13327 = vmatprep.mubr.msk.f32.mxu0 %vm197_vm2, %v10482_v61  ;;  %v10468_v27 = vsel %vm10467_vm3, %v10465_v35, %v10462_v23  ;;  %v10481_v37 = vadd.f32 %v10477_v47, %v10417_v45 }
0x378f   :  { %13328 = vmatmul.mubr.msk.f32.vlgmr.msra.gmra.mrb[156].mxu0 %vm197_vm2, %v10483_v32  ;;  %v10480_v55 = vadd.f32 %v10468_v27, %v10416_v52 }
0x3790   :  { %13334 = vmatpush3.msk.msra.mxu0 %vm102_vm0, %v18055_v58  ;;  %v10485_v22 = vsel %vm10421_vm10, %v18121_v5, %v10481_v37 }
0x3791   :  { %v10484_v48 = vsel %vm10420_vm9, %v18123_v36, %v10480_v55 }
0x3792   :  { %13330 = vmatprep.mubr.msk.f32.mxu0 %vm197_vm2, %v10484_v48 }
0x3793   :  { %13331 = vmatmul.mubr.msk.f32.gmra.mrb[158].mxu0 %vm197_vm2, %v10485_v22 }
0x3794   :  { %13335 = vmatprep.mubr.msk.f32.mxu0 %vm89_vm1, %v17961_v41 }
0x3797   :  { %13336 = vmatmul.mubr.msk.f32.vlgmr.msra.gmra.mrb[160].mxu0 %vm89_vm1, %v17952_v29 }
0x3798   :  { %13338 = vmatprep.mubr.msk.f32.mxu0 %vm89_vm1, %v17987_v21 }
0x379b   :  { %13339 = vmatmul.mubr.msk.f32.gmra.mrb[162].mxu0 %vm89_vm1, %v17984_v54 }
0x3862   :  { %v18160_v58 = vpop.f32.mrb[156].mxu0 }
0x3863   :  { %v18162_v63 = vpop.f32.mrb[157].mxu0 }
0x3866   :  { %v18164_v43 = vpop.f32.mrb[158].mxu0 }
0x3867   :  { %v18166_v26 = vpop.f32.mrb[159].mxu0 }
0x386a   :  { %v13337_v39 = vpop.f32.mrb[160].mxu0 }
0x386b   :  { %v18171_v30 = vadd.f32 %v14842_v20, %v13337_v39  ;;  %v10649_v56 = vpop.f32.mrb[161].mxu0 }
0x386c   :  { %v18173_v4 = vadd.f32 %v14842_v20, %v10649_v56 }
0x386d   :  { %v10681_v10 = vand.u32 2147483647, %v18171_v30  ;;  %v10669_v48 = vmax.f32 %v18171_v30, 0.0  ;;  %vm10673_vm11 = vcmp.ne.f32.partialorder %v18171_v30, %v18171_v30 }
0x386e   :  { %v10680_v34 = vand.u32 2147483647, %v18173_v4  ;;  %v13340_v0 = vpop.f32.mrb[162].mxu0  ;;  %vm10672_vm12 = vcmp.ne.f32.partialorder %v18173_v4, %v18173_v4 }
0x386f   :  { %v10685_v7 = vsub.f32 0.0, %v10681_v10  ;;  %v18177_v50 = vadd.f32 %v14842_v20, %v13340_v0  ;;  %v10659_v25 = vpop.f32.mrb[163].mxu0 }
0x3870   :  { %v10684_v62 = vsub.f32 0.0, %v10680_v34  ;;  %v18179_v51 = vadd.f32 %v14842_v20, %v10659_v25  ;;  %v10668_v25 = vmax.f32 %v18173_v4, 0.0 }
0x3871   :  { %v10690_v16 = vmul.f32 1.442695, %v10685_v7  ;;  %v10683_v28 = vand.u32 2147483647, %v18177_v50  ;;  %vm10675_vm7 = vcmp.ne.f32.partialorder %v18177_v50, %v18177_v50 }
0x3872   :  { %v10688_v15 = vmul.f32 1.442695, %v10684_v62  ;;  %v10682_v12 = vand.u32 2147483647, %v18179_v51  ;;  %vm10674_vm15 = vcmp.ne.f32.partialorder %v18179_v51, %v18179_v51 }
0x3873   :  { %14739 = vpow2.f32 %v10690_v16  ;;  %v10687_v13 = vsub.f32 0.0, %v10683_v28 }
0x3874   :  { %14741 = vpow2.f32 %v10688_v15  ;;  %v10686_v40 = vsub.f32 0.0, %v10682_v12 }
0x3875   :  { %v10694_v42 = vmul.f32 1.442695, %v10687_v13 }
0x3876   :  { %v10692_v18 = vmul.f32 1.442695, %v10686_v40 }
0x3877   :  { %14743 = vpow2.f32 %v10694_v42 }
0x3878   :  { %14745 = vpow2.f32 %v10692_v18 }
0x387d   :  { %v14740_v60 = vpop.eup %14739 }
0x387e   :  { %v14742_v33 = vpop.eup %14741  ;;  %v10705_v11 = vadd.f32 1.0, %v14740_v60  ;;  %v10708_v23 = vmul.f32 -0.5, %v14740_v60  ;;  %v10711_v52 = vand.u32 2147483647, %v14740_v60 }
0x387f   :  { %v10696_v46 = vadd.f32 1.0, %v14742_v33  ;;  %v10699_v45 = vmul.f32 -0.5, %v14742_v33  ;;  %v10702_v37 = vand.u32 2147483647, %v14742_v33 }
0x3880   :  { %14747 = vlog2.f32 %v10705_v11  ;;  %v10709_v61 = vadd.f32 1.0, %v10708_v23  ;;  %vm10712_vm0 = vcmp.lt.f32.partialorder %v10711_v52, 0.0004427343  ;;  %v10671_v11 = vmax.f32 %v18177_v50, 0.0 }
0x3881   :  { %v14744_v8 = vpop.eup %14743  ;;  %14749 = vlog2.f32 %v10696_v46  ;;  %v10700_v32 = vadd.f32 1.0, %v10699_v45  ;;  %vm10703_vm2 = vcmp.lt.f32.partialorder %v10702_v37, 0.0004427343 }
0x3882   :  { %v14746_v49 = vpop.eup %14745  ;;  %v10723_v53 = vadd.f32 1.0, %v14744_v8  ;;  %v10726_v47 = vmul.f32 -0.5, %v14744_v8  ;;  %v10710_v20 = vmul.f32 %v14740_v60, %v10709_v61  ;;  %v10729_v7 = vand.u32 2147483647, %v14744_v8 }
0x3883   :  { %v10714_v35 = vadd.f32 1.0, %v14746_v49  ;;  %v10717_v27 = vmul.f32 -0.5, %v14746_v49  ;;  %v10701_v34 = vmul.f32 %v14742_v33, %v10700_v32  ;;  %v10720_v16 = vand.u32 2147483647, %v14746_v49 }
0x3884   :  { %14751 = vlog2.f32 %v10723_v53  ;;  %v10727_v56 = vadd.f32 1.0, %v10726_v47  ;;  %vm10730_vm13 = vcmp.lt.f32.partialorder %v10729_v7, 0.0004427343  ;;  %v10670_v53 = vmax.f32 %v18179_v51, 0.0 }
0x3885   :  { %14753 = vlog2.f32 %v10714_v35  ;;  %v10718_v0 = vadd.f32 1.0, %v10717_v27  ;;  %vm10721_vm14 = vcmp.lt.f32.partialorder %v10720_v16, 0.0004427343 }
0x3886   :  { %v10728_v18 = vmul.f32 %v14744_v8, %v10727_v56 }
0x3887   :  { %v10719_v33 = vmul.f32 %v14746_v49, %v10718_v0 }
0x388a   :  { %v14748_v55 = vpop.eup %14747 }
0x388b   :  { %v14750_v22 = vpop.eup %14749  ;;  %v10707_v39 = vmul.f32 0.6931472, %v14748_v55 }
0x388c   :  { %v10698_v10 = vmul.f32 0.6931472, %v14750_v22 }
0x388d   :  { %v10713_v62 = vsel %vm10712_vm0, %v10710_v20, %v10707_v39  ;;  %v14843_v39 = vld [vmem:[%s18666_s20] ss:$0 sm:$0xff] }
0x388e   :  { %v14752_v28 = vpop.eup %14751  ;;  %v10704_v15 = vsel %vm10703_vm2, %v10701_v34, %v10698_v10  ;;  %v10733_v12 = vadd.f32 %v10713_v62, %v10669_v48 }
0x388f   :  { %v14754_v13 = vpop.eup %14753  ;;  %v10732_v40 = vadd.f32 %v10704_v15, %v10668_v25  ;;  %v10725_v42 = vmul.f32 0.6931472, %v14752_v28 }
0x3890   :  { %v10716_v60 = vmul.f32 0.6931472, %v14754_v13  ;;  %v10737_v35 = vsel %vm10673_vm11, %v18171_v30, %v10733_v12  ;;  %vm11027_vm11 = vcmask 7168  }
0x3891   :  { %v10736_v46 = vsel %vm10672_vm12, %v18173_v4, %v10732_v40  ;;  %v10731_v23 = vsel %vm10730_vm13, %v10728_v18, %v10725_v42 }
0x3892   :  { %13373 = vmatprep.mubr.f32.mxu1 %v10736_v46  ;;  %v10722_v45 = vsel %vm10721_vm14, %v10719_v33, %v10716_v60  ;;  %v10735_v61 = vadd.f32 %v10731_v23, %v10671_v11 }
0x3893   :  { %13374 = vmatmul.mubr.f32.vlgmr.msra.gmra.mrb[96].mxu1 %v10737_v35  ;;  %v10734_v8 = vadd.f32 %v10722_v45, %v10670_v53 }
0x3894   :  { %v10739_v4 = vsel %vm10675_vm7, %v18177_v50, %v10735_v61 }
0x3895   :  { %v10738_v49 = vsel %vm10674_vm15, %v18179_v51, %v10734_v8 }
0x3896   :  { %13376 = vmatprep.mubr.f32.mxu1 %v10738_v49 }
0x3897   :  { %13377 = vmatmul.mubr.f32.gmra.mrb[98].mxu1 %v10739_v4 }
0x3966   :  { %v13375_v52 = vpop.f32.mrb[96].mxu1 }
0x3967   :  { %v18203_v47 = vadd.f32 %v17903_v24, %v13375_v52  ;;  %v10806_v30 = vpop.f32.mrb[97].mxu1 }
0x3968   :  { %v18206_v32 = vadd.f32 %v17903_v24, %v10806_v30 }
0x3969   :  { %v10838_v27 = vand.u32 2147483647, %v18203_v47  ;;  %v10826_v8 = vmax.f32 %v18203_v47, 0.0  ;;  %vm10830_vm4 = vcmp.ne.f32.partialorder %v18203_v47, %v18203_v47 }
0x396a   :  { %v10837_v37 = vand.u32 2147483647, %v18206_v32  ;;  %v13378_v51 = vpop.f32.mrb[98].mxu1  ;;  %vm10829_vm8 = vcmp.ne.f32.partialorder %v18206_v32, %v18206_v32 }
0x396b   :  { %v10842_v55 = vsub.f32 0.0, %v10838_v27  ;;  %v18211_v48 = vadd.f32 %v17903_v24, %v13378_v51  ;;  %v10816_v22 = vpop.f32.mrb[99].mxu1 }
0x396c   :  { %v10841_v50 = vsub.f32 0.0, %v10837_v37  ;;  %v18216_v20 = vadd.f32 %v14843_v39, %v10816_v22 }
0x396d   :  { %v10847_v56 = vmul.f32 1.442695, %v10842_v55  ;;  %v10840_v10 = vand.u32 2147483647, %v18211_v48  ;;  %vm10832_vm10 = vcmp.ne.f32.partialorder %v18211_v48, %v18211_v48 }
0x396e   :  { %v10845_v34 = vmul.f32 1.442695, %v10841_v50  ;;  %v10839_v0 = vand.u32 2147483647, %v18216_v20  ;;  %v10825_v50 = vmax.f32 %v18206_v32, 0.0  ;;  %vm10831_vm0 = vcmp.ne.f32.partialorder %v18216_v20, %v18216_v20 }
0x396f   :  { %14755 = vpow2.f32 %v10847_v56  ;;  %v10844_v7 = vsub.f32 0.0, %v10840_v10 }
0x3970   :  { %14757 = vpow2.f32 %v10845_v34  ;;  %v10843_v25 = vsub.f32 0.0, %v10839_v0  ;;  %v10828_v0 = vmax.f32 %v18211_v48, 0.0 }
0x3971   :  { %v10851_v24 = vmul.f32 1.442695, %v10844_v7 }
0x3972   :  { %v10849_v62 = vmul.f32 1.442695, %v10843_v25 }
0x3973   :  { %14759 = vpow2.f32 %v10851_v24 }
0x3974   :  { %14761 = vpow2.f32 %v10849_v62 }
0x3979   :  { %v14756_v16 = vpop.eup %14755 }
0x397a   :  { %v14758_v28 = vpop.eup %14757  ;;  %v10862_v15 = vadd.f32 1.0, %v14756_v16  ;;  %v10865_v18 = vmul.f32 -0.5, %v14756_v16  ;;  %v10868_v46 = vand.u32 2147483647, %v14756_v16 }
0x397b   :  { %v10853_v12 = vadd.f32 1.0, %v14758_v28  ;;  %v10856_v33 = vmul.f32 -0.5, %v14758_v28  ;;  %v10859_v45 = vand.u32 2147483647, %v14758_v28 }
0x397c   :  { %14763 = vlog2.f32 %v10862_v15  ;;  %v10866_v11 = vadd.f32 1.0, %v10865_v18  ;;  %vm10869_vm5 = vcmp.lt.f32.partialorder %v10868_v46, 0.0004427343 }
0x397d   :  { %v14760_v13 = vpop.eup %14759  ;;  %14765 = vlog2.f32 %v10853_v12  ;;  %v10857_v23 = vadd.f32 1.0, %v10856_v33  ;;  %vm10860_vm6 = vcmp.lt.f32.partialorder %v10859_v45, 0.0004427343 }
0x397e   :  { %v14762_v40 = vpop.eup %14761  ;;  %v10880_v42 = vadd.f32 1.0, %v14760_v13  ;;  %v10883_v53 = vmul.f32 -0.5, %v14760_v13  ;;  %v10867_v52 = vmul.f32 %v14756_v16, %v10866_v11  ;;  %v10886_v51 = vand.u32 2147483647, %v14760_v13 }
0x397f   :  { %v10871_v60 = vadd.f32 1.0, %v14762_v40  ;;  %v10874_v35 = vmul.f32 -0.5, %v14762_v40  ;;  %v10858_v37 = vmul.f32 %v14758_v28, %v10857_v23  ;;  %v10877_v39 = vand.u32 2147483647, %v14762_v40  ;;  %v14844_v23 = vld [vmem:[%s18668_s16] ss:$0 sm:$0xff] }
0x3980   :  { %14767 = vlog2.f32 %v10880_v42  ;;  %v10884_v30 = vadd.f32 1.0, %v10883_v53  ;;  %v10827_v16 = vmax.f32 %v18216_v20, 0.0  ;;  %vm10887_vm3 = vcmp.lt.f32.partialorder %v10886_v51, 0.0004427343  ;;  %v11036_v51 = vld [vmem:[%s18723_s3 + $0x8] sm:$0xff] }
0x3981   :  { %14769 = vlog2.f32 %v10871_v60  ;;  %v10875_v55 = vadd.f32 1.0, %v10874_v35  ;;  %vm10878_vm9 = vcmp.lt.f32.partialorder %v10877_v39, 0.0004427343  ;;  %v9458_v35 = vadd.f32 %v14844_v23, %v17853_v44 }
0x3982   :  { %v10885_v62 = vmul.f32 %v14760_v13, %v10884_v30  ;;  %v10565_v45 = vadd.f32 %v14844_v23, %v18162_v63  ;;  %v10954_v44 = vmul.f32 0.1, %v18115_v38  ;;  %v10955_v63 = vmul.f32 0.1, %v18123_v36 }
0x3983   :  { %v10876_v15 = vmul.f32 %v14762_v40, %v10875_v55  ;;  %14771 = vrcp.f32 %v17816_v3  ;;  %v11068_v55 = vld [vmem:[%s18655_s21 + $0x8] sm:$0xff] }
0x3984   :  { %14773 = vrcp.f32 %v17818_v6  ;;  %v11072_v3 = vld [vmem:[%s18655_s21 + $0x28] sm:$0xff]  ;;  %v11100_v39 = vsub.f32 %v11036_v51, %v11068_v55 }
0x3986   :  { %v14764_v61 = vpop.eup %14763 }
0x3987   :  { %v14766_v49 = vpop.eup %14765  ;;  %v10864_v4 = vmul.f32 0.6931472, %v14764_v61  ;;  %v10580_v61 = vadd.f32 %v14844_v23, %v18164_v43  ;;  %v8664_v43 = vpop.permute.xlu1 %8663 }
0x3988   :  { %v10855_v27 = vmul.f32 0.6931472, %v14766_v49 }
0x3989   :  { %v10870_v22 = vsel %vm10869_vm5, %v10867_v52, %v10864_v4 }
0x398a   :  { %v14768_v56 = vpop.eup %14767  ;;  %v10890_v10 = vadd.f32 %v10870_v22, %v10826_v8  ;;  %v10861_v34 = vsel %vm10860_vm6, %v10858_v37, %v10855_v27  ;;  %v10575_v8 = vadd.f32 %v14844_v23, %v18166_v26  ;;  %v8662_v26 = vpop.permute.xlu0 %8661 }
0x398b   :  { %v14770_v7 = vpop.eup %14769  ;;  %v10889_v25 = vadd.f32 %v10861_v34, %v10825_v50  ;;  %v10882_v24 = vmul.f32 0.6931472, %v14768_v56  ;;  %v18278_v49 = vpop.permute.xlu1 %8667  ;;  %v11040_v50 = vld [vmem:[%s18723_s3 + $0x28] sm:$0xff]  ;;  %v11035_v56 = vld [vmem:[%s18723_s3] sm:$0xff] }
0x398c   :  { %v10873_v28 = vmul.f32 0.6931472, %v14770_v7  ;;  %v18232_v12 = vsel %vm10830_vm4, %v18203_v47, %v10890_v10  ;;  %v11104_v10 = vsub.f32 %v11040_v50, %v11072_v3  ;;  %v11039_v34 = vld [vmem:[%s18723_s3 + $0x20] sm:$0xff]  ;;  %v11080_v50 = vld [vmem:[%s18655_s21 + $0x68] sm:$0xff] }
0x398d   :  { %v10888_v42 = vsel %vm10887_vm3, %v10885_v62, %v10882_v24  ;;  %v10898_v18 = vmax.f32 %v18232_v12, 1e-07  ;;  %v18236_v60 = vsel %vm10829_vm8, %v18206_v32, %v10889_v25  ;;  %v11071_v7 = vld [vmem:[%s18655_s21 + $0x20] sm:$0xff]  ;;  %v11132_v62 = vmul.f32 100.0, %v11100_v39 }
0x398e   :  { %v10892_v33 = vadd.f32 %v10888_v42, %v10828_v0  ;;  %v10879_v13 = vsel %vm10878_vm9, %v10876_v15, %v10873_v28  ;;  %v10897_v11 = vmax.f32 %v18236_v60, 1e-07  ;;  %v18280_v4 = vpop.permute.xlu0 %8665  ;;  %v11067_v0 = vld [vmem:[%s18655_s21] sm:$0xff]  ;;  %v11103_v28 = vsub.f32 %v11039_v34, %v11071_v7  ;;  %v18828_v15 = vld [vmem:[#allocation46_spill] sm:$0xff] }
0x398f   :  { %v10891_v40 = vadd.f32 %v10879_v13, %v10827_v16  ;;  %10927 = vrot.lane.b32.xlu1 %v10898_v18, %s14848_s2  ;;  %v9786_v52 = vpop.permute.xlu1 %9785  ;;  %v11099_v16 = vsub.f32 %v11035_v56, %v11067_v0  ;;  %v8674_v42 = vsub.f32 %v18828_v15, %v8664_v43  ;;  %v11136_v18 = vmul.f32 100.0, %v11104_v10  ;;  %v18829_v13 = vld [vmem:[#allocation47_spill] sm:$0xff]  ;;  %v11075_v43 = vld [vmem:[%s18655_s21 + $0x40] sm:$0xff] }
0x3990   :  { %10925 = vrot.lane.b32.xlu0 %v10897_v11, %s14848_s2  ;;  %v18246_v47 = vsel %vm10832_vm10, %v18211_v48, %v10892_v33  ;;  %v9453_v48 = vadd.f32 %v14844_v23, %v17856_v19  ;;  %v10953_v19 = vmul.f32 0.1, %v18117_v59  ;;  %v14772_v33 = vpop.eup %14771  ;;  %v8673_v11 = vsub.f32 %v18829_v13, %v8662_v26  ;;  %v18359_v15 = vld [vmem:[%s18655_s21 + $0x60] sm:$0xff] }
0x3991   :  { %v10900_v32 = vmax.f32 %v18246_v47, 1e-07  ;;  %v18250_v46 = vsel %vm10831_vm0, %v18216_v20, %v10891_v40  ;;  %v10570_v20 = vadd.f32 %v14844_v23, %v18160_v58  ;;  %v10956_v58 = vmul.f32 0.1, %v18121_v5  ;;  %v11076_v23 = vld [vmem:[%s18655_s21 + $0x48] sm:$0xff] }
0x3992   :  { %v10899_v53 = vmax.f32 %v18250_v46, 1e-07  ;;  %v18282_v30 = vpop.permute.xlu0 %9783 }
0x3993   :  { %10931 = vrot.lane.b32.xlu1 %v10900_v32, %s14848_s2  ;;  %v9806_v27 = vpop.permute.xlu1 %9805  ;;  %v14774_v32 = vpop.eup %14773  ;;  %v9795_v51 = vsub.f32 %v17633_v9, %v18282_v30 }
0x3994   :  { %10929 = vrot.lane.b32.xlu0 %v10899_v53, %s14848_s2  ;;  %14775 = vrcp.f32 %v9806_v27  ;;  %v8694_v26 = vmul.f32 %v14774_v32, %v8673_v11  ;;  %v18831_v27 = vld [vmem:[#allocation49_spill] sm:$0xff] }
0x3996   :  { %v9804_v37 = vpop.permute.xlu0 %9803 }
0x3997   :  { %9789 = vrot.lane.b32.xlu1 %v9458_v35, %s14848_s2  ;;  %v9810_v22 = vpop.permute.xlu1 %9809  ;;  %14777 = vrcp.f32 %v9804_v37  ;;  %v11164_v35 = vmul.f32 %v11132_v62, %v11132_v62  ;;  %v8675_v37 = vsub.f32 %v18831_v27, %v18280_v4 }
0x3998   :  { %9787 = vrot.lane.b32.xlu0 %v9453_v48, %s14848_s2  ;;  %14779 = vrcp.f32 %v17820_v57  ;;  %v11131_v48 = vmul.f32 100.0, %v11099_v16 }
0x3999   :  { %14781 = vrcp.f32 %v17822_v14  ;;  %v11044_v14 = vld [vmem:[%s18723_s3 + $0x48] sm:$0xff]  ;;  %v18344_v34 = vsel %vm89_vm1, %v11164_v35, 0.0 }
0x399a   :  { %v9808_v6 = vpop.permute.xlu0 %9807  ;;  %14783 = vrcp.f32 %v9810_v22  ;;  %v11048_v22 = vld [vmem:[%s18723_s3 + $0x68] sm:$0xff]  ;;  %v11108_v3 = vsub.f32 %v11044_v14, %v11076_v23  ;;  %v18341_v39 = vmul.f32 %v11131_v48, %v11131_v48 }
0x399b   :  { %10907 = vrot.lane.b32.xlu1 %v10570_v20, %s14848_s2  ;;  %14785 = vrcp.f32 %v9808_v6  ;;  %v11135_v20 = vmul.f32 100.0, %v11103_v28  ;;  %v11112_v16 = vsub.f32 %v11048_v22, %v11080_v50 }
0x399c   :  { %10905 = vrot.lane.b32.xlu0 %v10565_v45, %s14848_s2 }
0x399d   :  { %v18346_v0 = vmul.f32 %v11135_v20, %v11135_v20 }
0x399e   :  { %v14776_v53 = vpop.eup %14775 }
0x399f   :  { %10911 = vrot.lane.b32.xlu1 %v10580_v61, %s14848_s2  ;;  %v8696_v61 = vmul.f32 %v14772_v33, %v8674_v42 }
0x39a0   :  { %10909 = vrot.lane.b32.xlu0 %v10575_v8, %s14848_s2  ;;  %v18830_v8 = vld [vmem:[#allocation48_spill] sm:$0xff] }
0x39a1   :  { %v14778_v45 = vpop.eup %14777 }
0x39a2   :  { %v14780_v4 = vpop.eup %14779  ;;  %v9816_v9 = vmul.f32 %v14778_v45, %v9795_v51 }
0x39a3   :  { %10963 = vrot.lane.b32.xlu1 %v10954_v44, %s14847_s4  ;;  %v8676_v44 = vsub.f32 %v18830_v8, %v18278_v49  ;;  %v14782_v56 = vpop.eup %14781  ;;  %v18832_v8 = vld [vmem:[#allocation32_spill] sm:$0xff] }
0x39a4   :  { %10961 = vrot.lane.b32.xlu0 %v10953_v19, %s14847_s4  ;;  %v9796_v19 = vsub.f32 %v17631_v31, %v9786_v52  ;;  %v14784_v7 = vpop.eup %14783 }
0x39a5   :  { %v8700_v10 = vmul.f32 %v14780_v4, %v8676_v44  ;;  %v14786_v42 = vpop.eup %14785  ;;  %v11691_v4 = vld [vmem:[%s18667_s1 + $0xc8] sm:$0xff] }
0x39a6   :  { %v9818_v55 = vmul.f32 %v14776_v53, %v9796_v19  ;;  %v9823_v53 = vmul.f32 %v9816_v9, %v9816_v9 }
0x39a7   :  { %10967 = vrot.lane.b32.xlu1 %v10956_v58, %s14847_s4  ;;  %v11168_v58 = vmul.f32 %v11136_v18, %v11136_v18  ;;  %v8704_v20 = vmul.f32 %v8700_v10, %v8700_v10 }
0x39a8   :  { %10965 = vrot.lane.b32.xlu0 %v10955_v63, %s14847_s4  ;;  %v11043_v63 = vld [vmem:[%s18723_s3 + $0x40] sm:$0xff]  ;;  %v9824_v33 = vmul.f32 %v9818_v55, %v9818_v55 }
0x39a9   :  { %v11107_v30 = vsub.f32 %v11043_v63, %v11075_v43  ;;  %v18349_v28 = vsel %vm89_vm1, %v11168_v58, 0.0  ;;  %v11052_v63 = vld [vmem:[%s18723_s3 + $0x88] sm:$0xff]  ;;  %v11144_v43 = vmul.f32 100.0, %v11112_v16 }
0x39ab   :  { %v18363_v23 = vmul.f32 100.0, %v11107_v30 }
0x3a01   :  { %v10928_v25 = vpop.permute.xlu1 %10927 }
0x3a02   :  { %v10926_v24 = vpop.permute.xlu0 %10925  ;;  %14787 = vrcp.f32 %v10928_v25  ;;  %v8701_v25 = vmul.f32 %v8694_v26, %v8694_v26 }
0x3a03   :  { %14789 = vrcp.f32 %v10926_v24  ;;  %v8698_v24 = vmul.f32 %v14782_v56, %v8675_v37 }
0x3a04   :  { %v8705_v44 = vadd.f32 %v8701_v25, %v18832_v8 }
0x3a05   :  { %v10932_v40 = vpop.permute.xlu1 %10931 }
0x3a06   :  { %v10930_v57 = vpop.permute.xlu0 %10929  ;;  %14791 = vrcp.f32 %v10932_v40  ;;  %v11140_v40 = vmul.f32 100.0, %v11108_v3  ;;  %v9827_v22 = vadd.f32 %v9823_v53, %v8705_v44  ;;  %v11060_v53 = vld [vmem:[%s18723_s3 + $0xc8] sm:$0xff]  ;;  %v11692_v44 = vld [vmem:[%s18667_s1 + $0xd0] sm:$0xff] }
0x3a07   :  { %14793 = vrcp.f32 %v10930_v57 }
0x3a09   :  { %v9790_v49 = vpop.permute.xlu1 %9789 }
0x3a0a   :  { %v9798_v31 = vsub.f32 %v17639_v17, %v9790_v49  ;;  %v9788_v52 = vpop.permute.xlu0 %9787  ;;  %v8702_v17 = vmul.f32 %v8696_v61, %v8696_v61  ;;  %v11056_v49 = vld [vmem:[%s18723_s3 + $0xa8] sm:$0xff] }
0x3a0b   :  { %v9797_v6 = vsub.f32 %v17642_v2, %v9788_v52  ;;  %v18354_v2 = vld [vmem:[%s18723_s3 + $0x60] sm:$0xff] }
0x3a0c   :  { %v9822_v18 = vmul.f32 %v14784_v7, %v9798_v31  ;;  %v14788_v32 = vpop.eup %14787  ;;  %v8706_v48 = vadd.f32 %v8702_v17, %v17842_v1  ;;  %v11111_v61 = vsub.f32 %v18354_v2, %v18359_v15  ;;  %v11088_v31 = vld [vmem:[%s18655_s21 + $0xa8] sm:$0xff]  ;;  %v11690_v17 = vld [vmem:[%s18667_s1 + $0xc0] sm:$0xff]  ;;  %v18834_v7 = vld [vmem:[#allocation42_spill] sm:$0xff]  ;;  %v11171_v2 = vmul.f32 %v18363_v23, %v18363_v23 }
0x3a0d   :  { %v10908_v62 = vpop.permute.xlu1 %10907  ;;  %v9820_v57 = vmul.f32 %v14786_v42, %v9797_v6  ;;  %v14790_v35 = vpop.eup %14789  ;;  %v18833_v6 = vld [vmem:[#allocation33_spill] sm:$0xff]  ;;  %v11051_v42 = vld [vmem:[%s18723_s3 + $0x80] sm:$0xff] }
0x3a0e   :  { %v10918_v13 = vsub.f32 %v18115_v38, %v10908_v62  ;;  %v10906_v11 = vpop.permute.xlu0 %10905  ;;  %v8703_v38 = vmul.f32 %v8698_v24, %v8698_v24  ;;  %v9826_v1 = vmul.f32 %v9822_v18, %v9822_v18  ;;  %v9828_v26 = vadd.f32 %v9824_v33, %v8706_v48  ;;  %v11083_v18 = vld [vmem:[%s18655_s21 + $0x80] sm:$0xff]  ;;  %v11064_v23 = vld [vmem:[%s18723_s3 + $0xe8] sm:$0xff] }
0x3a0f   :  { %v10917_v14 = vsub.f32 %v18117_v59, %v10906_v11  ;;  %v11084_v59 = vld [vmem:[%s18655_s21 + $0x88] sm:$0xff]  ;;  %v9825_v55 = vmul.f32 %v9820_v57, %v9820_v57  ;;  %v8708_v9 = vadd.f32 %v8704_v20, %v18833_v6  ;;  %v10983_v11 = vmul.f32 %v11691_v4, %v18232_v12 }
0x3a10   :  { %v10940_v45 = vmul.f32 %v14788_v32, %v10918_v13  ;;  %v14792_v52 = vpop.eup %14791  ;;  %v11116_v10 = vsub.f32 %v11052_v63, %v11084_v59  ;;  %v8707_v25 = vadd.f32 %v8703_v38, %v18834_v7  ;;  %v10982_v20 = vmul.f32 %v11690_v17, %v18236_v60 }
0x3a11   :  { %v10938_v19 = vmul.f32 %v14790_v35, %v10917_v14  ;;  %v10912_v58 = vpop.permute.xlu1 %10911  ;;  %v9830_v33 = vadd.f32 %v9826_v1, %v8708_v9  ;;  %v11092_v14 = vld [vmem:[%s18655_s21 + $0xc8] sm:$0xff]  ;;  %v11172_v38 = vmul.f32 %v11140_v40, %v11140_v40  ;;  %v11115_v60 = vsub.f32 %v11051_v42, %v11083_v18 }
0x3a12   :  { %v10946_v27 = vmul.f32 %v10940_v45, %v10940_v45  ;;  %v10920_v37 = vsub.f32 %v18121_v5, %v10912_v58  ;;  %v10910_v51 = vpop.permute.xlu0 %10909  ;;  %v14794_v5 = vpop.eup %14793  ;;  %v9829_v35 = vadd.f32 %v9825_v55, %v8707_v25  ;;  %v11124_v1 = vsub.f32 %v11060_v53, %v11092_v14 }
0x3a13   :  { %v10945_v50 = vmul.f32 %v10938_v19, %v10938_v19  ;;  %v10919_v3 = vsub.f32 %v18123_v36, %v10910_v51  ;;  %v11120_v36 = vsub.f32 %v11056_v49, %v11088_v31  ;;  %v11055_v19 = vld [vmem:[%s18723_s3 + $0xa0] sm:$0xff]  ;;  %v11176_v51 = vmul.f32 %v11144_v43, %v11144_v43 }
0x3a14   :  { %v10950_v30 = vadd.f32 %v10946_v27, %v9828_v26  ;;  %v10944_v56 = vmul.f32 %v14792_v52, %v10920_v37  ;;  %v11148_v26 = vmul.f32 100.0, %v11116_v10  ;;  %v11059_v49 = vld [vmem:[%s18723_s3 + $0xc0] sm:$0xff]  ;;  %v11143_v52 = vmul.f32 100.0, %v11111_v61 }
0x3a15   :  { %v10949_v24 = vadd.f32 %v10945_v50, %v9827_v22  ;;  %v10942_v62 = vmul.f32 %v14794_v5, %v10919_v3  ;;  %v10964_v16 = vpop.permute.xlu1 %10963  ;;  %v11091_v31 = vld [vmem:[%s18655_s21 + $0xc0] sm:$0xff]  ;;  %v11152_v43 = vmul.f32 100.0, %v11120_v36  ;;  %v11213_v50 = vsel %vm89_vm1, %v11172_v38, 0.0 }
0x3a16   :  { %v10948_v13 = vmul.f32 %v10944_v56, %v10944_v56  ;;  %v10974_v32 = vadd.f32 %v10964_v16, %v17952_v29  ;;  %11001 = vrot.lane.b32.xlu1 %v10950_v30, %s14847_s4  ;;  %v10962_v57 = vpop.permute.xlu0 %10961  ;;  %v11693_v29 = vld [vmem:[%s18667_s1 + $0xd8] sm:$0xff]  ;;  %v11147_v3 = vmul.f32 100.0, %v11115_v60  ;;  %v11156_v61 = vmul.f32 100.0, %v11124_v1 }
0x3a17   :  { %v10947_v48 = vmul.f32 %v10942_v62, %v10942_v62  ;;  %v10973_v45 = vadd.f32 %v10962_v57, %v17961_v41  ;;  %10999 = vrot.lane.b32.xlu0 %v10949_v24, %s14847_s4  ;;  %v11087_v41 = vld [vmem:[%s18655_s21 + $0xa0] sm:$0xff]  ;;  %v10985_v40 = vmul.f32 %v11693_v29, %v18246_v47  ;;  %v11180_v4 = vmul.f32 %v11148_v26, %v11148_v26 }
0x3a18   :  { %v10952_v12 = vadd.f32 %v10948_v13, %v9830_v33  ;;  %v10987_v8 = vadd.f32 %v10983_v11, %v10974_v32  ;;  %v11119_v55 = vsub.f32 %v11055_v19, %v11087_v41  ;;  %v11123_v5 = vsub.f32 %v11059_v49, %v11091_v31 }
0x3a19   :  { %v10951_v58 = vadd.f32 %v10947_v48, %v9829_v35  ;;  %v10986_v63 = vadd.f32 %v10982_v20, %v10973_v45  ;;  %v10968_v59 = vpop.permute.xlu1 %10967  ;;  %v11196_v6 = vsel %vm89_vm1, %v18346_v0, 0.0  ;;  %v11184_v9 = vmul.f32 %v11152_v43, %v11152_v43 }
0x3a1a   :  { %11695 = vst.msk [vmem:[%s18655_s21 + $0xe8] sm:$0xff] %vm89_vm1, %v10987_v8  ;;  %v10976_v27 = vadd.f32 %v10968_v59, %v17984_v54  ;;  %11005 = vrot.lane.b32.xlu1 %v10952_v12, %s14847_s4  ;;  %v10966_v37 = vpop.permute.xlu0 %10965  ;;  %v10984_v54 = vmul.f32 %v11692_v44, %v18250_v46  ;;  %v11195_v46 = vsel %vm89_vm1, %v18341_v39, 0.0  ;;  %v11215_v30 = vsel %vm89_vm1, %v11176_v51, 0.0  ;;  %v11063_v39 = vld [vmem:[%s18723_s3 + $0xe0] sm:$0xff] }
0x3a1b   :  { %11694 = vst.msk [vmem:[%s18655_s21 + $0xe0] sm:$0xff] %vm89_vm1, %v10986_v63  ;;  %v10975_v47 = vadd.f32 %v10966_v37, %v17987_v21  ;;  %11003 = vrot.lane.b32.xlu0 %v10951_v58, %s14847_s4  ;;  %v11212_v21 = vadd.f32 %v18349_v28, %v18344_v34  ;;  %v11151_v56 = vmul.f32 100.0, %v11119_v55  ;;  %v11175_v34 = vmul.f32 %v11143_v52, %v11143_v52  ;;  %v11037_v55 = vld [vmem:[%s18723_s3 + $0x10] sm:$0xff] }
0x3a1c   :  { %v10989_v22 = vadd.f32 %v10985_v40, %v10976_v27  ;;  %v11198_v0 = vsel %vm89_vm1, %v11171_v2, 0.0  ;;  %v11188_v10 = vmul.f32 %v11156_v61, %v11156_v61  ;;  %v11217_v7 = vsel %vm89_vm1, %v11180_v4, 0.0  ;;  %v11045_v2 = vld [vmem:[%s18723_s3 + $0x50] sm:$0xff] }
0x3a1d   :  { %v10988_v15 = vadd.f32 %v10984_v54, %v10975_v47  ;;  %v11214_v28 = vadd.f32 %v11213_v50, %v11212_v21  ;;  %v11155_v25 = vmul.f32 100.0, %v11123_v5  ;;  %v11179_v24 = vmul.f32 %v11147_v3, %v11147_v3  ;;  %v11041_v50 = vld [vmem:[%s18723_s3 + $0x30] sm:$0xff] }
0x3a1e   :  { %11697 = vst.msk [vmem:[%s18655_s21 + $0xf8] sm:$0xff] %vm89_vm1, %v10989_v22  ;;  %v11197_v42 = vadd.f32 %v11196_v6, %v11195_v46  ;;  %v11219_v18 = vsel %vm89_vm1, %v11184_v9, 0.0  ;;  %v11183_v13 = vmul.f32 %v11151_v56, %v11151_v56  ;;  %v11200_v11 = vsel %vm89_vm1, %v11175_v34, 0.0  ;;  %v11069_v22 = vld [vmem:[%s18655_s21 + $0x10] sm:$0xff] }
0x3a1f   :  { %11696 = vst.msk [vmem:[%s18655_s21 + $0xf0] sm:$0xff] %vm89_vm1, %v10988_v15  ;;  %v11216_v16 = vadd.f32 %v11215_v30, %v11214_v28  ;;  %v11221_v14 = vsel %vm89_vm1, %v11188_v10, 0.0  ;;  %v11187_v48 = vmul.f32 %v11155_v25, %v11155_v25  ;;  %v11202_v20 = vsel %vm89_vm1, %v11179_v24, 0.0  ;;  %v11073_v3 = vld [vmem:[%s18655_s21 + $0x30] sm:$0xff]  ;;  %v11038_v30 = vld [vmem:[%s18723_s3 + $0x18] sm:$0xff] }
0x3a20   :  { %v11199_v53 = vadd.f32 %v11198_v0, %v11197_v42  ;;  %v11204_v44 = vsel %vm89_vm1, %v11183_v13, 0.0  ;;  %v11032_v59 = vlaneseq  ;;  %v11077_v15 = vld [vmem:[%s18655_s21 + $0x50] sm:$0xff]  ;;  %v11101_v61 = vsub.f32 %v11037_v55, %v11069_v22  ;;  %v11042_v28 = vld [vmem:[%s18723_s3 + $0x38] sm:$0xff] }
0x3a21   :  { %v11096_v17 = vld [vmem:[%s18655_s21 + $0xe8] sm:$0xff]  ;;  %v11218_v57 = vadd.f32 %v11217_v7, %v11216_v16  ;;  %v11206_v60 = vsel %vm89_vm1, %v11187_v48, 0.0  ;;  %v11105_v4 = vsub.f32 %v11041_v50, %v11073_v3  ;;  %v11049_v5 = vld [vmem:[%s18723_s3 + $0x70] sm:$0xff]  ;;  %v11109_v46 = vsub.f32 %v11045_v2, %v11077_v15  ;;  %v11074_v0 = vld [vmem:[%s18655_s21 + $0x38] sm:$0xff] }
0x3a22   :  { %v11128_v62 = vsub.f32 %v11064_v23, %v11096_v17  ;;  %v11095_v36 = vld [vmem:[%s18655_s21 + $0xe0] sm:$0xff]  ;;  %v11201_v12 = vadd.f32 %v11200_v11, %v11199_v53  ;;  %v18484_v37 = vand.u32 127, %v11032_v59  ;;  %v11081_v21 = vld [vmem:[%s18655_s21 + $0x70] sm:$0xff]  ;;  %v11133_v9 = vmul.f32 100.0, %v11101_v61  ;;  %v11046_v11 = vld [vmem:[%s18723_s3 + $0x58] sm:$0xff] }
0x3a23   :  { %v11127_v33 = vsub.f32 %v11063_v39, %v11095_v36  ;;  %v11220_v29 = vadd.f32 %v11219_v18, %v11218_v57  ;;  %v11053_v6 = vld [vmem:[%s18723_s3 + $0x90] sm:$0xff]  ;;  %v11113_v56 = vsub.f32 %v11049_v5, %v11081_v21  ;;  %v11137_v34 = vmul.f32 100.0, %v11105_v4  ;;  %v11070_v39 = vld [vmem:[%s18655_s21 + $0x18] sm:$0xff] }
0x3a24   :  { %v11160_v32 = vmul.f32 100.0, %v11128_v62  ;;  %v11203_v41 = vadd.f32 %v11202_v20, %v11201_v12  ;;  %vm11034_vm2 = vcmp.ge.s32.totalorder %v18484_v37, 1  ;;  %v11085_v23 = vld [vmem:[%s18655_s21 + $0x90] sm:$0xff]  ;;  %v11141_v25 = vmul.f32 100.0, %v11109_v46  ;;  %v11050_v20 = vld [vmem:[%s18723_s3 + $0x78] sm:$0xff] }
0x3a25   :  { %v11159_v35 = vmul.f32 100.0, %v11127_v33  ;;  %v11222_v38 = vadd.f32 %v11221_v14, %v11220_v29  ;;  %v11057_v17 = vld [vmem:[%s18723_s3 + $0xb0] sm:$0xff]  ;;  %v11117_v7 = vsub.f32 %v11053_v6, %v11085_v23  ;;  %v11165_v16 = vmul.f32 %v11133_v9, %v11133_v9  ;;  %v11062_v22 = vld [vmem:[%s18723_s3 + $0xd8] sm:$0xff] }
0x3a26   :  { %v11192_v45 = vmul.f32 %v11160_v32, %v11160_v32  ;;  %v11205_v63 = vadd.f32 %v11204_v44, %v11203_v41  ;;  %v11089_v10 = vld [vmem:[%s18655_s21 + $0xb0] sm:$0xff]  ;;  %v11102_v36 = vsub.f32 %v11038_v30, %v11070_v39  ;;  %v11106_v42 = vsub.f32 %v11042_v28, %v11074_v0  ;;  %v11078_v32 = vld [vmem:[%s18655_s21 + $0x58] sm:$0xff] }
0x3a27   :  { %v11191_v8 = vmul.f32 %v11159_v35, %v11159_v35  ;;  %v11061_v24 = vld [vmem:[%s18723_s3 + $0xd0] sm:$0xff]  ;;  %v11121_v18 = vsub.f32 %v11057_v17, %v11089_v10  ;;  %v11145_v33 = vmul.f32 100.0, %v11113_v56  ;;  %v11169_v13 = vmul.f32 %v11137_v34, %v11137_v34  ;;  %v11094_v50 = vld [vmem:[%s18655_s21 + $0xd8] sm:$0xff] }
0x3a28   :  { %v11223_v19 = vsel %vm89_vm1, %v11192_v45, 0.0  ;;  %v11207_v26 = vadd.f32 %v11206_v60, %v11205_v63  ;;  %v11093_v62 = vld [vmem:[%s18655_s21 + $0xd0] sm:$0xff]  ;;  %v11149_v35 = vmul.f32 100.0, %v11117_v7  ;;  %v11173_v48 = vmul.f32 %v11141_v25, %v11141_v25  ;;  %v11082_v45 = vld [vmem:[%s18655_s21 + $0x78] sm:$0xff] }
0x3a29   :  { %v11224_v58 = vadd.f32 %v11223_v19, %v11222_v38  ;;  %v11208_v1 = vsel %vm89_vm1, %v11191_v8, 0.0  ;;  %v11065_v57 = vld [vmem:[%s18723_s3 + $0xf0] sm:$0xff]  ;;  %v11125_v14 = vsub.f32 %v11061_v24, %v11093_v62  ;;  %v11225_v29 = vsel %vm89_vm1, %v11165_v16, 0.0  ;;  %v11086_v63 = vld [vmem:[%s18655_s21 + $0x98] sm:$0xff] }
0x3a2a   :  { %v11209_v27 = vadd.f32 %v11208_v1, %v11207_v26  ;;  %v11097_v53 = vld [vmem:[%s18655_s21 + $0xf0] sm:$0xff]  ;;  %v11110_v12 = vsub.f32 %v11046_v11, %v11078_v32  ;;  %v11134_v8 = vmul.f32 100.0, %v11102_v36  ;;  %v11138_v44 = vmul.f32 100.0, %v11106_v42  ;;  %v11066_v21 = vld [vmem:[%s18723_s3 + $0xf8] sm:$0xff] }
0x3a2b   :  { %v11256_v40 = vmul.f32 -0.5, %v11224_v58  ;;  %v11129_v38 = vsub.f32 %v11065_v57, %v11097_v53  ;;  %v11153_v19 = vmul.f32 100.0, %v11121_v18  ;;  %v11177_v41 = vmul.f32 %v11145_v33, %v11145_v33  ;;  %v11054_v58 = vld [vmem:[%s18723_s3 + $0x98] sm:$0xff] }
0x3a2c   :  { %v11255_v49 = vmul.f32 -0.5, %v11209_v27  ;;  %v11226_v60 = vsel %vm89_vm1, %v11169_v13, 0.0  ;;  %v11114_v59 = vsub.f32 %v11050_v20, %v11082_v45  ;;  %v11157_v1 = vmul.f32 100.0, %v11125_v14  ;;  %v11058_v27 = vld [vmem:[%s18723_s3 + $0xb8] sm:$0xff] }
0x3a2d   :  { %v11260_v51 = vadd.f32 29.489853, %v11256_v40  ;;  %v11181_v26 = vmul.f32 %v11149_v35, %v11149_v35  ;;  %v11228_v40 = vsel %vm89_vm1, %v11173_v48, 0.0  ;;  %v11230_v55 = vsel %vm89_vm1, %v11177_v41, 0.0  ;;  %v11098_v46 = vld [vmem:[%s18655_s21 + $0xf8] sm:$0xff] }
0x3a2e   :  { %v11259_v52 = vadd.f32 29.489853, %v11255_v49  ;;  %v11227_v49 = vadd.f32 %v11226_v60, %v11225_v29  ;;  %v11170_v3 = vmul.f32 %v11138_v44, %v11138_v44  ;;  %v11146_v61 = vmul.f32 100.0, %v11114_v59 }
0x3a2f   :  { %v11264_v31 = vsel %vm11034_vm2, %v11260_v51, 0.0  ;;  %v11090_v51 = vld [vmem:[%s18655_s21 + $0xb8] sm:$0xff]  ;;  %v11189_v4 = vmul.f32 %v11157_v1, %v11157_v1  ;;  %v11232_v5 = vsel %vm89_vm1, %v11181_v26, 0.0  ;;  %v11126_v23 = vsub.f32 %v11062_v22, %v11094_v50 }
0x3a30   :  { %v11270_v54 = vsel %vm89_vm1, %v11264_v31, 0.0  ;;  %v11263_v47 = vsel %vm11034_vm2, %v11259_v52, 0.0  ;;  %v11118_v31 = vsub.f32 %v11054_v58, %v11086_v63  ;;  %v11142_v52 = vmul.f32 100.0, %v11110_v12 }
0x3a31   :  { %v11267_v43 = vsel %vm89_vm1, %v11263_v47, 0.0  ;;  %v11161_v47 = vmul.f32 100.0, %v11129_v38  ;;  %v11229_v2 = vadd.f32 %v11228_v40, %v11227_v49  ;;  %v11122_v15 = vsub.f32 %v11058_v27, %v11090_v51 }
0x3a32   :  { %v11150_v9 = vmul.f32 100.0, %v11118_v31  ;;  %v11174_v30 = vmul.f32 %v11142_v52, %v11142_v52  ;;  %v11241_v39 = vsel %vm89_vm1, %v11170_v3, 0.0  ;;  %v11130_v17 = vsub.f32 %v11066_v21, %v11098_v46 }
0x3a33   :  { %v11231_v6 = vadd.f32 %v11230_v55, %v11229_v2  ;;  %v11193_v56 = vmul.f32 %v11161_v47, %v11161_v47  ;;  %v11154_v10 = vmul.f32 100.0, %v11122_v15  ;;  %v11178_v7 = vmul.f32 %v11146_v61, %v11146_v61 }
0x3a34   :  { %v11236_v25 = vsel %vm89_vm1, %v11189_v4, 0.0  ;;  %v11158_v62 = vmul.f32 100.0, %v11126_v23  ;;  %v11182_v16 = vmul.f32 %v11150_v9, %v11150_v9  ;;  %v11243_v36 = vsel %vm89_vm1, %v11174_v30, 0.0 }
0x3a35   :  { %v11233_v0 = vadd.f32 %v11232_v5, %v11231_v6  ;;  %v11238_v42 = vsel %vm89_vm1, %v11193_v56, 0.0  ;;  %v11162_v13 = vmul.f32 100.0, %v11130_v17  ;;  %v11186_v11 = vmul.f32 %v11154_v10, %v11154_v10 }
0x3a36   :  { %v11245_v32 = vsel %vm89_vm1, %v11178_v7, 0.0  ;;  %v11190_v14 = vmul.f32 %v11158_v62, %v11158_v62  ;;  %v11247_v35 = vsel %vm89_vm1, %v11182_v16, 0.0 }
0x3a37   :  { %v11194_v20 = vmul.f32 %v11162_v13, %v11162_v13  ;;  %v11249_v45 = vsel %vm89_vm1, %v11186_v11, 0.0 }
0x3a39   :  { %v11253_v38 = vsel %vm89_vm1, %v11194_v20, 0.0 }
0x3a3a   :  { %11271 = vadd.xlane.f32.xlu0 %v11270_v54  ;;  %v11166_v54 = vmul.f32 %v11134_v8, %v11134_v8  ;;  %v11251_v8 = vsel %vm89_vm1, %v11190_v14, 0.0 }
0x3a3c   :  { %v11240_v28 = vsel %vm89_vm1, %v11166_v54, 0.0 }
0x3a3d   :  { %v11242_v18 = vadd.f32 %v11241_v39, %v11240_v28 }
0x3a3e   :  { %11268 = vadd.xlane.f32.xlu1 %v11267_v43  ;;  %v11185_v43 = vmul.f32 %v11153_v19, %v11153_v19 }
0x3a3f   :  { %v11244_v57 = vadd.f32 %v11243_v36, %v11242_v18 }
0x3a40   :  { %v11234_v34 = vsel %vm89_vm1, %v11185_v43, 0.0 }
0x3a41   :  { %v11235_v24 = vadd.f32 %v11234_v34, %v11233_v0  ;;  %v11246_v48 = vadd.f32 %v11245_v32, %v11244_v57 }
0x3a43   :  { %v11237_v33 = vadd.f32 %v11236_v25, %v11235_v24  ;;  %v11248_v29 = vadd.f32 %v11247_v35, %v11246_v48 }
0x3a45   :  { %v11239_v53 = vadd.f32 %v11238_v42, %v11237_v33  ;;  %v11250_v44 = vadd.f32 %v11249_v45, %v11248_v29 }
0x3a47   :  { %v11257_v12 = vmul.f32 -0.5, %v11239_v53  ;;  %v11252_v19 = vadd.f32 %v11251_v8, %v11250_v44 }
0x3a49   :  { %v11261_v41 = vadd.f32 29.489853, %v11257_v12  ;;  %v11254_v60 = vadd.f32 %v11253_v38, %v11252_v19 }
0x3a4b   :  { %v11265_v26 = vsel %vm11034_vm2, %v11261_v41, 0.0  ;;  %v11258_v40 = vmul.f32 -0.5, %v11254_v60 }
0x3a4c   :  { %v11273_v49 = vsel %vm89_vm1, %v11265_v26, 0.0 }
0x3a4d   :  { %v11262_v52 = vadd.f32 29.489853, %v11258_v40 }
0x3a4f   :  { %v11266_v47 = vsel %vm11034_vm2, %v11262_v52, 0.0 }
0x3a50   :  { %v11276_v43 = vsel %vm89_vm1, %v11266_v47, 0.0 }
0x3a88   :  { %v11002_v58 = vpop.permute.xlu1 %11001 }
0x3a89   :  { %v11014_v63 = vsel %vm89_vm1, %v11002_v58, 0.0  ;;  %v11000_v59 = vpop.permute.xlu0 %10999 }
0x3a8a   :  { %v11011_v1 = vsel %vm89_vm1, %v11000_v59, 0.0  ;;  %11015 = vadd.xlane.f32.xlu1 %v11014_v63 }
0x3a8b   :  { %11012 = vadd.xlane.f32.xlu0 %v11011_v1 }
0x3a8c   :  { %v11006_v27 = vpop.permute.xlu1 %11005 }
0x3a8d   :  { %v11020_v51 = vsel %vm89_vm1, %v11006_v27, 0.0  ;;  %v11004_v31 = vpop.permute.xlu0 %11003 }
0x3a8e   :  { %11274 = vadd.xlane.f32.xlu1 %v11273_v49  ;;  %v11017_v54 = vsel %vm89_vm1, %v11004_v31, 0.0 }
0x3a8f   :  { %11021 = vadd.xlane.f32.xlu0 %v11020_v51 }
0x3a93   :  { %11018 = vadd.xlane.f32.xlu0 %v11017_v54 }
0x3a97   :  { %11277 = vadd.xlane.f32.xlu0 %v11276_v43 }
0x3ac7   :  { %v11272_v55 = vpop.xlane.xlu0 %11271 }
0x3ac8   :  { %11280 = vst.msk [vmem:[%s18669_s23 + $0x8] sm:$0xff] %vm11027_vm11, %v11272_v55 }
0x3acb   :  { %v11269_v22 = vpop.xlane.xlu1 %11268 }
0x3acc   :  { %11279 = vst.msk [vmem:[%s18669_s23] sm:$0xff] %vm11027_vm11, %v11269_v22 }
0x3b17   :  { %v11016_v50 = vpop.xlane.xlu1 %11015 }
0x3b18   :  { %v11024_v3 = vmul.f32 0.05, %v11016_v50  ;;  %v11013_v37 = vpop.xlane.xlu0 %11012 }
0x3b19   :  { %v11023_v2 = vmul.f32 0.05, %v11013_v37 }
0x3b1a   :  { %11029 = vst.msk [vmem:[%s18670_s22 + $0x8] sm:$0xff] %vm11027_vm11, %v11024_v3 }
0x3b1b   :  { %11028 = vst.msk [vmem:[%s18670_s22] sm:$0xff] %vm11027_vm11, %v11023_v2  ;;  %v11275_v15 = vpop.xlane.xlu1 %11274 }
0x3b1c   :  { %11281 = vst.msk [vmem:[%s18669_s23 + $0x10] sm:$0xff] %vm11027_vm11, %v11275_v15  ;;  %v11022_v61 = vpop.xlane.xlu0 %11021 }
0x3b1d   :  { %v11026_v4 = vmul.f32 0.05, %v11022_v61 }
0x3b1f   :  { %11031 = vst.msk [vmem:[%s18670_s22 + $0x18] sm:$0xff] %vm11027_vm11, %v11026_v4 }
0x3b20   :  { %v11019_v5 = vpop.xlane.xlu0 %11018 }
0x3b21   :  { %v11025_v21 = vmul.f32 0.05, %v11019_v5 }
0x3b23   :  { %11030 = vst.msk [vmem:[%s18670_s22 + $0x10] sm:$0xff] %vm11027_vm11, %v11025_v21 }
0x3b24   :  { %v11278_v46 = vpop.xlane.xlu0 %11277 }
0x3b25   :  { %11282 = vst.msk [vmem:[%s18669_s23 + $0x18] sm:$0xff] %vm11027_vm11, %v11278_v46 }

</bundles_post_ra>
